<compile_context>
chip_gen: v6e
topology: v6e:2x2x1
jax: 0.10.0
libtpu: 0.0.40
codegen_flags: <defaults>
</compile_context>

<pallas_src>
import functools
import math

import jax
import jax.numpy as jnp
from jax.experimental import pallas as pl
from jax.experimental.pallas import tpu as pltpu

LANE = 128


def _round_up(x, m):
    return (x + m - 1) // m * m


def _pick_row_tile(h, target):
    t = min(h, target)
    while h % t:
        t -= 1
    return t


def _conv3x3_kernel(xp_ref, w_ref, b_ref, o_ref, acc_ref, *, th, W, act):
    """One (batch, cout-tile, row-tile) grid step.

    xp_ref : (1, H+2, W+2, Cin)  zero-padded full image for this batch (bf16)
    w_ref  : (9, Cin, TC)        taps ordered (dy, dx) row-major (bf16)
    b_ref  : (1, TC)             f32 bias slice for this cout tile
    o_ref  : (1, th, W, TC)      output tile
    acc_ref: (th, W, TC)         f32 VMEM scratch accumulator
    """
    row = pl.program_id(2)
    r0 = pl.multiple_of(row * th, th)
    # Rows r0 .. r0+th+1 of the padded image; dynamic slice on a major axis.
    xrows = xp_ref[0, pl.ds(r0, th + 2), :, :]            # (th+2, W+2, Cin)

    first = True
    for dx in range(3):
        # Hoist the sublane-shifting width slice out of the dy loop.
        xdx = xrows[:, dx:dx + W, :]                      # (th+2, W, Cin)
        for dy in range(3):
            patch = xdx[dy:dy + th]                       # (th, W, Cin) major-axis slice
            tap = jax.lax.dot_general(
                patch, w_ref[dy * 3 + dx],
                (((2,), (0,)), ((), ())),
                preferred_element_type=jnp.float32)       # MXU, f32 accumulate
            if first:
                acc_ref[...] = tap
                first = False
            else:
                acc_ref[...] += tap

    out = acc_ref[...] + b_ref[...]                       # (1, TC) broadcasts
    if act == "relu":
        out = jnp.maximum(out, 0.0)
    elif act == "sigmoid":
        out = jax.nn.sigmoid(out)
    o_ref[0] = out.astype(o_ref.dtype)


def conv3x3(x_nhwc, w, b, act="none", out_dtype=None, row_tile=8):
    """3x3 / stride 1 / pad 1 convolution + bias + optional activation.

    x_nhwc : (B, H, W, Cin)
    w      : (3, 3, Cin, Cout)
    b      : (Cout,)
    """
    B, H, W, Cin = x_nhwc.shape
    Cout = w.shape[-1]
    if out_dtype is None:
        out_dtype = x_nhwc.dtype

    # Lane-dense output channels: pad Cout to a multiple of 128 so stores are
    # unmasked and the MXU N dimension is fully used; slice the pad off after.
    Cout_p = _round_up(Cout, LANE)
    if Cout_p != Cout:
        w = jnp.pad(w, ((0, 0), (0, 0), (0, 0), (0, Cout_p - Cout)))
        b = jnp.pad(b, ((0, Cout_p - Cout),))

    tcout = 256 if Cout_p % 256 == 0 else LANE
    th = _pick_row_tile(H, row_tile)
    n_rows = H // th
    n_cout = Cout_p // tcout

    # bf16 operands for MXU throughput; accumulation stays f32 in the kernel.
    # TODO(synk): move the zero-padding (and the whole conv stack) inside the
    # kernel pipeline (row-halo DMA into a zeroed VMEM scratch) to avoid the
    # extra padded HBM copy per layer.
    xp = jnp.pad(x_nhwc, ((0, 0), (1, 1), (1, 1), (0, 0))).astype(jnp.bfloat16)
    w9 = w.reshape(9, Cin, Cout_p).astype(jnp.bfloat16)
    b2 = b.reshape(1, Cout_p).astype(jnp.float32)

    flops = 2 * B * H * W * 9 * Cin * Cout_p
    bytes_accessed = (xp.size * 2 + w9.size * 2 + b2.size * 4
                      + B * H * W * Cout_p * jnp.dtype(out_dtype).itemsize)
    cost = pl.CostEstimate(
        flops=flops,
        transcendentals=(B * H * W * Cout_p if act == "sigmoid" else 0),
        bytes_accessed=bytes_accessed)

    kernel = functools.partial(_conv3x3_kernel, th=th, W=W, act=act)
    out = pl.pallas_call(
        kernel,
        out_shape=jax.ShapeDtypeStruct((B, H, W, Cout_p), out_dtype),
        grid_spec=pltpu.PrefetchScalarGridSpec(
            num_scalar_prefetch=0,
            # Inner axis = rows: weight/bias block index is constant across it
            # (weights DMA'd once per cout tile, input image once per batch).
            grid=(B, n_cout, n_rows),
            in_specs=[
                pl.BlockSpec((1, H + 2, W + 2, Cin),
                             lambda bb, j, i: (bb, 0, 0, 0)),
                pl.BlockSpec((9, Cin, tcout), lambda bb, j, i: (0, 0, j)),
                pl.BlockSpec((1, tcout), lambda bb, j, i: (0, j)),
            ],
            out_specs=pl.BlockSpec((1, th, W, tcout),
                                   lambda bb, j, i: (bb, i, 0, j)),
            scratch_shapes=[pltpu.VMEM((th, W, tcout), jnp.float32)],
        ),
        compiler_params=pltpu.CompilerParams(
            dimension_semantics=("parallel", "parallel", "parallel"),
            vmem_limit_bytes=48 * 1024 * 1024),
        cost_estimate=cost,
    )(xp, w9, b2)

    if Cout_p != Cout:
        out = out[..., :Cout]
    return out


def _normal_conv_params(key, cin, cout, std=0.01, bias_val=0.0):
    w = std * jax.random.normal(key, (3, 3, cin, cout), jnp.float32)
    b = jnp.full((cout,), bias_val, jnp.float32)
    return w, b


def _retina_forward_single(params, x_nchw, *, num_anchors, num_classes):
    # NCHW -> NHWC for the conv kernel.
    x = jnp.transpose(x_nchw, (0, 2, 3, 1)).astype(jnp.float32)
    cls_feat = x
    reg_feat = x
    # Trunk convs: bf16 inter-layer activations (f32 accumulation in-kernel).
    for (w, b) in params["cls_convs"]:
        cls_feat = conv3x3(cls_feat, w, b, act="relu", out_dtype=jnp.bfloat16)
    for (w, b) in params["reg_convs"]:
        reg_feat = conv3x3(reg_feat, w, b, act="relu", out_dtype=jnp.bfloat16)

    # retina_cls + sigmoid fused into the conv kernel.
    wc, bc = params["retina_cls"]
    cls_score = conv3x3(cls_feat, wc, bc, act="sigmoid",
                        out_dtype=jnp.float32)                 # (B,H,W,A*K)
    B, H, W, _ = cls_score.shape
    # permute(0,2,3,1) of NCHW == NHWC already; then view(B, -1, num_classes)
    cls_score = cls_score.reshape(B, H * W * num_anchors, num_classes)

    wr, br = params["retina_reg"]
    bbox_pred = conv3x3(reg_feat, wr, br, act="none",
                        out_dtype=jnp.float32)                 # (B,H,W,A*4)
    bbox_pred = bbox_pred.reshape(B, H * W * num_anchors, 4)
    return cls_score, bbox_pred


class RetinaHeadPallas:
    """Pallas re-implementation of RetinaHead.forward."""

    def __init__(self, num_classes, in_channels, feat_channels=256,
                 anchor_scales=(8, 16, 32), anchor_ratios=(0.5, 1.0, 2.0),
                 stacked_convs=4, key=None):
        if key is None:
            key = jax.random.PRNGKey(0)
        self.num_classes = num_classes
        self.cls_out_channels = num_classes
        self.num_anchors = len(anchor_ratios) * len(anchor_scales)  # 9
        self.in_channels = in_channels
        self.feat_channels = feat_channels
        self.stacked_convs = stacked_convs

        keys = jax.random.split(key, 2 * stacked_convs + 2)
        cls_convs, reg_convs = [], []
        for i in range(stacked_convs):
            chn = in_channels if i == 0 else feat_channels
            cls_convs.append(_normal_conv_params(keys[i], chn, feat_channels))
            reg_convs.append(
                _normal_conv_params(keys[stacked_convs + i], chn, feat_channels))
        # retina_cls bias follows bias_init_with_prob(0.25) = -log((1-p)/p)
        bias_cls = -math.log((1.0 - 0.25) / 0.25)
        retina_cls = _normal_conv_params(
            keys[-2], feat_channels, self.num_anchors * self.cls_out_channels,
            bias_val=bias_cls)
        retina_reg = _normal_conv_params(
            keys[-1], feat_channels, self.num_anchors * 4)

        self.params = {
            "cls_convs": cls_convs,
            "reg_convs": reg_convs,
            "retina_cls": retina_cls,
            "retina_reg": retina_reg,
        }
        self._fwd_single = jax.jit(functools.partial(
            _retina_forward_single,
            num_anchors=self.num_anchors,
            num_classes=self.cls_out_channels))

    def forward_single(self, x_nchw):
        return self._fwd_single(self.params, x_nchw)

    def forward(self, feats):
        results = [self.forward_single(f) for f in feats]
        cls_scores = [r[0] for r in results]
        bbox_preds = [r[1] for r in results]
        return cls_scores, bbox_preds


if __name__ == "__main__":
    key = jax.random.PRNGKey(0)
    k1, k2, kp = jax.random.split(key, 3)

    num_classes = 4
    in_channels = 4
    feat_channels = 32   # kept small for the synthetic test (module default 256)

    head = RetinaHeadPallas(num_classes=num_classes, in_channels=in_channels,
                            feat_channels=feat_channels, key=kp)

    # Two pyramid levels (NCHW, like PyTorch inputs)
    feats = [
        jax.random.normal(k1, (2, in_channels, 16, 16), jnp.float32),
        jax.random.normal(k2, (2, in_channels, 8, 8), jnp.float32),
    ]

    cls_scores, bbox_preds = head.forward(feats)
    cls_scores = [jax.block_until_ready(c) for c in cls_scores]
    bbox_preds = [jax.block_until_ready(b) for b in bbox_preds]

    # sanity: shapes match PyTorch semantics (B, H*W*num_anchors, C)
    assert cls_scores[0].shape == (2, 16 * 16 * 9, num_classes)
    assert bbox_preds[0].shape == (2, 16 * 16 * 9, 4)
    assert cls_scores[1].shape == (2, 8 * 8 * 9, num_classes)
    assert bbox_preds[1].shape == (2, 8 * 8 * 9, 4)
    assert bool(jnp.all((cls_scores[0] >= 0) & (cls_scores[0] <= 1)))
    assert bool(jnp.all(jnp.isfinite(bbox_preds[0])))

    print("KERNEL_OK")
</pallas_src>

<mosaic_0001>
module attributes {stable_mosaic.version = 11 : i64} {
  func.func @_conv3x3_kernel(%arg0: i32, %arg1: i32, %arg2: i32, %arg3: memref<1x18x18x4xbf16, #tpu.memory_space<vmem>>, %arg4: memref<9x4x128xbf16, #tpu.memory_space<vmem>>, %arg5: memref<1x128xf32, #tpu.memory_space<vmem>>, %arg6: memref<1x8x16x128xbf16, #tpu.memory_space<vmem>>, %arg7: memref<8x16x128xf32, #tpu.memory_space<vmem>>) attributes {dimension_semantics = [#tpu.dimension_semantics<parallel>, #tpu.dimension_semantics<parallel>, #tpu.dimension_semantics<parallel>], iteration_bounds = array<i64: 2, 1, 2>, scalar_prefetch = 0 : i64, scratch_operands = 1 : i64, tpu.core_type = #tpu.core_type<tc>, window_params = [{transform_indices = @transform_0, window_bounds = array<i64: 1, 18, 18, 4>}, {transform_indices = @transform_1, window_bounds = array<i64: 9, 4, 128>}, {transform_indices = @transform_2, window_bounds = array<i64: 1, 128>}, {transform_indices = @transform_3, window_bounds = array<i64: 1, 8, 16, 128>}]} {
    %c8_i32 = arith.constant 8 : i32
    %0 = arith.muli %arg2, %c8_i32 : i32
    %1 = tpu.assume_multiple %0, 8 : i32
    %c0 = arith.constant 0 : index
    %2 = arith.index_cast %1 : i32 to index
    %c0_0 = arith.constant 0 : index
    %c0_1 = arith.constant 0 : index
    %3 = vector.load %arg3[%c0, %2, %c0_0, %c0_1] : memref<1x18x18x4xbf16, #tpu.memory_space<vmem>>, vector<1x10x18x4xbf16>
    %4 = vector.shape_cast %3 : vector<1x10x18x4xbf16> to vector<10x18x4xbf16>
    %5 = vector.extract_strided_slice %4 {offsets = [0, 0, 0], sizes = [10, 16, 4], strides = [1, 1, 1]} : vector<10x18x4xbf16> to vector<10x16x4xbf16>
    %6 = vector.extract_strided_slice %5 {offsets = [0, 0, 0], sizes = [8, 16, 4], strides = [1, 1, 1]} : vector<10x16x4xbf16> to vector<8x16x4xbf16>
    %c0_2 = arith.constant 0 : index
    %c0_3 = arith.constant 0 : index
    %c0_4 = arith.constant 0 : index
    %7 = vector.load %arg4[%c0_2, %c0_3, %c0_4] : memref<9x4x128xbf16, #tpu.memory_space<vmem>>, vector<1x4x128xbf16>
    %8 = vector.shape_cast %7 : vector<1x4x128xbf16> to vector<4x128xbf16>
    %cst = arith.constant dense<0.000000e+00> : vector<8x16x128xf32>
    %9 = tpu.matmul %6, %8, %cst {dimension_numbers = #tpu.dot_dimension_numbers<[2], [0], [0, 1], [1], [0, 0, 0, 1, 1, 1], [], []>} : vector<8x16x4xbf16>, vector<4x128xbf16>, vector<8x16x128xf32> -> vector<8x16x128xf32>
    %c0_5 = arith.constant 0 : index
    %c0_6 = arith.constant 0 : index
    %c0_7 = arith.constant 0 : index
    %10 = vector.load %arg7[%c0_5, %c0_6, %c0_7] : memref<8x16x128xf32, #tpu.memory_space<vmem>>, vector<8x16x128xf32>
    tpu.vector_store %arg7[%c0_5, %c0_6, %c0_7], %9 {strides = array<i32>} : memref<8x16x128xf32, #tpu.memory_space<vmem>>, vector<8x16x128xf32>,
    %11 = vector.extract_strided_slice %5 {offsets = [1, 0, 0], sizes = [8, 16, 4], strides = [1, 1, 1]} : vector<10x16x4xbf16> to vector<8x16x4xbf16>
    %c3 = arith.constant 3 : index
    %c0_8 = arith.constant 0 : index
    %c0_9 = arith.constant 0 : index
    %12 = vector.load %arg4[%c3, %c0_8, %c0_9] : memref<9x4x128xbf16, #tpu.memory_space<vmem>>, vector<1x4x128xbf16>
    %13 = vector.shape_cast %12 : vector<1x4x128xbf16> to vector<4x128xbf16>
    %cst_10 = arith.constant dense<0.000000e+00> : vector<8x16x128xf32>
    %14 = tpu.matmul %11, %13, %cst_10 {dimension_numbers = #tpu.dot_dimension_numbers<[2], [0], [0, 1], [1], [0, 0, 0, 1, 1, 1], [], []>} : vector<8x16x4xbf16>, vector<4x128xbf16>, vector<8x16x128xf32> -> vector<8x16x128xf32>
    %c0_11 = arith.constant 0 : index
    %c0_12 = arith.constant 0 : index
    %c0_13 = arith.constant 0 : index
    %15 = vector.load %arg7[%c0_11, %c0_12, %c0_13] : memref<8x16x128xf32, #tpu.memory_space<vmem>>, vector<8x16x128xf32>
    %16 = arith.addf %15, %14 : vector<8x16x128xf32>
    %c0_14 = arith.constant 0 : index
    %c0_15 = arith.constant 0 : index
    %c0_16 = arith.constant 0 : index
    %17 = vector.load %arg7[%c0_14, %c0_15, %c0_16] : memref<8x16x128xf32, #tpu.memory_space<vmem>>, vector<8x16x128xf32>
    tpu.vector_store %arg7[%c0_14, %c0_15, %c0_16], %16 {strides = array<i32>} : memref<8x16x128xf32, #tpu.memory_space<vmem>>, vector<8x16x128xf32>,
    %18 = vector.extract_strided_slice %5 {offsets = [2, 0, 0], sizes = [8, 16, 4], strides = [1, 1, 1]} : vector<10x16x4xbf16> to vector<8x16x4xbf16>
    %c6 = arith.constant 6 : index
    %c0_17 = arith.constant 0 : index
    %c0_18 = arith.constant 0 : index
    %19 = vector.load %arg4[%c6, %c0_17, %c0_18] : memref<9x4x128xbf16, #tpu.memory_space<vmem>>, vector<1x4x128xbf16>
    %20 = vector.shape_cast %19 : vector<1x4x128xbf16> to vector<4x128xbf16>
    %cst_19 = arith.constant dense<0.000000e+00> : vector<8x16x128xf32>
    %21 = tpu.matmul %18, %20, %cst_19 {dimension_numbers = #tpu.dot_dimension_numbers<[2], [0], [0, 1], [1], [0, 0, 0, 1, 1, 1], [], []>} : vector<8x16x4xbf16>, vector<4x128xbf16>, vector<8x16x128xf32> -> vector<8x16x128xf32>
    %c0_20 = arith.constant 0 : index
    %c0_21 = arith.constant 0 : index
    %c0_22 = arith.constant 0 : index
    %22 = vector.load %arg7[%c0_20, %c0_21, %c0_22] : memref<8x16x128xf32, #tpu.memory_space<vmem>>, vector<8x16x128xf32>
    %23 = arith.addf %22, %21 : vector<8x16x128xf32>
    %c0_23 = arith.constant 0 : index
    %c0_24 = arith.constant 0 : index
    %c0_25 = arith.constant 0 : index
    %24 = vector.load %arg7[%c0_23, %c0_24, %c0_25] : memref<8x16x128xf32, #tpu.memory_space<vmem>>, vector<8x16x128xf32>
    tpu.vector_store %arg7[%c0_23, %c0_24, %c0_25], %23 {strides = array<i32>} : memref<8x16x128xf32, #tpu.memory_space<vmem>>, vector<8x16x128xf32>,
    %25 = vector.extract_strided_slice %4 {offsets = [0, 1, 0], sizes = [10, 16, 4], strides = [1, 1, 1]} : vector<10x18x4xbf16> to vector<10x16x4xbf16>
    %26 = vector.extract_strided_slice %25 {offsets = [0, 0, 0], sizes = [8, 16, 4], strides = [1, 1, 1]} : vector<10x16x4xbf16> to vector<8x16x4xbf16>
    %c1 = arith.constant 1 : index
    %c0_26 = arith.constant 0 : index
    %c0_27 = arith.constant 0 : index
    %27 = vector.load %arg4[%c1, %c0_26, %c0_27] : memref<9x4x128xbf16, #tpu.memory_space<vmem>>, vector<1x4x128xbf16>
    %28 = vector.shape_cast %27 : vector<1x4x128xbf16> to vector<4x128xbf16>
    %cst_28 = arith.constant dense<0.000000e+00> : vector<8x16x128xf32>
    %29 = tpu.matmul %26, %28, %cst_28 {dimension_numbers = #tpu.dot_dimension_numbers<[2], [0], [0, 1], [1], [0, 0, 0, 1, 1, 1], [], []>} : vector<8x16x4xbf16>, vector<4x128xbf16>, vector<8x16x128xf32> -> vector<8x16x128xf32>
    %c0_29 = arith.constant 0 : index
    %c0_30 = arith.constant 0 : index
    %c0_31 = arith.constant 0 : index
    %30 = vector.load %arg7[%c0_29, %c0_30, %c0_31] : memref<8x16x128xf32, #tpu.memory_space<vmem>>, vector<8x16x128xf32>
    %31 = arith.addf %30, %29 : vector<8x16x128xf32>
    %c0_32 = arith.constant 0 : index
    %c0_33 = arith.constant 0 : index
    %c0_34 = arith.constant 0 : index
    %32 = vector.load %arg7[%c0_32, %c0_33, %c0_34] : memref<8x16x128xf32, #tpu.memory_space<vmem>>, vector<8x16x128xf32>
    tpu.vector_store %arg7[%c0_32, %c0_33, %c0_34], %31 {strides = array<i32>} : memref<8x16x128xf32, #tpu.memory_space<vmem>>, vector<8x16x128xf32>,
    %33 = vector.extract_strided_slice %25 {offsets = [1, 0, 0], sizes = [8, 16, 4], strides = [1, 1, 1]} : vector<10x16x4xbf16> to vector<8x16x4xbf16>
    %c4 = arith.constant 4 : index
    %c0_35 = arith.constant 0 : index
    %c0_36 = arith.constant 0 : index
    %34 = vector.load %arg4[%c4, %c0_35, %c0_36] : memref<9x4x128xbf16, #tpu.memory_space<vmem>>, vector<1x4x128xbf16>
    %35 = vector.shape_cast %34 : vector<1x4x128xbf16> to vector<4x128xbf16>
    %cst_37 = arith.constant dense<0.000000e+00> : vector<8x16x128xf32>
    %36 = tpu.matmul %33, %35, %cst_37 {dimension_numbers = #tpu.dot_dimension_numbers<[2], [0], [0, 1], [1], [0, 0, 0, 1, 1, 1], [], []>} : vector<8x16x4xbf16>, vector<4x128xbf16>, vector<8x16x128xf32> -> vector<8x16x128xf32>
    %c0_38 = arith.constant 0 : index
    %c0_39 = arith.constant 0 : index
    %c0_40 = arith.constant 0 : index
    %37 = vector.load %arg7[%c0_38, %c0_39, %c0_40] : memref<8x16x128xf32, #tpu.memory_space<vmem>>, vector<8x16x128xf32>
    %38 = arith.addf %37, %36 : vector<8x16x128xf32>
    %c0_41 = arith.constant 0 : index
    %c0_42 = arith.constant 0 : index
    %c0_43 = arith.constant 0 : index
    %39 = vector.load %arg7[%c0_41, %c0_42, %c0_43] : memref<8x16x128xf32, #tpu.memory_space<vmem>>, vector<8x16x128xf32>
    tpu.vector_store %arg7[%c0_41, %c0_42, %c0_43], %38 {strides = array<i32>} : memref<8x16x128xf32, #tpu.memory_space<vmem>>, vector<8x16x128xf32>,
    %40 = vector.extract_strided_slice %25 {offsets = [2, 0, 0], sizes = [8, 16, 4], strides = [1, 1, 1]} : vector<10x16x4xbf16> to vector<8x16x4xbf16>
    %c7 = arith.constant 7 : index
    %c0_44 = arith.constant 0 : index
    %c0_45 = arith.constant 0 : index
    %41 = vector.load %arg4[%c7, %c0_44, %c0_45] : memref<9x4x128xbf16, #tpu.memory_space<vmem>>, vector<1x4x128xbf16>
    %42 = vector.shape_cast %41 : vector<1x4x128xbf16> to vector<4x128xbf16>
    %cst_46 = arith.constant dense<0.000000e+00> : vector<8x16x128xf32>
    %43 = tpu.matmul %40, %42, %cst_46 {dimension_numbers = #tpu.dot_dimension_numbers<[2], [0], [0, 1], [1], [0, 0, 0, 1, 1, 1], [], []>} : vector<8x16x4xbf16>, vector<4x128xbf16>, vector<8x16x128xf32> -> vector<8x16x128xf32>
    %c0_47 = arith.constant 0 : index
    %c0_48 = arith.constant 0 : index
    %c0_49 = arith.constant 0 : index
    %44 = vector.load %arg7[%c0_47, %c0_48, %c0_49] : memref<8x16x128xf32, #tpu.memory_space<vmem>>, vector<8x16x128xf32>
    %45 = arith.addf %44, %43 : vector<8x16x128xf32>
    %c0_50 = arith.constant 0 : index
    %c0_51 = arith.constant 0 : index
    %c0_52 = arith.constant 0 : index
    %46 = vector.load %arg7[%c0_50, %c0_51, %c0_52] : memref<8x16x128xf32, #tpu.memory_space<vmem>>, vector<8x16x128xf32>
    tpu.vector_store %arg7[%c0_50, %c0_51, %c0_52], %45 {strides = array<i32>} : memref<8x16x128xf32, #tpu.memory_space<vmem>>, vector<8x16x128xf32>,
    %47 = vector.extract_strided_slice %4 {offsets = [0, 2, 0], sizes = [10, 16, 4], strides = [1, 1, 1]} : vector<10x18x4xbf16> to vector<10x16x4xbf16>
    %48 = vector.extract_strided_slice %47 {offsets = [0, 0, 0], sizes = [8, 16, 4], strides = [1, 1, 1]} : vector<10x16x4xbf16> to vector<8x16x4xbf16>
    %c2 = arith.constant 2 : index
    %c0_53 = arith.constant 0 : index
    %c0_54 = arith.constant 0 : index
    %49 = vector.load %arg4[%c2, %c0_53, %c0_54] : memref<9x4x128xbf16, #tpu.memory_space<vmem>>, vector<1x4x128xbf16>
    %50 = vector.shape_cast %49 : vector<1x4x128xbf16> to vector<4x128xbf16>
    %cst_55 = arith.constant dense<0.000000e+00> : vector<8x16x128xf32>
    %51 = tpu.matmul %48, %50, %cst_55 {dimension_numbers = #tpu.dot_dimension_numbers<[2], [0], [0, 1], [1], [0, 0, 0, 1, 1, 1], [], []>} : vector<8x16x4xbf16>, vector<4x128xbf16>, vector<8x16x128xf32> -> vector<8x16x128xf32>
    %c0_56 = arith.constant 0 : index
    %c0_57 = arith.constant 0 : index
    %c0_58 = arith.constant 0 : index
    %52 = vector.load %arg7[%c0_56, %c0_57, %c0_58] : memref<8x16x128xf32, #tpu.memory_space<vmem>>, vector<8x16x128xf32>
    %53 = arith.addf %52, %51 : vector<8x16x128xf32>
    %c0_59 = arith.constant 0 : index
    %c0_60 = arith.constant 0 : index
    %c0_61 = arith.constant 0 : index
    %54 = vector.load %arg7[%c0_59, %c0_60, %c0_61] : memref<8x16x128xf32, #tpu.memory_space<vmem>>, vector<8x16x128xf32>
    tpu.vector_store %arg7[%c0_59, %c0_60, %c0_61], %53 {strides = array<i32>} : memref<8x16x128xf32, #tpu.memory_space<vmem>>, vector<8x16x128xf32>,
    %55 = vector.extract_strided_slice %47 {offsets = [1, 0, 0], sizes = [8, 16, 4], strides = [1, 1, 1]} : vector<10x16x4xbf16> to vector<8x16x4xbf16>
    %c5 = arith.constant 5 : index
    %c0_62 = arith.constant 0 : index
    %c0_63 = arith.constant 0 : index
    %56 = vector.load %arg4[%c5, %c0_62, %c0_63] : memref<9x4x128xbf16, #tpu.memory_space<vmem>>, vector<1x4x128xbf16>
    %57 = vector.shape_cast %56 : vector<1x4x128xbf16> to vector<4x128xbf16>
    %cst_64 = arith.constant dense<0.000000e+00> : vector<8x16x128xf32>
    %58 = tpu.matmul %55, %57, %cst_64 {dimension_numbers = #tpu.dot_dimension_numbers<[2], [0], [0, 1], [1], [0, 0, 0, 1, 1, 1], [], []>} : vector<8x16x4xbf16>, vector<4x128xbf16>, vector<8x16x128xf32> -> vector<8x16x128xf32>
    %c0_65 = arith.constant 0 : index
    %c0_66 = arith.constant 0 : index
    %c0_67 = arith.constant 0 : index
    %59 = vector.load %arg7[%c0_65, %c0_66, %c0_67] : memref<8x16x128xf32, #tpu.memory_space<vmem>>, vector<8x16x128xf32>
    %60 = arith.addf %59, %58 : vector<8x16x128xf32>
    %c0_68 = arith.constant 0 : index
    %c0_69 = arith.constant 0 : index
    %c0_70 = arith.constant 0 : index
    %61 = vector.load %arg7[%c0_68, %c0_69, %c0_70] : memref<8x16x128xf32, #tpu.memory_space<vmem>>, vector<8x16x128xf32>
    tpu.vector_store %arg7[%c0_68, %c0_69, %c0_70], %60 {strides = array<i32>} : memref<8x16x128xf32, #tpu.memory_space<vmem>>, vector<8x16x128xf32>,
    %62 = vector.extract_strided_slice %47 {offsets = [2, 0, 0], sizes = [8, 16, 4], strides = [1, 1, 1]} : vector<10x16x4xbf16> to vector<8x16x4xbf16>
    %c8 = arith.constant 8 : index
    %c0_71 = arith.constant 0 : index
    %c0_72 = arith.constant 0 : index
    %63 = vector.load %arg4[%c8, %c0_71, %c0_72] : memref<9x4x128xbf16, #tpu.memory_space<vmem>>, vector<1x4x128xbf16>
    %64 = vector.shape_cast %63 : vector<1x4x128xbf16> to vector<4x128xbf16>
    %cst_73 = arith.constant dense<0.000000e+00> : vector<8x16x128xf32>
    %65 = tpu.matmul %62, %64, %cst_73 {dimension_numbers = #tpu.dot_dimension_numbers<[2], [0], [0, 1], [1], [0, 0, 0, 1, 1, 1], [], []>} : vector<8x16x4xbf16>, vector<4x128xbf16>, vector<8x16x128xf32> -> vector<8x16x128xf32>
    %c0_74 = arith.constant 0 : index
    %c0_75 = arith.constant 0 : index
    %c0_76 = arith.constant 0 : index
    %66 = vector.load %arg7[%c0_74, %c0_75, %c0_76] : memref<8x16x128xf32, #tpu.memory_space<vmem>>, vector<8x16x128xf32>
    %67 = arith.addf %66, %65 : vector<8x16x128xf32>
    %c0_77 = arith.constant 0 : index
    %c0_78 = arith.constant 0 : index
    %c0_79 = arith.constant 0 : index
    %68 = vector.load %arg7[%c0_77, %c0_78, %c0_79] : memref<8x16x128xf32, #tpu.memory_space<vmem>>, vector<8x16x128xf32>
    tpu.vector_store %arg7[%c0_77, %c0_78, %c0_79], %67 {strides = array<i32>} : memref<8x16x128xf32, #tpu.memory_space<vmem>>, vector<8x16x128xf32>,
    %c0_80 = arith.constant 0 : index
    %c0_81 = arith.constant 0 : index
    %c0_82 = arith.constant 0 : index
    %69 = vector.load %arg7[%c0_80, %c0_81, %c0_82] : memref<8x16x128xf32, #tpu.memory_space<vmem>>, vector<8x16x128xf32>
    %c0_83 = arith.constant 0 : index
    %c0_84 = arith.constant 0 : index
    %70 = vector.load %arg5[%c0_83, %c0_84] : memref<1x128xf32, #tpu.memory_space<vmem>>, vector<1x128xf32>
    %71 = vector.shape_cast %70 : vector<1x128xf32> to vector<1x1x128xf32>
    %72 = vector.broadcast %71 : vector<1x1x128xf32> to vector<8x16x128xf32>
    %73 = arith.addf %69, %72 : vector<8x16x128xf32>
    %cst_85 = arith.constant 0.000000e+00 : f32
    %74 = vector.broadcast %cst_85 : f32 to vector<8x16x128xf32>
    %75 = arith.maximumf %73, %74 : vector<8x16x128xf32>
    %76 = arith.truncf %75 : vector<8x16x128xf32> to vector<8x16x128xbf16>
    %c0_86 = arith.constant 0 : index
    %c0_87 = arith.constant 0 : index
    %c0_88 = arith.constant 0 : index
    %c0_89 = arith.constant 0 : index
    %77 = vector.load %arg6[%c0_86, %c0_87, %c0_88, %c0_89] : memref<1x8x16x128xbf16, #tpu.memory_space<vmem>>, vector<1x8x16x128xbf16>
    %78 = vector.shape_cast %77 : vector<1x8x16x128xbf16> to vector<8x16x128xbf16>
    %79 = vector.shape_cast %76 : vector<8x16x128xbf16> to vector<1x8x16x128xbf16>
    tpu.vector_store %arg6[%c0_86, %c0_87, %c0_88, %c0_89], %79 {strides = array<i32>} : memref<1x8x16x128xbf16, #tpu.memory_space<vmem>>, vector<1x8x16x128xbf16>,
    return
  }
  func.func @transform_0(%arg0: i32, %arg1: i32, %arg2: i32) -> (i32, i32, i32, i32) {
    %c0_i32 = arith.constant 0 : i32
    %c0_i32_0 = arith.constant 0 : i32
    %c0_i32_1 = arith.constant 0 : i32
    %c0_i32_2 = arith.constant 0 : i32
    return %arg0, %c0_i32, %c0_i32_0, %c0_i32_1 : i32, i32, i32, i32
  }
  func.func @transform_1(%arg0: i32, %arg1: i32, %arg2: i32) -> (i32, i32, i32) {
    %c0_i32 = arith.constant 0 : i32
    %c0_i32_0 = arith.constant 0 : i32
    %c0_i32_1 = arith.constant 0 : i32
    return %c0_i32, %c0_i32_0, %arg1 : i32, i32, i32
  }
  func.func @transform_2(%arg0: i32, %arg1: i32, %arg2: i32) -> (i32, i32) {
    %c0_i32 = arith.constant 0 : i32
    %c0_i32_0 = arith.constant 0 : i32
    return %c0_i32, %arg1 : i32, i32
  }
  func.func @transform_3(%arg0: i32, %arg1: i32, %arg2: i32) -> (i32, i32, i32, i32) {
    %c0_i32 = arith.constant 0 : i32
    %c0_i32_0 = arith.constant 0 : i32
    return %arg0, %arg2, %c0_i32, %arg1 : i32, i32, i32, i32
  }
}

module attributes {stable_mosaic.version = 11 : i64} {
  func.func @_conv3x3_kernel(%arg0: i32, %arg1: i32, %arg2: i32, %arg3: memref<1x18x18x32xbf16, #tpu.memory_space<vmem>>, %arg4: memref<9x32x128xbf16, #tpu.memory_space<vmem>>, %arg5: memref<1x128xf32, #tpu.memory_space<vmem>>, %arg6: memref<1x8x16x128xbf16, #tpu.memory_space<vmem>>, %arg7: memref<8x16x128xf32, #tpu.memory_space<vmem>>) attributes {dimension_semantics = [#tpu.dimension_semantics<parallel>, #tpu.dimension_semantics<parallel>, #tpu.dimension_semantics<parallel>], iteration_bounds = array<i64: 2, 1, 2>, scalar_prefetch = 0 : i64, scratch_operands = 1 : i64, tpu.core_type = #tpu.core_type<tc>, window_params = [{transform_indices = @transform_0, window_bounds = array<i64: 1, 18, 18, 32>}, {transform_indices = @transform_1, window_bounds = array<i64: 9, 32, 128>}, {transform_indices = @transform_2, window_bounds = array<i64: 1, 128>}, {transform_indices = @transform_3, window_bounds = array<i64: 1, 8, 16, 128>}]} {
    %c8_i32 = arith.constant 8 : i32
    %0 = arith.muli %arg2, %c8_i32 : i32
    %1 = tpu.assume_multiple %0, 8 : i32
    %c0 = arith.constant 0 : index
    %2 = arith.index_cast %1 : i32 to index
    %c0_0 = arith.constant 0 : index
    %c0_1 = arith.constant 0 : index
    %3 = vector.load %arg3[%c0, %2, %c0_0, %c0_1] : memref<1x18x18x32xbf16, #tpu.memory_space<vmem>>, vector<1x10x18x32xbf16>
    %4 = vector.shape_cast %3 : vector<1x10x18x32xbf16> to vector<10x18x32xbf16>
    %5 = vector.extract_strided_slice %4 {offsets = [0, 0, 0], sizes = [10, 16, 32], strides = [1, 1, 1]} : vector<10x18x32xbf16> to vector<10x16x32xbf16>
    %6 = vector.extract_strided_slice %5 {offsets = [0, 0, 0], sizes = [8, 16, 32], strides = [1, 1, 1]} : vector<10x16x32xbf16> to vector<8x16x32xbf16>
    %c0_2 = arith.constant 0 : index
    %c0_3 = arith.constant 0 : index
    %c0_4 = arith.constant 0 : index
    %7 = vector.load %arg4[%c0_2, %c0_3, %c0_4] : memref<9x32x128xbf16, #tpu.memory_space<vmem>>, vector<1x32x128xbf16>
    %8 = vector.shape_cast %7 : vector<1x32x128xbf16> to vector<32x128xbf16>
    %cst = arith.constant dense<0.000000e+00> : vector<8x16x128xf32>
    %9 = tpu.matmul %6, %8, %cst {dimension_numbers = #tpu.dot_dimension_numbers<[2], [0], [0, 1], [1], [0, 0, 0, 1, 1, 1], [], []>} : vector<8x16x32xbf16>, vector<32x128xbf16>, vector<8x16x128xf32> -> vector<8x16x128xf32>
    %c0_5 = arith.constant 0 : index
    %c0_6 = arith.constant 0 : index
    %c0_7 = arith.constant 0 : index
    %10 = vector.load %arg7[%c0_5, %c0_6, %c0_7] : memref<8x16x128xf32, #tpu.memory_space<vmem>>, vector<8x16x128xf32>
    tpu.vector_store %arg7[%c0_5, %c0_6, %c0_7], %9 {strides = array<i32>} : memref<8x16x128xf32, #tpu.memory_space<vmem>>, vector<8x16x128xf32>,
    %11 = vector.extract_strided_slice %5 {offsets = [1, 0, 0], sizes = [8, 16, 32], strides = [1, 1, 1]} : vector<10x16x32xbf16> to vector<8x16x32xbf16>
    %c3 = arith.constant 3 : index
    %c0_8 = arith.constant 0 : index
    %c0_9 = arith.constant 0 : index
    %12 = vector.load %arg4[%c3, %c0_8, %c0_9] : memref<9x32x128xbf16, #tpu.memory_space<vmem>>, vector<1x32x128xbf16>
    %13 = vector.shape_cast %12 : vector<1x32x128xbf16> to vector<32x128xbf16>
    %cst_10 = arith.constant dense<0.000000e+00> : vector<8x16x128xf32>
    %14 = tpu.matmul %11, %13, %cst_10 {dimension_numbers = #tpu.dot_dimension_numbers<[2], [0], [0, 1], [1], [0, 0, 0, 1, 1, 1], [], []>} : vector<8x16x32xbf16>, vector<32x128xbf16>, vector<8x16x128xf32> -> vector<8x16x128xf32>
    %c0_11 = arith.constant 0 : index
    %c0_12 = arith.constant 0 : index
    %c0_13 = arith.constant 0 : index
    %15 = vector.load %arg7[%c0_11, %c0_12, %c0_13] : memref<8x16x128xf32, #tpu.memory_space<vmem>>, vector<8x16x128xf32>
    %16 = arith.addf %15, %14 : vector<8x16x128xf32>
    %c0_14 = arith.constant 0 : index
    %c0_15 = arith.constant 0 : index
    %c0_16 = arith.constant 0 : index
    %17 = vector.load %arg7[%c0_14, %c0_15, %c0_16] : memref<8x16x128xf32, #tpu.memory_space<vmem>>, vector<8x16x128xf32>
    tpu.vector_store %arg7[%c0_14, %c0_15, %c0_16], %16 {strides = array<i32>} : memref<8x16x128xf32, #tpu.memory_space<vmem>>, vector<8x16x128xf32>,
    %18 = vector.extract_strided_slice %5 {offsets = [2, 0, 0], sizes = [8, 16, 32], strides = [1, 1, 1]} : vector<10x16x32xbf16> to vector<8x16x32xbf16>
    %c6 = arith.constant 6 : index
    %c0_17 = arith.constant 0 : index
    %c0_18 = arith.constant 0 : index
    %19 = vector.load %arg4[%c6, %c0_17, %c0_18] : memref<9x32x128xbf16, #tpu.memory_space<vmem>>, vector<1x32x128xbf16>
    %20 = vector.shape_cast %19 : vector<1x32x128xbf16> to vector<32x128xbf16>
    %cst_19 = arith.constant dense<0.000000e+00> : vector<8x16x128xf32>
    %21 = tpu.matmul %18, %20, %cst_19 {dimension_numbers = #tpu.dot_dimension_numbers<[2], [0], [0, 1], [1], [0, 0, 0, 1, 1, 1], [], []>} : vector<8x16x32xbf16>, vector<32x128xbf16>, vector<8x16x128xf32> -> vector<8x16x128xf32>
    %c0_20 = arith.constant 0 : index
    %c0_21 = arith.constant 0 : index
    %c0_22 = arith.constant 0 : index
    %22 = vector.load %arg7[%c0_20, %c0_21, %c0_22] : memref<8x16x128xf32, #tpu.memory_space<vmem>>, vector<8x16x128xf32>
    %23 = arith.addf %22, %21 : vector<8x16x128xf32>
    %c0_23 = arith.constant 0 : index
    %c0_24 = arith.constant 0 : index
    %c0_25 = arith.constant 0 : index
    %24 = vector.load %arg7[%c0_23, %c0_24, %c0_25] : memref<8x16x128xf32, #tpu.memory_space<vmem>>, vector<8x16x128xf32>
    tpu.vector_store %arg7[%c0_23, %c0_24, %c0_25], %23 {strides = array<i32>} : memref<8x16x128xf32, #tpu.memory_space<vmem>>, vector<8x16x128xf32>,
    %25 = vector.extract_strided_slice %4 {offsets = [0, 1, 0], sizes = [10, 16, 32], strides = [1, 1, 1]} : vector<10x18x32xbf16> to vector<10x16x32xbf16>
    %26 = vector.extract_strided_slice %25 {offsets = [0, 0, 0], sizes = [8, 16, 32], strides = [1, 1, 1]} : vector<10x16x32xbf16> to vector<8x16x32xbf16>
    %c1 = arith.constant 1 : index
    %c0_26 = arith.constant 0 : index
    %c0_27 = arith.constant 0 : index
    %27 = vector.load %arg4[%c1, %c0_26, %c0_27] : memref<9x32x128xbf16, #tpu.memory_space<vmem>>, vector<1x32x128xbf16>
    %28 = vector.shape_cast %27 : vector<1x32x128xbf16> to vector<32x128xbf16>
    %cst_28 = arith.constant dense<0.000000e+00> : vector<8x16x128xf32>
    %29 = tpu.matmul %26, %28, %cst_28 {dimension_numbers = #tpu.dot_dimension_numbers<[2], [0], [0, 1], [1], [0, 0, 0, 1, 1, 1], [], []>} : vector<8x16x32xbf16>, vector<32x128xbf16>, vector<8x16x128xf32> -> vector<8x16x128xf32>
    %c0_29 = arith.constant 0 : index
    %c0_30 = arith.constant 0 : index
    %c0_31 = arith.constant 0 : index
    %30 = vector.load %arg7[%c0_29, %c0_30, %c0_31] : memref<8x16x128xf32, #tpu.memory_space<vmem>>, vector<8x16x128xf32>
    %31 = arith.addf %30, %29 : vector<8x16x128xf32>
    %c0_32 = arith.constant 0 : index
    %c0_33 = arith.constant 0 : index
    %c0_34 = arith.constant 0 : index
    %32 = vector.load %arg7[%c0_32, %c0_33, %c0_34] : memref<8x16x128xf32, #tpu.memory_space<vmem>>, vector<8x16x128xf32>
    tpu.vector_store %arg7[%c0_32, %c0_33, %c0_34], %31 {strides = array<i32>} : memref<8x16x128xf32, #tpu.memory_space<vmem>>, vector<8x16x128xf32>,
    %33 = vector.extract_strided_slice %25 {offsets = [1, 0, 0], sizes = [8, 16, 32], strides = [1, 1, 1]} : vector<10x16x32xbf16> to vector<8x16x32xbf16>
    %c4 = arith.constant 4 : index
    %c0_35 = arith.constant 0 : index
    %c0_36 = arith.constant 0 : index
    %34 = vector.load %arg4[%c4, %c0_35, %c0_36] : memref<9x32x128xbf16, #tpu.memory_space<vmem>>, vector<1x32x128xbf16>
    %35 = vector.shape_cast %34 : vector<1x32x128xbf16> to vector<32x128xbf16>
    %cst_37 = arith.constant dense<0.000000e+00> : vector<8x16x128xf32>
    %36 = tpu.matmul %33, %35, %cst_37 {dimension_numbers = #tpu.dot_dimension_numbers<[2], [0], [0, 1], [1], [0, 0, 0, 1, 1, 1], [], []>} : vector<8x16x32xbf16>, vector<32x128xbf16>, vector<8x16x128xf32> -> vector<8x16x128xf32>
    %c0_38 = arith.constant 0 : index
    %c0_39 = arith.constant 0 : index
    %c0_40 = arith.constant 0 : index
    %37 = vector.load %arg7[%c0_38, %c0_39, %c0_40] : memref<8x16x128xf32, #tpu.memory_space<vmem>>, vector<8x16x128xf32>
    %38 = arith.addf %37, %36 : vector<8x16x128xf32>
    %c0_41 = arith.constant 0 : index
    %c0_42 = arith.constant 0 : index
    %c0_43 = arith.constant 0 : index
    %39 = vector.load %arg7[%c0_41, %c0_42, %c0_43] : memref<8x16x128xf32, #tpu.memory_space<vmem>>, vector<8x16x128xf32>
    tpu.vector_store %arg7[%c0_41, %c0_42, %c0_43], %38 {strides = array<i32>} : memref<8x16x128xf32, #tpu.memory_space<vmem>>, vector<8x16x128xf32>,
    %40 = vector.extract_strided_slice %25 {offsets = [2, 0, 0], sizes = [8, 16, 32], strides = [1, 1, 1]} : vector<10x16x32xbf16> to vector<8x16x32xbf16>
    %c7 = arith.constant 7 : index
    %c0_44 = arith.constant 0 : index
    %c0_45 = arith.constant 0 : index
    %41 = vector.load %arg4[%c7, %c0_44, %c0_45] : memref<9x32x128xbf16, #tpu.memory_space<vmem>>, vector<1x32x128xbf16>
    %42 = vector.shape_cast %41 : vector<1x32x128xbf16> to vector<32x128xbf16>
    %cst_46 = arith.constant dense<0.000000e+00> : vector<8x16x128xf32>
    %43 = tpu.matmul %40, %42, %cst_46 {dimension_numbers = #tpu.dot_dimension_numbers<[2], [0], [0, 1], [1], [0, 0, 0, 1, 1, 1], [], []>} : vector<8x16x32xbf16>, vector<32x128xbf16>, vector<8x16x128xf32> -> vector<8x16x128xf32>
    %c0_47 = arith.constant 0 : index
    %c0_48 = arith.constant 0 : index
    %c0_49 = arith.constant 0 : index
    %44 = vector.load %arg7[%c0_47, %c0_48, %c0_49] : memref<8x16x128xf32, #tpu.memory_space<vmem>>, vector<8x16x128xf32>
    %45 = arith.addf %44, %43 : vector<8x16x128xf32>
    %c0_50 = arith.constant 0 : index
    %c0_51 = arith.constant 0 : index
    %c0_52 = arith.constant 0 : index
    %46 = vector.load %arg7[%c0_50, %c0_51, %c0_52] : memref<8x16x128xf32, #tpu.memory_space<vmem>>, vector<8x16x128xf32>
    tpu.vector_store %arg7[%c0_50, %c0_51, %c0_52], %45 {strides = array<i32>} : memref<8x16x128xf32, #tpu.memory_space<vmem>>, vector<8x16x128xf32>,
    %47 = vector.extract_strided_slice %4 {offsets = [0, 2, 0], sizes = [10, 16, 32], strides = [1, 1, 1]} : vector<10x18x32xbf16> to vector<10x16x32xbf16>
    %48 = vector.extract_strided_slice %47 {offsets = [0, 0, 0], sizes = [8, 16, 32], strides = [1, 1, 1]} : vector<10x16x32xbf16> to vector<8x16x32xbf16>
    %c2 = arith.constant 2 : index
    %c0_53 = arith.constant 0 : index
    %c0_54 = arith.constant 0 : index
    %49 = vector.load %arg4[%c2, %c0_53, %c0_54] : memref<9x32x128xbf16, #tpu.memory_space<vmem>>, vector<1x32x128xbf16>
    %50 = vector.shape_cast %49 : vector<1x32x128xbf16> to vector<32x128xbf16>
    %cst_55 = arith.constant dense<0.000000e+00> : vector<8x16x128xf32>
    %51 = tpu.matmul %48, %50, %cst_55 {dimension_numbers = #tpu.dot_dimension_numbers<[2], [0], [0, 1], [1], [0, 0, 0, 1, 1, 1], [], []>} : vector<8x16x32xbf16>, vector<32x128xbf16>, vector<8x16x128xf32> -> vector<8x16x128xf32>
    %c0_56 = arith.constant 0 : index
    %c0_57 = arith.constant 0 : index
    %c0_58 = arith.constant 0 : index
    %52 = vector.load %arg7[%c0_56, %c0_57, %c0_58] : memref<8x16x128xf32, #tpu.memory_space<vmem>>, vector<8x16x128xf32>
    %53 = arith.addf %52, %51 : vector<8x16x128xf32>
    %c0_59 = arith.constant 0 : index
    %c0_60 = arith.constant 0 : index
    %c0_61 = arith.constant 0 : index
    %54 = vector.load %arg7[%c0_59, %c0_60, %c0_61] : memref<8x16x128xf32, #tpu.memory_space<vmem>>, vector<8x16x128xf32>
    tpu.vector_store %arg7[%c0_59, %c0_60, %c0_61], %53 {strides = array<i32>} : memref<8x16x128xf32, #tpu.memory_space<vmem>>, vector<8x16x128xf32>,
    %55 = vector.extract_strided_slice %47 {offsets = [1, 0, 0], sizes = [8, 16, 32], strides = [1, 1, 1]} : vector<10x16x32xbf16> to vector<8x16x32xbf16>
    %c5 = arith.constant 5 : index
    %c0_62 = arith.constant 0 : index
    %c0_63 = arith.constant 0 : index
    %56 = vector.load %arg4[%c5, %c0_62, %c0_63] : memref<9x32x128xbf16, #tpu.memory_space<vmem>>, vector<1x32x128xbf16>
    %57 = vector.shape_cast %56 : vector<1x32x128xbf16> to vector<32x128xbf16>
    %cst_64 = arith.constant dense<0.000000e+00> : vector<8x16x128xf32>
    %58 = tpu.matmul %55, %57, %cst_64 {dimension_numbers = #tpu.dot_dimension_numbers<[2], [0], [0, 1], [1], [0, 0, 0, 1, 1, 1], [], []>} : vector<8x16x32xbf16>, vector<32x128xbf16>, vector<8x16x128xf32> -> vector<8x16x128xf32>
    %c0_65 = arith.constant 0 : index
    %c0_66 = arith.constant 0 : index
    %c0_67 = arith.constant 0 : index
    %59 = vector.load %arg7[%c0_65, %c0_66, %c0_67] : memref<8x16x128xf32, #tpu.memory_space<vmem>>, vector<8x16x128xf32>
    %60 = arith.addf %59, %58 : vector<8x16x128xf32>
    %c0_68 = arith.constant 0 : index
    %c0_69 = arith.constant 0 : index
    %c0_70 = arith.constant 0 : index
    %61 = vector.load %arg7[%c0_68, %c0_69, %c0_70] : memref<8x16x128xf32, #tpu.memory_space<vmem>>, vector<8x16x128xf32>
    tpu.vector_store %arg7[%c0_68, %c0_69, %c0_70], %60 {strides = array<i32>} : memref<8x16x128xf32, #tpu.memory_space<vmem>>, vector<8x16x128xf32>,
    %62 = vector.extract_strided_slice %47 {offsets = [2, 0, 0], sizes = [8, 16, 32], strides = [1, 1, 1]} : vector<10x16x32xbf16> to vector<8x16x32xbf16>
    %c8 = arith.constant 8 : index
    %c0_71 = arith.constant 0 : index
    %c0_72 = arith.constant 0 : index
    %63 = vector.load %arg4[%c8, %c0_71, %c0_72] : memref<9x32x128xbf16, #tpu.memory_space<vmem>>, vector<1x32x128xbf16>
    %64 = vector.shape_cast %63 : vector<1x32x128xbf16> to vector<32x128xbf16>
    %cst_73 = arith.constant dense<0.000000e+00> : vector<8x16x128xf32>
    %65 = tpu.matmul %62, %64, %cst_73 {dimension_numbers = #tpu.dot_dimension_numbers<[2], [0], [0, 1], [1], [0, 0, 0, 1, 1, 1], [], []>} : vector<8x16x32xbf16>, vector<32x128xbf16>, vector<8x16x128xf32> -> vector<8x16x128xf32>
    %c0_74 = arith.constant 0 : index
    %c0_75 = arith.constant 0 : index
    %c0_76 = arith.constant 0 : index
    %66 = vector.load %arg7[%c0_74, %c0_75, %c0_76] : memref<8x16x128xf32, #tpu.memory_space<vmem>>, vector<8x16x128xf32>
    %67 = arith.addf %66, %65 : vector<8x16x128xf32>
    %c0_77 = arith.constant 0 : index
    %c0_78 = arith.constant 0 : index
    %c0_79 = arith.constant 0 : index
    %68 = vector.load %arg7[%c0_77, %c0_78, %c0_79] : memref<8x16x128xf32, #tpu.memory_space<vmem>>, vector<8x16x128xf32>
    tpu.vector_store %arg7[%c0_77, %c0_78, %c0_79], %67 {strides = array<i32>} : memref<8x16x128xf32, #tpu.memory_space<vmem>>, vector<8x16x128xf32>,
    %c0_80 = arith.constant 0 : index
    %c0_81 = arith.constant 0 : index
    %c0_82 = arith.constant 0 : index
    %69 = vector.load %arg7[%c0_80, %c0_81, %c0_82] : memref<8x16x128xf32, #tpu.memory_space<vmem>>, vector<8x16x128xf32>
    %c0_83 = arith.constant 0 : index
    %c0_84 = arith.constant 0 : index
    %70 = vector.load %arg5[%c0_83, %c0_84] : memref<1x128xf32, #tpu.memory_space<vmem>>, vector<1x128xf32>
    %71 = vector.shape_cast %70 : vector<1x128xf32> to vector<1x1x128xf32>
    %72 = vector.broadcast %71 : vector<1x1x128xf32> to vector<8x16x128xf32>
    %73 = arith.addf %69, %72 : vector<8x16x128xf32>
    %cst_85 = arith.constant 0.000000e+00 : f32
    %74 = vector.broadcast %cst_85 : f32 to vector<8x16x128xf32>
    %75 = arith.maximumf %73, %74 : vector<8x16x128xf32>
    %76 = arith.truncf %75 : vector<8x16x128xf32> to vector<8x16x128xbf16>
    %c0_86 = arith.constant 0 : index
    %c0_87 = arith.constant 0 : index
    %c0_88 = arith.constant 0 : index
    %c0_89 = arith.constant 0 : index
    %77 = vector.load %arg6[%c0_86, %c0_87, %c0_88, %c0_89] : memref<1x8x16x128xbf16, #tpu.memory_space<vmem>>, vector<1x8x16x128xbf16>
    %78 = vector.shape_cast %77 : vector<1x8x16x128xbf16> to vector<8x16x128xbf16>
    %79 = vector.shape_cast %76 : vector<8x16x128xbf16> to vector<1x8x16x128xbf16>
    tpu.vector_store %arg6[%c0_86, %c0_87, %c0_88, %c0_89], %79 {strides = array<i32>} : memref<1x8x16x128xbf16, #tpu.memory_space<vmem>>, vector<1x8x16x128xbf16>,
    return
  }
  func.func @transform_0(%arg0: i32, %arg1: i32, %arg2: i32) -> (i32, i32, i32, i32) {
    %c0_i32 = arith.constant 0 : i32
    %c0_i32_0 = arith.constant 0 : i32
    %c0_i32_1 = arith.constant 0 : i32
    %c0_i32_2 = arith.constant 0 : i32
    return %arg0, %c0_i32, %c0_i32_0, %c0_i32_1 : i32, i32, i32, i32
  }
  func.func @transform_1(%arg0: i32, %arg1: i32, %arg2: i32) -> (i32, i32, i32) {
    %c0_i32 = arith.constant 0 : i32
    %c0_i32_0 = arith.constant 0 : i32
    %c0_i32_1 = arith.constant 0 : i32
    return %c0_i32, %c0_i32_0, %arg1 : i32, i32, i32
  }
  func.func @transform_2(%arg0: i32, %arg1: i32, %arg2: i32) -> (i32, i32) {
    %c0_i32 = arith.constant 0 : i32
    %c0_i32_0 = arith.constant 0 : i32
    return %c0_i32, %arg1 : i32, i32
  }
  func.func @transform_3(%arg0: i32, %arg1: i32, %arg2: i32) -> (i32, i32, i32, i32) {
    %c0_i32 = arith.constant 0 : i32
    %c0_i32_0 = arith.constant 0 : i32
    return %arg0, %arg2, %c0_i32, %arg1 : i32, i32, i32, i32
  }
}

module attributes {stable_mosaic.version = 11 : i64} {
  func.func @_conv3x3_kernel(%arg0: i32, %arg1: i32, %arg2: i32, %arg3: memref<1x18x18x32xbf16, #tpu.memory_space<vmem>>, %arg4: memref<9x32x128xbf16, #tpu.memory_space<vmem>>, %arg5: memref<1x128xf32, #tpu.memory_space<vmem>>, %arg6: memref<1x8x16x128xf32, #tpu.memory_space<vmem>>, %arg7: memref<8x16x128xf32, #tpu.memory_space<vmem>>) attributes {dimension_semantics = [#tpu.dimension_semantics<parallel>, #tpu.dimension_semantics<parallel>, #tpu.dimension_semantics<parallel>], iteration_bounds = array<i64: 2, 1, 2>, scalar_prefetch = 0 : i64, scratch_operands = 1 : i64, tpu.core_type = #tpu.core_type<tc>, window_params = [{transform_indices = @transform_0, window_bounds = array<i64: 1, 18, 18, 32>}, {transform_indices = @transform_1, window_bounds = array<i64: 9, 32, 128>}, {transform_indices = @transform_2, window_bounds = array<i64: 1, 128>}, {transform_indices = @transform_3, window_bounds = array<i64: 1, 8, 16, 128>}]} {
    %c8_i32 = arith.constant 8 : i32
    %0 = arith.muli %arg2, %c8_i32 : i32
    %1 = tpu.assume_multiple %0, 8 : i32
    %c0 = arith.constant 0 : index
    %2 = arith.index_cast %1 : i32 to index
    %c0_0 = arith.constant 0 : index
    %c0_1 = arith.constant 0 : index
    %3 = vector.load %arg3[%c0, %2, %c0_0, %c0_1] : memref<1x18x18x32xbf16, #tpu.memory_space<vmem>>, vector<1x10x18x32xbf16>
    %4 = vector.shape_cast %3 : vector<1x10x18x32xbf16> to vector<10x18x32xbf16>
    %5 = vector.extract_strided_slice %4 {offsets = [0, 0, 0], sizes = [10, 16, 32], strides = [1, 1, 1]} : vector<10x18x32xbf16> to vector<10x16x32xbf16>
    %6 = vector.extract_strided_slice %5 {offsets = [0, 0, 0], sizes = [8, 16, 32], strides = [1, 1, 1]} : vector<10x16x32xbf16> to vector<8x16x32xbf16>
    %c0_2 = arith.constant 0 : index
    %c0_3 = arith.constant 0 : index
    %c0_4 = arith.constant 0 : index
    %7 = vector.load %arg4[%c0_2, %c0_3, %c0_4] : memref<9x32x128xbf16, #tpu.memory_space<vmem>>, vector<1x32x128xbf16>
    %8 = vector.shape_cast %7 : vector<1x32x128xbf16> to vector<32x128xbf16>
    %cst = arith.constant dense<0.000000e+00> : vector<8x16x128xf32>
    %9 = tpu.matmul %6, %8, %cst {dimension_numbers = #tpu.dot_dimension_numbers<[2], [0], [0, 1], [1], [0, 0, 0, 1, 1, 1], [], []>} : vector<8x16x32xbf16>, vector<32x128xbf16>, vector<8x16x128xf32> -> vector<8x16x128xf32>
    %c0_5 = arith.constant 0 : index
    %c0_6 = arith.constant 0 : index
    %c0_7 = arith.constant 0 : index
    %10 = vector.load %arg7[%c0_5, %c0_6, %c0_7] : memref<8x16x128xf32, #tpu.memory_space<vmem>>, vector<8x16x128xf32>
    tpu.vector_store %arg7[%c0_5, %c0_6, %c0_7], %9 {strides = array<i32>} : memref<8x16x128xf32, #tpu.memory_space<vmem>>, vector<8x16x128xf32>,
    %11 = vector.extract_strided_slice %5 {offsets = [1, 0, 0], sizes = [8, 16, 32], strides = [1, 1, 1]} : vector<10x16x32xbf16> to vector<8x16x32xbf16>
    %c3 = arith.constant 3 : index
    %c0_8 = arith.constant 0 : index
    %c0_9 = arith.constant 0 : index
    %12 = vector.load %arg4[%c3, %c0_8, %c0_9] : memref<9x32x128xbf16, #tpu.memory_space<vmem>>, vector<1x32x128xbf16>
    %13 = vector.shape_cast %12 : vector<1x32x128xbf16> to vector<32x128xbf16>
    %cst_10 = arith.constant dense<0.000000e+00> : vector<8x16x128xf32>
    %14 = tpu.matmul %11, %13, %cst_10 {dimension_numbers = #tpu.dot_dimension_numbers<[2], [0], [0, 1], [1], [0, 0, 0, 1, 1, 1], [], []>} : vector<8x16x32xbf16>, vector<32x128xbf16>, vector<8x16x128xf32> -> vector<8x16x128xf32>
    %c0_11 = arith.constant 0 : index
    %c0_12 = arith.constant 0 : index
    %c0_13 = arith.constant 0 : index
    %15 = vector.load %arg7[%c0_11, %c0_12, %c0_13] : memref<8x16x128xf32, #tpu.memory_space<vmem>>, vector<8x16x128xf32>
    %16 = arith.addf %15, %14 : vector<8x16x128xf32>
    %c0_14 = arith.constant 0 : index
    %c0_15 = arith.constant 0 : index
    %c0_16 = arith.constant 0 : index
    %17 = vector.load %arg7[%c0_14, %c0_15, %c0_16] : memref<8x16x128xf32, #tpu.memory_space<vmem>>, vector<8x16x128xf32>
    tpu.vector_store %arg7[%c0_14, %c0_15, %c0_16], %16 {strides = array<i32>} : memref<8x16x128xf32, #tpu.memory_space<vmem>>, vector<8x16x128xf32>,
    %18 = vector.extract_strided_slice %5 {offsets = [2, 0, 0], sizes = [8, 16, 32], strides = [1, 1, 1]} : vector<10x16x32xbf16> to vector<8x16x32xbf16>
    %c6 = arith.constant 6 : index
    %c0_17 = arith.constant 0 : index
    %c0_18 = arith.constant 0 : index
    %19 = vector.load %arg4[%c6, %c0_17, %c0_18] : memref<9x32x128xbf16, #tpu.memory_space<vmem>>, vector<1x32x128xbf16>
    %20 = vector.shape_cast %19 : vector<1x32x128xbf16> to vector<32x128xbf16>
    %cst_19 = arith.constant dense<0.000000e+00> : vector<8x16x128xf32>
    %21 = tpu.matmul %18, %20, %cst_19 {dimension_numbers = #tpu.dot_dimension_numbers<[2], [0], [0, 1], [1], [0, 0, 0, 1, 1, 1], [], []>} : vector<8x16x32xbf16>, vector<32x128xbf16>, vector<8x16x128xf32> -> vector<8x16x128xf32>
    %c0_20 = arith.constant 0 : index
    %c0_21 = arith.constant 0 : index
    %c0_22 = arith.constant 0 : index
    %22 = vector.load %arg7[%c0_20, %c0_21, %c0_22] : memref<8x16x128xf32, #tpu.memory_space<vmem>>, vector<8x16x128xf32>
    %23 = arith.addf %22, %21 : vector<8x16x128xf32>
    %c0_23 = arith.constant 0 : index
    %c0_24 = arith.constant 0 : index
    %c0_25 = arith.constant 0 : index
    %24 = vector.load %arg7[%c0_23, %c0_24, %c0_25] : memref<8x16x128xf32, #tpu.memory_space<vmem>>, vector<8x16x128xf32>
    tpu.vector_store %arg7[%c0_23, %c0_24, %c0_25], %23 {strides = array<i32>} : memref<8x16x128xf32, #tpu.memory_space<vmem>>, vector<8x16x128xf32>,
    %25 = vector.extract_strided_slice %4 {offsets = [0, 1, 0], sizes = [10, 16, 32], strides = [1, 1, 1]} : vector<10x18x32xbf16> to vector<10x16x32xbf16>
    %26 = vector.extract_strided_slice %25 {offsets = [0, 0, 0], sizes = [8, 16, 32], strides = [1, 1, 1]} : vector<10x16x32xbf16> to vector<8x16x32xbf16>
    %c1 = arith.constant 1 : index
    %c0_26 = arith.constant 0 : index
    %c0_27 = arith.constant 0 : index
    %27 = vector.load %arg4[%c1, %c0_26, %c0_27] : memref<9x32x128xbf16, #tpu.memory_space<vmem>>, vector<1x32x128xbf16>
    %28 = vector.shape_cast %27 : vector<1x32x128xbf16> to vector<32x128xbf16>
    %cst_28 = arith.constant dense<0.000000e+00> : vector<8x16x128xf32>
    %29 = tpu.matmul %26, %28, %cst_28 {dimension_numbers = #tpu.dot_dimension_numbers<[2], [0], [0, 1], [1], [0, 0, 0, 1, 1, 1], [], []>} : vector<8x16x32xbf16>, vector<32x128xbf16>, vector<8x16x128xf32> -> vector<8x16x128xf32>
    %c0_29 = arith.constant 0 : index
    %c0_30 = arith.constant 0 : index
    %c0_31 = arith.constant 0 : index
    %30 = vector.load %arg7[%c0_29, %c0_30, %c0_31] : memref<8x16x128xf32, #tpu.memory_space<vmem>>, vector<8x16x128xf32>
    %31 = arith.addf %30, %29 : vector<8x16x128xf32>
    %c0_32 = arith.constant 0 : index
    %c0_33 = arith.constant 0 : index
    %c0_34 = arith.constant 0 : index
    %32 = vector.load %arg7[%c0_32, %c0_33, %c0_34] : memref<8x16x128xf32, #tpu.memory_space<vmem>>, vector<8x16x128xf32>
    tpu.vector_store %arg7[%c0_32, %c0_33, %c0_34], %31 {strides = array<i32>} : memref<8x16x128xf32, #tpu.memory_space<vmem>>, vector<8x16x128xf32>,
    %33 = vector.extract_strided_slice %25 {offsets = [1, 0, 0], sizes = [8, 16, 32], strides = [1, 1, 1]} : vector<10x16x32xbf16> to vector<8x16x32xbf16>
    %c4 = arith.constant 4 : index
    %c0_35 = arith.constant 0 : index
    %c0_36 = arith.constant 0 : index
    %34 = vector.load %arg4[%c4, %c0_35, %c0_36] : memref<9x32x128xbf16, #tpu.memory_space<vmem>>, vector<1x32x128xbf16>
    %35 = vector.shape_cast %34 : vector<1x32x128xbf16> to vector<32x128xbf16>
    %cst_37 = arith.constant dense<0.000000e+00> : vector<8x16x128xf32>
    %36 = tpu.matmul %33, %35, %cst_37 {dimension_numbers = #tpu.dot_dimension_numbers<[2], [0], [0, 1], [1], [0, 0, 0, 1, 1, 1], [], []>} : vector<8x16x32xbf16>, vector<32x128xbf16>, vector<8x16x128xf32> -> vector<8x16x128xf32>
    %c0_38 = arith.constant 0 : index
    %c0_39 = arith.constant 0 : index
    %c0_40 = arith.constant 0 : index
    %37 = vector.load %arg7[%c0_38, %c0_39, %c0_40] : memref<8x16x128xf32, #tpu.memory_space<vmem>>, vector<8x16x128xf32>
    %38 = arith.addf %37, %36 : vector<8x16x128xf32>
    %c0_41 = arith.constant 0 : index
    %c0_42 = arith.constant 0 : index
    %c0_43 = arith.constant 0 : index
    %39 = vector.load %arg7[%c0_41, %c0_42, %c0_43] : memref<8x16x128xf32, #tpu.memory_space<vmem>>, vector<8x16x128xf32>
    tpu.vector_store %arg7[%c0_41, %c0_42, %c0_43], %38 {strides = array<i32>} : memref<8x16x128xf32, #tpu.memory_space<vmem>>, vector<8x16x128xf32>,
    %40 = vector.extract_strided_slice %25 {offsets = [2, 0, 0], sizes = [8, 16, 32], strides = [1, 1, 1]} : vector<10x16x32xbf16> to vector<8x16x32xbf16>
    %c7 = arith.constant 7 : index
    %c0_44 = arith.constant 0 : index
    %c0_45 = arith.constant 0 : index
    %41 = vector.load %arg4[%c7, %c0_44, %c0_45] : memref<9x32x128xbf16, #tpu.memory_space<vmem>>, vector<1x32x128xbf16>
    %42 = vector.shape_cast %41 : vector<1x32x128xbf16> to vector<32x128xbf16>
    %cst_46 = arith.constant dense<0.000000e+00> : vector<8x16x128xf32>
    %43 = tpu.matmul %40, %42, %cst_46 {dimension_numbers = #tpu.dot_dimension_numbers<[2], [0], [0, 1], [1], [0, 0, 0, 1, 1, 1], [], []>} : vector<8x16x32xbf16>, vector<32x128xbf16>, vector<8x16x128xf32> -> vector<8x16x128xf32>
    %c0_47 = arith.constant 0 : index
    %c0_48 = arith.constant 0 : index
    %c0_49 = arith.constant 0 : index
    %44 = vector.load %arg7[%c0_47, %c0_48, %c0_49] : memref<8x16x128xf32, #tpu.memory_space<vmem>>, vector<8x16x128xf32>
    %45 = arith.addf %44, %43 : vector<8x16x128xf32>
    %c0_50 = arith.constant 0 : index
    %c0_51 = arith.constant 0 : index
    %c0_52 = arith.constant 0 : index
    %46 = vector.load %arg7[%c0_50, %c0_51, %c0_52] : memref<8x16x128xf32, #tpu.memory_space<vmem>>, vector<8x16x128xf32>
    tpu.vector_store %arg7[%c0_50, %c0_51, %c0_52], %45 {strides = array<i32>} : memref<8x16x128xf32, #tpu.memory_space<vmem>>, vector<8x16x128xf32>,
    %47 = vector.extract_strided_slice %4 {offsets = [0, 2, 0], sizes = [10, 16, 32], strides = [1, 1, 1]} : vector<10x18x32xbf16> to vector<10x16x32xbf16>
    %48 = vector.extract_strided_slice %47 {offsets = [0, 0, 0], sizes = [8, 16, 32], strides = [1, 1, 1]} : vector<10x16x32xbf16> to vector<8x16x32xbf16>
    %c2 = arith.constant 2 : index
    %c0_53 = arith.constant 0 : index
    %c0_54 = arith.constant 0 : index
    %49 = vector.load %arg4[%c2, %c0_53, %c0_54] : memref<9x32x128xbf16, #tpu.memory_space<vmem>>, vector<1x32x128xbf16>
    %50 = vector.shape_cast %49 : vector<1x32x128xbf16> to vector<32x128xbf16>
    %cst_55 = arith.constant dense<0.000000e+00> : vector<8x16x128xf32>
    %51 = tpu.matmul %48, %50, %cst_55 {dimension_numbers = #tpu.dot_dimension_numbers<[2], [0], [0, 1], [1], [0, 0, 0, 1, 1, 1], [], []>} : vector<8x16x32xbf16>, vector<32x128xbf16>, vector<8x16x128xf32> -> vector<8x16x128xf32>
    %c0_56 = arith.constant 0 : index
    %c0_57 = arith.constant 0 : index
    %c0_58 = arith.constant 0 : index
    %52 = vector.load %arg7[%c0_56, %c0_57, %c0_58] : memref<8x16x128xf32, #tpu.memory_space<vmem>>, vector<8x16x128xf32>
    %53 = arith.addf %52, %51 : vector<8x16x128xf32>
    %c0_59 = arith.constant 0 : index
    %c0_60 = arith.constant 0 : index
    %c0_61 = arith.constant 0 : index
    %54 = vector.load %arg7[%c0_59, %c0_60, %c0_61] : memref<8x16x128xf32, #tpu.memory_space<vmem>>, vector<8x16x128xf32>
    tpu.vector_store %arg7[%c0_59, %c0_60, %c0_61], %53 {strides = array<i32>} : memref<8x16x128xf32, #tpu.memory_space<vmem>>, vector<8x16x128xf32>,
    %55 = vector.extract_strided_slice %47 {offsets = [1, 0, 0], sizes = [8, 16, 32], strides = [1, 1, 1]} : vector<10x16x32xbf16> to vector<8x16x32xbf16>
    %c5 = arith.constant 5 : index
    %c0_62 = arith.constant 0 : index
    %c0_63 = arith.constant 0 : index
    %56 = vector.load %arg4[%c5, %c0_62, %c0_63] : memref<9x32x128xbf16, #tpu.memory_space<vmem>>, vector<1x32x128xbf16>
    %57 = vector.shape_cast %56 : vector<1x32x128xbf16> to vector<32x128xbf16>
    %cst_64 = arith.constant dense<0.000000e+00> : vector<8x16x128xf32>
    %58 = tpu.matmul %55, %57, %cst_64 {dimension_numbers = #tpu.dot_dimension_numbers<[2], [0], [0, 1], [1], [0, 0, 0, 1, 1, 1], [], []>} : vector<8x16x32xbf16>, vector<32x128xbf16>, vector<8x16x128xf32> -> vector<8x16x128xf32>
    %c0_65 = arith.constant 0 : index
    %c0_66 = arith.constant 0 : index
    %c0_67 = arith.constant 0 : index
    %59 = vector.load %arg7[%c0_65, %c0_66, %c0_67] : memref<8x16x128xf32, #tpu.memory_space<vmem>>, vector<8x16x128xf32>
    %60 = arith.addf %59, %58 : vector<8x16x128xf32>
    %c0_68 = arith.constant 0 : index
    %c0_69 = arith.constant 0 : index
    %c0_70 = arith.constant 0 : index
    %61 = vector.load %arg7[%c0_68, %c0_69, %c0_70] : memref<8x16x128xf32, #tpu.memory_space<vmem>>, vector<8x16x128xf32>
    tpu.vector_store %arg7[%c0_68, %c0_69, %c0_70], %60 {strides = array<i32>} : memref<8x16x128xf32, #tpu.memory_space<vmem>>, vector<8x16x128xf32>,
    %62 = vector.extract_strided_slice %47 {offsets = [2, 0, 0], sizes = [8, 16, 32], strides = [1, 1, 1]} : vector<10x16x32xbf16> to vector<8x16x32xbf16>
    %c8 = arith.constant 8 : index
    %c0_71 = arith.constant 0 : index
    %c0_72 = arith.constant 0 : index
    %63 = vector.load %arg4[%c8, %c0_71, %c0_72] : memref<9x32x128xbf16, #tpu.memory_space<vmem>>, vector<1x32x128xbf16>
    %64 = vector.shape_cast %63 : vector<1x32x128xbf16> to vector<32x128xbf16>
    %cst_73 = arith.constant dense<0.000000e+00> : vector<8x16x128xf32>
    %65 = tpu.matmul %62, %64, %cst_73 {dimension_numbers = #tpu.dot_dimension_numbers<[2], [0], [0, 1], [1], [0, 0, 0, 1, 1, 1], [], []>} : vector<8x16x32xbf16>, vector<32x128xbf16>, vector<8x16x128xf32> -> vector<8x16x128xf32>
    %c0_74 = arith.constant 0 : index
    %c0_75 = arith.constant 0 : index
    %c0_76 = arith.constant 0 : index
    %66 = vector.load %arg7[%c0_74, %c0_75, %c0_76] : memref<8x16x128xf32, #tpu.memory_space<vmem>>, vector<8x16x128xf32>
    %67 = arith.addf %66, %65 : vector<8x16x128xf32>
    %c0_77 = arith.constant 0 : index
    %c0_78 = arith.constant 0 : index
    %c0_79 = arith.constant 0 : index
    %68 = vector.load %arg7[%c0_77, %c0_78, %c0_79] : memref<8x16x128xf32, #tpu.memory_space<vmem>>, vector<8x16x128xf32>
    tpu.vector_store %arg7[%c0_77, %c0_78, %c0_79], %67 {strides = array<i32>} : memref<8x16x128xf32, #tpu.memory_space<vmem>>, vector<8x16x128xf32>,
    %c0_80 = arith.constant 0 : index
    %c0_81 = arith.constant 0 : index
    %c0_82 = arith.constant 0 : index
    %69 = vector.load %arg7[%c0_80, %c0_81, %c0_82] : memref<8x16x128xf32, #tpu.memory_space<vmem>>, vector<8x16x128xf32>
    %c0_83 = arith.constant 0 : index
    %c0_84 = arith.constant 0 : index
    %70 = vector.load %arg5[%c0_83, %c0_84] : memref<1x128xf32, #tpu.memory_space<vmem>>, vector<1x128xf32>
    %71 = vector.shape_cast %70 : vector<1x128xf32> to vector<1x1x128xf32>
    %72 = vector.broadcast %71 : vector<1x1x128xf32> to vector<8x16x128xf32>
    %73 = arith.addf %69, %72 : vector<8x16x128xf32>
    %74 = arith.negf %73 : vector<8x16x128xf32>
    %75 = math.exp %74 : vector<8x16x128xf32>
    %cst_85 = arith.constant 1.000000e+00 : f32
    %76 = vector.broadcast %cst_85 : f32 to vector<8x16x128xf32>
    %77 = arith.addf %76, %75 : vector<8x16x128xf32>
    %78 = arith.divf %76, %77 : vector<8x16x128xf32>
    %c0_86 = arith.constant 0 : index
    %c0_87 = arith.constant 0 : index
    %c0_88 = arith.constant 0 : index
    %c0_89 = arith.constant 0 : index
    %79 = vector.load %arg6[%c0_86, %c0_87, %c0_88, %c0_89] : memref<1x8x16x128xf32, #tpu.memory_space<vmem>>, vector<1x8x16x128xf32>
    %80 = vector.shape_cast %79 : vector<1x8x16x128xf32> to vector<8x16x128xf32>
    %81 = vector.shape_cast %78 : vector<8x16x128xf32> to vector<1x8x16x128xf32>
    tpu.vector_store %arg6[%c0_86, %c0_87, %c0_88, %c0_89], %81 {strides = array<i32>} : memref<1x8x16x128xf32, #tpu.memory_space<vmem>>, vector<1x8x16x128xf32>,
    return
  }
  func.func @transform_0(%arg0: i32, %arg1: i32, %arg2: i32) -> (i32, i32, i32, i32) {
    %c0_i32 = arith.constant 0 : i32
    %c0_i32_0 = arith.constant 0 : i32
    %c0_i32_1 = arith.constant 0 : i32
    %c0_i32_2 = arith.constant 0 : i32
    return %arg0, %c0_i32, %c0_i32_0, %c0_i32_1 : i32, i32, i32, i32
  }
  func.func @transform_1(%arg0: i32, %arg1: i32, %arg2: i32) -> (i32, i32, i32) {
    %c0_i32 = arith.constant 0 : i32
    %c0_i32_0 = arith.constant 0 : i32
    %c0_i32_1 = arith.constant 0 : i32
    return %c0_i32, %c0_i32_0, %arg1 : i32, i32, i32
  }
  func.func @transform_2(%arg0: i32, %arg1: i32, %arg2: i32) -> (i32, i32) {
    %c0_i32 = arith.constant 0 : i32
    %c0_i32_0 = arith.constant 0 : i32
    return %c0_i32, %arg1 : i32, i32
  }
  func.func @transform_3(%arg0: i32, %arg1: i32, %arg2: i32) -> (i32, i32, i32, i32) {
    %c0_i32 = arith.constant 0 : i32
    %c0_i32_0 = arith.constant 0 : i32
    return %arg0, %arg2, %c0_i32, %arg1 : i32, i32, i32, i32
  }
}

module attributes {stable_mosaic.version = 11 : i64} {
  func.func @_conv3x3_kernel(%arg0: i32, %arg1: i32, %arg2: i32, %arg3: memref<1x18x18x32xbf16, #tpu.memory_space<vmem>>, %arg4: memref<9x32x128xbf16, #tpu.memory_space<vmem>>, %arg5: memref<1x128xf32, #tpu.memory_space<vmem>>, %arg6: memref<1x8x16x128xf32, #tpu.memory_space<vmem>>, %arg7: memref<8x16x128xf32, #tpu.memory_space<vmem>>) attributes {dimension_semantics = [#tpu.dimension_semantics<parallel>, #tpu.dimension_semantics<parallel>, #tpu.dimension_semantics<parallel>], iteration_bounds = array<i64: 2, 1, 2>, scalar_prefetch = 0 : i64, scratch_operands = 1 : i64, tpu.core_type = #tpu.core_type<tc>, window_params = [{transform_indices = @transform_0, window_bounds = array<i64: 1, 18, 18, 32>}, {transform_indices = @transform_1, window_bounds = array<i64: 9, 32, 128>}, {transform_indices = @transform_2, window_bounds = array<i64: 1, 128>}, {transform_indices = @transform_3, window_bounds = array<i64: 1, 8, 16, 128>}]} {
    %c8_i32 = arith.constant 8 : i32
    %0 = arith.muli %arg2, %c8_i32 : i32
    %1 = tpu.assume_multiple %0, 8 : i32
    %c0 = arith.constant 0 : index
    %2 = arith.index_cast %1 : i32 to index
    %c0_0 = arith.constant 0 : index
    %c0_1 = arith.constant 0 : index
    %3 = vector.load %arg3[%c0, %2, %c0_0, %c0_1] : memref<1x18x18x32xbf16, #tpu.memory_space<vmem>>, vector<1x10x18x32xbf16>
    %4 = vector.shape_cast %3 : vector<1x10x18x32xbf16> to vector<10x18x32xbf16>
    %5 = vector.extract_strided_slice %4 {offsets = [0, 0, 0], sizes = [10, 16, 32], strides = [1, 1, 1]} : vector<10x18x32xbf16> to vector<10x16x32xbf16>
    %6 = vector.extract_strided_slice %5 {offsets = [0, 0, 0], sizes = [8, 16, 32], strides = [1, 1, 1]} : vector<10x16x32xbf16> to vector<8x16x32xbf16>
    %c0_2 = arith.constant 0 : index
    %c0_3 = arith.constant 0 : index
    %c0_4 = arith.constant 0 : index
    %7 = vector.load %arg4[%c0_2, %c0_3, %c0_4] : memref<9x32x128xbf16, #tpu.memory_space<vmem>>, vector<1x32x128xbf16>
    %8 = vector.shape_cast %7 : vector<1x32x128xbf16> to vector<32x128xbf16>
    %cst = arith.constant dense<0.000000e+00> : vector<8x16x128xf32>
    %9 = tpu.matmul %6, %8, %cst {dimension_numbers = #tpu.dot_dimension_numbers<[2], [0], [0, 1], [1], [0, 0, 0, 1, 1, 1], [], []>} : vector<8x16x32xbf16>, vector<32x128xbf16>, vector<8x16x128xf32> -> vector<8x16x128xf32>
    %c0_5 = arith.constant 0 : index
    %c0_6 = arith.constant 0 : index
    %c0_7 = arith.constant 0 : index
    %10 = vector.load %arg7[%c0_5, %c0_6, %c0_7] : memref<8x16x128xf32, #tpu.memory_space<vmem>>, vector<8x16x128xf32>
    tpu.vector_store %arg7[%c0_5, %c0_6, %c0_7], %9 {strides = array<i32>} : memref<8x16x128xf32, #tpu.memory_space<vmem>>, vector<8x16x128xf32>,
    %11 = vector.extract_strided_slice %5 {offsets = [1, 0, 0], sizes = [8, 16, 32], strides = [1, 1, 1]} : vector<10x16x32xbf16> to vector<8x16x32xbf16>
    %c3 = arith.constant 3 : index
    %c0_8 = arith.constant 0 : index
    %c0_9 = arith.constant 0 : index
    %12 = vector.load %arg4[%c3, %c0_8, %c0_9] : memref<9x32x128xbf16, #tpu.memory_space<vmem>>, vector<1x32x128xbf16>
    %13 = vector.shape_cast %12 : vector<1x32x128xbf16> to vector<32x128xbf16>
    %cst_10 = arith.constant dense<0.000000e+00> : vector<8x16x128xf32>
    %14 = tpu.matmul %11, %13, %cst_10 {dimension_numbers = #tpu.dot_dimension_numbers<[2], [0], [0, 1], [1], [0, 0, 0, 1, 1, 1], [], []>} : vector<8x16x32xbf16>, vector<32x128xbf16>, vector<8x16x128xf32> -> vector<8x16x128xf32>
    %c0_11 = arith.constant 0 : index
    %c0_12 = arith.constant 0 : index
    %c0_13 = arith.constant 0 : index
    %15 = vector.load %arg7[%c0_11, %c0_12, %c0_13] : memref<8x16x128xf32, #tpu.memory_space<vmem>>, vector<8x16x128xf32>
    %16 = arith.addf %15, %14 : vector<8x16x128xf32>
    %c0_14 = arith.constant 0 : index
    %c0_15 = arith.constant 0 : index
    %c0_16 = arith.constant 0 : index
    %17 = vector.load %arg7[%c0_14, %c0_15, %c0_16] : memref<8x16x128xf32, #tpu.memory_space<vmem>>, vector<8x16x128xf32>
    tpu.vector_store %arg7[%c0_14, %c0_15, %c0_16], %16 {strides = array<i32>} : memref<8x16x128xf32, #tpu.memory_space<vmem>>, vector<8x16x128xf32>,
    %18 = vector.extract_strided_slice %5 {offsets = [2, 0, 0], sizes = [8, 16, 32], strides = [1, 1, 1]} : vector<10x16x32xbf16> to vector<8x16x32xbf16>
    %c6 = arith.constant 6 : index
    %c0_17 = arith.constant 0 : index
    %c0_18 = arith.constant 0 : index
    %19 = vector.load %arg4[%c6, %c0_17, %c0_18] : memref<9x32x128xbf16, #tpu.memory_space<vmem>>, vector<1x32x128xbf16>
    %20 = vector.shape_cast %19 : vector<1x32x128xbf16> to vector<32x128xbf16>
    %cst_19 = arith.constant dense<0.000000e+00> : vector<8x16x128xf32>
    %21 = tpu.matmul %18, %20, %cst_19 {dimension_numbers = #tpu.dot_dimension_numbers<[2], [0], [0, 1], [1], [0, 0, 0, 1, 1, 1], [], []>} : vector<8x16x32xbf16>, vector<32x128xbf16>, vector<8x16x128xf32> -> vector<8x16x128xf32>
    %c0_20 = arith.constant 0 : index
    %c0_21 = arith.constant 0 : index
    %c0_22 = arith.constant 0 : index
    %22 = vector.load %arg7[%c0_20, %c0_21, %c0_22] : memref<8x16x128xf32, #tpu.memory_space<vmem>>, vector<8x16x128xf32>
    %23 = arith.addf %22, %21 : vector<8x16x128xf32>
    %c0_23 = arith.constant 0 : index
    %c0_24 = arith.constant 0 : index
    %c0_25 = arith.constant 0 : index
    %24 = vector.load %arg7[%c0_23, %c0_24, %c0_25] : memref<8x16x128xf32, #tpu.memory_space<vmem>>, vector<8x16x128xf32>
    tpu.vector_store %arg7[%c0_23, %c0_24, %c0_25], %23 {strides = array<i32>} : memref<8x16x128xf32, #tpu.memory_space<vmem>>, vector<8x16x128xf32>,
    %25 = vector.extract_strided_slice %4 {offsets = [0, 1, 0], sizes = [10, 16, 32], strides = [1, 1, 1]} : vector<10x18x32xbf16> to vector<10x16x32xbf16>
    %26 = vector.extract_strided_slice %25 {offsets = [0, 0, 0], sizes = [8, 16, 32], strides = [1, 1, 1]} : vector<10x16x32xbf16> to vector<8x16x32xbf16>
    %c1 = arith.constant 1 : index
    %c0_26 = arith.constant 0 : index
    %c0_27 = arith.constant 0 : index
    %27 = vector.load %arg4[%c1, %c0_26, %c0_27] : memref<9x32x128xbf16, #tpu.memory_space<vmem>>, vector<1x32x128xbf16>
    %28 = vector.shape_cast %27 : vector<1x32x128xbf16> to vector<32x128xbf16>
    %cst_28 = arith.constant dense<0.000000e+00> : vector<8x16x128xf32>
    %29 = tpu.matmul %26, %28, %cst_28 {dimension_numbers = #tpu.dot_dimension_numbers<[2], [0], [0, 1], [1], [0, 0, 0, 1, 1, 1], [], []>} : vector<8x16x32xbf16>, vector<32x128xbf16>, vector<8x16x128xf32> -> vector<8x16x128xf32>
    %c0_29 = arith.constant 0 : index
    %c0_30 = arith.constant 0 : index
    %c0_31 = arith.constant 0 : index
    %30 = vector.load %arg7[%c0_29, %c0_30, %c0_31] : memref<8x16x128xf32, #tpu.memory_space<vmem>>, vector<8x16x128xf32>
    %31 = arith.addf %30, %29 : vector<8x16x128xf32>
    %c0_32 = arith.constant 0 : index
    %c0_33 = arith.constant 0 : index
    %c0_34 = arith.constant 0 : index
    %32 = vector.load %arg7[%c0_32, %c0_33, %c0_34] : memref<8x16x128xf32, #tpu.memory_space<vmem>>, vector<8x16x128xf32>
    tpu.vector_store %arg7[%c0_32, %c0_33, %c0_34], %31 {strides = array<i32>} : memref<8x16x128xf32, #tpu.memory_space<vmem>>, vector<8x16x128xf32>,
    %33 = vector.extract_strided_slice %25 {offsets = [1, 0, 0], sizes = [8, 16, 32], strides = [1, 1, 1]} : vector<10x16x32xbf16> to vector<8x16x32xbf16>
    %c4 = arith.constant 4 : index
    %c0_35 = arith.constant 0 : index
    %c0_36 = arith.constant 0 : index
    %34 = vector.load %arg4[%c4, %c0_35, %c0_36] : memref<9x32x128xbf16, #tpu.memory_space<vmem>>, vector<1x32x128xbf16>
    %35 = vector.shape_cast %34 : vector<1x32x128xbf16> to vector<32x128xbf16>
    %cst_37 = arith.constant dense<0.000000e+00> : vector<8x16x128xf32>
    %36 = tpu.matmul %33, %35, %cst_37 {dimension_numbers = #tpu.dot_dimension_numbers<[2], [0], [0, 1], [1], [0, 0, 0, 1, 1, 1], [], []>} : vector<8x16x32xbf16>, vector<32x128xbf16>, vector<8x16x128xf32> -> vector<8x16x128xf32>
    %c0_38 = arith.constant 0 : index
    %c0_39 = arith.constant 0 : index
    %c0_40 = arith.constant 0 : index
    %37 = vector.load %arg7[%c0_38, %c0_39, %c0_40] : memref<8x16x128xf32, #tpu.memory_space<vmem>>, vector<8x16x128xf32>
    %38 = arith.addf %37, %36 : vector<8x16x128xf32>
    %c0_41 = arith.constant 0 : index
    %c0_42 = arith.constant 0 : index
    %c0_43 = arith.constant 0 : index
    %39 = vector.load %arg7[%c0_41, %c0_42, %c0_43] : memref<8x16x128xf32, #tpu.memory_space<vmem>>, vector<8x16x128xf32>
    tpu.vector_store %arg7[%c0_41, %c0_42, %c0_43], %38 {strides = array<i32>} : memref<8x16x128xf32, #tpu.memory_space<vmem>>, vector<8x16x128xf32>,
    %40 = vector.extract_strided_slice %25 {offsets = [2, 0, 0], sizes = [8, 16, 32], strides = [1, 1, 1]} : vector<10x16x32xbf16> to vector<8x16x32xbf16>
    %c7 = arith.constant 7 : index
    %c0_44 = arith.constant 0 : index
    %c0_45 = arith.constant 0 : index
    %41 = vector.load %arg4[%c7, %c0_44, %c0_45] : memref<9x32x128xbf16, #tpu.memory_space<vmem>>, vector<1x32x128xbf16>
    %42 = vector.shape_cast %41 : vector<1x32x128xbf16> to vector<32x128xbf16>
    %cst_46 = arith.constant dense<0.000000e+00> : vector<8x16x128xf32>
    %43 = tpu.matmul %40, %42, %cst_46 {dimension_numbers = #tpu.dot_dimension_numbers<[2], [0], [0, 1], [1], [0, 0, 0, 1, 1, 1], [], []>} : vector<8x16x32xbf16>, vector<32x128xbf16>, vector<8x16x128xf32> -> vector<8x16x128xf32>
    %c0_47 = arith.constant 0 : index
    %c0_48 = arith.constant 0 : index
    %c0_49 = arith.constant 0 : index
    %44 = vector.load %arg7[%c0_47, %c0_48, %c0_49] : memref<8x16x128xf32, #tpu.memory_space<vmem>>, vector<8x16x128xf32>
    %45 = arith.addf %44, %43 : vector<8x16x128xf32>
    %c0_50 = arith.constant 0 : index
    %c0_51 = arith.constant 0 : index
    %c0_52 = arith.constant 0 : index
    %46 = vector.load %arg7[%c0_50, %c0_51, %c0_52] : memref<8x16x128xf32, #tpu.memory_space<vmem>>, vector<8x16x128xf32>
    tpu.vector_store %arg7[%c0_50, %c0_51, %c0_52], %45 {strides = array<i32>} : memref<8x16x128xf32, #tpu.memory_space<vmem>>, vector<8x16x128xf32>,
    %47 = vector.extract_strided_slice %4 {offsets = [0, 2, 0], sizes = [10, 16, 32], strides = [1, 1, 1]} : vector<10x18x32xbf16> to vector<10x16x32xbf16>
    %48 = vector.extract_strided_slice %47 {offsets = [0, 0, 0], sizes = [8, 16, 32], strides = [1, 1, 1]} : vector<10x16x32xbf16> to vector<8x16x32xbf16>
    %c2 = arith.constant 2 : index
    %c0_53 = arith.constant 0 : index
    %c0_54 = arith.constant 0 : index
    %49 = vector.load %arg4[%c2, %c0_53, %c0_54] : memref<9x32x128xbf16, #tpu.memory_space<vmem>>, vector<1x32x128xbf16>
    %50 = vector.shape_cast %49 : vector<1x32x128xbf16> to vector<32x128xbf16>
    %cst_55 = arith.constant dense<0.000000e+00> : vector<8x16x128xf32>
    %51 = tpu.matmul %48, %50, %cst_55 {dimension_numbers = #tpu.dot_dimension_numbers<[2], [0], [0, 1], [1], [0, 0, 0, 1, 1, 1], [], []>} : vector<8x16x32xbf16>, vector<32x128xbf16>, vector<8x16x128xf32> -> vector<8x16x128xf32>
    %c0_56 = arith.constant 0 : index
    %c0_57 = arith.constant 0 : index
    %c0_58 = arith.constant 0 : index
    %52 = vector.load %arg7[%c0_56, %c0_57, %c0_58] : memref<8x16x128xf32, #tpu.memory_space<vmem>>, vector<8x16x128xf32>
    %53 = arith.addf %52, %51 : vector<8x16x128xf32>
    %c0_59 = arith.constant 0 : index
    %c0_60 = arith.constant 0 : index
    %c0_61 = arith.constant 0 : index
    %54 = vector.load %arg7[%c0_59, %c0_60, %c0_61] : memref<8x16x128xf32, #tpu.memory_space<vmem>>, vector<8x16x128xf32>
    tpu.vector_store %arg7[%c0_59, %c0_60, %c0_61], %53 {strides = array<i32>} : memref<8x16x128xf32, #tpu.memory_space<vmem>>, vector<8x16x128xf32>,
    %55 = vector.extract_strided_slice %47 {offsets = [1, 0, 0], sizes = [8, 16, 32], strides = [1, 1, 1]} : vector<10x16x32xbf16> to vector<8x16x32xbf16>
    %c5 = arith.constant 5 : index
    %c0_62 = arith.constant 0 : index
    %c0_63 = arith.constant 0 : index
    %56 = vector.load %arg4[%c5, %c0_62, %c0_63] : memref<9x32x128xbf16, #tpu.memory_space<vmem>>, vector<1x32x128xbf16>
    %57 = vector.shape_cast %56 : vector<1x32x128xbf16> to vector<32x128xbf16>
    %cst_64 = arith.constant dense<0.000000e+00> : vector<8x16x128xf32>
    %58 = tpu.matmul %55, %57, %cst_64 {dimension_numbers = #tpu.dot_dimension_numbers<[2], [0], [0, 1], [1], [0, 0, 0, 1, 1, 1], [], []>} : vector<8x16x32xbf16>, vector<32x128xbf16>, vector<8x16x128xf32> -> vector<8x16x128xf32>
    %c0_65 = arith.constant 0 : index
    %c0_66 = arith.constant 0 : index
    %c0_67 = arith.constant 0 : index
    %59 = vector.load %arg7[%c0_65, %c0_66, %c0_67] : memref<8x16x128xf32, #tpu.memory_space<vmem>>, vector<8x16x128xf32>
    %60 = arith.addf %59, %58 : vector<8x16x128xf32>
    %c0_68 = arith.constant 0 : index
    %c0_69 = arith.constant 0 : index
    %c0_70 = arith.constant 0 : index
    %61 = vector.load %arg7[%c0_68, %c0_69, %c0_70] : memref<8x16x128xf32, #tpu.memory_space<vmem>>, vector<8x16x128xf32>
    tpu.vector_store %arg7[%c0_68, %c0_69, %c0_70], %60 {strides = array<i32>} : memref<8x16x128xf32, #tpu.memory_space<vmem>>, vector<8x16x128xf32>,
    %62 = vector.extract_strided_slice %47 {offsets = [2, 0, 0], sizes = [8, 16, 32], strides = [1, 1, 1]} : vector<10x16x32xbf16> to vector<8x16x32xbf16>
    %c8 = arith.constant 8 : index
    %c0_71 = arith.constant 0 : index
    %c0_72 = arith.constant 0 : index
    %63 = vector.load %arg4[%c8, %c0_71, %c0_72] : memref<9x32x128xbf16, #tpu.memory_space<vmem>>, vector<1x32x128xbf16>
    %64 = vector.shape_cast %63 : vector<1x32x128xbf16> to vector<32x128xbf16>
    %cst_73 = arith.constant dense<0.000000e+00> : vector<8x16x128xf32>
    %65 = tpu.matmul %62, %64, %cst_73 {dimension_numbers = #tpu.dot_dimension_numbers<[2], [0], [0, 1], [1], [0, 0, 0, 1, 1, 1], [], []>} : vector<8x16x32xbf16>, vector<32x128xbf16>, vector<8x16x128xf32> -> vector<8x16x128xf32>
    %c0_74 = arith.constant 0 : index
    %c0_75 = arith.constant 0 : index
    %c0_76 = arith.constant 0 : index
    %66 = vector.load %arg7[%c0_74, %c0_75, %c0_76] : memref<8x16x128xf32, #tpu.memory_space<vmem>>, vector<8x16x128xf32>
    %67 = arith.addf %66, %65 : vector<8x16x128xf32>
    %c0_77 = arith.constant 0 : index
    %c0_78 = arith.constant 0 : index
    %c0_79 = arith.constant 0 : index
    %68 = vector.load %arg7[%c0_77, %c0_78, %c0_79] : memref<8x16x128xf32, #tpu.memory_space<vmem>>, vector<8x16x128xf32>
    tpu.vector_store %arg7[%c0_77, %c0_78, %c0_79], %67 {strides = array<i32>} : memref<8x16x128xf32, #tpu.memory_space<vmem>>, vector<8x16x128xf32>,
    %c0_80 = arith.constant 0 : index
    %c0_81 = arith.constant 0 : index
    %c0_82 = arith.constant 0 : index
    %69 = vector.load %arg7[%c0_80, %c0_81, %c0_82] : memref<8x16x128xf32, #tpu.memory_space<vmem>>, vector<8x16x128xf32>
    %c0_83 = arith.constant 0 : index
    %c0_84 = arith.constant 0 : index
    %70 = vector.load %arg5[%c0_83, %c0_84] : memref<1x128xf32, #tpu.memory_space<vmem>>, vector<1x128xf32>
    %71 = vector.shape_cast %70 : vector<1x128xf32> to vector<1x1x128xf32>
    %72 = vector.broadcast %71 : vector<1x1x128xf32> to vector<8x16x128xf32>
    %73 = arith.addf %69, %72 : vector<8x16x128xf32>
    %c0_85 = arith.constant 0 : index
    %c0_86 = arith.constant 0 : index
    %c0_87 = arith.constant 0 : index
    %c0_88 = arith.constant 0 : index
    %74 = vector.load %arg6[%c0_85, %c0_86, %c0_87, %c0_88] : memref<1x8x16x128xf32, #tpu.memory_space<vmem>>, vector<1x8x16x128xf32>
    %75 = vector.shape_cast %74 : vector<1x8x16x128xf32> to vector<8x16x128xf32>
    %76 = vector.shape_cast %73 : vector<8x16x128xf32> to vector<1x8x16x128xf32>
    tpu.vector_store %arg6[%c0_85, %c0_86, %c0_87, %c0_88], %76 {strides = array<i32>} : memref<1x8x16x128xf32, #tpu.memory_space<vmem>>, vector<1x8x16x128xf32>,
    return
  }
  func.func @transform_0(%arg0: i32, %arg1: i32, %arg2: i32) -> (i32, i32, i32, i32) {
    %c0_i32 = arith.constant 0 : i32
    %c0_i32_0 = arith.constant 0 : i32
    %c0_i32_1 = arith.constant 0 : i32
    %c0_i32_2 = arith.constant 0 : i32
    return %arg0, %c0_i32, %c0_i32_0, %c0_i32_1 : i32, i32, i32, i32
  }
  func.func @transform_1(%arg0: i32, %arg1: i32, %arg2: i32) -> (i32, i32, i32) {
    %c0_i32 = arith.constant 0 : i32
    %c0_i32_0 = arith.constant 0 : i32
    %c0_i32_1 = arith.constant 0 : i32
    return %c0_i32, %c0_i32_0, %arg1 : i32, i32, i32
  }
  func.func @transform_2(%arg0: i32, %arg1: i32, %arg2: i32) -> (i32, i32) {
    %c0_i32 = arith.constant 0 : i32
    %c0_i32_0 = arith.constant 0 : i32
    return %c0_i32, %arg1 : i32, i32
  }
  func.func @transform_3(%arg0: i32, %arg1: i32, %arg2: i32) -> (i32, i32, i32, i32) {
    %c0_i32 = arith.constant 0 : i32
    %c0_i32_0 = arith.constant 0 : i32
    return %arg0, %arg2, %c0_i32, %arg1 : i32, i32, i32, i32
  }
}

</mosaic_0001>

<bundles_post_ra>
// kernel: _retina_forward_single.10
= control target key start
LH: loop header
LB: loop body
LE: loop exit
PB: predicated region body
PF: predicated region fallthrough
CT: control target
= control target key end

     0   :  { %s2973_s12 = smov 0   ;;  %s2975_s13 = smov 0   ;;  %s3959_s0 = inlined_call_operand.vmem [shape: bf16[2,18,18,4], index: 0, kind: input, shape index: {}]   ;;  %s3960_s1 = inlined_call_operand.vmem [shape: bf16[9,4,128], index: 1, kind: input, shape index: {}]   ;;  %s3961_s2 = inlined_call_operand.vmem [shape: f32[1,128], index: 2, kind: input, shape index: {}]   ;;  %s3962_s3 = inlined_call_operand.vmem [shape: bf16[2,16,16,128], index: 3, kind: output, shape index: {}]  }
   0x1   :  { %s2977_s14 = smov 0   ;;  %s2979_s15 = smov 0  }
   0x2   :  { %s2981_s16 = smov 0  }
   0x3 LB: > { %s25_s17 = sadd.s32 1, %s2943_s14  ;;  %s32_s18 = sadd.s32 1, %s2947_s15  ;;  %s2951_s16 = sphi %s2981_s16, %s13_s16   ;;  %s2947_s15 = sphi %s2979_s15, %s4056_s15   ;;  %s2943_s14 = sphi %s2977_s14, %s4055_s14   ;;  %s2939_s13 = sphi %s2975_s13, %s4054_s13   ;;  %s2935_s12 = sphi %s2973_s12, %s4053_s12  }
   0x4   : > { %p26_p0 = scmp.ge.s32.totalorder %s25_s17, 2  ;;  %p2395_p1 = scmp.ge.s32.totalorder %s2951_s16, 1 }
   0x5   : > { %p177_p2 = scmp.lt.s32.totalorder %s2951_s16, 5 }
   0x6   : > { %s4058_s17 = smov (%p26_p0, %s25_s17), 0  ;;  %s4060_s18 = smov (!%p26_p0, %s32_s18), %s2947_s15 }
   0x7   : > { %p178_p3 = pnand %p2395_p1, %p177_p2  ;;  %p34_p4 = scmp.ge.s32.totalorder %s4060_s18, 2 }
   0x9   : > { %s4062_s18 = smov (%p34_p4, %s4060_s18), 0  ;;  %181 = sbr.rel (%p178_p3) target bundleno = 376 (0x178), region = 32 }
   0xe   : > { %v277_v0 = vld [vmem:[%s3960_s1] sm:$0x3]  ;;  %vm343_vm0 = vcmask 1041408   ;;  %p216_p5 = scmp.lt.s32.totalorder %s2939_s13, 1  ;;  %v2420_v2 = vld [vmem:[%s3960_s1 + $0x6] sm:$0x3] }
   0xf   : > { %2853 = vmatprep.subr.msk.bf16.mxu1 %vm343_vm0, %v277_v0  ;;  %2852 = vmatprep.subr.msk.bf16.mxu0 %vm343_vm0, %v277_v0  ;;  %v345_v1 = vsel %vm343_vm0, %v277_v0, 0  ;;  %v2430_v3 = vld [vmem:[%s3960_s1 + $0xc] sm:$0x3]  ;;  %s2543_s25 = smul.u32 96, %s2935_s12  ;;  %vm318_vm1 = vcmask 31744   ;;  %v471_v16 = vsel %vm343_vm0, %v2420_v2, 0 }
  0x10   : > { %2851 = vmatpush3.bf16.msra.mxu1 %v345_v1  ;;  %2689 = vmatpush3.bf16.msra.mxu0 %v345_v1  ;;  %s4064_s13 = smov (!%p216_p5, %s2939_s13), 1  ;;  %v3053_v14 = vld [vmem:[%s3960_s1 + $0x2] sm:$0x3]  ;;  %v2457_v15 = vld [vmem:[%s3960_s1 + $0x8] sm:$0x3]  ;;  %v629_v21 = vsel %vm343_vm0, %v2430_v3, 0 }
  0x11   : > { %2854 = vmatprep.subr.msk.bf16.mxu1 %vm343_vm0, %v2420_v2  ;;  %2855 = vmatprep.subr.msk.bf16.mxu0 %vm343_vm0, %v2430_v3  ;;  %s2862_s26 = smul.u32 216, %s4064_s13  ;;  %v3063_v17 = vld [vmem:[%s3960_s1 + $0xe] sm:$0x3]  ;;  %v3077_v24 = vsel %vm343_vm0, %v3053_v14, 0  ;;  %v3080_v25 = vsel %vm343_vm0, %v2457_v15, 0  ;;  %vm1539_vm5 = vcmask 1042432  }
  0x12   : > { %v3085_v26 = vld [vmem:[%s3960_s1 + $0x4] sm:$0x3]  ;;  %v3108_v35 = vsel %vm343_vm0, %v3063_v17, 0  ;;  %vm778_vm2 = vsmask.f32 3328  ;;  %vm1540_vm6 = vcmask 1046532  }
  0x13   : > { %s220_s29 = scalar_lea.vmem %s3959_s0, %s2862_s26  ;;  %3976 = vst [vmem:[#allocation6_spill] sm:$0xff] %v3108_v35  ;;  %v3121_v40 = vsel %vm343_vm0, %v3085_v26, 0  ;;  %vm779_vm3 = vsmask.f32 7440  ;;  %vm3382_vm7 = vmor %vm1539_vm5, %vm1540_vm6  ;;  %s2397_s23 = sshll.u32 %s2935_s12, 3 }
  0x14   : > { %s3026_s30 = scalar_lea.vmem %s220_s29, %s2543_s25  ;;  %3977 = vst [vmem:[#allocation7_spill] sm:$0xff] %v3121_v40  ;;  %vm3255_vm4 = vmor %vm778_vm2, %vm779_vm3  ;;  %p231_p6 = scmp.lt.s32.totalorder %s2397_s23, 15 }
  0x15   : > { %v3029_v4 = vld [vmem:[%s3026_s30] sm:$0xf]  ;;  %v3032_v5 = vld [vmem:[%s3026_s30 + $0x4] sm:$0xf]  ;;  %v3035_v6 = vld [vmem:[%s3026_s30 + $0x30] sm:$0xf] }
  0x16   : > { %3973 = vst [vmem:[#allocation3_spill] sm:$0xff] %v3035_v6  ;;  %v2404_v7 = vcombine.low %v3029_v4, %v3032_v5  ;;  %v782_v8 = vshrl.u32 %v3029_v4, 16  ;;  %v785_v9 = vshll.u32 %v3029_v4, 16  ;;  %v3042_v10 = vld [vmem:[%s3026_s30 + $0x34] sm:$0xf]  ;;  %v791_v11 = vshll.u32 %v3032_v5, 16 }
  0x17   : > { %3974 = vst [vmem:[#allocation4_spill] sm:$0xff] %v3042_v10  ;;  %v795_v12 = vshrl.u32 %v3032_v5, 16  ;;  %v3048_v13 = vcombine.low %v3035_v6, %v3042_v10  ;;  %v3964_v18 = vrot.slane %v3032_v5, 5  ;;  %v3069_v19 = vld [vmem:[%s3026_s30 + $0xc] sm:$0xf]  ;;  %v878_v31 = vshrl.u32 %v3035_v6, 16 }
  0x18   : > { %2690 = vmatprep.mubr.msk.bf16.mxu0 %vm318_vm1, %v2404_v7  ;;  %v3072_v20 = vld [vmem:[%s3026_s30 + $0x10] sm:$0xf]  ;;  %v784_v22 = vrot.slane %v782_v8, 4  ;;  %v787_v23 = vrot.slane %v785_v9, 5  ;;  %v3087_v27 = vrot.slane %v791_v11, 5  ;;  %v881_v38 = vshll.u32 %v3035_v6, 16 }
  0x19   : > { %2698 = vmatprep.mubr.msk.bf16.mxu1 %vm318_vm1, %v3048_v13  ;;  %v797_v28 = vrot.slane %v795_v12, 4  ;;  %v3090_v29 = vld [vmem:[%s3026_s30 + $0x3c] sm:$0xf]  ;;  %v3093_v30 = vld [vmem:[%s3026_s30 + $0x40] sm:$0xf]  ;;  %v3098_v32 = vcombine.low %v3069_v19, %v3072_v20  ;;  %v3113_v37 = vrot.slane %v3964_v18, 4 }
  0x1a   : > { %3975 = vst [vmem:[#allocation5_spill] sm:$0xff] %v3093_v30  ;;  %v3101_v33 = vld [vmem:[%s3026_s30 + $0x18] sm:$0xf]  ;;  %v3104_v34 = vld [vmem:[%s3026_s30 + $0x1c] sm:$0xf]  ;;  %v788_v41 = vor.u32 %v787_v23, %v784_v22  ;;  %v887_v42 = vshll.u32 %v3042_v10, 16  ;;  %v3129_v44 = vcombine.low %v3090_v29, %v3093_v30 }
  0x1b   : > { %v3117_v39 = vld [vmem:[%s3026_s30 + $0x48] sm:$0xf]  ;;  %v891_v43 = vshrl.u32 %v3042_v10, 16  ;;  %2691 = vmatmul.mubr.msk.bf16.vlgmr.msra.gmra.mxu0 %vm318_vm1, %v3098_v32  ;;  %v3132_v45 = vld [vmem:[%s3026_s30 + $0x4c] sm:$0xf]  ;;  %v798_v46 = vor.u32 %v797_v28, %v3087_v27  ;;  %v3137_v47 = vcombine.low %v3101_v33, %v3104_v34  ;;  %v830_v48 = vshrl.u32 %v3101_v33, 16 }
  0x1c   : > { %2725 = vmatpush3.bf16.msra.mxu0 %v629_v21  ;;  %v833_v49 = vshll.u32 %v3101_v33, 16  ;;  %v3142_v50 = vld [vmem:[%s3026_s30 + $0x24] sm:$0xf]  ;;  %v3144_v51 = vrot.slane %v878_v31, 4  ;;  %2699 = vmatmul.mubr.msk.bf16.vlgmr.msra.gmra.mxu1 %vm318_vm1, %v3129_v44  ;;  %v839_v52 = vshll.u32 %v3104_v34, 16  ;;  %v843_v53 = vshrl.u32 %v3104_v34, 16 }
  0x1d   : > { %v3152_v54 = vcombine.low %v3117_v39, %v3132_v45  ;;  %v3155_v55 = vld [vmem:[%s3026_s30 + $0x28] sm:$0xf]  ;;  %2857 = vmatprep.subr.msk.bf16.mxu0 %vm343_vm0, %v2457_v15  ;;  %v3158_v56 = vrot.slane %v881_v38, 5  ;;  %2707 = vmatpush3.bf16.msra.mxu1 %v471_v16  ;;  %v832_v58 = vrot.slane %v830_v48, 4  ;;  %v3164_v60 = vld [vmem:[%s3026_s30 + $0x54] sm:$0xf] }
  0x1e   : > { %2694 = vmatprep.mubr.msk.bf16.mxu0 %vm318_vm1, %v3137_v47  ;;  %v835_v59 = vrot.slane %v833_v49, 5  ;;  %v3166_v61 = vrot.slane %v887_v42, 5  ;;  %v3963_v63 = vrot.slane %v3072_v20, 5  ;;  %v3174_v0 = vcombine.low %v3142_v50, %v3155_v55  ;;  %v3177_v1 = vld [vmem:[%s3026_s30 + $0x58] sm:$0xf]  ;;  %2856 = vmatprep.subr.msk.bf16.mxu1 %vm343_vm0, %v3053_v14  ;;  %s4066_s23 = smov (!%p231_p6, %s2397_s23), 15 }
  0x1f   : > { %2702 = vmatprep.mubr.msk.bf16.mxu1 %vm318_vm1, %v3152_v54  ;;  %v3181_v2 = vrot.slane %v788_v41, 4  ;;  %v3183_v3 = vrot.slane %v798_v46, 4  ;;  %v3185_v7 = vrot.slane %v891_v43, 4  ;;  %v806_v8 = vshrl.u32 %v3069_v19, 16  ;;  %v3232_v14 = vld [vmem:[%s3026_s30 + $0x6c] sm:$0xf] }
  0x20   : > { %v809_v9 = vshll.u32 %v3069_v19, 16  ;;  %v3189_v11 = vrot.slane %v839_v52, 5  ;;  %v845_v12 = vrot.slane %v843_v53, 4  ;;  %v3193_v15 = vcombine.low %v3164_v60, %v3177_v1  ;;  %v3218_v52 = vld [vmem:[%s3026_s30 + $0x60] sm:$0xf]  ;;  %s2398_s12 = sshll.u32 %s4066_s23, 1 }
  0x21   : > { %v819_v16 = vshrl.u32 %v3072_v20, 16  ;;  %v836_v22 = vor.u32 %v835_v59, %v832_v58  ;;  %v3200_v23 = vrot.slane %v3963_v63, 4  ;;  %v854_v43 = vshrl.u32 %v3142_v50, 16  ;;  %v3221_v53 = vld [vmem:[%s3026_s30 + $0x64] sm:$0xf]  ;;  %s2399_s24 = sshll.u32 %s4064_s13, 5 }
  0x22   : > { %v857_v46 = vshll.u32 %v3142_v50, 16  ;;  %v846_v48 = vor.u32 %v845_v12, %v3189_v11  ;;  %v867_v49 = vshrl.u32 %v3155_v55, 16  ;;  %3978 = vst [vmem:[#allocation8_spill] sm:$0xff] %v3221_v53  ;;  %v815_v58 = vshll.u32 %v3072_v20, 16  ;;  %v3235_v63 = vld [vmem:[%s3026_s30 + $0x70] sm:$0xf]  ;;  %s3873_s13 = sadd.s32 %s2399_s24, %s2398_s12 }
  0x23   : > { %2695 = vmatmul.mubr.msk.bf16.gmra.mxu0 %vm318_vm1, %v3174_v0  ;;  %v3224_v59 = vrot.slane %v836_v22, 4  ;;  %v3238_v36 = vld [vmem:[%s3026_s30 + $0x8] sm:$0x1]  ;;  %v808_v18 = vrot.slane %v806_v8, 4  ;;  %v811_v22 = vrot.slane %v809_v9, 5  ;;  %v3242_v57 = vcombine.low %v3218_v52, %v3221_v53  ;;  %s2400_s27 = sshll.u32 %s3873_s13, 2 }
  0x24   : > { %2726 = vmatprep.mubr.msk.bf16.mxu0 %vm318_vm1, %v3137_v47  ;;  %2703 = vmatmul.mubr.msk.bf16.gmra.mxu1 %vm318_vm1, %v3193_v15  ;;  %v3245_v62 = vld [vmem:[%s3026_s30 + $0x14] sm:$0x1]  ;;  %v3247_v42 = vrot.slane %v815_v58, 5  ;;  %v821_v12 = vrot.slane %v819_v16, 4  ;;  %v3250_v41 = vrot.slane %v846_v48, 4  ;;  %v856_v31 = vrot.slane %v854_v43, 4 }
  0x25   : > { %2708 = vmatprep.mubr.msk.bf16.mxu1 %vm318_vm1, %v3098_v32  ;;  %v863_v32 = vshll.u32 %v3155_v55, 16  ;;  %v3260_v9 = vld [vmem:[%s3026_s30 + $0x20] sm:$0x1]  ;;  %v859_v28 = vrot.slane %v857_v46, 5  ;;  %v801_v16 = vshll.u32 %v3238_v36, 16  ;;  %v869_v35 = vrot.slane %v867_v49, 4 }
  0x26   : > { %v3265_v21 = vld [vmem:[%s3026_s30 + $0x2c] sm:$0x1]  ;;  %v812_v6 = vor.u32 %v811_v22, %v808_v18  ;;  %v825_v43 = vshll.u32 %v3245_v62, 16  ;;  %v3276_v46 = vld [vmem:[%s3026_s30 + $0x38] sm:$0x1]  ;;  %v822_v38 = vor.u32 %v821_v12, %v3247_v42  ;;  %v849_v18 = vshll.u32 %v3260_v9, 16 }
  0x27   : > { %3981 = vst [vmem:[#allocation9_spill] sm:$0xff] %v3265_v21  ;;  %v3267_v48 = vrot.slane %v863_v32, 5  ;;  %3982 = vst [vmem:[#allocation10_spill] sm:$0xff] %v3276_v46  ;;  %v873_v49 = vshll.u32 %v3265_v21, 16  ;;  %v884_v40 = vor.u32 %v3158_v56, %v3144_v51  ;;  %v803_v12 = vrot.slane %v801_v16, 5 }
  0x28   : > { %v813_v51 = vrot.slane %v812_v6, 4  ;;  %v827_v56 = vrot.slane %v825_v43, 5  ;;  %v823_v16 = vrot.slane %v822_v38, 4  ;;  %v3985_v58 = vshrl.u32 %v3093_v30, 16 }
  0x29   : > { %v870_v22 = vor.u32 %v869_v35, %v3267_v48  ;;  %v894_v35 = vor.u32 %v3185_v7, %v3166_v61  ;;  %v911_v7 = vshll.u32 %v3093_v30, 16  ;;  %v3987_v30 = vshll.u32 %v3117_v39, 16 }
  0x2a   : > { %v917_v32 = vrot.slane %v3985_v58, 4 }
  0x2b   : > { %2727 = vmatmul.mubr.msk.bf16.vlgmr.msra.gmra.mxu0 %vm318_vm1, %v3174_v0  ;;  %v871_v43 = vrot.slane %v870_v22, 4  ;;  %v895_v10 = vrot.slane %v894_v35, 4  ;;  %v913_v21 = vrot.slane %v911_v7, 5  ;;  %v931_v58 = vrot.slane %v3987_v30, 5 }
  0x2c   : > { %2761 = vmatpush3.bf16.msra.mxu0 %v3080_v25  ;;  %2730 = vmatprep.mubr.msk.bf16.mxu0 %vm318_vm1, %v3048_v13  ;;  %v860_v25 = vor.u32 %v859_v28, %v856_v31  ;;  %v3984_v28 = vshll.u32 %v3090_v29, 16  ;;  %v828_v30 = vsel %vm3255_vm4, %v823_v16, %v827_v56  ;;  %v3989_v16 = vshrl.u32 %v3164_v60, 16 }
  0x2d   : > { %2709 = vmatmul.mubr.msk.bf16.vlgmr.msra.gmra.mxu1 %vm318_vm1, %v3137_v47  ;;  %2859 = vmatprep.subr.msk.bf16.mxu0 %vm343_vm0, %v3085_v26  ;;  %v842_v26 = vsel %vm3255_vm4, %v3224_v59, %v3189_v11  ;;  %v897_v47 = vshll.u32 %v3276_v46, 16  ;;  %v851_v11 = vrot.slane %v849_v18, 5  ;;  %v3313_v59 = vld [vmem:[%s3026_s30 + $0x44] sm:$0x1]  ;;  %v875_v46 = vrot.slane %v873_v49, 5 }
  0x2e   : > { %2743 = vmatpush3.bf16.msra.mxu1 %v3077_v24  ;;  %2712 = vmatprep.mubr.msk.bf16.mxu1 %vm318_vm1, %v3174_v0  ;;  %v3983_v24 = vshrl.u32 %v3090_v29, 16  ;;  %v907_v31 = vrot.slane %v3984_v28, 5  ;;  %v861_v6 = vrot.slane %v860_v25, 4  ;;  %v921_v38 = vshll.u32 %v3313_v59, 16 }
  0x2f   : > { %2858 = vmatprep.subr.msk.bf16.mxu1 %vm343_vm0, %v3063_v17  ;;  %v885_v17 = vrot.slane %v884_v40, 4  ;;  %v899_v53 = vrot.slane %v897_v47, 5  ;;  %v3986_v18 = vshrl.u32 %v3117_v39, 16  ;;  %v935_v25 = vshll.u32 %v3132_v45, 16  ;;  %v3338_v47 = vld [vmem:[%s3026_s30 + $0x50] sm:$0x1] }
  0x30   : > { %v904_v0 = vrot.slane %v3983_v24, 4  ;;  %v804_v40 = vsel %vm3255_vm4, %v3183_v3, %v803_v12  ;;  %v818_v49 = vsel %vm3255_vm4, %v813_v51, %v3247_v42  ;;  %v852_v22 = vsel %vm3255_vm4, %v3250_v41, %v851_v11 }
  0x31   : > { %v928_v28 = vrot.slane %v3986_v18, 4  ;;  %v918_v35 = vor.u32 %v917_v32, %v913_v21  ;;  %v866_v3 = vsel %vm3255_vm4, %v861_v6, %v3267_v48  ;;  %v876_v42 = vsel %vm3255_vm4, %v871_v43, %v875_v46 }
  0x32   : > { %v908_v24 = vor.u32 %v907_v31, %v904_v0  ;;  %v890_v41 = vsel %vm3255_vm4, %v885_v17, %v3166_v61  ;;  %v3356_v12 = vrot.slane %v935_v25, 5  ;;  %v3988_v51 = vshrl.u32 %v3132_v45, 16 }
  0x33   : > { %2731 = vmatmul.mubr.msk.bf16.gmra.mxu0 %vm318_vm1, %v3129_v44  ;;  %v919_v48 = vrot.slane %v918_v35, 4  ;;  %v923_v0 = vrot.slane %v921_v38, 5  ;;  %v932_v46 = vor.u32 %v931_v58, %v928_v28  ;;  %v945_v31 = vshll.u32 %v3338_v47, 16 }
  0x34   : > { %2734 = vmatprep.mubr.msk.bf16.mxu0 %vm318_vm1, %v3152_v54  ;;  %v909_v32 = vrot.slane %v908_v24, 4  ;;  %v941_v56 = vrot.slane %v3988_v51, 4  ;;  %v1355_v61 = vshll.u32 %v3232_v14, 16  ;;  %v959_v11 = vshll.u32 %v3177_v1, 16 }
  0x35   : > { %2713 = vmatmul.mubr.msk.bf16.gmra.mxu1 %vm318_vm1, %v3048_v13  ;;  %v900_v13 = vsel %vm3255_vm4, %v895_v10, %v899_v53  ;;  %v3990_v10 = vshll.u32 %v3164_v60, 16  ;;  %v1365_v7 = vshrl.u32 %v3235_v63, 16  ;;  %v3991_v6 = vsel %vm3255_vm4, %v3181_v2, %v3087_v27  ;;  %v3394_v27 = vld [vmem:[%s3026_s30 + $0x5c] sm:$0x1] }
  0x36   : > { %2716 = vmatprep.mubr.msk.bf16.mxu1 %vm318_vm1, %v3129_v44  ;;  %v3364_v44 = vrot.slane %v3989_v16, 4  ;;  %v2441_v43 = vcombine.low %v3991_v6, %v804_v40  ;;  %v1554_v17 = vrot.slane %v3245_v62, 5  ;;  %v3378_v24 = vcombine.low %v842_v26, %v852_v22 }
  0x37   : > { %v3368_v53 = vrot.slane %v3990_v10, 5  ;;  %v3386_v18 = vcombine.low %v818_v49, %v828_v30  ;;  %v3388_v28 = vcombine.low %v866_v3, %v876_v42  ;;  %v3390_v58 = vcombine.low %v890_v41, %v900_v13 }
  0x38   : > { %v942_v25 = vor.u32 %v941_v56, %v3356_v12  ;;  %v914_v62 = vsel %vm3255_vm4, %v909_v32, %v913_v21  ;;  %v924_v2 = vsel %vm3255_vm4, %v919_v48, %v923_v0  ;;  %v3402_v26 = vrot.slane %v932_v46, 4 }
  0x39   : > { %v3404_v40 = vrot.slane %v945_v31, 5  ;;  %v956_v49 = vor.u32 %v3368_v53, %v3364_v44  ;;  %v3410_v22 = vrot.slane %v959_v11, 5  ;;  %v3994_v35 = vshrl.u32 %v3177_v1, 16 }
  0x3a   : > { %v3995_v21 = vrot.slane %v3032_v5, 5  ;;  %v3996_v3 = vrot.slane %v3029_v4, 9  ;;  %v969_v41 = vshll.u32 %v3394_v27, 16  ;;  %v3997_v13 = vshrl.u32 %v3218_v52, 16 }
  0x3b   : > { %2735 = vmatmul.mubr.msk.bf16.gmra.mxu0 %vm318_vm1, %v3193_v15  ;;  %v3414_v30 = vrot.slane %v3994_v35, 4  ;;  %v1547_v51 = vrot.slane %v3238_v36, 5  ;;  %v3998_v56 = vrot.slane %v3072_v20, 5  ;;  %v3999_v5 = vrot.slane %v3069_v19, 9 }
  0x3c   : > { %2738 = vmatprep.mubr.msk.bf16.mxu0 %vm318_vm1, %v3242_v57  ;;  %v3422_v42 = vsel %vm3382_vm7, %v3996_v3, %v3995_v21  ;;  %v3429_v32 = vrot.slane %v3997_v13, 4  ;;  %v3440_v48 = vcombine.low %v914_v62, %v924_v2  ;;  %v4000_v0 = vshll.u32 %v3218_v52, 16  ;;  %v4002_v62 = vld [vmem:[#allocation8_spill] sm:$0xff]  ;;  %v4005_v21 = vld [vmem:[#allocation3_spill] sm:$0xff] }
  0x3d   : > { %2717 = vmatmul.mubr.msk.bf16.gmra.mxu1 %vm318_vm1, %v3152_v54  ;;  %v1552_v4 = vsel %vm3382_vm7, %v3999_v5, %v3998_v56  ;;  %v3442_v54 = vrot.slane %v942_v25, 4  ;;  %v1555_v20 = vsel %vm3382_vm7, %v3200_v23, %v1554_v17  ;;  %v3454_v19 = vsel %vm3382_vm7, %v3113_v37, %v1547_v51  ;;  %v4001_v25 = vld [vmem:[#allocation9_spill] sm:$0xff]  ;;  %v4003_v2 = vld [vmem:[#allocation4_spill] sm:$0xff]  ;;  %v4008_v51 = vld [vmem:[#allocation10_spill] sm:$0xff] }
  0x3e   : > { %2720 = vmatprep.mubr.msk.bf16.mxu1 %vm318_vm1, %v3193_v15  ;;  %v3446_v46 = vrot.slane %v4000_v0, 5  ;;  %v3456_v36 = vcombine.low %v1552_v4, %v1555_v20  ;;  %v2480_v15 = vrot.slane %v3101_v33, 9  ;;  %v1558_v31 = vrot.slane %v3104_v34, 5 }
  0x3f   : > { %v966_v16 = vor.u32 %v3414_v30, %v3410_v22  ;;  %v2486_v10 = vcombine.low %v3422_v42, %v3454_v19  ;;  %v1561_v11 = vrot.slane %v3260_v9, 5  ;;  %v2481_v23 = vrot.slane %v3142_v50, 9 }
  0x40   : > { %v1559_v37 = vsel %vm3382_vm7, %v2480_v15, %v1558_v31  ;;  %v1560_v6 = vrot.slane %v1558_v31, 4  ;;  %v1565_v17 = vrot.slane %v3155_v55, 5  ;;  %v1568_v33 = vrot.slane %v4001_v25, 5 }
  0x41   : > { %v1181_v34 = vshll.u32 %v4002_v62, 16  ;;  %v4004_v35 = vrot.slane %v4003_v2, 5  ;;  %v4006_v3 = vrot.slane %v4005_v21, 9  ;;  %v1575_v56 = vrot.slane %v4008_v51, 5 }
  0x42   : > { %v4009_v5 = vcombine.low %v3232_v14, %v3235_v63  ;;  %v4010_v55 = vshrl.u32 %v4002_v62, 16  ;;  %v1562_v0 = vsel %vm3382_vm7, %v1560_v6, %v1561_v11  ;;  %v1566_v20 = vsel %vm3382_vm7, %v2481_v23, %v1565_v17 }
  0x43   : > { %v1573_v13 = vsel %vm3382_vm7, %v4006_v3, %v4004_v35  ;;  %v4007_v9 = vmov %v4004_v35  ;;  %v1567_v15 = vrot.slane %v1565_v17, 4  ;;  %v3494_v31 = vcombine.low %v1559_v37, %v1562_v0  ;;  %v4011_v35 = vld [vmem:[#allocation5_spill] sm:$0xff] }
  0x44   : > { %v1574_v50 = vrot.slane %v4007_v9, 4  ;;  %2739 = vmatmul.mubr.msk.bf16.gmra.mxu0 %vm318_vm1, %v4009_v5  ;;  %v3486_v4 = vrot.slane %v4010_v55, 4  ;;  %v2483_v2 = vrot.slane %v3090_v29, 9  ;;  %v1579_v21 = vrot.slane %v4011_v35, 5 }
  0x45   : > { %2762 = vmatprep.mubr.msk.bf16.mxu0 %vm318_vm1, %v3386_v18  ;;  %2721 = vmatmul.mubr.msk.bf16.gmra.mxu1 %vm318_vm1, %v3242_v57  ;;  %v1569_v11 = vsel %vm3382_vm7, %v1567_v15, %v1568_v33  ;;  %v1582_v6 = vrot.slane %v3313_v59, 5  ;;  %v2484_v37 = vrot.slane %v3117_v39, 9  ;;  %v1586_v9 = vrot.slane %v3132_v45, 5  ;;  %v276_v57 = vld [vmem:[%s3026_s30 + $0x74] sm:$0x1] }
  0x46   : > { %v1576_v25 = vsel %vm3382_vm7, %v1574_v50, %v1575_v56  ;;  %2744 = vmatprep.mubr.msk.bf16.mxu1 %vm318_vm1, %v2441_v43  ;;  %v3509_v17 = vcombine.low %v1566_v20, %v1569_v11  ;;  %v1580_v29 = vsel %vm3382_vm7, %v2483_v2, %v1579_v21  ;;  %v1581_v3 = vrot.slane %v1579_v21, 4  ;;  %v3544_v2 = vld [vmem:[%s3960_s1 + $0xa] sm:$0x3] }
  0x47   : > { %v3504_v23 = vcombine.low %v1573_v13, %v1576_v25  ;;  %v1589_v50 = vrot.slane %v3338_v47, 5  ;;  %v4012_v33 = vshrl.u32 %v3232_v14, 16  ;;  %v1357_v59 = vrot.slane %v1355_v61, 5  ;;  %v3532_v61 = vld [vmem:[%s3960_s1 + $0x10] sm:$0x3] }
  0x48   : > { %v1361_v39 = vshll.u32 %v3235_v63, 16  ;;  %v1583_v43 = vsel %vm3382_vm7, %v1581_v3, %v1582_v6  ;;  %v1587_v51 = vsel %vm3382_vm7, %v2484_v37, %v1586_v9  ;;  %v1588_v56 = vrot.slane %v1586_v9, 4  ;;  %v4013_v37 = vld [vmem:[#allocation7_spill] sm:$0xff] }
  0x49   : > { %v1354_v13 = vrot.slane %v4012_v33, 4  ;;  %v1367_v45 = vrot.slane %v1365_v7, 4  ;;  %v3527_v5 = vcombine.low %v1580_v29, %v1583_v43  ;;  %v1371_v0 = vshll.u32 %v276_v57, 16 }
  0x4a   : > { %v1363_v55 = vrot.slane %v1361_v39, 5  ;;  %v1590_v20 = vsel %vm3382_vm7, %v1588_v56, %v1589_v50  ;;  %v2485_v15 = vrot.slane %v3164_v60, 9  ;;  %v1593_v25 = vrot.slane %v3177_v1, 5  ;;  %v273_v60 = vld [vmem:[%s3026_s30 + $0x68] sm:$0x1]  ;;  %v4014_v39 = vld [vmem:[#allocation6_spill] sm:$0xff]  ;;  %s3897_s30 = scalar_lea.vmem %s3962_s3, %s2400_s27 }
  0x4b   : > { %v1358_v47 = vor.u32 %v1357_v59, %v1354_v13  ;;  %v1596_v7 = vrot.slane %v3394_v27, 5  ;;  %v3546_v35 = vcombine.low %v1587_v51, %v1590_v20  ;;  %v1373_v6 = vrot.slane %v1371_v0, 5 }
  0x4c   : > { %2763 = vmatmul.mubr.msk.bf16.vlgmr.msra.gmra.mxu0 %vm318_vm1, %v3378_v24  ;;  %v1368_v11 = vor.u32 %v1367_v45, %v1363_v55  ;;  %v1594_v1 = vsel %vm3382_vm7, %v2485_v15, %v1593_v25  ;;  %v1595_v29 = vrot.slane %v1593_v25, 4  ;;  %v2503_v3 = vrot.slane %v3218_v52, 9 }
  0x4d   : > { %v1359_v21 = vrot.slane %v1358_v47, 4  ;;  %2797 = vmatpush3.bf16.msra.mxu0 %v4013_v37  ;;  %2766 = vmatprep.mubr.msk.bf16.mxu0 %vm318_vm1, %v3388_v28  ;;  %v1799_v9 = vrot.slane %v4002_v62, 5  ;;  %v1802_v13 = vrot.slane %v273_v60, 5  ;;  %v2514_v59 = vrot.slane %v3232_v14, 9 }
  0x4e   : > { %2745 = vmatmul.mubr.msk.bf16.vlgmr.msra.gmra.mxu1 %vm318_vm1, %v3386_v18  ;;  %2861 = vmatprep.subr.msk.bf16.mxu0 %vm343_vm0, %v3532_v61  ;;  %v1369_v33 = vrot.slane %v1368_v11, 4  ;;  %v1597_v52 = vsel %vm3382_vm7, %v1595_v29, %v1596_v7  ;;  %v1963_v51 = vrot.slane %v3235_v63, 5  ;;  %v1183_v56 = vrot.slane %v1181_v34, 5 }
  0x4f   : > { %v1364_v50 = vsel %vm3255_vm4, %v1359_v21, %v1363_v55  ;;  %2779 = vmatpush3.bf16.msra.mxu1 %v4014_v39  ;;  %2748 = vmatprep.mubr.msk.bf16.mxu1 %vm318_vm1, %v3378_v24  ;;  %v1800_v18 = vsel %vm3382_vm7, %v2503_v3, %v1799_v9  ;;  %v1801_v43 = vrot.slane %v1799_v9, 4  ;;  %v3577_v45 = vcombine.low %v1594_v1, %v1597_v52 }
  0x50   : > { %2860 = vmatprep.subr.msk.bf16.mxu1 %vm343_vm0, %v3544_v2  ;;  %v1374_v14 = vsel %vm3255_vm4, %v1369_v33, %v1373_v6  ;;  %v1966_v47 = vrot.slane %v276_v57, 5  ;;  %v3583_v20 = vsel %vm3382_vm7, %v2514_v59, %v1963_v51  ;;  %v1965_v63 = vrot.slane %v1963_v51, 4 }
  0x51   : > { %v2468_v55 = vcombine.low %v1364_v50, %v1374_v14  ;;  %v1803_v0 = vsel %vm3382_vm7, %v1801_v43, %v1802_v13  ;;  %v957_v62 = vrot.slane %v956_v49, 4  ;;  %v967_v34 = vrot.slane %v966_v16, 4 }
  0x52   : > { %v971_v57 = vrot.slane %v969_v41, 5  ;;  %v3593_v15 = vcombine.low %v1800_v18, %v1803_v0  ;;  %v1967_v25 = vsel %vm3382_vm7, %v1965_v63, %v1966_v47  ;;  %v938_v44 = vsel %vm3255_vm4, %v3402_v26, %v3356_v12 }
  0x53   : > { %v2515_v53 = vcombine.low %v3583_v20, %v1967_v25  ;;  %v948_v27 = vsel %vm3255_vm4, %v3442_v54, %v3404_v40  ;;  %v1178_v38 = vor.u32 %v3446_v46, %v3429_v32  ;;  %v1188_v49 = vor.u32 %v3486_v4, %v1183_v56 }
  0x54   : > { %2767 = vmatmul.mubr.msk.bf16.gmra.mxu0 %vm318_vm1, %v3390_v58  ;;  %v1191_v30 = vshll.u32 %v273_v60, 16  ;;  %v962_v12 = vsel %vm3255_vm4, %v957_v62, %v3410_v22  ;;  %v972_v26 = vsel %vm3255_vm4, %v967_v34, %v971_v57  ;;  %v2447_v40 = vcombine.low %v938_v44, %v948_v27 }
  0x55   : > { %2770 = vmatprep.mubr.msk.bf16.mxu0 %vm318_vm1, %v3440_v48  ;;  %v2448_v41 = vcombine.low %v962_v12, %v972_v26  ;;  %v1179_v54 = vrot.slane %v1178_v38, 4  ;;  %v1189_v32 = vrot.slane %v1188_v49, 4  ;;  %v1975_v8 = vsel %vm343_vm0, %v3532_v61, 0 }
  0x56   : > { %2749 = vmatmul.mubr.msk.bf16.gmra.mxu1 %vm318_vm1, %v3388_v28  ;;  %v1193_v46 = vrot.slane %v1191_v30, 5  ;;  %v1811_v7 = vsel %vm343_vm0, %v3544_v2, 0 }
  0x57   : > { %2752 = vmatprep.mubr.msk.bf16.mxu1 %vm318_vm1, %v3390_v58  ;;  %v1184_v16 = vsel %vm3255_vm4, %v1179_v54, %v1183_v56 }
  0x58   : > { %v1194_v22 = vsel %vm3255_vm4, %v1189_v32, %v1193_v46 }
  0x59   : > { %v2458_v4 = vcombine.low %v1184_v16, %v1194_v22 }
  0x5c   : > { %2771 = vmatmul.mubr.msk.bf16.gmra.mxu0 %vm318_vm1, %v2447_v40 }
  0x5d   : > { %2774 = vmatprep.mubr.msk.bf16.mxu0 %vm318_vm1, %v2448_v41 }
  0x5e   : > { %2753 = vmatmul.mubr.msk.bf16.gmra.mxu1 %vm318_vm1, %v3440_v48 }
  0x5f   : > { %2756 = vmatprep.mubr.msk.bf16.mxu1 %vm318_vm1, %v2447_v40 }
  0x64   : > { %2775 = vmatmul.mubr.msk.bf16.gmra.mxu0 %vm318_vm1, %v2458_v4 }
  0x65   : > { %2798 = vmatprep.mubr.msk.bf16.mxu0 %vm318_vm1, %v2486_v10 }
  0x66   : > { %2757 = vmatmul.mubr.msk.bf16.gmra.mxu1 %vm318_vm1, %v2448_v41 }
  0x67   : > { %2780 = vmatprep.mubr.msk.bf16.mxu1 %vm318_vm1, %v3378_v24 }
  0x6c   : > { %2799 = vmatmul.mubr.msk.bf16.vlgmr.msra.gmra.mxu0 %vm318_vm1, %v3456_v36 }
  0x6d   : > { %2833 = vmatpush3.bf16.msra.mxu0 %v1975_v8  ;;  %2802 = vmatprep.mubr.msk.bf16.mxu0 %vm318_vm1, %v3494_v31 }
  0x6e   : > { %2781 = vmatmul.mubr.msk.bf16.vlgmr.msra.gmra.mxu1 %vm318_vm1, %v3388_v28 }
  0x6f   : > { %2815 = vmatpush3.bf16.msra.mxu1 %v1811_v7  ;;  %2784 = vmatprep.mubr.msk.bf16.mxu1 %vm318_vm1, %v3390_v58 }
  0x74   : > { %2803 = vmatmul.mubr.msk.bf16.gmra.mxu0 %vm318_vm1, %v3509_v17 }
  0x75   : > { %2806 = vmatprep.mubr.msk.bf16.mxu0 %vm318_vm1, %v3504_v23 }
  0x76   : > { %2785 = vmatmul.mubr.msk.bf16.gmra.mxu1 %vm318_vm1, %v3440_v48 }
  0x77   : > { %2788 = vmatprep.mubr.msk.bf16.mxu1 %vm318_vm1, %v2447_v40 }
  0x7c   : > { %2807 = vmatmul.mubr.msk.bf16.gmra.mxu0 %vm318_vm1, %v3527_v5 }
  0x7d   : > { %2810 = vmatprep.mubr.msk.bf16.mxu0 %vm318_vm1, %v3546_v35 }
  0x7e   : > { %2789 = vmatmul.mubr.msk.bf16.gmra.mxu1 %vm318_vm1, %v2448_v41 }
  0x7f   : > { %2792 = vmatprep.mubr.msk.bf16.mxu1 %vm318_vm1, %v2458_v4 }
  0x84   : > { %2811 = vmatmul.mubr.msk.bf16.gmra.mxu0 %vm318_vm1, %v3577_v45 }
  0x85   : > { %2834 = vmatprep.mubr.msk.bf16.mxu0 %vm318_vm1, %v3494_v31 }
  0x86   : > { %2793 = vmatmul.mubr.msk.bf16.gmra.mxu1 %vm318_vm1, %v2468_v55 }
  0x87   : > { %2816 = vmatprep.mubr.msk.bf16.mxu1 %vm318_vm1, %v3456_v36 }
  0x8c   : > { %2835 = vmatmul.mubr.msk.bf16.vlgmr.msra.gmra.mxu0 %vm318_vm1, %v3509_v17 }
  0x8d   : > { %2838 = vmatprep.mubr.msk.bf16.mxu0 %vm318_vm1, %v3504_v23 }
  0x8e   : > { %2817 = vmatmul.mubr.msk.bf16.vlgmr.msra.gmra.mxu1 %vm318_vm1, %v3494_v31 }
  0x8f   : > { %2820 = vmatprep.mubr.msk.bf16.mxu1 %vm318_vm1, %v3509_v17 }
  0x94   : > { %2839 = vmatmul.mubr.msk.bf16.gmra.mxu0 %vm318_vm1, %v3527_v5 }
  0x95   : > { %2842 = vmatprep.mubr.msk.bf16.mxu0 %vm318_vm1, %v3546_v35 }
  0x96   : > { %2821 = vmatmul.mubr.msk.bf16.gmra.mxu1 %vm318_vm1, %v3504_v23 }
  0x97   : > { %2824 = vmatprep.mubr.msk.bf16.mxu1 %vm318_vm1, %v3527_v5 }
  0x9c   : > { %2843 = vmatmul.mubr.msk.bf16.gmra.mxu0 %vm318_vm1, %v3577_v45 }
  0x9d   : > { %2846 = vmatprep.mubr.msk.bf16.mxu0 %vm318_vm1, %v3593_v15 }
  0x9e   : > { %2825 = vmatmul.mubr.msk.bf16.gmra.mxu1 %vm318_vm1, %v3546_v35 }
  0x9f   : > { %2828 = vmatprep.mubr.msk.bf16.mxu1 %vm318_vm1, %v3577_v45 }
  0xa4   : > { %2847 = vmatmul.mubr.msk.bf16.gmra.mxu0 %vm318_vm1, %v2515_v53 }
  0xa6   : > { %2829 = vmatmul.mubr.msk.bf16.gmra.mxu1 %vm318_vm1, %v3593_v15 }
  0xdb   : > { %v2692_v24 = vpop.f32.mrf.mxu0 }
  0xdc   : > { %v2700_v28 = vpop.f32.mrf.mxu1 }
  0xdd   : > { %v381_v58 = vpop.f32.mrf.mxu0 }
  0xde   : > { %v413_v42 = vpop.f32.mrf.mxu1 }
  0xdf   : > { %v2693_v48 = vpop.f32.mrf.mxu0 }
  0xe0   : > { %v2701_v19 = vpop.f32.mrf.mxu1 }
  0xe1   : > { %v384_v36 = vpop.f32.mrf.mxu0 }
  0xe2   : > { %v416_v10 = vpop.f32.mrf.mxu1 }
  0xe3   : > { %v2696_v31 = vpop.f32.mrf.mxu0 }
  0xe4   : > { %v2704_v23 = vpop.f32.mrf.mxu1 }
  0xe5   : > { %v397_v17 = vpop.f32.mrf.mxu0 }
  0xe6   : > { %v429_v5 = vpop.f32.mrf.mxu1 }
  0xe7   : > { %v2697_v61 = vpop.f32.mrf.mxu0 }
  0xe8   : > { %v2705_v2 = vpop.f32.mrf.mxu1 }
  0xe9   : > { %v400_v35 = vpop.f32.mrf.mxu0 }
  0xea   : > { %v3698_v21 = vpop.f32.mrf.mxu1 }
  0xeb   : > { %v2728_v11 = vpop.f32.mrf.mxu0 }
  0xed   : > { %v2710_v6 = vpop.f32.mrf.mxu1  ;;  %v665_v37 = vpop.f32.mrf.mxu0 }
  0xee   : > { %v588_v60 = vadd.f32 %v2710_v6, %v2692_v24 }
  0xef   : > { %v507_v1 = vpop.f32.mrf.mxu1  ;;  %v2729_v29 = vpop.f32.mrf.mxu0 }
  0xf0   : > { %v3700_v3 = vadd.f32 %v2728_v11, %v588_v60  ;;  %v586_v9 = vadd.f32 %v507_v1, %v381_v58 }
  0xf1   : > { %v2711_v50 = vpop.f32.mrf.mxu1  ;;  %v668_v33 = vpop.f32.mrf.mxu0 }
  0xf2   : > { %v3702_v13 = vadd.f32 %v665_v37, %v586_v9  ;;  %v589_v59 = vadd.f32 %v2711_v50, %v2693_v48 }
  0xf3   : > { %v510_v39 = vpop.f32.mrf.mxu1  ;;  %v2732_v52 = vpop.f32.mrf.mxu0 }
  0xf4   : > { %v3704_v18 = vadd.f32 %v2729_v29, %v589_v59  ;;  %v587_v43 = vadd.f32 %v510_v39, %v384_v36 }
  0xf5   : > { %v2714_v51 = vpop.f32.mrf.mxu1  ;;  %v681_v56 = vpop.f32.mrf.mxu0 }
  0xf6   : > { %v3706_v14 = vadd.f32 %v668_v33, %v587_v43  ;;  %v592_v45 = vadd.f32 %v2714_v51, %v2696_v31 }
  0xf7   : > { %v523_v47 = vpop.f32.mrf.mxu1  ;;  %v2733_v55 = vpop.f32.mrf.mxu0 }
  0xf8   : > { %v3708_v0 = vadd.f32 %v2732_v52, %v592_v45  ;;  %v590_v20 = vadd.f32 %v523_v47, %v397_v17 }
  0xf9   : > { %v2715_v63 = vpop.f32.mrf.mxu1  ;;  %v684_v62 = vpop.f32.mrf.mxu0 }
  0xfa   : > { %v3710_v34 = vadd.f32 %v681_v56, %v590_v20  ;;  %v593_v57 = vadd.f32 %v2715_v63, %v2697_v61 }
  0xfb   : > { %v526_v15 = vpop.f32.mrf.mxu1  ;;  %v2736_v25 = vpop.f32.mrf.mxu0 }
  0xfc   : > { %v3712_v44 = vadd.f32 %v2733_v55, %v593_v57  ;;  %v591_v53 = vadd.f32 %v526_v15, %v400_v35 }
  0xfd   : > { %v2718_v27 = vpop.f32.mrf.mxu1  ;;  %v697_v38 = vpop.f32.mrf.mxu0 }
  0xfe   : > { %v3714_v49 = vadd.f32 %v684_v62, %v591_v53  ;;  %v596_v30 = vadd.f32 %v2718_v27, %v2700_v28 }
  0xff   : > { %v539_v12 = vpop.f32.mrf.mxu1  ;;  %v2737_v26 = vpop.f32.mrf.mxu0 }
 0x100   : > { %v3716_v40 = vadd.f32 %v2736_v25, %v596_v30  ;;  %v594_v41 = vadd.f32 %v539_v12, %v413_v42 }
 0x101   : > { %v2719_v54 = vpop.f32.mrf.mxu1  ;;  %v700_v32 = vpop.f32.mrf.mxu0 }
 0x102   : > { %v3718_v46 = vadd.f32 %v697_v38, %v594_v41  ;;  %v597_v16 = vadd.f32 %v2719_v54, %v2701_v19 }
 0x103   : > { %v542_v22 = vpop.f32.mrf.mxu1 }
 0x104   : > { %v2740_v4 = vpop.f32.mrf.mxu0  ;;  %v3720_v8 = vadd.f32 %v2737_v26, %v597_v16  ;;  %v595_v7 = vadd.f32 %v542_v22, %v416_v10 }
 0x105   : > { %v2722_v24 = vpop.f32.mrf.mxu1 }
 0x106   : > { %v713_v58 = vpop.f32.mrf.mxu0  ;;  %v3722_v48 = vadd.f32 %v700_v32, %v595_v7  ;;  %v600_v28 = vadd.f32 %v2722_v24, %v2704_v23 }
 0x107   : > { %v555_v36 = vpop.f32.mrf.mxu1 }
 0x108   : > { %v2741_v31 = vpop.f32.mrf.mxu0  ;;  %v3724_v17 = vadd.f32 %v2740_v4, %v600_v28  ;;  %v598_v42 = vadd.f32 %v555_v36, %v429_v5 }
 0x109   : > { %v2723_v61 = vpop.f32.mrf.mxu1 }
 0x10a   : > { %v716_v35 = vpop.f32.mrf.mxu0  ;;  %v3726_v11 = vadd.f32 %v713_v58, %v598_v42  ;;  %v601_v19 = vadd.f32 %v2723_v61, %v2705_v2 }
 0x10b   : > { %v558_v6 = vpop.f32.mrf.mxu1 }
 0x10c   : > { %4015 = vst [vmem:[#allocation9_spill] sm:$0xff] %v3726_v11  ;;  %v3728_v37 = vpop.f32.mrf.mxu0  ;;  %v3730_v60 = vadd.f32 %v2741_v31, %v601_v19  ;;  %v599_v10 = vadd.f32 %v558_v6, %v3698_v21 }
 0x10e   : > { %4016 = vst [vmem:[#allocation8_spill] sm:$0xff] %v3730_v60  ;;  %v2746_v1 = vpop.f32.mrf.mxu1  ;;  %v3733_v29 = vpop.f32.mrf.mxu0  ;;  %v3735_v23 = vadd.f32 %v716_v35, %v599_v10 }
 0x110   : > { %4017 = vst [vmem:[#allocation4_spill] sm:$0xff] %v3735_v23  ;;  %v1058_v9 = vpop.f32.mrf.mxu1  ;;  %v3737_v50 = vpop.f32.mrf.mxu0 }
 0x112   : > { %v2747_v5 = vpop.f32.mrf.mxu1  ;;  %v3739_v33 = vpop.f32.mrf.mxu0 }
 0x114   : > { %v1061_v59 = vpop.f32.mrf.mxu1  ;;  %v3741_v2 = vpop.f32.mrf.mxu0 }
 0x116   : > { %v3743_v39 = vpop.f32.mrf.mxu1  ;;  %v3745_v52 = vpop.f32.mrf.mxu0 }
 0x118   : > { %v3747_v43 = vpop.f32.mrf.mxu1  ;;  %v3749_v21 = vpop.f32.mrf.mxu0 }
 0x11a   : > { %v3751_v51 = vpop.f32.mrf.mxu1  ;;  %v3753_v56 = vpop.f32.mrf.mxu0 }
 0x11c   : > { %v3755_v45 = vpop.f32.mrf.mxu1  ;;  %v3757_v47 = vpop.f32.mrf.mxu0 }
 0x11e   : > { %v3759_v55 = vpop.f32.mrf.mxu1  ;;  %v3761_v20 = vpop.f32.mrf.mxu0 }
 0x120   : > { %v3763_v63 = vpop.f32.mrf.mxu1  ;;  %v3765_v62 = vpop.f32.mrf.mxu0 }
 0x122   : > { %v3767_v57 = vpop.f32.mrf.mxu1  ;;  %v3769_v15 = vpop.f32.mrf.mxu0 }
 0x123   : > { %4018 = vst [vmem:[#allocation3_spill] sm:$0xff] %v3769_v15 }
 0x124   : > { %v3771_v25 = vpop.f32.mrf.mxu1  ;;  %v3773_v53 = vpop.f32.mrf.mxu0 }
 0x125   : > { %4019 = vst [vmem:[#allocation10_spill] sm:$0xff] %v3773_v53  ;;  %v1139_v53 = vadd.f32 %v2746_v1, %v3700_v3  ;;  %v1138_v1 = vadd.f32 %v1061_v59, %v3706_v14 }
 0x126   : > { %v3775_v27 = vpop.f32.mrf.mxu1  ;;  %v3777_v38 = vpop.f32.mrf.mxu0 }
 0x127   : > { %4020 = vst [vmem:[#allocation5_spill] sm:$0xff] %v3777_v38  ;;  %v1318_v14 = vadd.f32 %v3739_v33, %v1138_v1  ;;  %v1147_v33 = vadd.f32 %v3759_v55, %v3716_v40 }
 0x128   : > { %v3779_v30 = vpop.f32.mrf.mxu1  ;;  %v3781_v12 = vpop.f32.mrf.mxu0 }
 0x129   : > { %4021 = vst [vmem:[#allocation7_spill] sm:$0xff] %v3779_v30  ;;  %4022 = vst [vmem:[#allocation6_spill] sm:$0xff] %v3781_v12 }
 0x12a   : > { %v3783_v26 = vpop.f32.mrf.mxu1  ;;  %v3785_v41 = vpop.f32.mrf.mxu0 }
 0x12b   : > { %4023 = vst [vmem:[#allocation11_spill] sm:$0xff] %v3783_v26  ;;  %4024 = vst [vmem:[#allocation12_spill] sm:$0xff] %v3785_v41 }
 0x12c   : > { %v3787_v54 = vpop.f32.mrf.mxu1  ;;  %v2800_v32 = vpop.f32.mrf.mxu0 }
 0x12d   : > { %4025 = vst [vmem:[#allocation13_spill] sm:$0xff] %v3787_v54 }
 0x12e   : > { %v2782_v16 = vpop.f32.mrf.mxu1  ;;  %v1683_v22 = vpop.f32.mrf.mxu0 }
 0x130   : > { %v1418_v4 = vpop.f32.mrf.mxu1  ;;  %v2801_v7 = vpop.f32.mrf.mxu0 }
 0x132   : > { %v2783_v24 = vpop.f32.mrf.mxu1  ;;  %v3789_v58 = vpop.f32.mrf.mxu0 }
 0x134   : > { %v1421_v28 = vpop.f32.mrf.mxu1  ;;  %v3791_v36 = vpop.f32.mrf.mxu0 }
 0x136   : > { %v2786_v31 = vpop.f32.mrf.mxu1  ;;  %v3793_v42 = vpop.f32.mrf.mxu0 }
 0x138   : > { %v1434_v61 = vpop.f32.mrf.mxu1  ;;  %v3795_v35 = vpop.f32.mrf.mxu0 }
 0x13a   : > { %v3797_v19 = vpop.f32.mrf.mxu1  ;;  %v3799_v6 = vpop.f32.mrf.mxu0 }
 0x13b   : > { %4026 = vst [vmem:[#allocation14_spill] sm:$0xff] %v3799_v6 }
 0x13c   : > { %v3801_v10 = vpop.f32.mrf.mxu1  ;;  %v3803_v41 = vpop.f32.mrf.mxu0 }
 0x13d   : > { %4027 = vst [vmem:[#allocation15_spill] sm:$0xff] %v3803_v41  ;;  %v1137_v41 = vadd.f32 %v1058_v9, %v3702_v13 }
 0x13e   : > { %v3805_v12 = vpop.f32.mrf.mxu1  ;;  %v3807_v38 = vpop.f32.mrf.mxu0 }
 0x13f   : > { %4028 = vst [vmem:[#allocation16_spill] sm:$0xff] %v3807_v38  ;;  %v1319_v38 = vadd.f32 %v3728_v37, %v1139_v53  ;;  %v1317_v3 = vadd.f32 %v3733_v29, %v1137_v41  ;;  %v1143_v37 = vadd.f32 %v3743_v39, %v3708_v0 }
 0x140   : > { %v3809_v54 = vpop.f32.mrf.mxu1  ;;  %v3811_v23 = vpop.f32.mrf.mxu0 }
 0x141   : > { %4029 = vst [vmem:[#allocation17_spill] sm:$0xff] %v3811_v23  ;;  %v1140_v23 = vadd.f32 %v2747_v5, %v3704_v18  ;;  %v1497_v18 = vadd.f32 %v1418_v4, %v1317_v3  ;;  %v1141_v5 = vadd.f32 %v3747_v43, %v3710_v34  ;;  %v1144_v43 = vadd.f32 %v3751_v51, %v3712_v44  ;;  %v3865_v44 = vld [vmem:[%s3961_s2] ss:$0 sm:$0xff] }
 0x142   : > { %v3813_v26 = vpop.f32.mrf.mxu1  ;;  %v3815_v60 = vpop.f32.mrf.mxu0 }
 0x143   : > { %4030 = vst [vmem:[#allocation18_spill] sm:$0xff] %v3813_v26  ;;  %4031 = vst [vmem:[#allocation19_spill] sm:$0xff] %v3815_v60  ;;  %v1762_v0 = vadd.f32 %v1683_v22, %v1497_v18  ;;  %v1321_v34 = vadd.f32 %v3745_v52, %v1141_v5  ;;  %v1145_v52 = vadd.f32 %v3763_v63, %v3718_v46 }
 0x144   : > { %v3818_v30 = vpop.f32.mrf.mxu1  ;;  %v3820_v11 = vpop.f32.mrf.mxu0  ;;  %v1148_v46 = vadd.f32 %v3767_v57, %v3720_v8 }
 0x145   : > { %4032 = vst [vmem:[#allocation20_spill] sm:$0xff] %v3820_v11  ;;  %v1499_v11 = vadd.f32 %v2782_v16, %v1319_v38  ;;  %v1501_v22 = vadd.f32 %v1434_v61, %v1321_v34  ;;  %v4034_v34 = vld [vmem:[#allocation14_spill] sm:$0xff] }
 0x146   : > { %v3823_v15 = vpop.f32.mrf.mxu1  ;;  %v3825_v6 = vpop.f32.mrf.mxu0 }
 0x147   : > { %4033 = vst [vmem:[#allocation21_spill] sm:$0xff] %v3825_v6  ;;  %v1320_v6 = vadd.f32 %v3737_v50, %v1140_v23  ;;  %v1764_v59 = vadd.f32 %v2800_v32, %v1499_v11  ;;  %v1323_v23 = vadd.f32 %v3741_v2, %v1143_v37  ;;  %v1498_v50 = vadd.f32 %v1421_v28, %v1318_v14 }
 0x148   : > { %v3830_v26 = vpop.f32.mrf.mxu1  ;;  %v3832_v60 = vpop.f32.mrf.mxu0  ;;  %v1142_v11 = vadd.f32 %v3755_v45, %v3714_v49 }
 0x149   : > { %v1500_v38 = vadd.f32 %v2783_v24, %v1320_v6  ;;  %v1503_v6 = vadd.f32 %v2786_v31, %v1323_v23  ;;  %v1763_v40 = vadd.f32 %v3789_v58, %v1498_v50  ;;  %v1327_v31 = vadd.f32 %v3757_v47, %v1147_v33 }
 0x14a   : > { %v3836_v13 = vpop.f32.mrf.mxu1  ;;  %v3838_v9 = vpop.f32.mrf.mxu0  ;;  %v1322_v28 = vadd.f32 %v3753_v56, %v1142_v11  ;;  %v1766_v56 = vadd.f32 %v3793_v42, %v1501_v22  ;;  %v1151_v42 = vadd.f32 %v3775_v27, %v3724_v17 }
 0x14b   : > { %v1765_v24 = vadd.f32 %v2801_v7, %v1500_v38  ;;  %v1324_v7 = vadd.f32 %v3749_v21, %v1144_v43  ;;  %v1768_v1 = vadd.f32 %v3791_v36, %v1503_v6  ;;  %v1325_v21 = vadd.f32 %v3761_v20, %v1145_v52 }
 0x14c   : > { %v3845_v53 = vpop.f32.mrf.mxu1  ;;  %v2836_v29 = vpop.f32.mrf.mxu0  ;;  %v1502_v5 = vadd.f32 %v3801_v10, %v1322_v28  ;;  %v1328_v38 = vadd.f32 %v3765_v62, %v1148_v46  ;;  %v1146_v20 = vadd.f32 %v3771_v25, %v3722_v48  ;;  %v4041_v28 = vld [vmem:[#allocation8_spill] sm:$0xff] }
 0x14d   : > { %v1504_v47 = vadd.f32 %v3797_v19, %v1324_v7  ;;  %v1507_v19 = vadd.f32 %v3805_v12, %v1327_v31  ;;  %v1505_v62 = vadd.f32 %v3809_v54, %v1325_v21  ;;  %v4042_v31 = vld [vmem:[#allocation11_spill] sm:$0xff] }
 0x14e   : > { %v2818_v41 = vpop.f32.mrf.mxu1  ;;  %v2011_v16 = vpop.f32.mrf.mxu0  ;;  %v1767_v43 = vadd.f32 %v4034_v34, %v1502_v5  ;;  %v1152_v46 = vadd.f32 %v4042_v31, %v4041_v28 }
 0x14f   : > { %v1928_v39 = vadd.f32 %v2818_v41, %v1764_v59 }
 0x150   : > { %v1847_v32 = vpop.f32.mrf.mxu1  ;;  %v2837_v4 = vpop.f32.mrf.mxu0 }
 0x151   : > { %v2092_v3 = vadd.f32 %v2836_v29, %v1928_v39  ;;  %v1926_v2 = vadd.f32 %v1847_v32, %v1762_v0  ;;  %v1769_v39 = vadd.f32 %v3795_v35, %v1504_v47  ;;  %v4035_v32 = vld [vmem:[#allocation3_spill] sm:$0xff]  ;;  %v4036_v35 = vld [vmem:[#allocation9_spill] sm:$0xff] }
 0x152   : > { %v2819_v49 = vpop.f32.mrf.mxu1  ;;  %v2014_v51 = vpop.f32.mrf.mxu0 }
 0x153   : > { %v2090_v45 = vadd.f32 %v2011_v16, %v1926_v2  ;;  %v1929_v55 = vadd.f32 %v2819_v49, %v1765_v24  ;;  %v2147_v58 = vadd.f32 %v3865_v44, %v2092_v3  ;;  %v4037_v24 = vld [vmem:[#allocation7_spill] sm:$0xff]  ;;  %v4038_v3 = vld [vmem:[#allocation18_spill] sm:$0xff] }
 0x154   : > { %v1850_v63 = vpop.f32.mrf.mxu1  ;;  %v2840_v61 = vpop.f32.mrf.mxu0  ;;  %v1149_v6 = vadd.f32 %v4037_v24, %v4036_v35  ;;  %v1508_v54 = vadd.f32 %v4038_v3, %v1328_v38  ;;  %v4039_v49 = vld [vmem:[#allocation10_spill] sm:$0xff] }
 0x155   : > { %v2093_v37 = vadd.f32 %v2837_v4, %v1929_v55  ;;  %v1927_v18 = vadd.f32 %v1850_v63, %v1763_v40  ;;  %v2145_v29 = vadd.f32 %v3865_v44, %v2090_v45  ;;  %v2163_v16 = vmax.f32 %v2147_v58, 0.0  ;;  %v4040_v40 = vld [vmem:[#allocation15_spill] sm:$0xff]  ;;  %v4043_v63 = vld [vmem:[#allocation4_spill] sm:$0xff] }
 0x156   : > { %v2822_v8 = vpop.f32.mrf.mxu1  ;;  %v2027_v57 = vpop.f32.mrf.mxu0  ;;  %v1326_v4 = vadd.f32 %v4035_v32, %v1146_v20  ;;  %v1772_v45 = vadd.f32 %v4040_v40, %v1507_v19 }
 0x157   : > { %v2148_v14 = vadd.f32 %v3865_v44, %v2093_v37  ;;  %v2091_v36 = vadd.f32 %v2014_v51, %v1927_v18  ;;  %v1932_v59 = vadd.f32 %v2822_v8, %v1768_v1  ;;  %v2161_v27 = vmax.f32 %v2145_v29, 0.0  ;;  %v4046_v29 = vld [vmem:[#allocation5_spill] sm:$0xff] }
 0x158   : > { %v1863_v10 = vpop.f32.mrf.mxu1  ;;  %v2841_v41 = vpop.f32.mrf.mxu0  ;;  %v1331_v51 = vadd.f32 %v4039_v49, %v1151_v42  ;;  %v1506_v38 = vadd.f32 %v3818_v30, %v1326_v4 }
 0x159   : > { %v2164_v23 = vmax.f32 %v2148_v14, 0.0  ;;  %v2146_v0 = vadd.f32 %v3865_v44, %v2091_v36  ;;  %v1930_v50 = vadd.f32 %v1863_v10, %v1766_v56  ;;  %v2096_v48 = vadd.f32 %v2840_v61, %v1932_v59  ;;  %v4044_v61 = vld [vmem:[#allocation13_spill] sm:$0xff]  ;;  %v4045_v56 = vld [vmem:[#allocation16_spill] sm:$0xff] }
 0x15a   : > { %v2823_v17 = vpop.f32.mrf.mxu1  ;;  %v2030_v25 = vpop.f32.mrf.mxu0  ;;  %v1150_v1 = vadd.f32 %v4044_v61, %v4043_v63  ;;  %v1770_v47 = vadd.f32 %v4045_v56, %v1505_v62  ;;  %v1329_v14 = vadd.f32 %v4046_v29, %v1149_v6  ;;  %v4047_v36 = vld [vmem:[#allocation17_spill] sm:$0xff]  ;;  %v1511_v10 = vadd.f32 %v3823_v15, %v1331_v51  ;;  %v4051_v6 = vld [vmem:[#allocation20_spill] sm:$0xff] }
 0x15b   : > { %v2568_v12 = vpack.c.bf16 %v2164_v23, %v2163_v16  ;;  %v2162_v11 = vmax.f32 %v2146_v0, 0.0  ;;  %v2094_v33 = vadd.f32 %v2027_v57, %v1930_v50  ;;  %v1933_v2 = vadd.f32 %v2823_v17, %v1769_v39  ;;  %v4048_v0 = vld [vmem:[#allocation6_spill] sm:$0xff]  ;;  %v4049_v39 = vld [vmem:[#allocation12_spill] sm:$0xff]  ;;  %v4052_v51 = vld [vmem:[#allocation21_spill] sm:$0xff] }
 0x15c   : > { %v1866_v52 = vpop.f32.mrf.mxu1  ;;  %v2844_v22 = vpop.f32.mrf.mxu0  ;;  %v2151_v58 = vadd.f32 %v3865_v44, %v2096_v48  ;;  %v1773_v59 = vadd.f32 %v4047_v36, %v1508_v54  ;;  %v1332_v50 = vadd.f32 %v4048_v0, %v1152_v46  ;;  %v1330_v34 = vadd.f32 %v4049_v39, %v1150_v1 }
 0x15d   : > { %2600 = vst [vmem:[%s3897_s30 + $0x8] sm:$0xff] %v2568_v12   ;;  %v2563_v55 = vpack.c.bf16 %v2162_v11, %v2161_v27  ;;  %v1931_v7 = vadd.f32 %v1866_v52, %v1767_v43  ;;  %v2097_v37 = vadd.f32 %v2841_v41, %v1933_v2  ;;  %v2149_v5 = vadd.f32 %v3865_v44, %v2094_v33  ;;  %v4050_v11 = vld [vmem:[#allocation19_spill] sm:$0xff] }
 0x15e   : > { %v2826_v18 = vpop.f32.mrf.mxu1  ;;  %v2043_v21 = vpop.f32.mrf.mxu0  ;;  %v2167_v43 = vmax.f32 %v2151_v58, 0.0  ;;  %v1509_v30 = vadd.f32 %v3830_v26, %v1329_v14  ;;  %v1771_v15 = vadd.f32 %v4050_v11, %v1506_v38  ;;  %v1512_v33 = vadd.f32 %v3836_v13, %v1332_v50 }
 0x15f   : > { %2564 = vst [vmem:[%s3897_s30] sm:$0xff] %v2563_v55   ;;  %v2095_v8 = vadd.f32 %v2030_v25, %v1931_v7  ;;  %v1936_v57 = vadd.f32 %v2826_v18, %v1772_v45  ;;  %v2152_v20 = vadd.f32 %v3865_v44, %v2097_v37  ;;  %v2165_v25 = vmax.f32 %v2149_v5, 0.0 }
 0x160   : > { %v1879_v42 = vpop.f32.mrf.mxu1  ;;  %v2845_v19 = vpop.f32.mrf.mxu0  ;;  %v1776_v3 = vadd.f32 %v4051_v6, %v1511_v10  ;;  %v1774_v40 = vadd.f32 %v4052_v51, %v1509_v30  ;;  %v1510_v45 = vadd.f32 %v3845_v53, %v1330_v34  ;;  %v1777_v7 = vadd.f32 %v3832_v60, %v1512_v33 }
 0x161   : > { %v2150_v41 = vadd.f32 %v3865_v44, %v2095_v8  ;;  %v2100_v16 = vadd.f32 %v2844_v22, %v1936_v57  ;;  %v1934_v23 = vadd.f32 %v1879_v42, %v1770_v47  ;;  %v2168_v62 = vmax.f32 %v2152_v20, 0.0 }
 0x162   : > { %v2827_v48 = vpop.f32.mrf.mxu1  ;;  %v2046_v17 = vpop.f32.mrf.mxu0  ;;  %v1775_v53 = vadd.f32 %v3838_v9, %v1510_v45 }
 0x163   : > { %v2166_v27 = vmax.f32 %v2150_v41, 0.0  ;;  %v1937_v12 = vadd.f32 %v2827_v48, %v1773_v59  ;;  %v2578_v32 = vpack.c.bf16 %v2168_v62, %v2167_v43  ;;  %v2098_v4 = vadd.f32 %v2043_v21, %v1934_v23 }
 0x164   : > { %v1882_v35 = vpop.f32.mrf.mxu1  ;;  %v2848_v24 = vpop.f32.mrf.mxu0  ;;  %v2155_v2 = vadd.f32 %v3865_v44, %v2100_v16 }
 0x165   : > { %v2573_v54 = vpack.c.bf16 %v2166_v27, %v2165_v25  ;;  %v2101_v52 = vadd.f32 %v2845_v19, %v1937_v12  ;;  %2602 = vst [vmem:[%s3897_s30 + $0x18] sm:$0xff] %v2578_v32   ;;  %v1935_v26 = vadd.f32 %v1882_v35, %v1771_v15  ;;  %v2153_v28 = vadd.f32 %v3865_v44, %v2098_v4 }
 0x166   : > { %v2830_v22 = vpop.f32.mrf.mxu1  ;;  %v2059_v49 = vpop.f32.mrf.mxu0  ;;  %v2171_v63 = vmax.f32 %v2155_v2, 0.0 }
 0x167   : > { %2601 = vst [vmem:[%s3897_s30 + $0x10] sm:$0xff] %v2573_v54   ;;  %v2156_v13 = vadd.f32 %v3865_v44, %v2101_v52  ;;  %v1940_v55 = vadd.f32 %v2830_v22, %v1776_v3  ;;  %v2099_v31 = vadd.f32 %v2046_v17, %v1935_v26  ;;  %v2169_v60 = vmax.f32 %v2153_v28, 0.0 }
 0x168   : > { %v1895_v46 = vpop.f32.mrf.mxu1  ;;  %v2849_v21 = vpop.f32.mrf.mxu0 }
 0x169   : > { %v2172_v61 = vmax.f32 %v2156_v13, 0.0  ;;  %v2104_v1 = vadd.f32 %v2848_v24, %v1940_v55  ;;  %v1938_v58 = vadd.f32 %v1895_v46, %v1774_v40  ;;  %v2154_v37 = vadd.f32 %v3865_v44, %v2099_v31 }
 0x16a   : > { %v2831_v18 = vpop.f32.mrf.mxu1  ;;  %v2062_v38 = vpop.f32.mrf.mxu0 }
 0x16b   : > { %v2588_v56 = vpack.c.bf16 %v2172_v61, %v2171_v63  ;;  %v2102_v47 = vadd.f32 %v2059_v49, %v1938_v58  ;;  %v1941_v5 = vadd.f32 %v2831_v18, %v1777_v7  ;;  %v2170_v8 = vmax.f32 %v2154_v37, 0.0 }
 0x16c   : > { %v1898_v57 = vpop.f32.mrf.mxu1  ;;  %v2159_v29 = vadd.f32 %v3865_v44, %v2104_v1 }
 0x16d   : > { %2604 = vst [vmem:[%s3897_s30 + $0x28] sm:$0xff] %v2588_v56   ;;  %v2105_v14 = vadd.f32 %v2849_v21, %v1941_v5  ;;  %v1939_v36 = vadd.f32 %v1898_v57, %v1775_v53  ;;  %v2583_v59 = vpack.c.bf16 %v2170_v8, %v2169_v60  ;;  %v2157_v20 = vadd.f32 %v3865_v44, %v2102_v47 }
 0x16e   : > { %v2175_v19 = vmax.f32 %v2159_v29, 0.0 }
 0x16f   : > { %v2160_v9 = vadd.f32 %v3865_v44, %v2105_v14  ;;  %v2103_v42 = vadd.f32 %v2062_v38, %v1939_v36  ;;  %2603 = vst [vmem:[%s3897_s30 + $0x20] sm:$0xff] %v2583_v59   ;;  %v2173_v16 = vmax.f32 %v2157_v20, 0.0 }
 0x171   : > { %v2176_v10 = vmax.f32 %v2160_v9, 0.0  ;;  %v2158_v41 = vadd.f32 %v3865_v44, %v2103_v42 }
 0x173   : > { %v2598_v23 = vpack.c.bf16 %v2176_v10, %v2175_v19  ;;  %v2174_v0 = vmax.f32 %v2158_v41, 0.0 }
 0x175   : > { %2606 = vst [vmem:[%s3897_s30 + $0x38] sm:$0xff] %v2598_v23   ;;  %v2593_v50 = vpack.c.bf16 %v2174_v0, %v2173_v16 }
 0x177   : > { %2605 = vst [vmem:[%s3897_s30 + $0x30] sm:$0xff] %v2593_v50  }
 0x178 PF: > { %s13_s16 = sadd.s32 1, %s2951_s16   ;;  %s4053_s12 = smov %s2943_s14 }
 0x179   : > { %p10_p7 = scmp.ge.s32.totalorder %s13_s16, 6   ;;  %s4054_s13 = smov %s2947_s15 }
 0x17a   : > { %s4055_s14 = smov %s4058_s17  ;;  %s4056_s15 = smov %s4062_s18 }
 0x17b   :  { %12 = sbr.rel (!%p10_p7) target bundleno = 3 (0x3), region = 77 }

// kernel: _retina_forward_single.11
= control target key start
LH: loop header
LB: loop body
LE: loop exit
PB: predicated region body
PF: predicated region fallthrough
CT: control target
= control target key end

     0   :  { %s3159_s12 = smov 0   ;;  %s3161_s13 = smov 0   ;;  %s4149_s0 = inlined_call_operand.vmem [shape: bf16[2,18,18,32], index: 0, kind: input, shape index: {}]   ;;  %s4150_s1 = inlined_call_operand.vmem [shape: bf16[9,32,128], index: 1, kind: input, shape index: {}]   ;;  %s4151_s2 = inlined_call_operand.vmem [shape: f32[1,128], index: 2, kind: input, shape index: {}]   ;;  %s4152_s3 = inlined_call_operand.vmem [shape: bf16[2,16,16,128], index: 3, kind: output, shape index: {}]  }
   0x1   :  { %s3163_s14 = smov 0   ;;  %s3165_s15 = smov 0  }
   0x2   :  { %s3167_s16 = smov 0  }
   0x3 LB: > { %s25_s17 = sadd.s32 1, %s3129_s14  ;;  %s32_s18 = sadd.s32 1, %s3133_s15  ;;  %s3137_s16 = sphi %s3167_s16, %s13_s16   ;;  %s3133_s15 = sphi %s3165_s15, %s4237_s15   ;;  %s3129_s14 = sphi %s3163_s14, %s4236_s14   ;;  %s3125_s13 = sphi %s3161_s13, %s4235_s13   ;;  %s3121_s12 = sphi %s3159_s12, %s4234_s12  }
   0x4   : > { %p26_p0 = scmp.ge.s32.totalorder %s25_s17, 2  ;;  %p2502_p1 = scmp.ge.s32.totalorder %s3137_s16, 1 }
   0x5   : > { %p177_p2 = scmp.lt.s32.totalorder %s3137_s16, 5 }
   0x6   : > { %s4239_s17 = smov (%p26_p0, %s25_s17), 0  ;;  %s4241_s18 = smov (!%p26_p0, %s32_s18), %s3133_s15 }
   0x7   : > { %p178_p3 = pnand %p2502_p1, %p177_p2  ;;  %p34_p4 = scmp.ge.s32.totalorder %s4241_s18, 2 }
   0x9   : > { %s4243_s18 = smov (%p34_p4, %s4241_s18), 0  ;;  %181 = sbr.rel (%p178_p3) target bundleno = 376 (0x178), region = 32 }
   0xe   : > { %v3071_v0 = vld [vmem:[%s4150_s1 + $0x8] sm:$0xff]   ;;  %p216_p5 = scmp.lt.s32.totalorder %s3125_s13, 1  ;;  %v3072_v1 = vld [vmem:[%s4150_s1] sm:$0xff]   ;;  %s2692_s23 = smul.u32 96, %s3121_s12  ;;  %v3203_v2 = vld [vmem:[%s4150_s1 + $0x38] sm:$0xff]   ;;  %vm333_vm0 = vcmask 261120  }
   0xf   : > { %3026 = vmatprep.subr.bf16.mxu1 %v3071_v0  ;;  %2846 = vmatprep.subr.bf16.mxu0 %v3071_v0  ;;  %v3078_v3 = vld [vmem:[%s4150_s1 + $0x68] sm:$0xff]   ;;  %vm1613_vm1 = vcmask 1042432   ;;  %vm1614_vm2 = vcmask 1046532   ;;  %v3084_v28 = vld [vmem:[%s4150_s1 + $0x60] sm:$0xff]   ;;  %v3081_v44 = vld [vmem:[%s4150_s1 + $0x30] sm:$0xff]   ;;  %s2504_s21 = sshll.u32 %s3121_s12, 3 }
  0x10   : > { %s4245_s13 = smov (!%p216_p5, %s3125_s13), 1  ;;  %3028 = vmatpush3.bf16.msra.mxu1 %v3071_v0  ;;  %2847 = vmatpush3.bf16.msra.mxu0 %v3071_v0  ;;  %v3329_v55 = vld [vmem:[%s4150_s1 + $0x48] sm:$0xff]   ;;  %vm3370_vm3 = vmor %vm1613_vm1, %vm1614_vm2  ;;  %vm816_vm4 = vsmask.f32 3328  ;;  %vm817_vm5 = vsmask.f32 7440 }
  0x11   : > { %3027 = vmatprep.subr.bf16.mxu1 %v3072_v1  ;;  %2848 = vmatprep.subr.bf16.mxu0 %v3072_v1  ;;  %s3030_s26 = smul.u32 216, %s4245_s13  ;;  %vm3470_vm6 = vmor %vm816_vm4, %vm817_vm5  ;;  %p231_p6 = scmp.lt.s32.totalorder %s2504_s21, 15 }
  0x12   : > { %s2506_s22 = sshll.u32 %s4245_s13, 5 }
  0x13   : > { %s220_s4 = scalar_lea.vmem %s4149_s0, %s3030_s26  ;;  %s4247_s21 = smov (!%p231_p6, %s2504_s21), 15 }
  0x14   : > { %3029 = vmatpush3.bf16.msra.mxu1 %v3072_v1  ;;  %2849 = vmatpush3.bf16.msra.mxu0 %v3072_v1  ;;  %s3212_s5 = scalar_lea.vmem %s220_s4, %s2692_s23  ;;  %s2505_s12 = sshll.u32 %s4247_s21, 1 }
  0x15   : > { %v3215_v4 = vld [vmem:[%s3212_s5] sm:$0xf]  ;;  %v3218_v5 = vld [vmem:[%s3212_s5 + $0x4] sm:$0xf]  ;;  %v3221_v6 = vld [vmem:[%s3212_s5 + $0x30] sm:$0xf]  ;;  %2866 = vmatprep.subr.bf16.mxu1 %v3203_v2  ;;  %2886 = vmatprep.subr.bf16.mxu0 %v3078_v3  ;;  %s4063_s13 = sadd.s32 %s2506_s22, %s2505_s12 }
  0x16   : > { %v2511_v7 = vcombine.low %v3215_v4, %v3218_v5  ;;  %v820_v8 = vshrl.u32 %v3215_v4, 16  ;;  %v823_v9 = vshll.u32 %v3215_v4, 16  ;;  %v829_v10 = vshll.u32 %v3218_v5, 16  ;;  %v3230_v11 = vld [vmem:[%s3212_s5 + $0x34] sm:$0xf]  ;;  %s2507_s25 = sshll.u32 %s4063_s13, 2 }
  0x17   : > { %4160 = vst [vmem:[#allocation3_spill] sm:$0xff] %v3230_v11  ;;  %v833_v12 = vshrl.u32 %v3218_v5, 16  ;;  %v3235_v13 = vcombine.low %v3221_v6, %v3230_v11  ;;  %v1618_v16 = vrot.slane %v3218_v5, 5  ;;  %v3240_v17 = vld [vmem:[%s3212_s5 + $0xc] sm:$0xf]  ;;  %v916_v20 = vshrl.u32 %v3221_v6, 16  ;;  %s4087_s28 = scalar_lea.vmem %s4152_s3, %s2507_s25 }
  0x18   : > { %2850 = vmatprep.mubr.msk.bf16.mxu0 %vm333_vm0, %v2511_v7  ;;  %v822_v14 = vrot.slane %v820_v8, 4  ;;  %v825_v15 = vrot.slane %v823_v9, 5  ;;  %v3242_v18 = vrot.slane %v829_v10, 5  ;;  %v919_v21 = vshll.u32 %v3221_v6, 16  ;;  %v3249_v22 = vld [vmem:[%s3212_s5 + $0x10] sm:$0xf] }
  0x19   : > { %v835_v19 = vrot.slane %v833_v12, 4  ;;  %2858 = vmatprep.mubr.msk.bf16.mxu1 %vm333_vm0, %v3235_v13  ;;  %v925_v24 = vshll.u32 %v3230_v11, 16  ;;  %v929_v25 = vshrl.u32 %v3230_v11, 16  ;;  %v3254_v26 = vld [vmem:[%s3212_s5 + $0x3c] sm:$0xf]  ;;  %v2615_v29 = vrot.slane %v3215_v4, 9 }
  0x1a   : > { %v826_v23 = vor.u32 %v825_v15, %v822_v14  ;;  %v3257_v27 = vld [vmem:[%s3212_s5 + $0x40] sm:$0xf]  ;;  %v3265_v30 = vrot.slane %v1618_v16, 4  ;;  %v3269_v31 = vcombine.low %v3240_v17, %v3249_v22  ;;  %v3272_v32 = vld [vmem:[%s3212_s5 + $0x18] sm:$0xf]  ;;  %v3278_v35 = vrot.slane %v916_v20, 4 }
  0x1b   : > { %4161 = vst [vmem:[#allocation4_spill] sm:$0xff] %v3257_v27  ;;  %v3275_v33 = vld [vmem:[%s3212_s5 + $0x1c] sm:$0xf]  ;;  %v836_v34 = vor.u32 %v835_v19, %v3242_v18  ;;  %v3280_v36 = vrot.slane %v919_v21, 5  ;;  %v2619_v37 = vrot.slane %v3221_v6, 9  ;;  %v3288_v40 = vrot.slane %v925_v24, 5 }
  0x1c   : > { %v3284_v38 = vld [vmem:[%s3212_s5 + $0x48] sm:$0xf]  ;;  %v3286_v39 = vrot.slane %v826_v23, 4  ;;  %v4153_v41 = vrot.slane %v3230_v11, 5  ;;  %2851 = vmatmul.mubr.msk.bf16.vlgmr.msra.gmra.mxu0 %vm333_vm0, %v3269_v31  ;;  %v3295_v42 = vcombine.low %v3254_v26, %v3257_v27  ;;  %v3298_v43 = vld [vmem:[%s3212_s5 + $0x4c] sm:$0xf]  ;;  %v3307_v46 = vcombine.low %v3272_v32, %v3275_v33 }
  0x1d   : > { %4162 = vst [vmem:[#allocation5_spill] sm:$0xff] %v3284_v38  ;;  %v3303_v45 = vrot.slane %v929_v25, 4  ;;  %2887 = vmatpush3.bf16.msra.mxu0 %v3078_v3  ;;  %v868_v47 = vshrl.u32 %v3272_v32, 16  ;;  %v871_v48 = vshll.u32 %v3272_v32, 16  ;;  %v3312_v49 = vld [vmem:[%s3212_s5 + $0x24] sm:$0xf]  ;;  %v3321_v53 = vcombine.low %v3284_v38, %v3298_v43 }
  0x1e   : > { %v844_v50 = vshrl.u32 %v3240_v17, 16  ;;  %2859 = vmatmul.mubr.msk.bf16.vlgmr.msra.gmra.mxu1 %vm333_vm0, %v3295_v42  ;;  %v877_v51 = vshll.u32 %v3275_v33, 16  ;;  %v881_v52 = vshrl.u32 %v3275_v33, 16  ;;  %v3324_v54 = vld [vmem:[%s3212_s5 + $0x28] sm:$0xf]  ;;  %2888 = vmatprep.subr.bf16.mxu0 %v3084_v28  ;;  %v3331_v56 = vrot.slane %v836_v34, 4 }
  0x1f   : > { %v1625_v57 = vrot.slane %v3249_v22, 5  ;;  %2867 = vmatpush3.bf16.msra.mxu1 %v3203_v2  ;;  %2854 = vmatprep.mubr.msk.bf16.mxu0 %vm333_vm0, %v3307_v46  ;;  %v870_v58 = vrot.slane %v868_v47, 4  ;;  %v873_v59 = vrot.slane %v871_v48, 5  ;;  %v3338_v60 = vld [vmem:[%s3212_s5 + $0x54] sm:$0xf]  ;;  %v847_v61 = vshll.u32 %v3240_v17, 16 }
  0x20   : > { %v3341_v62 = vrot.slane %v877_v51, 5  ;;  %v883_v63 = vrot.slane %v881_v52, 4  ;;  %2862 = vmatprep.mubr.msk.bf16.mxu1 %vm333_vm0, %v3321_v53  ;;  %2868 = vmatprep.subr.bf16.mxu1 %v3081_v44  ;;  %v3347_v0 = vcombine.low %v3312_v49, %v3324_v54  ;;  %v3350_v1 = vld [vmem:[%s3212_s5 + $0x58] sm:$0xf]  ;;  %v857_v3 = vshrl.u32 %v3249_v22, 16  ;;  %v3087_v6 = vld [vmem:[%s4150_s1 + $0x10] sm:$0xff]  }
  0x21   : > { %v3355_v2 = vld [vmem:[%s4150_s1 + $0x18] sm:$0xff]   ;;  %v2616_v7 = vrot.slane %v3240_v17, 9  ;;  %v874_v9 = vor.u32 %v873_v59, %v870_v58  ;;  %2889 = vmatpush3.bf16.msra.mxu0 %v3084_v28  ;;  %v3365_v15 = vcombine.low %v3338_v60, %v3350_v1  ;;  %v3374_v19 = vrot.slane %v1625_v57, 4  ;;  %v3393_v51 = vld [vmem:[%s3212_s5 + $0x60] sm:$0xf] }
  0x22   : > { %v884_v14 = vor.u32 %v883_v63, %v3341_v62  ;;  %2926 = vmatprep.subr.bf16.mxu0 %v3329_v55  ;;  %v892_v24 = vshrl.u32 %v3312_v49, 16  ;;  %v895_v25 = vshll.u32 %v3312_v49, 16  ;;  %v905_v28 = vshrl.u32 %v3324_v54, 16  ;;  %v3408_v59 = vld [vmem:[%s3212_s5 + $0x64] sm:$0xf]  ;;  %v3501_v12 = vld [vmem:[%s4150_s1 + $0x78] sm:$0xff]  }
  0x23   : > { %2869 = vmatpush3.bf16.msra.mxu1 %v3081_v44  ;;  %v3386_v47 = vrot.slane %v874_v9, 4  ;;  %v3401_v52 = vsel %vm3370_vm3, %v2615_v29, %v1618_v16  ;;  %v3412_v9 = vld [vmem:[%s3212_s5 + $0x8] sm:$0x1]  ;;  %v846_v16 = vrot.slane %v844_v50, 4  ;;  %v849_v29 = vrot.slane %v847_v61, 5  ;;  %4169 = vst [vmem:[#allocation8_spill] sm:$0xff] %v3501_v12 }
  0x24   : > { %2855 = vmatmul.mubr.msk.bf16.gmra.mxu0 %vm333_vm0, %v3347_v0  ;;  %2906 = vmatprep.subr.bf16.mxu1 %v3355_v2  ;;  %v3403_v58 = vrot.slane %v884_v14, 4  ;;  %v3088_v14 = vld [vmem:[%s4150_s1 + $0x40] sm:$0xff]   ;;  %v3422_v44 = vld [vmem:[%s3212_s5 + $0x6c] sm:$0xf]  ;;  %v839_v63 = vshll.u32 %v3412_v9, 16  ;;  %v853_v48 = vshll.u32 %v3249_v22, 16  ;;  %v3428_v34 = vsel %vm3370_vm3, %v2616_v7, %v1625_v57 }
  0x25   : > { %2890 = vmatprep.mubr.msk.bf16.mxu0 %vm333_vm0, %v3307_v46  ;;  %v3439_v50 = vld [vmem:[%s3212_s5 + $0x70] sm:$0xf]  ;;  %v3442_v61 = vld [vmem:[%s3212_s5 + $0x14] sm:$0x1]  ;;  %v3445_v5 = vld [vmem:[%s3212_s5 + $0x20] sm:$0x1]  ;;  %v850_v57 = vor.u32 %v849_v29, %v846_v16  ;;  %v922_v20 = vor.u32 %v3280_v36, %v3278_v35 }
  0x26   : > { %2863 = vmatmul.mubr.msk.bf16.gmra.mxu1 %vm333_vm0, %v3365_v15  ;;  %v3448_v7 = vrot.slane %v853_v48, 5  ;;  %v859_v4 = vrot.slane %v857_v3, 4  ;;  %v3457_v23 = vrot.slane %v839_v63, 5  ;;  %v863_v16 = vshll.u32 %v3442_v61, 16  ;;  %v3463_v3 = vld [vmem:[%s4150_s1 + $0x28] sm:$0xff]   ;;  %v3098_v48 = vld [vmem:[%s4150_s1 + $0x80] sm:$0xff]  }
  0x27   : > { %2870 = vmatprep.mubr.msk.bf16.mxu1 %vm333_vm0, %v3269_v31  ;;  %v3436_v31 = vsel %vm3370_vm3, %v2619_v37, %v4153_v41  ;;  %4166 = vst [vmem:[#allocation7_spill] sm:$0xff] %v3463_v3  ;;  %v887_v63 = vshll.u32 %v3445_v5, 16  ;;  %v894_v29 = vrot.slane %v892_v24, 4  ;;  %v897_v41 = vrot.slane %v895_v25, 5  ;;  %v3483_v22 = vld [vmem:[%s3212_s5 + $0x2c] sm:$0x1] }
  0x28   : > { %4165 = vst [vmem:[#allocation6_spill] sm:$0xff] %v3436_v31  ;;  %v901_v37 = vshll.u32 %v3324_v54, 16  ;;  %v3486_v21 = vld [vmem:[%s3212_s5 + $0x38] sm:$0x1]  ;;  %v932_v24 = vor.u32 %v3303_v45, %v3288_v40  ;;  %v860_v25 = vor.u32 %v859_v4, %v3448_v7  ;;  %v907_v35 = vrot.slane %v905_v28, 4 }
  0x29   : > { %v832_v45 = vsel %vm3470_vm6, %v3286_v39, %v3242_v18  ;;  %v3515_v4 = vld [vmem:[%s3212_s5 + $0x44] sm:$0x1]  ;;  %v911_v28 = vshll.u32 %v3483_v22, 16  ;;  %v935_v8 = vshll.u32 %v3486_v21, 16  ;;  %v4171_v36 = vshrl.u32 %v3254_v26, 16 }
  0x2a   : > { %v3503_v10 = vrot.slane %v901_v37, 5  ;;  %4170 = vst [vmem:[#allocation9_spill] sm:$0xff] %v3515_v4  ;;  %v898_v37 = vor.u32 %v897_v41, %v894_v29  ;;  %v4172_v18 = vshll.u32 %v3254_v26, 16  ;;  %v880_v41 = vsel %vm3470_vm6, %v3386_v47, %v3341_v62 }
  0x2b   : > { %v942_v31 = vrot.slane %v4171_v36, 4  ;;  %v959_v29 = vshll.u32 %v3515_v4, 16  ;;  %v842_v36 = vsel %vm3470_vm6, %v3331_v56, %v3457_v23  ;;  %v913_v47 = vrot.slane %v911_v28, 5 }
  0x2c   : > { %2891 = vmatmul.mubr.msk.bf16.vlgmr.msra.gmra.mxu0 %vm333_vm0, %v3347_v0  ;;  %v945_v39 = vrot.slane %v4172_v18, 5  ;;  %v899_v62 = vrot.slane %v898_v37, 4  ;;  %v973_v18 = vshll.u32 %v3298_v43, 16  ;;  %v4174_v56 = vshrl.u32 %v3284_v38, 16 }
  0x2d   : > { %2927 = vmatpush3.bf16.msra.mxu0 %v3329_v55  ;;  %2894 = vmatprep.mubr.msk.bf16.mxu0 %vm333_vm0, %v3235_v13  ;;  %v3480_v55 = vcombine.low %v3393_v51, %v3408_v59  ;;  %v961_v37 = vrot.slane %v959_v29, 5  ;;  %v997_v29 = vshll.u32 %v3350_v1, 16 }
  0x2e   : > { %2871 = vmatmul.mubr.msk.bf16.vlgmr.msra.gmra.mxu1 %vm333_vm0, %v3307_v46  ;;  %2928 = vmatprep.subr.bf16.mxu0 %v3088_v14  ;;  %v3495_v46 = vrot.slane %v850_v57, 4  ;;  %v889_v57 = vrot.slane %v887_v63, 5  ;;  %v908_v63 = vor.u32 %v907_v35, %v3503_v10  ;;  %v933_v35 = vrot.slane %v932_v24, 4  ;;  %v3552_v24 = vld [vmem:[%s3212_s5 + $0x50] sm:$0x1] }
  0x2f   : > { %2907 = vmatpush3.bf16.msra.mxu1 %v3355_v2  ;;  %2874 = vmatprep.mubr.msk.bf16.mxu1 %vm333_vm0, %v3347_v0  ;;  %v3511_v0 = vrot.slane %v863_v16, 5  ;;  %v949_v16 = vshll.u32 %v3257_v27, 16  ;;  %v4173_v2 = vshrl.u32 %v3257_v27, 16  ;;  %v966_v23 = vrot.slane %v4174_v56, 4 }
  0x30   : > { %2908 = vmatprep.subr.bf16.mxu1 %v3087_v6  ;;  %v3554_v28 = vrot.slane %v973_v18, 5  ;;  %v4177_v56 = vshrl.u32 %v3338_v60, 16  ;;  %v3562_v27 = vcombine.low %v832_v45, %v842_v36  ;;  %v3580_v18 = vld [vmem:[%s3212_s5 + $0x5c] sm:$0x1] }
  0x31   : > { %2929 = vmatpush3.bf16.msra.mxu0 %v3088_v14  ;;  %v955_v11 = vrot.slane %v4173_v2, 4  ;;  %v861_v14 = vrot.slane %v860_v25, 4  ;;  %v946_v25 = vor.u32 %v945_v39, %v942_v31  ;;  %v951_v2 = vrot.slane %v949_v16, 5 }
  0x32   : > { %2966 = vmatprep.subr.bf16.mxu0 %v3463_v3  ;;  %v937_v3 = vrot.slane %v935_v8, 5  ;;  %v909_v39 = vrot.slane %v908_v63, 4  ;;  %v890_v63 = vsel %vm3470_vm6, %v3403_v58, %v889_v57 }
  0x33   : > { %2909 = vmatpush3.bf16.msra.mxu1 %v3087_v6  ;;  %v923_v6 = vrot.slane %v922_v20, 4  ;;  %v956_v4 = vor.u32 %v955_v11, %v951_v2  ;;  %v4175_v20 = vshll.u32 %v3284_v38, 16  ;;  %v947_v11 = vrot.slane %v946_v25, 4 }
  0x34   : > { %2895 = vmatmul.mubr.msk.bf16.gmra.mxu0 %vm333_vm0, %v3295_v42  ;;  %2946 = vmatprep.subr.bf16.mxu1 %v3501_v12  ;;  %v990_v12 = vrot.slane %v4177_v56, 4  ;;  %v983_v25 = vshll.u32 %v3552_v24, 16  ;;  %v914_v58 = vsel %vm3470_vm6, %v909_v39, %v913_v47  ;;  %v1621_v39 = vrot.slane %v3412_v9, 5 }
  0x35   : > { %2898 = vmatprep.mubr.msk.bf16.mxu0 %vm333_vm0, %v3321_v53  ;;  %v969_v31 = vrot.slane %v4175_v20, 5  ;;  %v957_v16 = vrot.slane %v956_v4, 4  ;;  %v4178_v20 = vshll.u32 %v3338_v60, 16  ;;  %v866_v4 = vsel %vm3470_vm6, %v861_v14, %v3511_v0 }
  0x36   : > { %2875 = vmatmul.mubr.msk.bf16.gmra.mxu1 %vm333_vm0, %v3235_v13  ;;  %v4176_v13 = vshrl.u32 %v3298_v43, 16  ;;  %v928_v45 = vsel %vm3470_vm6, %v923_v6, %v3288_v40  ;;  %v3592_v40 = vcombine.low %v880_v41, %v890_v63  ;;  %v952_v57 = vsel %vm3470_vm6, %v947_v11, %v951_v2 }
  0x37   : > { %2878 = vmatprep.mubr.msk.bf16.mxu1 %vm333_vm0, %v3295_v42  ;;  %v993_v38 = vrot.slane %v4178_v20, 5  ;;  %v856_v42 = vsel %vm3470_vm6, %v3495_v46, %v3448_v7  ;;  %v970_v36 = vor.u32 %v969_v31, %v966_v23  ;;  %v904_v7 = vsel %vm3470_vm6, %v899_v62, %v3503_v10 }
  0x38   : > { %v979_v8 = vrot.slane %v4176_v13, 4  ;;  %v938_v46 = vsel %vm3470_vm6, %v933_v35, %v937_v3  ;;  %v962_v14 = vsel %vm3470_vm6, %v957_v16, %v961_v37  ;;  %v3600_v6 = vcombine.low %v856_v42, %v866_v4 }
  0x39   : > { %v994_v10 = vor.u32 %v993_v38, %v990_v12  ;;  %v3602_v3 = vrot.slane %v997_v29, 5  ;;  %v4179_v62 = vshrl.u32 %v3350_v1, 16  ;;  %v1007_v41 = vshll.u32 %v3580_v18, 16 }
  0x3a   : > { %v980_v0 = vor.u32 %v979_v8, %v3554_v28  ;;  %v3609_v2 = vcombine.low %v904_v7, %v914_v58  ;;  %v3611_v35 = vcombine.low %v928_v45, %v938_v46  ;;  %v3613_v38 = vrot.slane %v970_v36, 4 }
  0x3b   : > { %v1003_v47 = vrot.slane %v4179_v62, 4  ;;  %v3615_v12 = vrot.slane %v983_v25, 5  ;;  %v3619_v23 = vcombine.low %v952_v57, %v962_v14  ;;  %v4180_v37 = vrot.slane %v3442_v61, 5  ;;  %v4184_v25 = vld [vmem:[#allocation3_spill] sm:$0xff] }
  0x3c   : > { %2899 = vmatmul.mubr.msk.bf16.gmra.mxu0 %vm333_vm0, %v3365_v15  ;;  %v3621_v31 = vrot.slane %v980_v0, 4  ;;  %v3629_v13 = vrot.slane %v994_v10, 4  ;;  %v4181_v8 = vshrl.u32 %v3393_v51, 16  ;;  %v2617_v16 = vrot.slane %v3272_v32, 9  ;;  %v4187_v10 = vld [vmem:[#allocation4_spill] sm:$0xff] }
  0x3d   : > { %2902 = vmatprep.mubr.msk.bf16.mxu0 %vm333_vm0, %v3480_v55  ;;  %v1004_v56 = vor.u32 %v1003_v47, %v3602_v3  ;;  %v3640_v9 = vrot.slane %v1007_v41, 5  ;;  %v3645_v61 = vsel %vm3370_vm3, %v3265_v30, %v1621_v39  ;;  %v4182_v20 = vshll.u32 %v3393_v51, 16  ;;  %v4188_v41 = vld [vmem:[#allocation6_spill] sm:$0xff] }
  0x3e   : > { %2879 = vmatmul.mubr.msk.bf16.gmra.mxu1 %vm333_vm0, %v3321_v53  ;;  %v1629_v53 = vsel %vm3370_vm3, %v3374_v19, %v4180_v37  ;;  %v3633_v11 = vrot.slane %v4181_v8, 4  ;;  %v1632_v19 = vrot.slane %v3275_v33, 5  ;;  %v1635_v32 = vrot.slane %v3445_v5, 5  ;;  %v4189_v37 = vld [vmem:[#allocation9_spill] sm:$0xff] }
  0x3f   : > { %2882 = vmatprep.mubr.msk.bf16.mxu1 %vm333_vm0, %v3365_v15  ;;  %v3636_v15 = vcombine.low %v3428_v34, %v1629_v53  ;;  %v3650_v42 = vrot.slane %v4182_v20, 5  ;;  %v2623_v34 = vcombine.low %v3401_v52, %v3645_v61  ;;  %v2618_v63 = vrot.slane %v3312_v49, 9  ;;  %v4190_v53 = vld [vmem:[#allocation5_spill] sm:$0xff] }
  0x40   : > { %v1231_v29 = vshll.u32 %v3408_v59, 16  ;;  %v1633_v4 = vsel %vm3370_vm3, %v2617_v16, %v1632_v19  ;;  %v1634_v30 = vrot.slane %v1632_v19, 4  ;;  %v1639_v45 = vrot.slane %v3324_v54, 5 }
  0x41   : > { %v4183_v33 = vcombine.low %v3422_v44, %v3439_v50  ;;  %v1642_v36 = vrot.slane %v3483_v22, 5  ;;  %v4185_v7 = vrot.slane %v4184_v25, 5  ;;  %v1649_v49 = vrot.slane %v3486_v21, 5 }
  0x42   : > { %v2620_v58 = vrot.slane %v3254_v26, 9  ;;  %v4186_v46 = vshrl.u32 %v3408_v59, 16  ;;  %v1636_v0 = vsel %vm3370_vm3, %v1634_v30, %v1635_v32  ;;  %v1640_v22 = vsel %vm3370_vm3, %v2618_v63, %v1639_v45  ;;  %v3703_v32 = vld [vmem:[%s3212_s5 + $0x74] sm:$0x1] }
  0x43   : > { %v1648_v5 = vrot.slane %v4185_v7, 4  ;;  %v1641_v57 = vrot.slane %v1639_v45, 4  ;;  %v3681_v21 = vrot.slane %v1004_v56, 4  ;;  %v3683_v26 = vcombine.low %v1633_v4, %v1636_v0 }
  0x44   : > { %2903 = vmatmul.mubr.msk.bf16.gmra.mxu0 %vm333_vm0, %v4183_v33  ;;  %v3673_v54 = vrot.slane %v4186_v46, 4  ;;  %v1653_v62 = vrot.slane %v4187_v10, 5  ;;  %v2621_v8 = vrot.slane %v4190_v53, 9  ;;  %v1660_v20 = vrot.slane %v3298_v43, 5 }
  0x45   : > { %2930 = vmatprep.mubr.msk.bf16.mxu0 %vm333_vm0, %v3600_v6  ;;  %v1650_v14 = vsel %vm3370_vm3, %v1648_v5, %v1649_v49  ;;  %v1643_v47 = vsel %vm3370_vm3, %v1641_v57, %v1642_v36  ;;  %v4191_v63 = vshrl.u32 %v3422_v44, 16  ;;  %v4192_v30 = vshll.u32 %v3422_v44, 16  ;;  %v3094_v36 = vld [vmem:[%s4150_s1 + $0x20] sm:$0xff]  }
  0x46   : > { %2883 = vmatmul.mubr.msk.bf16.gmra.mxu1 %vm333_vm0, %v3480_v55  ;;  %v3693_v39 = vcombine.low %v4188_v41, %v1650_v14  ;;  %v1656_v55 = vrot.slane %v4189_v37, 5  ;;  %v3697_v16 = vcombine.low %v1640_v22, %v1643_v47  ;;  %v1654_v56 = vsel %vm3370_vm3, %v2620_v58, %v1653_v62  ;;  %v3093_v22 = vld [vmem:[%s4150_s1 + $0x70] sm:$0xff]   ;;  %v4194_v47 = vld [vmem:[#allocation7_spill] sm:$0xff] }
  0x47   : > { %2910 = vmatprep.mubr.msk.bf16.mxu1 %vm333_vm0, %v3562_v27  ;;  %v1655_v19 = vrot.slane %v1653_v62, 4  ;;  %v1663_v27 = vrot.slane %v3552_v24, 5  ;;  %v1416_v4 = vrot.slane %v4191_v63, 4  ;;  %v1419_v45 = vrot.slane %v4192_v30, 5  ;;  %v3095_v30 = vld [vmem:[%s4150_s1 + $0x58] sm:$0xff]  }
  0x48   : > { %v1423_v33 = vshll.u32 %v3439_v50, 16  ;;  %v1661_v43 = vsel %vm3370_vm3, %v2621_v8, %v1660_v20  ;;  %v1662_v7 = vrot.slane %v1660_v20, 4  ;;  %v4193_v24 = vshrl.u32 %v3439_v50, 16  ;;  %v273_v8 = vld [vmem:[%s3212_s5 + $0x68] sm:$0x1] }
  0x49   : > { %v1657_v25 = vsel %vm3370_vm3, %v1655_v19, %v1656_v55  ;;  %v1420_v58 = vor.u32 %v1419_v45, %v1416_v4  ;;  %v1433_v0 = vshll.u32 %v3703_v32, 16  ;;  %v2622_v14 = vrot.slane %v3338_v60, 9  ;;  %v3096_v60 = vld [vmem:[%s4150_s1 + $0x88] sm:$0xff]  }
  0x4a   : > { %v1429_v5 = vrot.slane %v4193_v24, 4  ;;  %v3720_v49 = vcombine.low %v1654_v56, %v1657_v25  ;;  %v1425_v46 = vrot.slane %v1423_v33, 5  ;;  %v1664_v57 = vsel %vm3370_vm3, %v1662_v7, %v1663_v27  ;;  %v4195_v20 = vld [vmem:[#allocation8_spill] sm:$0xff] }
  0x4b   : > { %v1667_v10 = vrot.slane %v3350_v1, 5  ;;  %v1670_v62 = vrot.slane %v3580_v18, 5  ;;  %v3736_v41 = vcombine.low %v1661_v43, %v1664_v57  ;;  %v1421_v37 = vrot.slane %v1420_v58, 4 }
  0x4c   : > { %2931 = vmatmul.mubr.msk.bf16.vlgmr.msra.gmra.mxu0 %vm333_vm0, %v3592_v40  ;;  %v1430_v55 = vor.u32 %v1429_v5, %v1425_v46  ;;  %v1435_v53 = vrot.slane %v1433_v0, 5  ;;  %v2645_v56 = vrot.slane %v3393_v51, 9  ;;  %v1885_v19 = vrot.slane %v3408_v59, 5 }
  0x4d   : > { %2967 = vmatpush3.bf16.msra.mxu0 %v4194_v47  ;;  %2934 = vmatprep.mubr.msk.bf16.mxu0 %vm333_vm0, %v3609_v2  ;;  %v1668_v1 = vsel %vm3370_vm3, %v2622_v14, %v1667_v10  ;;  %v1669_v18 = vrot.slane %v1667_v10, 4  ;;  %v1888_v63 = vrot.slane %v273_v8, 5  ;;  %v2661_v4 = vrot.slane %v3422_v44, 9 }
  0x4e   : > { %2911 = vmatmul.mubr.msk.bf16.vlgmr.msra.gmra.mxu1 %vm333_vm0, %v3600_v6  ;;  %2968 = vmatprep.subr.bf16.mxu0 %v3094_v36  ;;  %v1426_v6 = vsel %vm3470_vm6, %v1421_v37, %v1425_v46  ;;  %v1431_v27 = vrot.slane %v1430_v55, 4  ;;  %v1886_v45 = vsel %vm3370_vm3, %v2645_v56, %v1885_v19  ;;  %v1887_v33 = vrot.slane %v1885_v19, 4 }
  0x4f   : > { %2947 = vmatpush3.bf16.msra.mxu1 %v4195_v20  ;;  %2914 = vmatprep.mubr.msk.bf16.mxu1 %vm333_vm0, %v3592_v40  ;;  %v1671_v51 = vsel %vm3370_vm3, %v1669_v18, %v1670_v62  ;;  %v2061_v25 = vrot.slane %v3439_v50, 5  ;;  %v1233_v43 = vrot.slane %v1231_v29, 5  ;;  %v2064_v24 = vrot.slane %v3703_v32, 5 }
  0x50   : > { %2948 = vmatprep.subr.bf16.mxu1 %v3093_v22  ;;  %v1436_v44 = vsel %vm3470_vm6, %v1431_v27, %v1435_v53  ;;  %v3766_v7 = vcombine.low %v1668_v1, %v1671_v51  ;;  %v1889_v58 = vsel %vm3370_vm3, %v1887_v33, %v1888_v63  ;;  %v976_v29 = vsel %vm3470_vm6, %v3613_v38, %v3554_v28 }
  0x51   : > { %2969 = vmatpush3.bf16.msra.mxu0 %v3094_v36  ;;  %v2600_v5 = vcombine.low %v1426_v6, %v1436_v44  ;;  %v3773_v46 = vsel %vm3370_vm3, %v2661_v4, %v2061_v25  ;;  %v2063_v50 = vrot.slane %v2061_v25, 4  ;;  %v3775_v59 = vcombine.low %v1886_v45, %v1889_v58 }
  0x52   : > { %3006 = vmatprep.subr.bf16.mxu0 %v3096_v60  ;;  %v986_v32 = vsel %vm3470_vm6, %v3621_v31, %v3615_v12  ;;  %v1228_v0 = vor.u32 %v3650_v42, %v3633_v11  ;;  %v1241_v57 = vshll.u32 %v273_v8, 16  ;;  %v1000_v17 = vsel %vm3470_vm6, %v3629_v13, %v3602_v3 }
  0x53   : > { %2949 = vmatpush3.bf16.msra.mxu1 %v3093_v22  ;;  %v3789_v36 = vsel %vm3370_vm3, %v2063_v50, %v2064_v24  ;;  %v1238_v22 = vor.u32 %v3673_v54, %v1233_v43  ;;  %v1010_v38 = vsel %vm3470_vm6, %v3681_v21, %v3640_v9  ;;  %v2569_v12 = vcombine.low %v976_v29, %v986_v32  ;;  %v3097_v21 = vld [vmem:[%s4150_s1 + $0x50] sm:$0xff]  }
  0x54   : > { %2935 = vmatmul.mubr.msk.bf16.gmra.mxu0 %vm333_vm0, %v3611_v35  ;;  %2986 = vmatprep.subr.bf16.mxu1 %v3095_v30  ;;  %v2662_v28 = vcombine.low %v3773_v46, %v3789_v36  ;;  %v2570_v31 = vcombine.low %v1000_v17, %v1010_v38  ;;  %v1229_v11 = vrot.slane %v1228_v0, 4  ;;  %v1243_v54 = vrot.slane %v1241_v57, 5 }
  0x55   : > { %2938 = vmatprep.mubr.msk.bf16.mxu0 %vm333_vm0, %v3619_v23  ;;  %v1239_v42 = vrot.slane %v1238_v22, 4 }
  0x56   : > { %2915 = vmatmul.mubr.msk.bf16.gmra.mxu1 %vm333_vm0, %v3609_v2  ;;  %v1234_v3 = vsel %vm3470_vm6, %v1229_v11, %v1233_v43 }
  0x57   : > { %2918 = vmatprep.mubr.msk.bf16.mxu1 %vm333_vm0, %v3611_v35  ;;  %v1244_v13 = vsel %vm3470_vm6, %v1239_v42, %v1243_v54 }
  0x58   : > { %v2585_v9 = vcombine.low %v1234_v3, %v1244_v13 }
  0x5c   : > { %2939 = vmatmul.mubr.msk.bf16.gmra.mxu0 %vm333_vm0, %v2569_v12 }
  0x5d   : > { %2942 = vmatprep.mubr.msk.bf16.mxu0 %vm333_vm0, %v2570_v31 }
  0x5e   : > { %2919 = vmatmul.mubr.msk.bf16.gmra.mxu1 %vm333_vm0, %v3619_v23 }
  0x5f   : > { %2922 = vmatprep.mubr.msk.bf16.mxu1 %vm333_vm0, %v2569_v12 }
  0x64   : > { %2943 = vmatmul.mubr.msk.bf16.gmra.mxu0 %vm333_vm0, %v2585_v9 }
  0x65   : > { %2970 = vmatprep.mubr.msk.bf16.mxu0 %vm333_vm0, %v2623_v34 }
  0x66   : > { %2923 = vmatmul.mubr.msk.bf16.gmra.mxu1 %vm333_vm0, %v2570_v31 }
  0x67   : > { %2950 = vmatprep.mubr.msk.bf16.mxu1 %vm333_vm0, %v3592_v40 }
  0x6c   : > { %2971 = vmatmul.mubr.msk.bf16.vlgmr.msra.gmra.mxu0 %vm333_vm0, %v3636_v15 }
  0x6d   : > { %3007 = vmatpush3.bf16.msra.mxu0 %v3096_v60  ;;  %2974 = vmatprep.mubr.msk.bf16.mxu0 %vm333_vm0, %v3683_v26 }
  0x6e   : > { %2951 = vmatmul.mubr.msk.bf16.vlgmr.msra.gmra.mxu1 %vm333_vm0, %v3609_v2  ;;  %3008 = vmatprep.subr.bf16.mxu0 %v3098_v48 }
  0x6f   : > { %2987 = vmatpush3.bf16.msra.mxu1 %v3095_v30  ;;  %2954 = vmatprep.mubr.msk.bf16.mxu1 %vm333_vm0, %v3611_v35 }
  0x70   : > { %2988 = vmatprep.subr.bf16.mxu1 %v3097_v21 }
  0x71   : > { %3009 = vmatpush3.bf16.msra.mxu0 %v3098_v48 }
  0x73   : > { %2989 = vmatpush3.bf16.msra.mxu1 %v3097_v21 }
  0x74   : > { %2975 = vmatmul.mubr.msk.bf16.gmra.mxu0 %vm333_vm0, %v3697_v16 }
  0x75   : > { %2978 = vmatprep.mubr.msk.bf16.mxu0 %vm333_vm0, %v3693_v39 }
  0x76   : > { %2955 = vmatmul.mubr.msk.bf16.gmra.mxu1 %vm333_vm0, %v3619_v23 }
  0x77   : > { %2958 = vmatprep.mubr.msk.bf16.mxu1 %vm333_vm0, %v2569_v12 }
  0x7c   : > { %2979 = vmatmul.mubr.msk.bf16.gmra.mxu0 %vm333_vm0, %v3720_v49 }
  0x7d   : > { %2982 = vmatprep.mubr.msk.bf16.mxu0 %vm333_vm0, %v3736_v41 }
  0x7e   : > { %2959 = vmatmul.mubr.msk.bf16.gmra.mxu1 %vm333_vm0, %v2570_v31 }
  0x7f   : > { %2962 = vmatprep.mubr.msk.bf16.mxu1 %vm333_vm0, %v2585_v9 }
  0x84   : > { %2983 = vmatmul.mubr.msk.bf16.gmra.mxu0 %vm333_vm0, %v3766_v7 }
  0x85   : > { %3010 = vmatprep.mubr.msk.bf16.mxu0 %vm333_vm0, %v3683_v26 }
  0x86   : > { %2963 = vmatmul.mubr.msk.bf16.gmra.mxu1 %vm333_vm0, %v2600_v5 }
  0x87   : > { %2990 = vmatprep.mubr.msk.bf16.mxu1 %vm333_vm0, %v3636_v15 }
  0x8c   : > { %3011 = vmatmul.mubr.msk.bf16.vlgmr.msra.gmra.mxu0 %vm333_vm0, %v3697_v16 }
  0x8d   : > { %3014 = vmatprep.mubr.msk.bf16.mxu0 %vm333_vm0, %v3693_v39 }
  0x8e   : > { %2991 = vmatmul.mubr.msk.bf16.vlgmr.msra.gmra.mxu1 %vm333_vm0, %v3683_v26 }
  0x8f   : > { %2994 = vmatprep.mubr.msk.bf16.mxu1 %vm333_vm0, %v3697_v16 }
  0x94   : > { %3015 = vmatmul.mubr.msk.bf16.gmra.mxu0 %vm333_vm0, %v3720_v49 }
  0x95   : > { %3018 = vmatprep.mubr.msk.bf16.mxu0 %vm333_vm0, %v3736_v41 }
  0x96   : > { %2995 = vmatmul.mubr.msk.bf16.gmra.mxu1 %vm333_vm0, %v3693_v39 }
  0x97   : > { %2998 = vmatprep.mubr.msk.bf16.mxu1 %vm333_vm0, %v3720_v49 }
  0x9c   : > { %3019 = vmatmul.mubr.msk.bf16.gmra.mxu0 %vm333_vm0, %v3766_v7 }
  0x9d   : > { %3022 = vmatprep.mubr.msk.bf16.mxu0 %vm333_vm0, %v3775_v59 }
  0x9e   : > { %2999 = vmatmul.mubr.msk.bf16.gmra.mxu1 %vm333_vm0, %v3736_v41 }
  0x9f   : > { %3002 = vmatprep.mubr.msk.bf16.mxu1 %vm333_vm0, %v3766_v7 }
  0xa4   : > { %3023 = vmatmul.mubr.msk.bf16.gmra.mxu0 %vm333_vm0, %v2662_v28 }
  0xa6   : > { %3003 = vmatmul.mubr.msk.bf16.gmra.mxu1 %vm333_vm0, %v3775_v59 }
  0xdc   : > { %v2852_v52 = vpop.f32.mrf.mxu0 }
  0xde   : > { %v2860_v40 = vpop.f32.mrf.mxu1  ;;  %v392_v2 = vpop.f32.mrf.mxu0 }
  0xe0   : > { %v424_v35 = vpop.f32.mrf.mxu1  ;;  %v2853_v23 = vpop.f32.mrf.mxu0 }
  0xe2   : > { %v2861_v15 = vpop.f32.mrf.mxu1  ;;  %v395_v61 = vpop.f32.mrf.mxu0 }
  0xe4   : > { %v427_v34 = vpop.f32.mrf.mxu1  ;;  %v2856_v26 = vpop.f32.mrf.mxu0 }
  0xe6   : > { %v2864_v39 = vpop.f32.mrf.mxu1  ;;  %v408_v16 = vpop.f32.mrf.mxu0 }
  0xe8   : > { %v440_v49 = vpop.f32.mrf.mxu1  ;;  %v2857_v14 = vpop.f32.mrf.mxu0 }
  0xea   : > { %v2865_v10 = vpop.f32.mrf.mxu1  ;;  %v411_v62 = vpop.f32.mrf.mxu0 }
  0xec   : > { %v3888_v47 = vpop.f32.mrf.mxu1  ;;  %v2892_v41 = vpop.f32.mrf.mxu0 }
  0xee   : > { %v2872_v37 = vpop.f32.mrf.mxu1  ;;  %v700_v55 = vpop.f32.mrf.mxu0 }
  0xef   : > { %v611_v53 = vadd.f32 %v2872_v37, %v2852_v52 }
  0xf0   : > { %v530_v8 = vpop.f32.mrf.mxu1  ;;  %v2893_v60 = vpop.f32.mrf.mxu0 }
  0xf1   : > { %v3890_v1 = vadd.f32 %v2892_v41, %v611_v53  ;;  %v609_v18 = vadd.f32 %v530_v8, %v392_v2 }
  0xf2   : > { %v2873_v56 = vpop.f32.mrf.mxu1  ;;  %v703_v19 = vpop.f32.mrf.mxu0 }
  0xf3   : > { %v3892_v20 = vadd.f32 %v700_v55, %v609_v18  ;;  %v612_v6 = vadd.f32 %v2873_v56, %v2853_v23 }
  0xf4   : > { %v533_v27 = vpop.f32.mrf.mxu1  ;;  %v2896_v63 = vpop.f32.mrf.mxu0 }
  0xf5   : > { %v3894_v4 = vadd.f32 %v2893_v60, %v612_v6  ;;  %v610_v30 = vadd.f32 %v533_v27, %v395_v61 }
  0xf6   : > { %v2876_v51 = vpop.f32.mrf.mxu1  ;;  %v716_v45 = vpop.f32.mrf.mxu0 }
  0xf7   : > { %v3896_v33 = vadd.f32 %v703_v19, %v610_v30  ;;  %v615_v25 = vadd.f32 %v2876_v51, %v2856_v26 }
  0xf8   : > { %v546_v43 = vpop.f32.mrf.mxu1  ;;  %v2897_v44 = vpop.f32.mrf.mxu0 }
  0xf9   : > { %v3898_v7 = vadd.f32 %v2896_v63, %v615_v25  ;;  %v613_v24 = vadd.f32 %v546_v43, %v408_v16 }
  0xfa   : > { %v2877_v5 = vpop.f32.mrf.mxu1  ;;  %v719_v58 = vpop.f32.mrf.mxu0 }
  0xfb   : > { %v3900_v46 = vadd.f32 %v716_v45, %v613_v24  ;;  %v616_v50 = vadd.f32 %v2877_v5, %v2857_v14 }
  0xfc   : > { %v549_v59 = vpop.f32.mrf.mxu1  ;;  %v2900_v29 = vpop.f32.mrf.mxu0 }
  0xfd   : > { %v3902_v32 = vadd.f32 %v2897_v44, %v616_v50  ;;  %v614_v36 = vadd.f32 %v549_v59, %v411_v62 }
  0xfe   : > { %v2880_v0 = vpop.f32.mrf.mxu1  ;;  %v732_v22 = vpop.f32.mrf.mxu0 }
  0xff   : > { %v3904_v57 = vadd.f32 %v719_v58, %v614_v36  ;;  %v619_v28 = vadd.f32 %v2880_v0, %v2860_v40 }
 0x100   : > { %v562_v17 = vpop.f32.mrf.mxu1  ;;  %v2901_v38 = vpop.f32.mrf.mxu0 }
 0x101   : > { %v3906_v12 = vadd.f32 %v2900_v29, %v619_v28  ;;  %v617_v31 = vadd.f32 %v562_v17, %v424_v35 }
 0x102   : > { %v2881_v11 = vpop.f32.mrf.mxu1  ;;  %v735_v42 = vpop.f32.mrf.mxu0 }
 0x103   : > { %v3908_v54 = vadd.f32 %v732_v22, %v617_v31  ;;  %v620_v3 = vadd.f32 %v2881_v11, %v2861_v15 }
 0x104   : > { %v565_v13 = vpop.f32.mrf.mxu1  ;;  %v2904_v9 = vpop.f32.mrf.mxu0 }
 0x105   : > { %v3910_v48 = vadd.f32 %v2901_v38, %v620_v3  ;;  %v618_v21 = vadd.f32 %v565_v13, %v427_v34 }
 0x106   : > { %v2884_v52 = vpop.f32.mrf.mxu1  ;;  %v748_v2 = vpop.f32.mrf.mxu0 }
 0x107   : > { %v3912_v23 = vadd.f32 %v735_v42, %v618_v21  ;;  %v623_v40 = vadd.f32 %v2884_v52, %v2864_v39 }
 0x108   : > { %v578_v61 = vpop.f32.mrf.mxu1  ;;  %v2905_v26 = vpop.f32.mrf.mxu0 }
 0x109   : > { %v3914_v16 = vadd.f32 %v2904_v9, %v623_v40  ;;  %v621_v35 = vadd.f32 %v578_v61, %v440_v49 }
 0x10a   : > { %v2885_v14 = vpop.f32.mrf.mxu1  ;;  %v751_v62 = vpop.f32.mrf.mxu0 }
 0x10b   : > { %v3916_v41 = vadd.f32 %v748_v2, %v621_v35  ;;  %v624_v15 = vadd.f32 %v2885_v14, %v2865_v10 }
 0x10c   : > { %v581_v37 = vpop.f32.mrf.mxu1  ;;  %v3918_v55 = vpop.f32.mrf.mxu0 }
 0x10d   : > { %4196 = vst [vmem:[#allocation3_spill] sm:$0xff] %v3916_v41  ;;  %v3920_v53 = vadd.f32 %v2905_v26, %v624_v15  ;;  %v622_v34 = vadd.f32 %v581_v37, %v3888_v47 }
 0x10e   : > { %v2912_v8 = vpop.f32.mrf.mxu1  ;;  %v3923_v60 = vpop.f32.mrf.mxu0 }
 0x10f   : > { %4197 = vst [vmem:[#allocation4_spill] sm:$0xff] %v3920_v53  ;;  %v3925_v39 = vadd.f32 %v751_v62, %v622_v34 }
 0x110   : > { %v1105_v18 = vpop.f32.mrf.mxu1  ;;  %v3927_v56 = vpop.f32.mrf.mxu0 }
 0x111   : > { %4198 = vst [vmem:[#allocation6_spill] sm:$0xff] %v3925_v39 }
 0x112   : > { %v2913_v49 = vpop.f32.mrf.mxu1  ;;  %v3929_v19 = vpop.f32.mrf.mxu0 }
 0x114   : > { %v1108_v6 = vpop.f32.mrf.mxu1  ;;  %v3931_v10 = vpop.f32.mrf.mxu0 }
 0x116   : > { %v3933_v27 = vpop.f32.mrf.mxu1  ;;  %v3935_v63 = vpop.f32.mrf.mxu0 }
 0x118   : > { %v3937_v30 = vpop.f32.mrf.mxu1  ;;  %v3939_v47 = vpop.f32.mrf.mxu0 }
 0x11a   : > { %v3941_v51 = vpop.f32.mrf.mxu1  ;;  %v3943_v45 = vpop.f32.mrf.mxu0 }
 0x11c   : > { %v3945_v25 = vpop.f32.mrf.mxu1  ;;  %v3947_v43 = vpop.f32.mrf.mxu0 }
 0x11e   : > { %v3949_v44 = vpop.f32.mrf.mxu1  ;;  %v3951_v24 = vpop.f32.mrf.mxu0 }
 0x120   : > { %v3953_v5 = vpop.f32.mrf.mxu1  ;;  %v3955_v58 = vpop.f32.mrf.mxu0 }
 0x122   : > { %v3957_v50 = vpop.f32.mrf.mxu1  ;;  %v3959_v59 = vpop.f32.mrf.mxu0 }
 0x123   : > { %4199 = vst [vmem:[#allocation9_spill] sm:$0xff] %v3959_v59 }
 0x124   : > { %v3961_v29 = vpop.f32.mrf.mxu1  ;;  %v3963_v36 = vpop.f32.mrf.mxu0 }
 0x125   : > { %4200 = vst [vmem:[#allocation5_spill] sm:$0xff] %v3963_v36  ;;  %v1186_v36 = vadd.f32 %v2912_v8, %v3890_v1  ;;  %v1185_v8 = vadd.f32 %v1108_v6, %v3896_v33 }
 0x126   : > { %v3965_v0 = vpop.f32.mrf.mxu1  ;;  %v3967_v22 = vpop.f32.mrf.mxu0 }
 0x127   : > { %4201 = vst [vmem:[#allocation7_spill] sm:$0xff] %v3967_v22  ;;  %v1377_v33 = vadd.f32 %v3929_v19, %v1185_v8  ;;  %v1194_v19 = vadd.f32 %v3949_v44, %v3906_v12 }
 0x128   : > { %v3969_v28 = vpop.f32.mrf.mxu1  ;;  %v3971_v17 = vpop.f32.mrf.mxu0 }
 0x129   : > { %4202 = vst [vmem:[#allocation8_spill] sm:$0xff] %v3969_v28  ;;  %4203 = vst [vmem:[#allocation10_spill] sm:$0xff] %v3971_v17 }
 0x12a   : > { %v3973_v38 = vpop.f32.mrf.mxu1  ;;  %v3975_v31 = vpop.f32.mrf.mxu0 }
 0x12b   : > { %4204 = vst [vmem:[#allocation11_spill] sm:$0xff] %v3973_v38  ;;  %4205 = vst [vmem:[#allocation12_spill] sm:$0xff] %v3975_v31 }
 0x12c   : > { %v3977_v11 = vpop.f32.mrf.mxu1  ;;  %v2972_v42 = vpop.f32.mrf.mxu0 }
 0x12d   : > { %4206 = vst [vmem:[#allocation13_spill] sm:$0xff] %v3977_v11 }
 0x12e   : > { %v2952_v3 = vpop.f32.mrf.mxu1  ;;  %v1766_v13 = vpop.f32.mrf.mxu0 }
 0x130   : > { %v1489_v9 = vpop.f32.mrf.mxu1  ;;  %v2973_v21 = vpop.f32.mrf.mxu0 }
 0x132   : > { %v2953_v52 = vpop.f32.mrf.mxu1  ;;  %v3979_v2 = vpop.f32.mrf.mxu0 }
 0x134   : > { %v1492_v40 = vpop.f32.mrf.mxu1  ;;  %v3981_v61 = vpop.f32.mrf.mxu0 }
 0x136   : > { %v2956_v26 = vpop.f32.mrf.mxu1  ;;  %v3983_v35 = vpop.f32.mrf.mxu0 }
 0x138   : > { %v1505_v14 = vpop.f32.mrf.mxu1  ;;  %v3985_v62 = vpop.f32.mrf.mxu0 }
 0x13a   : > { %v3987_v15 = vpop.f32.mrf.mxu1  ;;  %v3989_v37 = vpop.f32.mrf.mxu0 }
 0x13b   : > { %4207 = vst [vmem:[#allocation14_spill] sm:$0xff] %v3989_v37 }
 0x13c   : > { %v3991_v34 = vpop.f32.mrf.mxu1  ;;  %v3993_v31 = vpop.f32.mrf.mxu0 }
 0x13d   : > { %4208 = vst [vmem:[#allocation15_spill] sm:$0xff] %v3993_v31  ;;  %v1184_v31 = vadd.f32 %v1105_v18, %v3892_v20 }
 0x13e   : > { %v3995_v17 = vpop.f32.mrf.mxu1  ;;  %v3997_v22 = vpop.f32.mrf.mxu0 }
 0x13f   : > { %4209 = vst [vmem:[#allocation16_spill] sm:$0xff] %v3997_v22  ;;  %v1378_v22 = vadd.f32 %v3918_v55, %v1186_v36  ;;  %v1376_v1 = vadd.f32 %v3923_v60, %v1184_v31  ;;  %v1190_v55 = vadd.f32 %v3933_v27, %v3898_v7 }
 0x140   : > { %v3999_v11 = vpop.f32.mrf.mxu1  ;;  %v4001_v39 = vpop.f32.mrf.mxu0 }
 0x141   : > { %4210 = vst [vmem:[#allocation17_spill] sm:$0xff] %v4001_v39  ;;  %v1187_v39 = vadd.f32 %v2913_v49, %v3894_v4  ;;  %v1568_v4 = vadd.f32 %v1489_v9, %v1376_v1  ;;  %v1188_v49 = vadd.f32 %v3937_v30, %v3900_v46  ;;  %v1191_v30 = vadd.f32 %v3941_v51, %v3902_v32  ;;  %v4055_v32 = vld [vmem:[%s4151_s2] ss:$0 sm:$0xff] }
 0x142   : > { %v4003_v38 = vpop.f32.mrf.mxu1  ;;  %v4005_v53 = vpop.f32.mrf.mxu0 }
 0x143   : > { %4211 = vst [vmem:[#allocation18_spill] sm:$0xff] %v4003_v38  ;;  %4212 = vst [vmem:[#allocation19_spill] sm:$0xff] %v4005_v53  ;;  %v1845_v7 = vadd.f32 %v1766_v13, %v1568_v4  ;;  %v1380_v46 = vadd.f32 %v3935_v63, %v1188_v49  ;;  %v1192_v63 = vadd.f32 %v3953_v5, %v3908_v54 }
 0x144   : > { %v4008_v28 = vpop.f32.mrf.mxu1  ;;  %v4010_v41 = vpop.f32.mrf.mxu0  ;;  %v1195_v54 = vadd.f32 %v3957_v50, %v3910_v48 }
 0x145   : > { %4213 = vst [vmem:[#allocation20_spill] sm:$0xff] %v4010_v41  ;;  %v1570_v41 = vadd.f32 %v2952_v3, %v1378_v22  ;;  %v1572_v13 = vadd.f32 %v1505_v14, %v1380_v46  ;;  %v4215_v46 = vld [vmem:[#allocation14_spill] sm:$0xff] }
 0x146   : > { %v4013_v59 = vpop.f32.mrf.mxu1  ;;  %v4015_v37 = vpop.f32.mrf.mxu0 }
 0x147   : > { %4214 = vst [vmem:[#allocation21_spill] sm:$0xff] %v4015_v37  ;;  %v1379_v37 = vadd.f32 %v3927_v56, %v1187_v39  ;;  %v1847_v6 = vadd.f32 %v2972_v42, %v1570_v41  ;;  %v1382_v39 = vadd.f32 %v3931_v10, %v1190_v55  ;;  %v1569_v56 = vadd.f32 %v1492_v40, %v1377_v33 }
 0x148   : > { %v4020_v38 = vpop.f32.mrf.mxu1  ;;  %v4022_v53 = vpop.f32.mrf.mxu0  ;;  %v1189_v41 = vadd.f32 %v3945_v25, %v3904_v57 }
 0x149   : > { %v1571_v22 = vadd.f32 %v2953_v52, %v1379_v37  ;;  %v1574_v37 = vadd.f32 %v2956_v26, %v1382_v39  ;;  %v1846_v12 = vadd.f32 %v3979_v2, %v1569_v56  ;;  %v1386_v26 = vadd.f32 %v3947_v43, %v1194_v19 }
 0x14a   : > { %v4026_v20 = vpop.f32.mrf.mxu1  ;;  %v4028_v18 = vpop.f32.mrf.mxu0  ;;  %v1381_v40 = vadd.f32 %v3943_v45, %v1189_v41  ;;  %v1849_v45 = vadd.f32 %v3983_v35, %v1572_v13  ;;  %v1198_v35 = vadd.f32 %v3965_v0, %v3914_v16 }
 0x14b   : > { %v1848_v52 = vadd.f32 %v2973_v21, %v1571_v22  ;;  %v1383_v21 = vadd.f32 %v3939_v47, %v1191_v30  ;;  %v1851_v8 = vadd.f32 %v3981_v61, %v1574_v37  ;;  %v1384_v47 = vadd.f32 %v3951_v24, %v1192_v63 }
 0x14c   : > { %v4035_v36 = vpop.f32.mrf.mxu1  ;;  %v3012_v60 = vpop.f32.mrf.mxu0  ;;  %v1573_v49 = vadd.f32 %v3991_v34, %v1381_v40  ;;  %v1387_v22 = vadd.f32 %v3955_v58, %v1195_v54  ;;  %v1193_v24 = vadd.f32 %v3961_v29, %v3912_v23  ;;  %v4222_v40 = vld [vmem:[#allocation4_spill] sm:$0xff] }
 0x14d   : > { %v1575_v43 = vadd.f32 %v3987_v15, %v1383_v21  ;;  %v1578_v15 = vadd.f32 %v3995_v17, %v1386_v26  ;;  %v1576_v58 = vadd.f32 %v3999_v11, %v1384_v47  ;;  %v4223_v26 = vld [vmem:[#allocation11_spill] sm:$0xff] }
 0x14e   : > { %v2992_v31 = vpop.f32.mrf.mxu1  ;;  %v2118_v3 = vpop.f32.mrf.mxu0  ;;  %v1850_v30 = vadd.f32 %v4215_v46, %v1573_v49  ;;  %v1199_v54 = vadd.f32 %v4223_v26, %v4222_v40 }
 0x14f   : > { %v2023_v27 = vadd.f32 %v2992_v31, %v1847_v6 }
 0x150   : > { %v1942_v42 = vpop.f32.mrf.mxu1  ;;  %v3013_v9 = vpop.f32.mrf.mxu0 }
 0x151   : > { %v2199_v1 = vadd.f32 %v3012_v60, %v2023_v27  ;;  %v2021_v10 = vadd.f32 %v1942_v42, %v1845_v7  ;;  %v1852_v27 = vadd.f32 %v3985_v62, %v1575_v43  ;;  %v4216_v42 = vld [vmem:[#allocation9_spill] sm:$0xff]  ;;  %v4217_v62 = vld [vmem:[#allocation3_spill] sm:$0xff] }
 0x152   : > { %v2993_v57 = vpop.f32.mrf.mxu1  ;;  %v2121_v51 = vpop.f32.mrf.mxu0 }
 0x153   : > { %v2197_v25 = vadd.f32 %v2118_v3, %v2021_v10  ;;  %v2024_v44 = vadd.f32 %v2993_v57, %v1848_v52  ;;  %v2254_v2 = vadd.f32 %v4055_v32, %v2199_v1  ;;  %v4218_v52 = vld [vmem:[#allocation8_spill] sm:$0xff]  ;;  %v4219_v1 = vld [vmem:[#allocation18_spill] sm:$0xff]  ;;  %v4220_v57 = vld [vmem:[#allocation5_spill] sm:$0xff] }
 0x154   : > { %v1945_v5 = vpop.f32.mrf.mxu1  ;;  %v3016_v14 = vpop.f32.mrf.mxu0  ;;  %v1196_v37 = vadd.f32 %v4218_v52, %v4217_v62  ;;  %v1579_v11 = vadd.f32 %v4219_v1, %v1387_v22 }
 0x155   : > { %v2200_v55 = vadd.f32 %v3013_v9, %v2024_v44  ;;  %v2022_v4 = vadd.f32 %v1945_v5, %v1846_v12  ;;  %v2252_v60 = vadd.f32 %v4055_v32, %v2197_v25  ;;  %v2270_v3 = vmax.f32 %v2254_v2, 0.0  ;;  %v4221_v12 = vld [vmem:[#allocation15_spill] sm:$0xff]  ;;  %v4224_v5 = vld [vmem:[#allocation6_spill] sm:$0xff] }
 0x156   : > { %v2996_v48 = vpop.f32.mrf.mxu1  ;;  %v2134_v50 = vpop.f32.mrf.mxu0  ;;  %v1385_v9 = vadd.f32 %v4216_v42, %v1193_v24  ;;  %v1855_v25 = vadd.f32 %v4221_v12, %v1578_v15 }
 0x157   : > { %v2255_v33 = vadd.f32 %v4055_v32, %v2200_v55  ;;  %v2198_v61 = vadd.f32 %v2121_v51, %v2022_v4  ;;  %v2027_v6 = vadd.f32 %v2996_v48, %v1851_v8  ;;  %v2268_v0 = vmax.f32 %v2252_v60, 0.0  ;;  %v4227_v60 = vld [vmem:[#allocation7_spill] sm:$0xff] }
 0x158   : > { %v1958_v34 = vpop.f32.mrf.mxu1  ;;  %v3017_v31 = vpop.f32.mrf.mxu0  ;;  %v1390_v51 = vadd.f32 %v4220_v57, %v1198_v35  ;;  %v1577_v22 = vadd.f32 %v4008_v28, %v1385_v9 }
 0x159   : > { %v2271_v39 = vmax.f32 %v2255_v33, 0.0  ;;  %v2253_v7 = vadd.f32 %v4055_v32, %v2198_v61  ;;  %v2025_v56 = vadd.f32 %v1958_v34, %v1849_v45  ;;  %v2203_v23 = vadd.f32 %v3016_v14, %v2027_v6  ;;  %v4225_v14 = vld [vmem:[#allocation13_spill] sm:$0xff]  ;;  %v4226_v45 = vld [vmem:[#allocation16_spill] sm:$0xff] }
 0x15a   : > { %v2997_v16 = vpop.f32.mrf.mxu1  ;;  %v2137_v29 = vpop.f32.mrf.mxu0  ;;  %v1197_v8 = vadd.f32 %v4225_v14, %v4224_v5  ;;  %v1853_v43 = vadd.f32 %v4226_v45, %v1576_v58  ;;  %v1388_v33 = vadd.f32 %v4227_v60, %v1196_v37  ;;  %v4228_v61 = vld [vmem:[#allocation17_spill] sm:$0xff]  ;;  %v1582_v34 = vadd.f32 %v4013_v59, %v1390_v51  ;;  %v4232_v37 = vld [vmem:[#allocation20_spill] sm:$0xff] }
 0x15b   : > { %v2717_v17 = vpack.c.bf16 %v2271_v39, %v2270_v3  ;;  %v2269_v41 = vmax.f32 %v2253_v7, 0.0  ;;  %v2201_v19 = vadd.f32 %v2134_v50, %v2025_v56  ;;  %v2028_v10 = vadd.f32 %v2997_v16, %v1852_v27  ;;  %v4229_v7 = vld [vmem:[#allocation10_spill] sm:$0xff]  ;;  %v4230_v27 = vld [vmem:[#allocation12_spill] sm:$0xff]  ;;  %v4233_v51 = vld [vmem:[#allocation21_spill] sm:$0xff] }
 0x15c   : > { %v1961_v63 = vpop.f32.mrf.mxu1  ;;  %v3020_v13 = vpop.f32.mrf.mxu0  ;;  %v2258_v2 = vadd.f32 %v4055_v32, %v2203_v23  ;;  %v1856_v6 = vadd.f32 %v4228_v61, %v1579_v11  ;;  %v1391_v56 = vadd.f32 %v4229_v7, %v1199_v54  ;;  %v1389_v46 = vadd.f32 %v4230_v27, %v1197_v8 }
 0x15d   : > { %2749 = vst [vmem:[%s4087_s28 + $0x8] sm:$0xff] %v2717_v17   ;;  %v2712_v44 = vpack.c.bf16 %v2269_v41, %v2268_v0  ;;  %v2026_v21 = vadd.f32 %v1961_v63, %v1850_v30  ;;  %v2204_v55 = vadd.f32 %v3017_v31, %v2028_v10  ;;  %v2256_v49 = vadd.f32 %v4055_v32, %v2201_v19  ;;  %v4231_v41 = vld [vmem:[#allocation19_spill] sm:$0xff] }
 0x15e   : > { %v3000_v4 = vpop.f32.mrf.mxu1  ;;  %v2150_v47 = vpop.f32.mrf.mxu0  ;;  %v2274_v30 = vmax.f32 %v2258_v2, 0.0  ;;  %v1580_v28 = vadd.f32 %v4020_v38, %v1388_v33  ;;  %v1854_v59 = vadd.f32 %v4231_v41, %v1577_v22  ;;  %v1583_v19 = vadd.f32 %v4026_v20, %v1391_v56 }
 0x15f   : > { %2713 = vst [vmem:[%s4087_s28] sm:$0xff] %v2712_v44   ;;  %v2202_v48 = vadd.f32 %v2137_v29, %v2026_v21  ;;  %v2031_v50 = vadd.f32 %v3000_v4, %v1855_v25  ;;  %v2259_v24 = vadd.f32 %v4055_v32, %v2204_v55  ;;  %v2272_v29 = vmax.f32 %v2256_v49, 0.0 }
 0x160   : > { %v1974_v35 = vpop.f32.mrf.mxu1  ;;  %v3021_v15 = vpop.f32.mrf.mxu0  ;;  %v1859_v1 = vadd.f32 %v4232_v37, %v1582_v34  ;;  %v1857_v12 = vadd.f32 %v4233_v51, %v1580_v28  ;;  %v1581_v25 = vadd.f32 %v4035_v36, %v1389_v46  ;;  %v1860_v21 = vadd.f32 %v4022_v53, %v1583_v19 }
 0x161   : > { %v2257_v31 = vadd.f32 %v4055_v32, %v2202_v48  ;;  %v2207_v3 = vadd.f32 %v3020_v13, %v2031_v50  ;;  %v2029_v39 = vadd.f32 %v1974_v35, %v1853_v43  ;;  %v2275_v58 = vmax.f32 %v2259_v24, 0.0 }
 0x162   : > { %v3001_v23 = vpop.f32.mrf.mxu1  ;;  %v2153_v16 = vpop.f32.mrf.mxu0  ;;  %v1858_v36 = vadd.f32 %v4028_v18, %v1581_v25 }
 0x163   : > { %v2273_v0 = vmax.f32 %v2257_v31, 0.0  ;;  %v2032_v17 = vadd.f32 %v3001_v23, %v1856_v6  ;;  %v2727_v42 = vpack.c.bf16 %v2275_v58, %v2274_v30  ;;  %v2205_v9 = vadd.f32 %v2150_v47, %v2029_v39 }
 0x164   : > { %v1977_v62 = vpop.f32.mrf.mxu1  ;;  %v3024_v52 = vpop.f32.mrf.mxu0  ;;  %v2262_v10 = vadd.f32 %v4055_v32, %v2207_v3 }
 0x165   : > { %v2722_v11 = vpack.c.bf16 %v2273_v0, %v2272_v29  ;;  %v2208_v63 = vadd.f32 %v3021_v15, %v2032_v17  ;;  %2751 = vst [vmem:[%s4087_s28 + $0x18] sm:$0xff] %v2727_v42   ;;  %v2030_v38 = vadd.f32 %v1977_v62, %v1854_v59  ;;  %v2260_v40 = vadd.f32 %v4055_v32, %v2205_v9 }
 0x166   : > { %v3004_v13 = vpop.f32.mrf.mxu1  ;;  %v2166_v57 = vpop.f32.mrf.mxu0  ;;  %v2278_v5 = vmax.f32 %v2262_v10, 0.0 }
 0x167   : > { %2750 = vst [vmem:[%s4087_s28 + $0x10] sm:$0xff] %v2722_v11   ;;  %v2263_v20 = vadd.f32 %v4055_v32, %v2208_v63  ;;  %v2035_v44 = vadd.f32 %v3004_v13, %v1859_v1  ;;  %v2206_v26 = vadd.f32 %v2153_v16, %v2030_v38  ;;  %v2276_v53 = vmax.f32 %v2260_v40, 0.0 }
 0x168   : > { %v1990_v54 = vpop.f32.mrf.mxu1  ;;  %v3025_v47 = vpop.f32.mrf.mxu0 }
 0x169   : > { %v2279_v14 = vmax.f32 %v2263_v20, 0.0  ;;  %v2211_v8 = vadd.f32 %v3024_v52, %v2035_v44  ;;  %v2033_v2 = vadd.f32 %v1990_v54, %v1857_v12  ;;  %v2261_v55 = vadd.f32 %v4055_v32, %v2206_v26 }
 0x16a   : > { %v3005_v4 = vpop.f32.mrf.mxu1  ;;  %v2169_v22 = vpop.f32.mrf.mxu0 }
 0x16b   : > { %v2737_v45 = vpack.c.bf16 %v2279_v14, %v2278_v5  ;;  %v2209_v43 = vadd.f32 %v2166_v57, %v2033_v2  ;;  %v2036_v49 = vadd.f32 %v3005_v4, %v1860_v21  ;;  %v2277_v48 = vmax.f32 %v2261_v55, 0.0 }
 0x16c   : > { %v1993_v50 = vpop.f32.mrf.mxu1  ;;  %v2266_v60 = vadd.f32 %v4055_v32, %v2211_v8 }
 0x16d   : > { %2753 = vst [vmem:[%s4087_s28 + $0x28] sm:$0xff] %v2737_v45   ;;  %v2212_v33 = vadd.f32 %v3025_v47, %v2036_v49  ;;  %v2034_v61 = vadd.f32 %v1993_v50, %v1858_v36  ;;  %v2732_v6 = vpack.c.bf16 %v2277_v48, %v2276_v53  ;;  %v2264_v24 = vadd.f32 %v4055_v32, %v2209_v43 }
 0x16e   : > { %v2282_v15 = vmax.f32 %v2266_v60, 0.0 }
 0x16f   : > { %v2267_v18 = vadd.f32 %v4055_v32, %v2212_v33  ;;  %v2210_v35 = vadd.f32 %v2169_v22, %v2034_v61  ;;  %2752 = vst [vmem:[%s4087_s28 + $0x20] sm:$0xff] %v2732_v6   ;;  %v2280_v3 = vmax.f32 %v2264_v24, 0.0 }
 0x171   : > { %v2283_v34 = vmax.f32 %v2267_v18, 0.0  ;;  %v2265_v31 = vadd.f32 %v4055_v32, %v2210_v35 }
 0x173   : > { %v2747_v39 = vpack.c.bf16 %v2283_v34, %v2282_v15  ;;  %v2281_v7 = vmax.f32 %v2265_v31, 0.0 }
 0x175   : > { %2755 = vst [vmem:[%s4087_s28 + $0x38] sm:$0xff] %v2747_v39   ;;  %v2742_v56 = vpack.c.bf16 %v2281_v7, %v2280_v3 }
 0x177   : > { %2754 = vst [vmem:[%s4087_s28 + $0x30] sm:$0xff] %v2742_v56  }
 0x178 PF: > { %s13_s16 = sadd.s32 1, %s3137_s16   ;;  %s4234_s12 = smov %s3129_s14 }
 0x179   : > { %p10_p7 = scmp.ge.s32.totalorder %s13_s16, 6   ;;  %s4235_s13 = smov %s3133_s15 }
 0x17a   : > { %s4236_s14 = smov %s4239_s17  ;;  %s4237_s15 = smov %s4243_s18 }
 0x17b   :  { %12 = sbr.rel (!%p10_p7) target bundleno = 3 (0x3), region = 77 }

// kernel: _retina_forward_single.18
= control target key start
LH: loop header
LB: loop body
LE: loop exit
PB: predicated region body
PF: predicated region fallthrough
CT: control target
= control target key end

     0   :  { %s3176_s12 = smov 0   ;;  %s3178_s13 = smov 0   ;;  %s4178_s0 = inlined_call_operand.vmem [shape: bf16[2,18,18,32], index: 0, kind: input, shape index: {}]   ;;  %s4179_s1 = inlined_call_operand.vmem [shape: bf16[9,32,128], index: 1, kind: input, shape index: {}]   ;;  %s4180_s2 = inlined_call_operand.vmem [shape: f32[1,128], index: 2, kind: input, shape index: {}]   ;;  %s4181_s3 = inlined_call_operand.vmem [shape: f32[2,16,16,128], index: 3, kind: output, shape index: {}]  }
   0x1   :  { %s3180_s14 = smov 0   ;;  %s3182_s15 = smov 0  }
   0x2   :  { %s3184_s16 = smov 0  }
   0x3 LB: > { %s25_s17 = sadd.s32 1, %s3146_s14  ;;  %s32_s18 = sadd.s32 1, %s3150_s15  ;;  %s3154_s16 = sphi %s3184_s16, %s13_s16   ;;  %s3150_s15 = sphi %s3182_s15, %s4271_s15   ;;  %s3146_s14 = sphi %s3180_s14, %s4270_s14   ;;  %s3142_s13 = sphi %s3178_s13, %s4269_s13   ;;  %s3138_s12 = sphi %s3176_s12, %s4268_s12  }
   0x4   : > { %p26_p0 = scmp.ge.s32.totalorder %s25_s17, 2  ;;  %p2518_p1 = scmp.ge.s32.totalorder %s3154_s16, 1 }
   0x5   : > { %p177_p2 = scmp.lt.s32.totalorder %s3154_s16, 5 }
   0x6   : > { %s4273_s17 = smov (%p26_p0, %s25_s17), 0  ;;  %s4275_s18 = smov (!%p26_p0, %s32_s18), %s3150_s15 }
   0x7   : > { %p178_p3 = pnand %p2518_p1, %p177_p2  ;;  %p34_p4 = scmp.ge.s32.totalorder %s4275_s18, 2 }
   0x9   : > { %s4277_s18 = smov (%p34_p4, %s4275_s18), 0  ;;  %181 = sbr.rel (%p178_p3) target bundleno = 405 (0x195), region = 32 }
   0xe   : > { %v3024_v0 = vld [vmem:[%s4179_s1 + $0x8] sm:$0xff]   ;;  %p216_p5 = scmp.lt.s32.totalorder %s3142_s13, 1  ;;  %v3025_v1 = vld [vmem:[%s4179_s1] sm:$0xff]   ;;  %s2708_s23 = smul.u32 96, %s3138_s12  ;;  %v3220_v2 = vld [vmem:[%s4179_s1 + $0x38] sm:$0xff]   ;;  %vm333_vm0 = vcmask 261120  }
   0xf   : > { %2979 = vmatprep.subr.bf16.mxu1 %v3024_v0  ;;  %2799 = vmatprep.subr.bf16.mxu0 %v3024_v0  ;;  %v3031_v3 = vld [vmem:[%s4179_s1 + $0x68] sm:$0xff]   ;;  %vm1613_vm1 = vcmask 1042432   ;;  %vm1614_vm2 = vcmask 1046532   ;;  %v3037_v28 = vld [vmem:[%s4179_s1 + $0x60] sm:$0xff]   ;;  %v3034_v44 = vld [vmem:[%s4179_s1 + $0x30] sm:$0xff]  }
  0x10   : > { %s4279_s13 = smov (!%p216_p5, %s3142_s13), 1  ;;  %2981 = vmatpush3.bf16.msra.mxu1 %v3024_v0  ;;  %2800 = vmatpush3.bf16.msra.mxu0 %v3024_v0  ;;  %v3346_v55 = vld [vmem:[%s4179_s1 + $0x48] sm:$0xff]   ;;  %vm3387_vm3 = vmor %vm1613_vm1, %vm1614_vm2  ;;  %vm816_vm4 = vsmask.f32 3328  ;;  %vm817_vm5 = vsmask.f32 7440 }
  0x11   : > { %2980 = vmatprep.subr.bf16.mxu1 %v3025_v1  ;;  %2801 = vmatprep.subr.bf16.mxu0 %v3025_v1  ;;  %s2983_s26 = smul.u32 216, %s4279_s13  ;;  %vm3487_vm6 = vmor %vm816_vm4, %vm817_vm5  ;;  %s2522_s25 = sshll.u32 %s4279_s13, 5 }
  0x13   : > { %s220_s4 = scalar_lea.vmem %s4178_s0, %s2983_s26 }
  0x14   : > { %2982 = vmatpush3.bf16.msra.mxu1 %v3025_v1  ;;  %2802 = vmatpush3.bf16.msra.mxu0 %v3025_v1  ;;  %s3229_s5 = scalar_lea.vmem %s220_s4, %s2708_s23  ;;  %s2520_s23 = sshll.u32 %s3138_s12, 3 }
  0x15   : > { %v3232_v4 = vld [vmem:[%s3229_s5] sm:$0xf]  ;;  %v3235_v5 = vld [vmem:[%s3229_s5 + $0x4] sm:$0xf]  ;;  %v3238_v6 = vld [vmem:[%s3229_s5 + $0x30] sm:$0xf]  ;;  %2819 = vmatprep.subr.bf16.mxu1 %v3220_v2  ;;  %2839 = vmatprep.subr.bf16.mxu0 %v3031_v3 }
  0x16   : > { %v2527_v7 = vcombine.low %v3232_v4, %v3235_v5  ;;  %v820_v8 = vshrl.u32 %v3232_v4, 16  ;;  %v823_v9 = vshll.u32 %v3232_v4, 16  ;;  %v829_v10 = vshll.u32 %v3235_v5, 16  ;;  %v3247_v11 = vld [vmem:[%s3229_s5 + $0x34] sm:$0xf]  ;;  %p4108_p6 = scmp.lt.s32.totalorder %s2520_s23, 15 }
  0x17   : > { %4189 = vst [vmem:[#allocation3_spill] sm:$0xff] %v3247_v11  ;;  %v833_v12 = vshrl.u32 %v3235_v5, 16  ;;  %v3252_v13 = vcombine.low %v3238_v6, %v3247_v11  ;;  %v1618_v16 = vrot.slane %v3235_v5, 5  ;;  %v3257_v17 = vld [vmem:[%s3229_s5 + $0xc] sm:$0xf]  ;;  %v916_v20 = vshrl.u32 %v3238_v6, 16 }
  0x18   : > { %2803 = vmatprep.mubr.msk.bf16.mxu0 %vm333_vm0, %v2527_v7  ;;  %v822_v14 = vrot.slane %v820_v8, 4  ;;  %v825_v15 = vrot.slane %v823_v9, 5  ;;  %v3259_v18 = vrot.slane %v829_v10, 5  ;;  %v919_v21 = vshll.u32 %v3238_v6, 16  ;;  %v3266_v22 = vld [vmem:[%s3229_s5 + $0x10] sm:$0xf] }
  0x19   : > { %v835_v19 = vrot.slane %v833_v12, 4  ;;  %2811 = vmatprep.mubr.msk.bf16.mxu1 %vm333_vm0, %v3252_v13  ;;  %v925_v24 = vshll.u32 %v3247_v11, 16  ;;  %v929_v25 = vshrl.u32 %v3247_v11, 16  ;;  %v3271_v26 = vld [vmem:[%s3229_s5 + $0x3c] sm:$0xf]  ;;  %v2631_v29 = vrot.slane %v3232_v4, 9 }
  0x1a   : > { %v826_v23 = vor.u32 %v825_v15, %v822_v14  ;;  %v3274_v27 = vld [vmem:[%s3229_s5 + $0x40] sm:$0xf]  ;;  %v3282_v30 = vrot.slane %v1618_v16, 4  ;;  %v3286_v31 = vcombine.low %v3257_v17, %v3266_v22  ;;  %v3289_v32 = vld [vmem:[%s3229_s5 + $0x18] sm:$0xf]  ;;  %v3295_v35 = vrot.slane %v916_v20, 4 }
  0x1b   : > { %4190 = vst [vmem:[#allocation4_spill] sm:$0xff] %v3274_v27  ;;  %v3292_v33 = vld [vmem:[%s3229_s5 + $0x1c] sm:$0xf]  ;;  %v836_v34 = vor.u32 %v835_v19, %v3259_v18  ;;  %v3297_v36 = vrot.slane %v919_v21, 5  ;;  %v2635_v37 = vrot.slane %v3238_v6, 9  ;;  %v3305_v40 = vrot.slane %v925_v24, 5 }
  0x1c   : > { %v3301_v38 = vld [vmem:[%s3229_s5 + $0x48] sm:$0xf]  ;;  %v3303_v39 = vrot.slane %v826_v23, 4  ;;  %v4182_v41 = vrot.slane %v3247_v11, 5  ;;  %2804 = vmatmul.mubr.msk.bf16.vlgmr.msra.gmra.mxu0 %vm333_vm0, %v3286_v31  ;;  %v3312_v42 = vcombine.low %v3271_v26, %v3274_v27  ;;  %v3315_v43 = vld [vmem:[%s3229_s5 + $0x4c] sm:$0xf]  ;;  %v3324_v46 = vcombine.low %v3289_v32, %v3292_v33 }
  0x1d   : > { %4191 = vst [vmem:[#allocation5_spill] sm:$0xff] %v3301_v38  ;;  %v3320_v45 = vrot.slane %v929_v25, 4  ;;  %2840 = vmatpush3.bf16.msra.mxu0 %v3031_v3  ;;  %v868_v47 = vshrl.u32 %v3289_v32, 16  ;;  %v871_v48 = vshll.u32 %v3289_v32, 16  ;;  %v3329_v49 = vld [vmem:[%s3229_s5 + $0x24] sm:$0xf]  ;;  %v3338_v53 = vcombine.low %v3301_v38, %v3315_v43 }
  0x1e   : > { %v844_v50 = vshrl.u32 %v3257_v17, 16  ;;  %2812 = vmatmul.mubr.msk.bf16.vlgmr.msra.gmra.mxu1 %vm333_vm0, %v3312_v42  ;;  %v877_v51 = vshll.u32 %v3292_v33, 16  ;;  %v881_v52 = vshrl.u32 %v3292_v33, 16  ;;  %v3341_v54 = vld [vmem:[%s3229_s5 + $0x28] sm:$0xf]  ;;  %2841 = vmatprep.subr.bf16.mxu0 %v3037_v28  ;;  %v3348_v56 = vrot.slane %v836_v34, 4 }
  0x1f   : > { %v1625_v57 = vrot.slane %v3266_v22, 5  ;;  %2820 = vmatpush3.bf16.msra.mxu1 %v3220_v2  ;;  %2807 = vmatprep.mubr.msk.bf16.mxu0 %vm333_vm0, %v3324_v46  ;;  %v870_v58 = vrot.slane %v868_v47, 4  ;;  %v873_v59 = vrot.slane %v871_v48, 5  ;;  %v3355_v60 = vld [vmem:[%s3229_s5 + $0x54] sm:$0xf]  ;;  %v847_v61 = vshll.u32 %v3257_v17, 16 }
  0x20   : > { %v3358_v62 = vrot.slane %v877_v51, 5  ;;  %v883_v63 = vrot.slane %v881_v52, 4  ;;  %2815 = vmatprep.mubr.msk.bf16.mxu1 %vm333_vm0, %v3338_v53  ;;  %2821 = vmatprep.subr.bf16.mxu1 %v3034_v44  ;;  %v3364_v0 = vcombine.low %v3329_v49, %v3341_v54  ;;  %v3367_v1 = vld [vmem:[%s3229_s5 + $0x58] sm:$0xf]  ;;  %v857_v3 = vshrl.u32 %v3266_v22, 16  ;;  %v3040_v6 = vld [vmem:[%s4179_s1 + $0x10] sm:$0xff]  }
  0x21   : > { %v3372_v2 = vld [vmem:[%s4179_s1 + $0x18] sm:$0xff]   ;;  %v2632_v7 = vrot.slane %v3257_v17, 9  ;;  %v874_v9 = vor.u32 %v873_v59, %v870_v58  ;;  %2842 = vmatpush3.bf16.msra.mxu0 %v3037_v28  ;;  %v3382_v15 = vcombine.low %v3355_v60, %v3367_v1  ;;  %v3391_v19 = vrot.slane %v1625_v57, 4  ;;  %v3410_v51 = vld [vmem:[%s3229_s5 + $0x60] sm:$0xf]  ;;  %s4281_s23 = smov (!%p4108_p6, %s2520_s23), 15 }
  0x22   : > { %v884_v14 = vor.u32 %v883_v63, %v3358_v62  ;;  %2879 = vmatprep.subr.bf16.mxu0 %v3346_v55  ;;  %v892_v24 = vshrl.u32 %v3329_v49, 16  ;;  %v895_v25 = vshll.u32 %v3329_v49, 16  ;;  %v905_v28 = vshrl.u32 %v3341_v54, 16  ;;  %v3425_v59 = vld [vmem:[%s3229_s5 + $0x64] sm:$0xf]  ;;  %v3518_v12 = vld [vmem:[%s4179_s1 + $0x78] sm:$0xff]  }
  0x23   : > { %2822 = vmatpush3.bf16.msra.mxu1 %v3034_v44  ;;  %v3403_v47 = vrot.slane %v874_v9, 4  ;;  %v3418_v52 = vsel %vm3387_vm3, %v2631_v29, %v1618_v16  ;;  %v3429_v9 = vld [vmem:[%s3229_s5 + $0x8] sm:$0x1]  ;;  %v846_v16 = vrot.slane %v844_v50, 4  ;;  %v849_v29 = vrot.slane %v847_v61, 5  ;;  %4198 = vst [vmem:[#allocation8_spill] sm:$0xff] %v3518_v12 }
  0x24   : > { %2808 = vmatmul.mubr.msk.bf16.gmra.mxu0 %vm333_vm0, %v3364_v0  ;;  %2859 = vmatprep.subr.bf16.mxu1 %v3372_v2  ;;  %v3420_v58 = vrot.slane %v884_v14, 4  ;;  %v3041_v14 = vld [vmem:[%s4179_s1 + $0x40] sm:$0xff]   ;;  %v3439_v44 = vld [vmem:[%s3229_s5 + $0x6c] sm:$0xf]  ;;  %v839_v63 = vshll.u32 %v3429_v9, 16  ;;  %v853_v48 = vshll.u32 %v3266_v22, 16  ;;  %v3445_v34 = vsel %vm3387_vm3, %v2632_v7, %v1625_v57 }
  0x25   : > { %2843 = vmatprep.mubr.msk.bf16.mxu0 %vm333_vm0, %v3324_v46  ;;  %v3456_v50 = vld [vmem:[%s3229_s5 + $0x70] sm:$0xf]  ;;  %v3459_v61 = vld [vmem:[%s3229_s5 + $0x14] sm:$0x1]  ;;  %v3462_v5 = vld [vmem:[%s3229_s5 + $0x20] sm:$0x1]  ;;  %v850_v57 = vor.u32 %v849_v29, %v846_v16  ;;  %v922_v20 = vor.u32 %v3297_v36, %v3295_v35 }
  0x26   : > { %2816 = vmatmul.mubr.msk.bf16.gmra.mxu1 %vm333_vm0, %v3382_v15  ;;  %v3465_v7 = vrot.slane %v853_v48, 5  ;;  %v859_v4 = vrot.slane %v857_v3, 4  ;;  %v3474_v23 = vrot.slane %v839_v63, 5  ;;  %v863_v16 = vshll.u32 %v3459_v61, 16  ;;  %v3480_v3 = vld [vmem:[%s4179_s1 + $0x28] sm:$0xff]   ;;  %v3051_v48 = vld [vmem:[%s4179_s1 + $0x80] sm:$0xff]  }
  0x27   : > { %2823 = vmatprep.mubr.msk.bf16.mxu1 %vm333_vm0, %v3286_v31  ;;  %v3453_v31 = vsel %vm3387_vm3, %v2635_v37, %v4182_v41  ;;  %4195 = vst [vmem:[#allocation7_spill] sm:$0xff] %v3480_v3  ;;  %v887_v63 = vshll.u32 %v3462_v5, 16  ;;  %v894_v29 = vrot.slane %v892_v24, 4  ;;  %v897_v41 = vrot.slane %v895_v25, 5  ;;  %v3500_v22 = vld [vmem:[%s3229_s5 + $0x2c] sm:$0x1] }
  0x28   : > { %4194 = vst [vmem:[#allocation6_spill] sm:$0xff] %v3453_v31  ;;  %v901_v37 = vshll.u32 %v3341_v54, 16  ;;  %v3503_v21 = vld [vmem:[%s3229_s5 + $0x38] sm:$0x1]  ;;  %v932_v24 = vor.u32 %v3320_v45, %v3305_v40  ;;  %v860_v25 = vor.u32 %v859_v4, %v3465_v7  ;;  %v907_v35 = vrot.slane %v905_v28, 4  ;;  %s2521_s12 = sshll.u32 %s4281_s23, 1 }
  0x29   : > { %v832_v45 = vsel %vm3487_vm6, %v3303_v39, %v3259_v18  ;;  %v3532_v4 = vld [vmem:[%s3229_s5 + $0x44] sm:$0x1]  ;;  %v911_v28 = vshll.u32 %v3500_v22, 16  ;;  %v935_v8 = vshll.u32 %v3503_v21, 16  ;;  %v4200_v36 = vshrl.u32 %v3271_v26, 16  ;;  %s4136_s26 = sadd.s32 %s2522_s25, %s2521_s12 }
  0x2a   : > { %v3520_v10 = vrot.slane %v901_v37, 5  ;;  %4199 = vst [vmem:[#allocation9_spill] sm:$0xff] %v3532_v4  ;;  %v898_v37 = vor.u32 %v897_v41, %v894_v29  ;;  %v4201_v18 = vshll.u32 %v3271_v26, 16  ;;  %v880_v41 = vsel %vm3487_vm6, %v3403_v47, %v3358_v62  ;;  %s2523_s13 = sshll.u32 %s4136_s26, 3 }
  0x2b   : > { %v942_v31 = vrot.slane %v4200_v36, 4  ;;  %v959_v29 = vshll.u32 %v3532_v4, 16  ;;  %v842_v36 = vsel %vm3487_vm6, %v3348_v56, %v3474_v23  ;;  %v913_v47 = vrot.slane %v911_v28, 5  ;;  %s4145_s29 = scalar_lea.vmem %s4181_s3, %s2523_s13 }
  0x2c   : > { %2844 = vmatmul.mubr.msk.bf16.vlgmr.msra.gmra.mxu0 %vm333_vm0, %v3364_v0  ;;  %v945_v39 = vrot.slane %v4201_v18, 5  ;;  %v899_v62 = vrot.slane %v898_v37, 4  ;;  %v973_v18 = vshll.u32 %v3315_v43, 16  ;;  %v4203_v56 = vshrl.u32 %v3301_v38, 16 }
  0x2d   : > { %2880 = vmatpush3.bf16.msra.mxu0 %v3346_v55  ;;  %2847 = vmatprep.mubr.msk.bf16.mxu0 %vm333_vm0, %v3252_v13  ;;  %v3497_v55 = vcombine.low %v3410_v51, %v3425_v59  ;;  %v961_v37 = vrot.slane %v959_v29, 5  ;;  %v997_v29 = vshll.u32 %v3367_v1, 16 }
  0x2e   : > { %2824 = vmatmul.mubr.msk.bf16.vlgmr.msra.gmra.mxu1 %vm333_vm0, %v3324_v46  ;;  %2881 = vmatprep.subr.bf16.mxu0 %v3041_v14  ;;  %v3512_v46 = vrot.slane %v850_v57, 4  ;;  %v889_v57 = vrot.slane %v887_v63, 5  ;;  %v908_v63 = vor.u32 %v907_v35, %v3520_v10  ;;  %v933_v35 = vrot.slane %v932_v24, 4  ;;  %v3569_v24 = vld [vmem:[%s3229_s5 + $0x50] sm:$0x1] }
  0x2f   : > { %2860 = vmatpush3.bf16.msra.mxu1 %v3372_v2  ;;  %2827 = vmatprep.mubr.msk.bf16.mxu1 %vm333_vm0, %v3364_v0  ;;  %v3528_v0 = vrot.slane %v863_v16, 5  ;;  %v949_v16 = vshll.u32 %v3274_v27, 16  ;;  %v4202_v2 = vshrl.u32 %v3274_v27, 16  ;;  %v966_v23 = vrot.slane %v4203_v56, 4 }
  0x30   : > { %2861 = vmatprep.subr.bf16.mxu1 %v3040_v6  ;;  %v3571_v28 = vrot.slane %v973_v18, 5  ;;  %v4206_v56 = vshrl.u32 %v3355_v60, 16  ;;  %v3579_v27 = vcombine.low %v832_v45, %v842_v36  ;;  %v3597_v18 = vld [vmem:[%s3229_s5 + $0x5c] sm:$0x1] }
  0x31   : > { %2882 = vmatpush3.bf16.msra.mxu0 %v3041_v14  ;;  %v955_v11 = vrot.slane %v4202_v2, 4  ;;  %v861_v14 = vrot.slane %v860_v25, 4  ;;  %v946_v25 = vor.u32 %v945_v39, %v942_v31  ;;  %v951_v2 = vrot.slane %v949_v16, 5 }
  0x32   : > { %2919 = vmatprep.subr.bf16.mxu0 %v3480_v3  ;;  %v937_v3 = vrot.slane %v935_v8, 5  ;;  %v909_v39 = vrot.slane %v908_v63, 4  ;;  %v890_v63 = vsel %vm3487_vm6, %v3420_v58, %v889_v57 }
  0x33   : > { %2862 = vmatpush3.bf16.msra.mxu1 %v3040_v6  ;;  %v923_v6 = vrot.slane %v922_v20, 4  ;;  %v956_v4 = vor.u32 %v955_v11, %v951_v2  ;;  %v4204_v20 = vshll.u32 %v3301_v38, 16  ;;  %v947_v11 = vrot.slane %v946_v25, 4 }
  0x34   : > { %2848 = vmatmul.mubr.msk.bf16.gmra.mxu0 %vm333_vm0, %v3312_v42  ;;  %2899 = vmatprep.subr.bf16.mxu1 %v3518_v12  ;;  %v990_v12 = vrot.slane %v4206_v56, 4  ;;  %v983_v25 = vshll.u32 %v3569_v24, 16  ;;  %v914_v58 = vsel %vm3487_vm6, %v909_v39, %v913_v47  ;;  %v1621_v39 = vrot.slane %v3429_v9, 5 }
  0x35   : > { %2851 = vmatprep.mubr.msk.bf16.mxu0 %vm333_vm0, %v3338_v53  ;;  %v969_v31 = vrot.slane %v4204_v20, 5  ;;  %v957_v16 = vrot.slane %v956_v4, 4  ;;  %v4207_v20 = vshll.u32 %v3355_v60, 16  ;;  %v866_v4 = vsel %vm3487_vm6, %v861_v14, %v3528_v0 }
  0x36   : > { %2828 = vmatmul.mubr.msk.bf16.gmra.mxu1 %vm333_vm0, %v3252_v13  ;;  %v4205_v13 = vshrl.u32 %v3315_v43, 16  ;;  %v928_v45 = vsel %vm3487_vm6, %v923_v6, %v3305_v40  ;;  %v3609_v40 = vcombine.low %v880_v41, %v890_v63  ;;  %v952_v57 = vsel %vm3487_vm6, %v947_v11, %v951_v2 }
  0x37   : > { %2831 = vmatprep.mubr.msk.bf16.mxu1 %vm333_vm0, %v3312_v42  ;;  %v993_v38 = vrot.slane %v4207_v20, 5  ;;  %v856_v42 = vsel %vm3487_vm6, %v3512_v46, %v3465_v7  ;;  %v970_v36 = vor.u32 %v969_v31, %v966_v23  ;;  %v904_v7 = vsel %vm3487_vm6, %v899_v62, %v3520_v10 }
  0x38   : > { %v979_v8 = vrot.slane %v4205_v13, 4  ;;  %v938_v46 = vsel %vm3487_vm6, %v933_v35, %v937_v3  ;;  %v962_v14 = vsel %vm3487_vm6, %v957_v16, %v961_v37  ;;  %v3617_v6 = vcombine.low %v856_v42, %v866_v4 }
  0x39   : > { %v994_v10 = vor.u32 %v993_v38, %v990_v12  ;;  %v3619_v3 = vrot.slane %v997_v29, 5  ;;  %v4208_v62 = vshrl.u32 %v3367_v1, 16  ;;  %v1007_v41 = vshll.u32 %v3597_v18, 16 }
  0x3a   : > { %v980_v0 = vor.u32 %v979_v8, %v3571_v28  ;;  %v3626_v2 = vcombine.low %v904_v7, %v914_v58  ;;  %v3628_v35 = vcombine.low %v928_v45, %v938_v46  ;;  %v3630_v38 = vrot.slane %v970_v36, 4 }
  0x3b   : > { %v1003_v47 = vrot.slane %v4208_v62, 4  ;;  %v3632_v12 = vrot.slane %v983_v25, 5  ;;  %v3636_v23 = vcombine.low %v952_v57, %v962_v14  ;;  %v4209_v37 = vrot.slane %v3459_v61, 5  ;;  %v4213_v25 = vld [vmem:[#allocation3_spill] sm:$0xff] }
  0x3c   : > { %2852 = vmatmul.mubr.msk.bf16.gmra.mxu0 %vm333_vm0, %v3382_v15  ;;  %v3638_v31 = vrot.slane %v980_v0, 4  ;;  %v3646_v13 = vrot.slane %v994_v10, 4  ;;  %v4210_v8 = vshrl.u32 %v3410_v51, 16  ;;  %v2633_v16 = vrot.slane %v3289_v32, 9  ;;  %v4216_v10 = vld [vmem:[#allocation4_spill] sm:$0xff] }
  0x3d   : > { %2855 = vmatprep.mubr.msk.bf16.mxu0 %vm333_vm0, %v3497_v55  ;;  %v1004_v56 = vor.u32 %v1003_v47, %v3619_v3  ;;  %v3657_v9 = vrot.slane %v1007_v41, 5  ;;  %v3662_v61 = vsel %vm3387_vm3, %v3282_v30, %v1621_v39  ;;  %v4211_v20 = vshll.u32 %v3410_v51, 16  ;;  %v4217_v41 = vld [vmem:[#allocation6_spill] sm:$0xff] }
  0x3e   : > { %2832 = vmatmul.mubr.msk.bf16.gmra.mxu1 %vm333_vm0, %v3338_v53  ;;  %v1629_v53 = vsel %vm3387_vm3, %v3391_v19, %v4209_v37  ;;  %v3650_v11 = vrot.slane %v4210_v8, 4  ;;  %v1632_v19 = vrot.slane %v3292_v33, 5  ;;  %v1635_v32 = vrot.slane %v3462_v5, 5  ;;  %v4218_v37 = vld [vmem:[#allocation9_spill] sm:$0xff] }
  0x3f   : > { %2835 = vmatprep.mubr.msk.bf16.mxu1 %vm333_vm0, %v3382_v15  ;;  %v3653_v15 = vcombine.low %v3445_v34, %v1629_v53  ;;  %v3667_v42 = vrot.slane %v4211_v20, 5  ;;  %v2639_v34 = vcombine.low %v3418_v52, %v3662_v61  ;;  %v2634_v63 = vrot.slane %v3329_v49, 9  ;;  %v4219_v53 = vld [vmem:[#allocation5_spill] sm:$0xff] }
  0x40   : > { %v1231_v29 = vshll.u32 %v3425_v59, 16  ;;  %v1633_v4 = vsel %vm3387_vm3, %v2633_v16, %v1632_v19  ;;  %v1634_v30 = vrot.slane %v1632_v19, 4  ;;  %v1639_v45 = vrot.slane %v3341_v54, 5 }
  0x41   : > { %v4212_v33 = vcombine.low %v3439_v44, %v3456_v50  ;;  %v1642_v36 = vrot.slane %v3500_v22, 5  ;;  %v4214_v7 = vrot.slane %v4213_v25, 5  ;;  %v1649_v49 = vrot.slane %v3503_v21, 5 }
  0x42   : > { %v2636_v58 = vrot.slane %v3271_v26, 9  ;;  %v4215_v46 = vshrl.u32 %v3425_v59, 16  ;;  %v1636_v0 = vsel %vm3387_vm3, %v1634_v30, %v1635_v32  ;;  %v1640_v22 = vsel %vm3387_vm3, %v2634_v63, %v1639_v45  ;;  %v3720_v32 = vld [vmem:[%s3229_s5 + $0x74] sm:$0x1] }
  0x43   : > { %v1648_v5 = vrot.slane %v4214_v7, 4  ;;  %v1641_v57 = vrot.slane %v1639_v45, 4  ;;  %v3698_v21 = vrot.slane %v1004_v56, 4  ;;  %v3700_v26 = vcombine.low %v1633_v4, %v1636_v0 }
  0x44   : > { %2856 = vmatmul.mubr.msk.bf16.gmra.mxu0 %vm333_vm0, %v4212_v33  ;;  %v3690_v54 = vrot.slane %v4215_v46, 4  ;;  %v1653_v62 = vrot.slane %v4216_v10, 5  ;;  %v2637_v8 = vrot.slane %v4219_v53, 9  ;;  %v1660_v20 = vrot.slane %v3315_v43, 5 }
  0x45   : > { %2883 = vmatprep.mubr.msk.bf16.mxu0 %vm333_vm0, %v3617_v6  ;;  %v1650_v14 = vsel %vm3387_vm3, %v1648_v5, %v1649_v49  ;;  %v1643_v47 = vsel %vm3387_vm3, %v1641_v57, %v1642_v36  ;;  %v4220_v63 = vshrl.u32 %v3439_v44, 16  ;;  %v4221_v30 = vshll.u32 %v3439_v44, 16  ;;  %v3047_v36 = vld [vmem:[%s4179_s1 + $0x20] sm:$0xff]  }
  0x46   : > { %2836 = vmatmul.mubr.msk.bf16.gmra.mxu1 %vm333_vm0, %v3497_v55  ;;  %v3710_v39 = vcombine.low %v4217_v41, %v1650_v14  ;;  %v1656_v55 = vrot.slane %v4218_v37, 5  ;;  %v3714_v16 = vcombine.low %v1640_v22, %v1643_v47  ;;  %v1654_v56 = vsel %vm3387_vm3, %v2636_v58, %v1653_v62  ;;  %v3046_v22 = vld [vmem:[%s4179_s1 + $0x70] sm:$0xff]   ;;  %v4223_v47 = vld [vmem:[#allocation7_spill] sm:$0xff] }
  0x47   : > { %2863 = vmatprep.mubr.msk.bf16.mxu1 %vm333_vm0, %v3579_v27  ;;  %v1655_v19 = vrot.slane %v1653_v62, 4  ;;  %v1663_v27 = vrot.slane %v3569_v24, 5  ;;  %v1416_v4 = vrot.slane %v4220_v63, 4  ;;  %v1419_v45 = vrot.slane %v4221_v30, 5  ;;  %v3048_v30 = vld [vmem:[%s4179_s1 + $0x58] sm:$0xff]  }
  0x48   : > { %v1423_v33 = vshll.u32 %v3456_v50, 16  ;;  %v1661_v43 = vsel %vm3387_vm3, %v2637_v8, %v1660_v20  ;;  %v1662_v7 = vrot.slane %v1660_v20, 4  ;;  %v4222_v24 = vshrl.u32 %v3456_v50, 16  ;;  %v273_v8 = vld [vmem:[%s3229_s5 + $0x68] sm:$0x1] }
  0x49   : > { %v1657_v25 = vsel %vm3387_vm3, %v1655_v19, %v1656_v55  ;;  %v1420_v58 = vor.u32 %v1419_v45, %v1416_v4  ;;  %v1433_v0 = vshll.u32 %v3720_v32, 16  ;;  %v2638_v14 = vrot.slane %v3355_v60, 9  ;;  %v3049_v60 = vld [vmem:[%s4179_s1 + $0x88] sm:$0xff]  }
  0x4a   : > { %v1429_v5 = vrot.slane %v4222_v24, 4  ;;  %v3737_v49 = vcombine.low %v1654_v56, %v1657_v25  ;;  %v1425_v46 = vrot.slane %v1423_v33, 5  ;;  %v1664_v57 = vsel %vm3387_vm3, %v1662_v7, %v1663_v27  ;;  %v4224_v20 = vld [vmem:[#allocation8_spill] sm:$0xff] }
  0x4b   : > { %v1667_v10 = vrot.slane %v3367_v1, 5  ;;  %v1670_v62 = vrot.slane %v3597_v18, 5  ;;  %v3753_v41 = vcombine.low %v1661_v43, %v1664_v57  ;;  %v1421_v37 = vrot.slane %v1420_v58, 4 }
  0x4c   : > { %2884 = vmatmul.mubr.msk.bf16.vlgmr.msra.gmra.mxu0 %vm333_vm0, %v3609_v40  ;;  %v1430_v55 = vor.u32 %v1429_v5, %v1425_v46  ;;  %v1435_v53 = vrot.slane %v1433_v0, 5  ;;  %v2661_v56 = vrot.slane %v3410_v51, 9  ;;  %v1885_v19 = vrot.slane %v3425_v59, 5 }
  0x4d   : > { %2920 = vmatpush3.bf16.msra.mxu0 %v4223_v47  ;;  %2887 = vmatprep.mubr.msk.bf16.mxu0 %vm333_vm0, %v3626_v2  ;;  %v1668_v1 = vsel %vm3387_vm3, %v2638_v14, %v1667_v10  ;;  %v1669_v18 = vrot.slane %v1667_v10, 4  ;;  %v1888_v63 = vrot.slane %v273_v8, 5  ;;  %v2677_v4 = vrot.slane %v3439_v44, 9 }
  0x4e   : > { %2864 = vmatmul.mubr.msk.bf16.vlgmr.msra.gmra.mxu1 %vm333_vm0, %v3617_v6  ;;  %2921 = vmatprep.subr.bf16.mxu0 %v3047_v36  ;;  %v1426_v6 = vsel %vm3487_vm6, %v1421_v37, %v1425_v46  ;;  %v1431_v27 = vrot.slane %v1430_v55, 4  ;;  %v1886_v45 = vsel %vm3387_vm3, %v2661_v56, %v1885_v19  ;;  %v1887_v33 = vrot.slane %v1885_v19, 4 }
  0x4f   : > { %2900 = vmatpush3.bf16.msra.mxu1 %v4224_v20  ;;  %2867 = vmatprep.mubr.msk.bf16.mxu1 %vm333_vm0, %v3609_v40  ;;  %v1671_v51 = vsel %vm3387_vm3, %v1669_v18, %v1670_v62  ;;  %v2061_v25 = vrot.slane %v3456_v50, 5  ;;  %v1233_v43 = vrot.slane %v1231_v29, 5  ;;  %v2064_v24 = vrot.slane %v3720_v32, 5 }
  0x50   : > { %2901 = vmatprep.subr.bf16.mxu1 %v3046_v22  ;;  %v1436_v44 = vsel %vm3487_vm6, %v1431_v27, %v1435_v53  ;;  %v3783_v7 = vcombine.low %v1668_v1, %v1671_v51  ;;  %v1889_v58 = vsel %vm3387_vm3, %v1887_v33, %v1888_v63  ;;  %v976_v29 = vsel %vm3487_vm6, %v3630_v38, %v3571_v28 }
  0x51   : > { %2922 = vmatpush3.bf16.msra.mxu0 %v3047_v36  ;;  %v2616_v5 = vcombine.low %v1426_v6, %v1436_v44  ;;  %v3790_v46 = vsel %vm3387_vm3, %v2677_v4, %v2061_v25  ;;  %v2063_v50 = vrot.slane %v2061_v25, 4  ;;  %v3792_v59 = vcombine.low %v1886_v45, %v1889_v58 }
  0x52   : > { %2959 = vmatprep.subr.bf16.mxu0 %v3049_v60  ;;  %v986_v32 = vsel %vm3487_vm6, %v3638_v31, %v3632_v12  ;;  %v1228_v0 = vor.u32 %v3667_v42, %v3650_v11  ;;  %v1241_v57 = vshll.u32 %v273_v8, 16  ;;  %v1000_v17 = vsel %vm3487_vm6, %v3646_v13, %v3619_v3 }
  0x53   : > { %2902 = vmatpush3.bf16.msra.mxu1 %v3046_v22  ;;  %v3806_v36 = vsel %vm3387_vm3, %v2063_v50, %v2064_v24  ;;  %v1238_v22 = vor.u32 %v3690_v54, %v1233_v43  ;;  %v1010_v38 = vsel %vm3487_vm6, %v3698_v21, %v3657_v9  ;;  %v2585_v12 = vcombine.low %v976_v29, %v986_v32  ;;  %v3050_v21 = vld [vmem:[%s4179_s1 + $0x50] sm:$0xff]  }
  0x54   : > { %2888 = vmatmul.mubr.msk.bf16.gmra.mxu0 %vm333_vm0, %v3628_v35  ;;  %2939 = vmatprep.subr.bf16.mxu1 %v3048_v30  ;;  %v2678_v28 = vcombine.low %v3790_v46, %v3806_v36  ;;  %v2586_v31 = vcombine.low %v1000_v17, %v1010_v38  ;;  %v1229_v11 = vrot.slane %v1228_v0, 4  ;;  %v1243_v54 = vrot.slane %v1241_v57, 5 }
  0x55   : > { %2891 = vmatprep.mubr.msk.bf16.mxu0 %vm333_vm0, %v3636_v23  ;;  %v1239_v42 = vrot.slane %v1238_v22, 4 }
  0x56   : > { %2868 = vmatmul.mubr.msk.bf16.gmra.mxu1 %vm333_vm0, %v3626_v2  ;;  %v1234_v3 = vsel %vm3487_vm6, %v1229_v11, %v1233_v43 }
  0x57   : > { %2871 = vmatprep.mubr.msk.bf16.mxu1 %vm333_vm0, %v3628_v35  ;;  %v1244_v13 = vsel %vm3487_vm6, %v1239_v42, %v1243_v54 }
  0x58   : > { %v2601_v9 = vcombine.low %v1234_v3, %v1244_v13 }
  0x5c   : > { %2892 = vmatmul.mubr.msk.bf16.gmra.mxu0 %vm333_vm0, %v2585_v12 }
  0x5d   : > { %2895 = vmatprep.mubr.msk.bf16.mxu0 %vm333_vm0, %v2586_v31 }
  0x5e   : > { %2872 = vmatmul.mubr.msk.bf16.gmra.mxu1 %vm333_vm0, %v3636_v23 }
  0x5f   : > { %2875 = vmatprep.mubr.msk.bf16.mxu1 %vm333_vm0, %v2585_v12 }
  0x64   : > { %2896 = vmatmul.mubr.msk.bf16.gmra.mxu0 %vm333_vm0, %v2601_v9 }
  0x65   : > { %2923 = vmatprep.mubr.msk.bf16.mxu0 %vm333_vm0, %v2639_v34 }
  0x66   : > { %2876 = vmatmul.mubr.msk.bf16.gmra.mxu1 %vm333_vm0, %v2586_v31 }
  0x67   : > { %2903 = vmatprep.mubr.msk.bf16.mxu1 %vm333_vm0, %v3609_v40 }
  0x6c   : > { %2924 = vmatmul.mubr.msk.bf16.vlgmr.msra.gmra.mxu0 %vm333_vm0, %v3653_v15 }
  0x6d   : > { %2960 = vmatpush3.bf16.msra.mxu0 %v3049_v60  ;;  %2927 = vmatprep.mubr.msk.bf16.mxu0 %vm333_vm0, %v3700_v26 }
  0x6e   : > { %2904 = vmatmul.mubr.msk.bf16.vlgmr.msra.gmra.mxu1 %vm333_vm0, %v3626_v2  ;;  %2961 = vmatprep.subr.bf16.mxu0 %v3051_v48 }
  0x6f   : > { %2940 = vmatpush3.bf16.msra.mxu1 %v3048_v30  ;;  %2907 = vmatprep.mubr.msk.bf16.mxu1 %vm333_vm0, %v3628_v35 }
  0x70   : > { %2941 = vmatprep.subr.bf16.mxu1 %v3050_v21 }
  0x71   : > { %2962 = vmatpush3.bf16.msra.mxu0 %v3051_v48 }
  0x73   : > { %2942 = vmatpush3.bf16.msra.mxu1 %v3050_v21 }
  0x74   : > { %2928 = vmatmul.mubr.msk.bf16.gmra.mxu0 %vm333_vm0, %v3714_v16 }
  0x75   : > { %2931 = vmatprep.mubr.msk.bf16.mxu0 %vm333_vm0, %v3710_v39 }
  0x76   : > { %2908 = vmatmul.mubr.msk.bf16.gmra.mxu1 %vm333_vm0, %v3636_v23 }
  0x77   : > { %2911 = vmatprep.mubr.msk.bf16.mxu1 %vm333_vm0, %v2585_v12 }
  0x7c   : > { %2932 = vmatmul.mubr.msk.bf16.gmra.mxu0 %vm333_vm0, %v3737_v49 }
  0x7d   : > { %2935 = vmatprep.mubr.msk.bf16.mxu0 %vm333_vm0, %v3753_v41 }
  0x7e   : > { %2912 = vmatmul.mubr.msk.bf16.gmra.mxu1 %vm333_vm0, %v2586_v31 }
  0x7f   : > { %2915 = vmatprep.mubr.msk.bf16.mxu1 %vm333_vm0, %v2601_v9 }
  0x84   : > { %2936 = vmatmul.mubr.msk.bf16.gmra.mxu0 %vm333_vm0, %v3783_v7 }
  0x85   : > { %2963 = vmatprep.mubr.msk.bf16.mxu0 %vm333_vm0, %v3700_v26 }
  0x86   : > { %2916 = vmatmul.mubr.msk.bf16.gmra.mxu1 %vm333_vm0, %v2616_v5 }
  0x87   : > { %2943 = vmatprep.mubr.msk.bf16.mxu1 %vm333_vm0, %v3653_v15 }
  0x8c   : > { %2964 = vmatmul.mubr.msk.bf16.vlgmr.msra.gmra.mxu0 %vm333_vm0, %v3714_v16 }
  0x8d   : > { %2967 = vmatprep.mubr.msk.bf16.mxu0 %vm333_vm0, %v3710_v39 }
  0x8e   : > { %2944 = vmatmul.mubr.msk.bf16.vlgmr.msra.gmra.mxu1 %vm333_vm0, %v3700_v26 }
  0x8f   : > { %2947 = vmatprep.mubr.msk.bf16.mxu1 %vm333_vm0, %v3714_v16 }
  0x94   : > { %2968 = vmatmul.mubr.msk.bf16.gmra.mxu0 %vm333_vm0, %v3737_v49 }
  0x95   : > { %2971 = vmatprep.mubr.msk.bf16.mxu0 %vm333_vm0, %v3753_v41 }
  0x96   : > { %2948 = vmatmul.mubr.msk.bf16.gmra.mxu1 %vm333_vm0, %v3710_v39 }
  0x97   : > { %2951 = vmatprep.mubr.msk.bf16.mxu1 %vm333_vm0, %v3737_v49 }
  0x9c   : > { %2972 = vmatmul.mubr.msk.bf16.gmra.mxu0 %vm333_vm0, %v3783_v7 }
  0x9d   : > { %2975 = vmatprep.mubr.msk.bf16.mxu0 %vm333_vm0, %v3792_v59 }
  0x9e   : > { %2952 = vmatmul.mubr.msk.bf16.gmra.mxu1 %vm333_vm0, %v3753_v41 }
  0x9f   : > { %2955 = vmatprep.mubr.msk.bf16.mxu1 %vm333_vm0, %v3783_v7 }
  0xa4   : > { %2976 = vmatmul.mubr.msk.bf16.gmra.mxu0 %vm333_vm0, %v2678_v28 }
  0xa6   : > { %2956 = vmatmul.mubr.msk.bf16.gmra.mxu1 %vm333_vm0, %v3792_v59 }
  0xdc   : > { %v2805_v52 = vpop.f32.mrf.mxu0 }
  0xde   : > { %v2813_v40 = vpop.f32.mrf.mxu1  ;;  %v392_v2 = vpop.f32.mrf.mxu0 }
  0xe0   : > { %v424_v35 = vpop.f32.mrf.mxu1  ;;  %v2806_v23 = vpop.f32.mrf.mxu0 }
  0xe2   : > { %v2814_v15 = vpop.f32.mrf.mxu1  ;;  %v395_v61 = vpop.f32.mrf.mxu0 }
  0xe4   : > { %v427_v34 = vpop.f32.mrf.mxu1  ;;  %v2809_v26 = vpop.f32.mrf.mxu0 }
  0xe6   : > { %v2817_v39 = vpop.f32.mrf.mxu1  ;;  %v408_v16 = vpop.f32.mrf.mxu0 }
  0xe8   : > { %v440_v49 = vpop.f32.mrf.mxu1  ;;  %v2810_v14 = vpop.f32.mrf.mxu0 }
  0xea   : > { %v2818_v10 = vpop.f32.mrf.mxu1  ;;  %v411_v62 = vpop.f32.mrf.mxu0 }
  0xec   : > { %v3905_v47 = vpop.f32.mrf.mxu1  ;;  %v2845_v41 = vpop.f32.mrf.mxu0 }
  0xee   : > { %v2825_v37 = vpop.f32.mrf.mxu1  ;;  %v700_v55 = vpop.f32.mrf.mxu0 }
  0xef   : > { %v611_v53 = vadd.f32 %v2825_v37, %v2805_v52 }
  0xf0   : > { %v530_v8 = vpop.f32.mrf.mxu1  ;;  %v2846_v60 = vpop.f32.mrf.mxu0 }
  0xf1   : > { %v3907_v1 = vadd.f32 %v2845_v41, %v611_v53  ;;  %v609_v18 = vadd.f32 %v530_v8, %v392_v2 }
  0xf2   : > { %v2826_v56 = vpop.f32.mrf.mxu1  ;;  %v703_v19 = vpop.f32.mrf.mxu0 }
  0xf3   : > { %v3909_v20 = vadd.f32 %v700_v55, %v609_v18  ;;  %v612_v6 = vadd.f32 %v2826_v56, %v2806_v23 }
  0xf4   : > { %v533_v27 = vpop.f32.mrf.mxu1  ;;  %v2849_v63 = vpop.f32.mrf.mxu0 }
  0xf5   : > { %v3911_v4 = vadd.f32 %v2846_v60, %v612_v6  ;;  %v610_v30 = vadd.f32 %v533_v27, %v395_v61 }
  0xf6   : > { %v2829_v51 = vpop.f32.mrf.mxu1  ;;  %v716_v45 = vpop.f32.mrf.mxu0 }
  0xf7   : > { %v3913_v33 = vadd.f32 %v703_v19, %v610_v30  ;;  %v615_v25 = vadd.f32 %v2829_v51, %v2809_v26 }
  0xf8   : > { %v546_v43 = vpop.f32.mrf.mxu1  ;;  %v2850_v44 = vpop.f32.mrf.mxu0 }
  0xf9   : > { %v3915_v7 = vadd.f32 %v2849_v63, %v615_v25  ;;  %v613_v24 = vadd.f32 %v546_v43, %v408_v16 }
  0xfa   : > { %v2830_v5 = vpop.f32.mrf.mxu1  ;;  %v719_v58 = vpop.f32.mrf.mxu0 }
  0xfb   : > { %v3917_v46 = vadd.f32 %v716_v45, %v613_v24  ;;  %v616_v50 = vadd.f32 %v2830_v5, %v2810_v14 }
  0xfc   : > { %v549_v59 = vpop.f32.mrf.mxu1  ;;  %v2853_v29 = vpop.f32.mrf.mxu0 }
  0xfd   : > { %v3919_v32 = vadd.f32 %v2850_v44, %v616_v50  ;;  %v614_v36 = vadd.f32 %v549_v59, %v411_v62 }
  0xfe   : > { %v2833_v0 = vpop.f32.mrf.mxu1  ;;  %v732_v22 = vpop.f32.mrf.mxu0 }
  0xff   : > { %v3921_v57 = vadd.f32 %v719_v58, %v614_v36  ;;  %v619_v28 = vadd.f32 %v2833_v0, %v2813_v40 }
 0x100   : > { %v562_v17 = vpop.f32.mrf.mxu1  ;;  %v2854_v38 = vpop.f32.mrf.mxu0 }
 0x101   : > { %v3923_v12 = vadd.f32 %v2853_v29, %v619_v28  ;;  %v617_v31 = vadd.f32 %v562_v17, %v424_v35 }
 0x102   : > { %v2834_v11 = vpop.f32.mrf.mxu1  ;;  %v735_v42 = vpop.f32.mrf.mxu0 }
 0x103   : > { %v3925_v54 = vadd.f32 %v732_v22, %v617_v31  ;;  %v620_v3 = vadd.f32 %v2834_v11, %v2814_v15 }
 0x104   : > { %v565_v13 = vpop.f32.mrf.mxu1  ;;  %v2857_v9 = vpop.f32.mrf.mxu0 }
 0x105   : > { %v3927_v48 = vadd.f32 %v2854_v38, %v620_v3  ;;  %v618_v21 = vadd.f32 %v565_v13, %v427_v34 }
 0x106   : > { %v2837_v52 = vpop.f32.mrf.mxu1  ;;  %v748_v2 = vpop.f32.mrf.mxu0 }
 0x107   : > { %v3929_v23 = vadd.f32 %v735_v42, %v618_v21  ;;  %v623_v40 = vadd.f32 %v2837_v52, %v2817_v39 }
 0x108   : > { %v578_v61 = vpop.f32.mrf.mxu1  ;;  %v2858_v26 = vpop.f32.mrf.mxu0 }
 0x109   : > { %v3931_v16 = vadd.f32 %v2857_v9, %v623_v40  ;;  %v621_v35 = vadd.f32 %v578_v61, %v440_v49 }
 0x10a   : > { %v2838_v14 = vpop.f32.mrf.mxu1  ;;  %v751_v62 = vpop.f32.mrf.mxu0 }
 0x10b   : > { %v3933_v41 = vadd.f32 %v748_v2, %v621_v35  ;;  %v624_v15 = vadd.f32 %v2838_v14, %v2818_v10 }
 0x10c   : > { %v581_v37 = vpop.f32.mrf.mxu1  ;;  %v3935_v55 = vpop.f32.mrf.mxu0 }
 0x10d   : > { %v3937_v53 = vadd.f32 %v2858_v26, %v624_v15  ;;  %v622_v34 = vadd.f32 %v581_v37, %v3905_v47 }
 0x10e   : > { %v2865_v8 = vpop.f32.mrf.mxu1  ;;  %v3940_v60 = vpop.f32.mrf.mxu0 }
 0x10f   : > { %4225 = vst [vmem:[#allocation3_spill] sm:$0xff] %v3937_v53  ;;  %v3942_v39 = vadd.f32 %v751_v62, %v622_v34 }
 0x110   : > { %v1105_v18 = vpop.f32.mrf.mxu1  ;;  %v3944_v56 = vpop.f32.mrf.mxu0 }
 0x111   : > { %4226 = vst [vmem:[#allocation4_spill] sm:$0xff] %v3942_v39 }
 0x112   : > { %v2866_v49 = vpop.f32.mrf.mxu1  ;;  %v3946_v19 = vpop.f32.mrf.mxu0 }
 0x114   : > { %v1108_v6 = vpop.f32.mrf.mxu1  ;;  %v3948_v10 = vpop.f32.mrf.mxu0 }
 0x116   : > { %v2869_v27 = vpop.f32.mrf.mxu1  ;;  %v3950_v63 = vpop.f32.mrf.mxu0 }
 0x118   : > { %v1121_v30 = vpop.f32.mrf.mxu1  ;;  %v3952_v51 = vpop.f32.mrf.mxu0 }
 0x11a   : > { %v3954_v47 = vpop.f32.mrf.mxu1  ;;  %v3956_v45 = vpop.f32.mrf.mxu0 }
 0x11c   : > { %v3958_v25 = vpop.f32.mrf.mxu1  ;;  %v3960_v43 = vpop.f32.mrf.mxu0 }
 0x11e   : > { %v3962_v44 = vpop.f32.mrf.mxu1  ;;  %v3964_v24 = vpop.f32.mrf.mxu0 }
 0x120   : > { %v3966_v5 = vpop.f32.mrf.mxu1  ;;  %v3968_v58 = vpop.f32.mrf.mxu0 }
 0x122   : > { %v3970_v50 = vpop.f32.mrf.mxu1  ;;  %v3972_v59 = vpop.f32.mrf.mxu0 }
 0x124   : > { %v3974_v29 = vpop.f32.mrf.mxu1  ;;  %v3976_v36 = vpop.f32.mrf.mxu0 }
 0x125   : > { %4227 = vst [vmem:[#allocation6_spill] sm:$0xff] %v3976_v36  ;;  %v1186_v36 = vadd.f32 %v2865_v8, %v3907_v1  ;;  %v1185_v8 = vadd.f32 %v1108_v6, %v3913_v33  ;;  %v1191_v33 = vadd.f32 %v3954_v47, %v3919_v32  ;;  %v1192_v32 = vadd.f32 %v3966_v5, %v3925_v54 }
 0x126   : > { %v3978_v0 = vpop.f32.mrf.mxu1  ;;  %v3980_v22 = vpop.f32.mrf.mxu0  ;;  %v1195_v47 = vadd.f32 %v3970_v50, %v3927_v48 }
 0x127   : > { %4228 = vst [vmem:[#allocation9_spill] sm:$0xff] %v3980_v22 }
 0x128   : > { %v3982_v28 = vpop.f32.mrf.mxu1  ;;  %v3984_v17 = vpop.f32.mrf.mxu0 }
 0x129   : > { %4229 = vst [vmem:[#allocation5_spill] sm:$0xff] %v3982_v28  ;;  %4230 = vst [vmem:[#allocation7_spill] sm:$0xff] %v3984_v17 }
 0x12a   : > { %v3986_v38 = vpop.f32.mrf.mxu1  ;;  %v3988_v31 = vpop.f32.mrf.mxu0 }
 0x12b   : > { %4231 = vst [vmem:[#allocation8_spill] sm:$0xff] %v3986_v38  ;;  %4232 = vst [vmem:[#allocation10_spill] sm:$0xff] %v3988_v31 }
 0x12c   : > { %v3990_v11 = vpop.f32.mrf.mxu1  ;;  %v2925_v42 = vpop.f32.mrf.mxu0 }
 0x12d   : > { %4233 = vst [vmem:[#allocation11_spill] sm:$0xff] %v3990_v11 }
 0x12e   : > { %v2905_v3 = vpop.f32.mrf.mxu1  ;;  %v1766_v13 = vpop.f32.mrf.mxu0 }
 0x130   : > { %v1489_v9 = vpop.f32.mrf.mxu1  ;;  %v2926_v21 = vpop.f32.mrf.mxu0 }
 0x132   : > { %v2906_v52 = vpop.f32.mrf.mxu1  ;;  %v3992_v2 = vpop.f32.mrf.mxu0 }
 0x134   : > { %v1492_v40 = vpop.f32.mrf.mxu1  ;;  %v3994_v61 = vpop.f32.mrf.mxu0 }
 0x136   : > { %v2909_v26 = vpop.f32.mrf.mxu1  ;;  %v3996_v35 = vpop.f32.mrf.mxu0 }
 0x138   : > { %v1505_v14 = vpop.f32.mrf.mxu1  ;;  %v3998_v62 = vpop.f32.mrf.mxu0 }
 0x139   : > { %4234 = vst [vmem:[#allocation12_spill] sm:$0xff] %v3998_v62 }
 0x13a   : > { %v4000_v15 = vpop.f32.mrf.mxu1  ;;  %v4002_v37 = vpop.f32.mrf.mxu0 }
 0x13b   : > { %4235 = vst [vmem:[#allocation13_spill] sm:$0xff] %v4002_v37 }
 0x13c   : > { %v4004_v34 = vpop.f32.mrf.mxu1  ;;  %v4006_v31 = vpop.f32.mrf.mxu0 }
 0x13d   : > { %4236 = vst [vmem:[#allocation14_spill] sm:$0xff] %v4006_v31  ;;  %v1184_v31 = vadd.f32 %v1105_v18, %v3909_v20 }
 0x13e   : > { %v4008_v17 = vpop.f32.mrf.mxu1  ;;  %v4010_v11 = vpop.f32.mrf.mxu0 }
 0x13f   : > { %4237 = vst [vmem:[#allocation15_spill] sm:$0xff] %v4008_v17  ;;  %4238 = vst [vmem:[#allocation16_spill] sm:$0xff] %v4010_v11  ;;  %v1378_v11 = vadd.f32 %v3935_v55, %v1186_v36  ;;  %v1376_v1 = vadd.f32 %v3940_v60, %v1184_v31  ;;  %v1189_v31 = vadd.f32 %v3958_v25, %v3921_v57 }
 0x140   : > { %v4012_v39 = vpop.f32.mrf.mxu1  ;;  %v4014_v38 = vpop.f32.mrf.mxu0  ;;  %v1193_v57 = vadd.f32 %v3974_v29, %v3929_v23 }
 0x141   : > { %4239 = vst [vmem:[#allocation17_spill] sm:$0xff] %v4012_v39  ;;  %4240 = vst [vmem:[#allocation18_spill] sm:$0xff] %v4014_v38  ;;  %v1187_v38 = vadd.f32 %v2866_v49, %v3911_v4  ;;  %v1568_v55 = vadd.f32 %v1489_v9, %v1376_v1  ;;  %v1188_v4 = vadd.f32 %v1121_v30, %v3917_v46 }
 0x142   : > { %v4016_v53 = vpop.f32.mrf.mxu1  ;;  %v4018_v22 = vpop.f32.mrf.mxu0  ;;  %v1381_v54 = vadd.f32 %v3956_v45, %v1189_v31  ;;  %v1384_v9 = vadd.f32 %v3964_v24, %v1192_v32 }
 0x143   : > { %4241 = vst [vmem:[#allocation19_spill] sm:$0xff] %v4016_v53  ;;  %4242 = vst [vmem:[#allocation20_spill] sm:$0xff] %v4018_v22  ;;  %v1570_v22 = vadd.f32 %v2905_v3, %v1378_v11  ;;  %v1379_v18 = vadd.f32 %v3944_v56, %v1187_v38  ;;  %v1194_v56 = vadd.f32 %v3962_v44, %v3923_v12  ;;  %v4065_v12 = vld [vmem:[%s4180_s2] ss:$0 sm:$0xff] }
 0x144   : > { %v4021_v62 = vpop.f32.mrf.mxu1  ;;  %v4023_v37 = vpop.f32.mrf.mxu0  ;;  %v1845_v30 = vadd.f32 %v1766_v13, %v1568_v55 }
 0x145   : > { %4243 = vst [vmem:[#allocation21_spill] sm:$0xff] %v4023_v37  ;;  %v1847_v60 = vadd.f32 %v2925_v42, %v1570_v22  ;;  %v1571_v6 = vadd.f32 %v2906_v52, %v1379_v18  ;;  %v1386_v5 = vadd.f32 %v3960_v43, %v1194_v56 }
 0x146   : > { %v4026_v28 = vpop.f32.mrf.mxu1  ;;  %v4028_v17 = vpop.f32.mrf.mxu0  ;;  %v4248_v31 = vld [vmem:[#allocation15_spill] sm:$0xff] }
 0x147   : > { %4244 = vst [vmem:[#allocation22_spill] sm:$0xff] %v4028_v17  ;;  %v1190_v17 = vadd.f32 %v2869_v27, %v3915_v7  ;;  %v1848_v44 = vadd.f32 %v2926_v21, %v1571_v6  ;;  %v1385_v21 = vadd.f32 %v3972_v59, %v1193_v57 }
 0x148   : > { %v4032_v39 = vpop.f32.mrf.mxu1  ;;  %v4034_v53 = vpop.f32.mrf.mxu0 }
 0x149   : > { %4245 = vst [vmem:[#allocation23_spill] sm:$0xff] %v4034_v53  ;;  %v1377_v53 = vadd.f32 %v3946_v19, %v1185_v8  ;;  %v1382_v46 = vadd.f32 %v3948_v10, %v1190_v17  ;;  %v1380_v19 = vadd.f32 %v3950_v63, %v1188_v4 }
 0x14a   : > { %v4038_v37 = vpop.f32.mrf.mxu1  ;;  %v4040_v20 = vpop.f32.mrf.mxu0 }
 0x14b   : > { %v1569_v38 = vadd.f32 %v1492_v40, %v1377_v53  ;;  %v1383_v53 = vadd.f32 %v3952_v51, %v1191_v33  ;;  %v1574_v48 = vadd.f32 %v2909_v26, %v1382_v46  ;;  %v1572_v50 = vadd.f32 %v1505_v14, %v1380_v19 }
 0x14c   : > { %v4045_v49 = vpop.f32.mrf.mxu1  ;;  %v2965_v36 = vpop.f32.mrf.mxu0  ;;  %v1387_v51 = vadd.f32 %v3968_v58, %v1195_v47  ;;  %v1573_v58 = vadd.f32 %v4004_v34, %v1381_v54  ;;  %v4254_v54 = vld [vmem:[#allocation19_spill] sm:$0xff] }
 0x14d   : > { %v1846_v29 = vadd.f32 %v3992_v2, %v1569_v38  ;;  %v1575_v45 = vadd.f32 %v4000_v15, %v1383_v53  ;;  %v1198_v2 = vadd.f32 %v3978_v0, %v3931_v16  ;;  %v1851_v8 = vadd.f32 %v3994_v61, %v1574_v48  ;;  %v4252_v53 = vld [vmem:[#allocation9_spill] sm:$0xff] }
 0x14e   : > { %v2945_v7 = vpop.f32.mrf.mxu1  ;;  %v2118_v27 = vpop.f32.mrf.mxu0  ;;  %v1849_v24 = vadd.f32 %v3996_v35, %v1572_v50  ;;  %v1578_v16 = vadd.f32 %v4248_v31, %v1386_v5  ;;  %v1579_v5 = vadd.f32 %v4254_v54, %v1387_v51  ;;  %v4262_v31 = vld [vmem:[#allocation7_spill] sm:$0xff] }
 0x14f   : > { %v2023_v11 = vadd.f32 %v2945_v7, %v1847_v60  ;;  %v4247_v60 = vld [vmem:[#allocation12_spill] sm:$0xff] }
 0x150   : > { %v1942_v10 = vpop.f32.mrf.mxu1  ;;  %v2966_v25 = vpop.f32.mrf.mxu0  ;;  %v1852_v6 = vadd.f32 %v4247_v60, %v1575_v45  ;;  %v4257_v45 = vld [vmem:[#allocation4_spill] sm:$0xff] }
 0x151   : > { %v2199_v63 = vadd.f32 %v2965_v36, %v2023_v11  ;;  %v2021_v22 = vadd.f32 %v1942_v10, %v1845_v30  ;;  %v4246_v36 = vld [vmem:[#allocation5_spill] sm:$0xff] }
 0x152   : > { %v2946_v17 = vpop.f32.mrf.mxu1  ;;  %v2121_v23 = vpop.f32.mrf.mxu0  ;;  %v1196_v33 = vadd.f32 %v4246_v36, %v3933_v41  ;;  %v4250_v30 = vld [vmem:[#allocation13_spill] sm:$0xff] }
 0x153   : > { %v2254_v42 = vadd.f32 %v4065_v12, %v2199_v63  ;;  %v2197_v3 = vadd.f32 %v2118_v27, %v2021_v22  ;;  %v2024_v13 = vadd.f32 %v2946_v17, %v1848_v44  ;;  %v4249_v27 = vld [vmem:[#allocation6_spill] sm:$0xff]  ;;  %v1850_v38 = vadd.f32 %v4250_v30, %v1573_v58  ;;  %v4251_v11 = vld [vmem:[#allocation17_spill] sm:$0xff] }
 0x154   : > { %v1945_v52 = vpop.f32.mrf.mxu1  ;;  %v2969_v43 = vpop.f32.mrf.mxu0  ;;  %v1390_v46 = vadd.f32 %v4249_v27, %v1198_v2  ;;  %v1576_v19 = vadd.f32 %v4251_v11, %v1384_v9  ;;  %v1388_v44 = vadd.f32 %v4252_v53, %v1196_v33  ;;  %v4253_v63 = vld [vmem:[#allocation14_spill] sm:$0xff] }
 0x155   : > { %v2692_v40 = vmul.f32 -1.442695, %v2254_v42  ;;  %v2252_v26 = vadd.f32 %v4065_v12, %v2197_v3  ;;  %v2200_v14 = vadd.f32 %v2966_v25, %v2024_v13  ;;  %v2022_v1 = vadd.f32 %v1945_v52, %v1846_v29  ;;  %v4255_v3 = vld [vmem:[#allocation3_spill] sm:$0xff]  ;;  %v4256_v13 = vld [vmem:[#allocation8_spill] sm:$0xff]  ;;  %v4266_v53 = vld [vmem:[#allocation22_spill] sm:$0xff] }
 0x156   : > { %v2949_v18 = vpop.f32.mrf.mxu1  ;;  %v2134_v59 = vpop.f32.mrf.mxu0  ;;  %v1855_v22 = vadd.f32 %v4253_v63, %v1578_v16  ;;  %v1199_v9 = vadd.f32 %v4256_v13, %v4255_v3  ;;  %v4258_v52 = vld [vmem:[#allocation11_spill] sm:$0xff] }
 0x157   : > { %3052 = vpow2.f32 %v2692_v40  ;;  %v2690_v15 = vmul.f32 -1.442695, %v2252_v26  ;;  %v2255_v55 = vadd.f32 %v4065_v12, %v2200_v14  ;;  %v2198_v4 = vadd.f32 %v2121_v23, %v2022_v1  ;;  %v4259_v40 = vld [vmem:[#allocation16_spill] sm:$0xff] }
 0x158   : > { %v2027_v0 = vadd.f32 %v2949_v18, %v1851_v8  ;;  %v1958_v61 = vpop.f32.mrf.mxu1  ;;  %v2970_v56 = vpop.f32.mrf.mxu0  ;;  %v1853_v26 = vadd.f32 %v4259_v40, %v1576_v19  ;;  %v4260_v18 = vld [vmem:[#allocation18_spill] sm:$0xff]  ;;  %v1391_v16 = vadd.f32 %v4262_v31, %v1199_v9 }
 0x159   : > { %3054 = vpow2.f32 %v2690_v15  ;;  %v2693_v35 = vmul.f32 -1.442695, %v2255_v55  ;;  %v2253_v34 = vadd.f32 %v4065_v12, %v2198_v4  ;;  %v2025_v7 = vadd.f32 %v1958_v61, %v1849_v24 }
 0x15a   : > { %v2203_v32 = vadd.f32 %v2969_v43, %v2027_v0  ;;  %v2950_v41 = vpop.f32.mrf.mxu1  ;;  %v2137_v47 = vpop.f32.mrf.mxu0  ;;  %v1197_v43 = vadd.f32 %v4258_v52, %v4257_v45  ;;  %v1577_v15 = vadd.f32 %v4021_v62, %v1385_v21  ;;  %v1582_v55 = vadd.f32 %v4026_v28, %v1390_v46  ;;  %v4263_v0 = vld [vmem:[#allocation10_spill] sm:$0xff]  ;;  %v4264_v46 = vld [vmem:[#allocation20_spill] sm:$0xff] }
 0x15b   : > { %3056 = vpow2.f32 %v2693_v35  ;;  %v2691_v57 = vmul.f32 -1.442695, %v2253_v34  ;;  %v2201_v10 = vadd.f32 %v2134_v59, %v2025_v7  ;;  %v2028_v25 = vadd.f32 %v2950_v41, %v1852_v6 }
 0x15c   : > { %v2258_v48 = vadd.f32 %v4065_v12, %v2203_v32  ;;  %v1961_v50 = vpop.f32.mrf.mxu1  ;;  %v2973_v17 = vpop.f32.mrf.mxu0  ;;  %v1856_v59 = vadd.f32 %v4260_v18, %v1579_v5  ;;  %v1389_v61 = vadd.f32 %v4263_v0, %v1197_v43  ;;  %v1580_v28 = vadd.f32 %v4032_v39, %v1388_v44 }
 0x15d   : > { %3058 = vpow2.f32 %v2691_v57  ;;  %v2256_v23 = vadd.f32 %v4065_v12, %v2201_v10  ;;  %v2204_v29 = vadd.f32 %v2970_v56, %v2028_v25  ;;  %v2026_v42 = vadd.f32 %v1961_v50, %v1850_v38  ;;  %v4265_v38 = vld [vmem:[#allocation21_spill] sm:$0xff] }
 0x15e   : > { %v2696_v51 = vmul.f32 -1.442695, %v2258_v48  ;;  %v2953_v14 = vpop.f32.mrf.mxu1  ;;  %v2150_v1 = vpop.f32.mrf.mxu0  ;;  %v1854_v30 = vadd.f32 %v4264_v46, %v1577_v15  ;;  %v1859_v11 = vadd.f32 %v4265_v38, %v1582_v55  ;;  %v1583_v19 = vadd.f32 %v4038_v37, %v1391_v16 }
 0x15f   : > { %v2694_v2 = vmul.f32 -1.442695, %v2256_v23  ;;  %v2259_v8 = vadd.f32 %v4065_v12, %v2204_v29  ;;  %v2202_v24 = vadd.f32 %v2137_v47, %v2026_v42  ;;  %v2031_v58 = vadd.f32 %v2953_v14, %v1855_v22  ;;  %v4267_v29 = vld [vmem:[#allocation23_spill] sm:$0xff] }
 0x160   : > { %3060 = vpow2.f32 %v2696_v51  ;;  %v1974_v4 = vpop.f32.mrf.mxu1  ;;  %v2974_v36 = vpop.f32.mrf.mxu0  ;;  %v1857_v44 = vadd.f32 %v4266_v53, %v1580_v28  ;;  %v1581_v63 = vadd.f32 %v4045_v49, %v1389_v61  ;;  %v1860_v42 = vadd.f32 %v4267_v29, %v1583_v19 }
 0x161   : > { %3062 = vpow2.f32 %v2694_v2  ;;  %v2697_v33 = vmul.f32 -1.442695, %v2259_v8  ;;  %v2257_v60 = vadd.f32 %v4065_v12, %v2202_v24  ;;  %v2207_v6 = vadd.f32 %v2973_v17, %v2031_v58 }
 0x162   : > { %v2029_v62 = vadd.f32 %v1974_v4, %v1853_v26  ;;  %v2954_v21 = vpop.f32.mrf.mxu1  ;;  %v2153_v56 = vpop.f32.mrf.mxu0  ;;  %v1858_v40 = vadd.f32 %v4040_v20, %v1581_v63 }
 0x163   : > { %3064 = vpow2.f32 %v2697_v33  ;;  %v2695_v35 = vmul.f32 -1.442695, %v2257_v60  ;;  %v2262_v34 = vadd.f32 %v4065_v12, %v2207_v6  ;;  %v2032_v7 = vadd.f32 %v2954_v21, %v1856_v59 }
 0x164   : > { %v3053_v27 = vpop.eup %3052  ;;  %v2205_v32 = vadd.f32 %v2150_v1, %v2029_v62  ;;  %v1977_v41 = vpop.f32.mrf.mxu1 }
 0x165   : > { %v2977_v47 = vpop.f32.mrf.mxu0  ;;  %v2318_v39 = vadd.f32 1.0, %v3053_v27  ;;  %3066 = vpow2.f32 %v2695_v35  ;;  %v2700_v57 = vmul.f32 -1.442695, %v2262_v34  ;;  %v2208_v10 = vadd.f32 %v2974_v36, %v2032_v7 }
 0x166   : > { %v3055_v25 = vpop.eup %3054  ;;  %v2260_v37 = vadd.f32 %v4065_v12, %v2205_v32  ;;  %v2030_v22 = vadd.f32 %v1977_v41, %v1854_v30  ;;  %v2957_v54 = vpop.f32.mrf.mxu1 }
 0x167   : > { %v2166_v5 = vpop.f32.mrf.mxu0  ;;  %3068 = vrcp.f32 %v2318_v39  ;;  %v2316_v48 = vadd.f32 1.0, %v3055_v25  ;;  %v2263_v50 = vadd.f32 %v4065_v12, %v2208_v10  ;;  %v2035_v17 = vadd.f32 %v2957_v54, %v1859_v11 }
 0x168   : > { %v3057_v23 = vpop.eup %3056  ;;  %3070 = vpow2.f32 %v2700_v57  ;;  %v2698_v3 = vmul.f32 -1.442695, %v2260_v37  ;;  %v2206_v13 = vadd.f32 %v2153_v56, %v2030_v22  ;;  %v1990_v9 = vpop.f32.mrf.mxu1 }
 0x169   : > { %3072 = vrcp.f32 %v2316_v48  ;;  %v2319_v49 = vadd.f32 1.0, %v3057_v23  ;;  %v2701_v45 = vmul.f32 -1.442695, %v2263_v50  ;;  %v2211_v52 = vadd.f32 %v2977_v47, %v2035_v17  ;;  %v2978_v1 = vpop.f32.mrf.mxu0 }
 0x16a   : > { %v3059_v43 = vpop.eup %3058  ;;  %3074 = vpow2.f32 %v2698_v3  ;;  %v2261_v26 = vadd.f32 %v4065_v12, %v2206_v13  ;;  %v2033_v51 = vadd.f32 %v1990_v9, %v1857_v44  ;;  %v2958_v14 = vpop.f32.mrf.mxu1 }
 0x16b   : > { %3076 = vrcp.f32 %v2319_v49  ;;  %v2317_v2 = vadd.f32 1.0, %v3059_v43  ;;  %v2266_v8 = vadd.f32 %v4065_v12, %v2211_v52  ;;  %v2036_v24 = vadd.f32 %v2958_v14, %v1860_v42  ;;  %v2169_v6 = vpop.f32.mrf.mxu0 }
 0x16c   : > { %3078 = vpow2.f32 %v2701_v45  ;;  %v2699_v58 = vmul.f32 -1.442695, %v2261_v26  ;;  %v2209_v18 = vadd.f32 %v2166_v5, %v2033_v51  ;;  %v1993_v59 = vpop.f32.mrf.mxu1 }
 0x16d   : > { %v3061_v15 = vpop.eup %3060  ;;  %3080 = vrcp.f32 %v2317_v2  ;;  %v2704_v20 = vmul.f32 -1.442695, %v2266_v8  ;;  %v2212_v55 = vadd.f32 %v2978_v1, %v2036_v24  ;;  %v2034_v4 = vadd.f32 %v1993_v59, %v1858_v40 }
 0x16e   : > { %v3063_v36 = vpop.eup %3062  ;;  %v2322_v33 = vadd.f32 1.0, %v3061_v15  ;;  %3082 = vpow2.f32 %v2699_v58  ;;  %v2264_v60 = vadd.f32 %v4065_v12, %v2209_v18 }
 0x16f   : > { %v2320_v31 = vadd.f32 1.0, %v3063_v36  ;;  %3084 = vpow2.f32 %v2704_v20  ;;  %v2267_v16 = vadd.f32 %v4065_v12, %v2212_v55  ;;  %v2210_v0 = vadd.f32 %v2169_v6, %v2034_v4 }
 0x170   : > { %v3065_v61 = vpop.eup %3064  ;;  %3086 = vrcp.f32 %v2322_v33  ;;  %v2702_v28 = vmul.f32 -1.442695, %v2264_v60 }
 0x171   : > { %3088 = vrcp.f32 %v2320_v31  ;;  %v2323_v62 = vadd.f32 1.0, %v3065_v61  ;;  %v2705_v21 = vmul.f32 -1.442695, %v2267_v16  ;;  %v2265_v56 = vadd.f32 %v4065_v12, %v2210_v0 }
 0x172   : > { %v3067_v35 = vpop.eup %3066  ;;  %3090 = vpow2.f32 %v2702_v28 }
 0x173   : > { %3092 = vrcp.f32 %v2323_v62  ;;  %v2321_v34 = vadd.f32 1.0, %v3067_v35  ;;  %v2703_v7 = vmul.f32 -1.442695, %v2265_v56 }
 0x174   : > { %v3069_v27 = vpop.eup %3068  ;;  %3094 = vpow2.f32 %v2705_v21 }
 0x175   : > { %v3071_v46 = vpop.eup %3070  ;;  %2366 = vst [vmem:[%s4145_s29 + $0x10] sm:$0xff] %v3069_v27  ;;  %3096 = vrcp.f32 %v2321_v34 }
 0x176   : > { %v3073_v12 = vpop.eup %3072  ;;  %v2326_v30 = vadd.f32 1.0, %v3071_v46  ;;  %3098 = vpow2.f32 %v2703_v7 }
 0x177   : > { %v3075_v38 = vpop.eup %3074  ;;  %2364 = vst [vmem:[%s4145_s29] sm:$0xff] %v3073_v12 }
 0x178   : > { %v3077_v11 = vpop.eup %3076  ;;  %3100 = vrcp.f32 %v2326_v30  ;;  %v2324_v19 = vadd.f32 1.0, %v3075_v38 }
 0x179   : > { %v3079_v32 = vpop.eup %3078  ;;  %2367 = vst [vmem:[%s4145_s29 + $0x18] sm:$0xff] %v3077_v11 }
 0x17a   : > { %v3081_v41 = vpop.eup %3080  ;;  %3102 = vrcp.f32 %v2324_v19  ;;  %v2327_v47 = vadd.f32 1.0, %v3079_v32 }
 0x17b   : > { %v3083_v39 = vpop.eup %3082  ;;  %2365 = vst [vmem:[%s4145_s29 + $0x8] sm:$0xff] %v3081_v41 }
 0x17c   : > { %v3085_v57 = vpop.eup %3084  ;;  %3104 = vrcp.f32 %v2327_v47  ;;  %v2325_v10 = vadd.f32 1.0, %v3083_v39 }
 0x17d   : > { %v3087_v25 = vpop.eup %3086  ;;  %v2330_v53 = vadd.f32 1.0, %v3085_v57 }
 0x17e   : > { %v3089_v44 = vpop.eup %3088  ;;  %2370 = vst [vmem:[%s4145_s29 + $0x30] sm:$0xff] %v3087_v25  ;;  %3106 = vrcp.f32 %v2325_v10 }
 0x17f   : > { %v3091_v63 = vpop.eup %3090  ;;  %2368 = vst [vmem:[%s4145_s29 + $0x20] sm:$0xff] %v3089_v44  ;;  %3108 = vrcp.f32 %v2330_v53 }
 0x180   : > { %v3093_v37 = vpop.eup %3092  ;;  %v2328_v22 = vadd.f32 1.0, %v3091_v63 }
 0x181   : > { %v3095_v54 = vpop.eup %3094  ;;  %2371 = vst [vmem:[%s4145_s29 + $0x38] sm:$0xff] %v3093_v37 }
 0x182   : > { %v3097_v5 = vpop.eup %3096  ;;  %3110 = vrcp.f32 %v2328_v22  ;;  %v2331_v48 = vadd.f32 1.0, %v3095_v54 }
 0x183   : > { %v3099_v50 = vpop.eup %3098  ;;  %2369 = vst [vmem:[%s4145_s29 + $0x28] sm:$0xff] %v3097_v5 }
 0x184   : > { %3112 = vrcp.f32 %v2331_v48  ;;  %v2329_v17 = vadd.f32 1.0, %v3099_v50 }
 0x185   : > { %v3101_v23 = vpop.eup %3100 }
 0x186   : > { %2374 = vst [vmem:[%s4145_s29 + $0x50] sm:$0xff] %v3101_v23  ;;  %3114 = vrcp.f32 %v2329_v17 }
 0x187   : > { %v3103_v29 = vpop.eup %3102 }
 0x188   : > { %2372 = vst [vmem:[%s4145_s29 + $0x40] sm:$0xff] %v3103_v29 }
 0x189   : > { %v3105_v42 = vpop.eup %3104 }
 0x18a   : > { %2375 = vst [vmem:[%s4145_s29 + $0x58] sm:$0xff] %v3105_v42 }
 0x18b   : > { %v3107_v3 = vpop.eup %3106 }
 0x18c   : > { %v3109_v13 = vpop.eup %3108  ;;  %2373 = vst [vmem:[%s4145_s29 + $0x48] sm:$0xff] %v3107_v3 }
 0x18d   : > { %2378 = vst [vmem:[%s4145_s29 + $0x70] sm:$0xff] %v3109_v13 }
 0x18f   : > { %v3111_v9 = vpop.eup %3110 }
 0x190   : > { %2376 = vst [vmem:[%s4145_s29 + $0x60] sm:$0xff] %v3111_v9 }
 0x191   : > { %v3113_v49 = vpop.eup %3112 }
 0x192   : > { %2379 = vst [vmem:[%s4145_s29 + $0x78] sm:$0xff] %v3113_v49 }
 0x193   : > { %v3115_v45 = vpop.eup %3114 }
 0x194   : > { %2377 = vst [vmem:[%s4145_s29 + $0x68] sm:$0xff] %v3115_v45 }
 0x195 PF: > { %s13_s16 = sadd.s32 1, %s3154_s16   ;;  %s4268_s12 = smov %s3146_s14 }
 0x196   : > { %p10_p7 = scmp.ge.s32.totalorder %s13_s16, 6   ;;  %s4269_s13 = smov %s3150_s15 }
 0x197   : > { %s4270_s14 = smov %s4273_s17  ;;  %s4271_s15 = smov %s4277_s18 }
 0x198   :  { %12 = sbr.rel (!%p10_p7) target bundleno = 3 (0x3), region = 77 }

// kernel: _retina_forward_single.19
= control target key start
LH: loop header
LB: loop body
LE: loop exit
PB: predicated region body
PF: predicated region fallthrough
CT: control target
= control target key end

     0   :  { %s3000_s12 = smov 0   ;;  %s3002_s13 = smov 0   ;;  %s3995_s0 = inlined_call_operand.vmem [shape: bf16[2,18,18,32], index: 0, kind: input, shape index: {}]   ;;  %s3996_s1 = inlined_call_operand.vmem [shape: bf16[9,32,128], index: 1, kind: input, shape index: {}]   ;;  %s3997_s2 = inlined_call_operand.vmem [shape: f32[1,128], index: 2, kind: input, shape index: {}]   ;;  %s3998_s3 = inlined_call_operand.vmem [shape: f32[2,16,16,128], index: 3, kind: output, shape index: {}]  }
   0x1   :  { %s3004_s14 = smov 0   ;;  %s3006_s15 = smov 0  }
   0x2   :  { %s3008_s16 = smov 0  }
   0x3 LB: > { %s25_s17 = sadd.s32 1, %s2970_s14  ;;  %s32_s18 = sadd.s32 1, %s2974_s15  ;;  %s2978_s16 = sphi %s3008_s16, %s13_s16   ;;  %s2974_s15 = sphi %s3006_s15, %s4083_s15   ;;  %s2970_s14 = sphi %s3004_s14, %s4082_s14   ;;  %s2966_s13 = sphi %s3002_s13, %s4081_s13   ;;  %s2962_s12 = sphi %s3000_s12, %s4080_s12  }
   0x4   : > { %p26_p0 = scmp.ge.s32.totalorder %s25_s17, 2  ;;  %p2422_p1 = scmp.ge.s32.totalorder %s2978_s16, 1 }
   0x5   : > { %p177_p2 = scmp.lt.s32.totalorder %s2978_s16, 5 }
   0x6   : > { %s4085_s17 = smov (%p26_p0, %s25_s17), 0  ;;  %s4087_s18 = smov (!%p26_p0, %s32_s18), %s2974_s15 }
   0x7   : > { %p178_p3 = pnand %p2422_p1, %p177_p2  ;;  %p34_p4 = scmp.ge.s32.totalorder %s4087_s18, 2 }
   0x9   : > { %s4089_s18 = smov (%p34_p4, %s4087_s18), 0  ;;  %181 = sbr.rel (%p178_p3) target bundleno = 372 (0x174), region = 32 }
   0xe   : > { %v2912_v0 = vld [vmem:[%s3996_s1 + $0x8] sm:$0xff]   ;;  %p216_p5 = scmp.lt.s32.totalorder %s2966_s13, 1  ;;  %v2913_v1 = vld [vmem:[%s3996_s1] sm:$0xff]   ;;  %s2596_s23 = smul.u32 96, %s2962_s12  ;;  %v3044_v2 = vld [vmem:[%s3996_s1 + $0x38] sm:$0xff]   ;;  %vm333_vm0 = vcmask 261120  }
   0xf   : > { %2867 = vmatprep.subr.bf16.mxu1 %v2912_v0  ;;  %2687 = vmatprep.subr.bf16.mxu0 %v2912_v0  ;;  %v2919_v3 = vld [vmem:[%s3996_s1 + $0x68] sm:$0xff]   ;;  %vm1613_vm1 = vcmask 1042432   ;;  %vm1614_vm2 = vcmask 1046532   ;;  %v2925_v28 = vld [vmem:[%s3996_s1 + $0x60] sm:$0xff]   ;;  %v2922_v44 = vld [vmem:[%s3996_s1 + $0x30] sm:$0xff]   ;;  %s2424_s21 = sshll.u32 %s2962_s12, 3 }
  0x10   : > { %s4091_s13 = smov (!%p216_p5, %s2966_s13), 1  ;;  %2869 = vmatpush3.bf16.msra.mxu1 %v2912_v0  ;;  %2688 = vmatpush3.bf16.msra.mxu0 %v2912_v0  ;;  %v3170_v55 = vld [vmem:[%s3996_s1 + $0x48] sm:$0xff]   ;;  %vm3211_vm3 = vmor %vm1613_vm1, %vm1614_vm2  ;;  %vm816_vm4 = vsmask.f32 3328  ;;  %vm817_vm5 = vsmask.f32 7440 }
  0x11   : > { %2868 = vmatprep.subr.bf16.mxu1 %v2913_v1  ;;  %2689 = vmatprep.subr.bf16.mxu0 %v2913_v1  ;;  %s2871_s26 = smul.u32 216, %s4091_s13  ;;  %vm3311_vm6 = vmor %vm816_vm4, %vm817_vm5  ;;  %p231_p6 = scmp.lt.s32.totalorder %s2424_s21, 15 }
  0x12   : > { %s2426_s22 = sshll.u32 %s4091_s13, 5 }
  0x13   : > { %s220_s4 = scalar_lea.vmem %s3995_s0, %s2871_s26  ;;  %s4093_s21 = smov (!%p231_p6, %s2424_s21), 15 }
  0x14   : > { %2870 = vmatpush3.bf16.msra.mxu1 %v2913_v1  ;;  %2690 = vmatpush3.bf16.msra.mxu0 %v2913_v1  ;;  %s3053_s5 = scalar_lea.vmem %s220_s4, %s2596_s23  ;;  %s2425_s12 = sshll.u32 %s4093_s21, 1 }
  0x15   : > { %v3056_v4 = vld [vmem:[%s3053_s5] sm:$0xf]  ;;  %v3059_v5 = vld [vmem:[%s3053_s5 + $0x4] sm:$0xf]  ;;  %v3062_v6 = vld [vmem:[%s3053_s5 + $0x30] sm:$0xf]  ;;  %2707 = vmatprep.subr.bf16.mxu1 %v3044_v2  ;;  %2727 = vmatprep.subr.bf16.mxu0 %v2919_v3  ;;  %s238_s23 = sadd.s32 %s2426_s22, %s2425_s12 }
  0x16   : > { %v2431_v7 = vcombine.low %v3056_v4, %v3059_v5  ;;  %v820_v8 = vshrl.u32 %v3056_v4, 16  ;;  %v823_v9 = vshll.u32 %v3056_v4, 16  ;;  %v829_v10 = vshll.u32 %v3059_v5, 16  ;;  %v3071_v11 = vld [vmem:[%s3053_s5 + $0x34] sm:$0xf]  ;;  %s2427_s13 = sshll.u32 %s238_s23, 3 }
  0x17   : > { %4006 = vst [vmem:[#allocation3_spill] sm:$0xff] %v3071_v11  ;;  %v833_v12 = vshrl.u32 %v3059_v5, 16  ;;  %v3076_v13 = vcombine.low %v3062_v6, %v3071_v11  ;;  %v1618_v16 = vrot.slane %v3059_v5, 5  ;;  %v3081_v17 = vld [vmem:[%s3053_s5 + $0xc] sm:$0xf]  ;;  %v916_v20 = vshrl.u32 %v3062_v6, 16  ;;  %s3900_s28 = scalar_lea.vmem %s3998_s3, %s2427_s13 }
  0x18   : > { %2691 = vmatprep.mubr.msk.bf16.mxu0 %vm333_vm0, %v2431_v7  ;;  %v822_v14 = vrot.slane %v820_v8, 4  ;;  %v825_v15 = vrot.slane %v823_v9, 5  ;;  %v3083_v18 = vrot.slane %v829_v10, 5  ;;  %v919_v21 = vshll.u32 %v3062_v6, 16  ;;  %v3090_v22 = vld [vmem:[%s3053_s5 + $0x10] sm:$0xf] }
  0x19   : > { %v835_v19 = vrot.slane %v833_v12, 4  ;;  %2699 = vmatprep.mubr.msk.bf16.mxu1 %vm333_vm0, %v3076_v13  ;;  %v925_v24 = vshll.u32 %v3071_v11, 16  ;;  %v929_v25 = vshrl.u32 %v3071_v11, 16  ;;  %v3095_v26 = vld [vmem:[%s3053_s5 + $0x3c] sm:$0xf]  ;;  %v2535_v29 = vrot.slane %v3056_v4, 9 }
  0x1a   : > { %v826_v23 = vor.u32 %v825_v15, %v822_v14  ;;  %v3098_v27 = vld [vmem:[%s3053_s5 + $0x40] sm:$0xf]  ;;  %v3106_v30 = vrot.slane %v1618_v16, 4  ;;  %v3110_v31 = vcombine.low %v3081_v17, %v3090_v22  ;;  %v3113_v32 = vld [vmem:[%s3053_s5 + $0x18] sm:$0xf]  ;;  %v3119_v35 = vrot.slane %v916_v20, 4 }
  0x1b   : > { %4007 = vst [vmem:[#allocation4_spill] sm:$0xff] %v3098_v27  ;;  %v3116_v33 = vld [vmem:[%s3053_s5 + $0x1c] sm:$0xf]  ;;  %v836_v34 = vor.u32 %v835_v19, %v3083_v18  ;;  %v3121_v36 = vrot.slane %v919_v21, 5  ;;  %v2539_v37 = vrot.slane %v3062_v6, 9  ;;  %v3129_v40 = vrot.slane %v925_v24, 5 }
  0x1c   : > { %v3125_v38 = vld [vmem:[%s3053_s5 + $0x48] sm:$0xf]  ;;  %v3127_v39 = vrot.slane %v826_v23, 4  ;;  %v3999_v41 = vrot.slane %v3071_v11, 5  ;;  %2692 = vmatmul.mubr.msk.bf16.vlgmr.msra.gmra.mxu0 %vm333_vm0, %v3110_v31  ;;  %v3136_v42 = vcombine.low %v3095_v26, %v3098_v27  ;;  %v3139_v43 = vld [vmem:[%s3053_s5 + $0x4c] sm:$0xf]  ;;  %v3148_v46 = vcombine.low %v3113_v32, %v3116_v33 }
  0x1d   : > { %4008 = vst [vmem:[#allocation5_spill] sm:$0xff] %v3125_v38  ;;  %v3144_v45 = vrot.slane %v929_v25, 4  ;;  %2728 = vmatpush3.bf16.msra.mxu0 %v2919_v3  ;;  %v868_v47 = vshrl.u32 %v3113_v32, 16  ;;  %v871_v48 = vshll.u32 %v3113_v32, 16  ;;  %v3153_v49 = vld [vmem:[%s3053_s5 + $0x24] sm:$0xf]  ;;  %v3162_v53 = vcombine.low %v3125_v38, %v3139_v43 }
  0x1e   : > { %v844_v50 = vshrl.u32 %v3081_v17, 16  ;;  %2700 = vmatmul.mubr.msk.bf16.vlgmr.msra.gmra.mxu1 %vm333_vm0, %v3136_v42  ;;  %v877_v51 = vshll.u32 %v3116_v33, 16  ;;  %v881_v52 = vshrl.u32 %v3116_v33, 16  ;;  %v3165_v54 = vld [vmem:[%s3053_s5 + $0x28] sm:$0xf]  ;;  %2729 = vmatprep.subr.bf16.mxu0 %v2925_v28  ;;  %v3172_v56 = vrot.slane %v836_v34, 4 }
  0x1f   : > { %v1625_v57 = vrot.slane %v3090_v22, 5  ;;  %2708 = vmatpush3.bf16.msra.mxu1 %v3044_v2  ;;  %2695 = vmatprep.mubr.msk.bf16.mxu0 %vm333_vm0, %v3148_v46  ;;  %v870_v58 = vrot.slane %v868_v47, 4  ;;  %v873_v59 = vrot.slane %v871_v48, 5  ;;  %v3179_v60 = vld [vmem:[%s3053_s5 + $0x54] sm:$0xf]  ;;  %v847_v61 = vshll.u32 %v3081_v17, 16 }
  0x20   : > { %v3182_v62 = vrot.slane %v877_v51, 5  ;;  %v883_v63 = vrot.slane %v881_v52, 4  ;;  %2703 = vmatprep.mubr.msk.bf16.mxu1 %vm333_vm0, %v3162_v53  ;;  %2709 = vmatprep.subr.bf16.mxu1 %v2922_v44  ;;  %v3188_v0 = vcombine.low %v3153_v49, %v3165_v54  ;;  %v3191_v1 = vld [vmem:[%s3053_s5 + $0x58] sm:$0xf]  ;;  %v857_v3 = vshrl.u32 %v3090_v22, 16  ;;  %v2928_v6 = vld [vmem:[%s3996_s1 + $0x10] sm:$0xff]  }
  0x21   : > { %v3196_v2 = vld [vmem:[%s3996_s1 + $0x18] sm:$0xff]   ;;  %v2536_v7 = vrot.slane %v3081_v17, 9  ;;  %v874_v9 = vor.u32 %v873_v59, %v870_v58  ;;  %2730 = vmatpush3.bf16.msra.mxu0 %v2925_v28  ;;  %v3206_v15 = vcombine.low %v3179_v60, %v3191_v1  ;;  %v3215_v19 = vrot.slane %v1625_v57, 4  ;;  %v3234_v51 = vld [vmem:[%s3053_s5 + $0x60] sm:$0xf] }
  0x22   : > { %v884_v14 = vor.u32 %v883_v63, %v3182_v62  ;;  %2767 = vmatprep.subr.bf16.mxu0 %v3170_v55  ;;  %v892_v24 = vshrl.u32 %v3153_v49, 16  ;;  %v895_v25 = vshll.u32 %v3153_v49, 16  ;;  %v905_v28 = vshrl.u32 %v3165_v54, 16  ;;  %v3249_v59 = vld [vmem:[%s3053_s5 + $0x64] sm:$0xf]  ;;  %v3342_v12 = vld [vmem:[%s3996_s1 + $0x78] sm:$0xff]  }
  0x23   : > { %2710 = vmatpush3.bf16.msra.mxu1 %v2922_v44  ;;  %v3227_v47 = vrot.slane %v874_v9, 4  ;;  %v3242_v52 = vsel %vm3211_vm3, %v2535_v29, %v1618_v16  ;;  %v3253_v9 = vld [vmem:[%s3053_s5 + $0x8] sm:$0x1]  ;;  %v846_v16 = vrot.slane %v844_v50, 4  ;;  %v849_v29 = vrot.slane %v847_v61, 5  ;;  %4015 = vst [vmem:[#allocation8_spill] sm:$0xff] %v3342_v12 }
  0x24   : > { %2696 = vmatmul.mubr.msk.bf16.gmra.mxu0 %vm333_vm0, %v3188_v0  ;;  %2747 = vmatprep.subr.bf16.mxu1 %v3196_v2  ;;  %v3244_v58 = vrot.slane %v884_v14, 4  ;;  %v2929_v14 = vld [vmem:[%s3996_s1 + $0x40] sm:$0xff]   ;;  %v3263_v44 = vld [vmem:[%s3053_s5 + $0x6c] sm:$0xf]  ;;  %v839_v63 = vshll.u32 %v3253_v9, 16  ;;  %v853_v48 = vshll.u32 %v3090_v22, 16  ;;  %v3269_v34 = vsel %vm3211_vm3, %v2536_v7, %v1625_v57 }
  0x25   : > { %2731 = vmatprep.mubr.msk.bf16.mxu0 %vm333_vm0, %v3148_v46  ;;  %v3280_v50 = vld [vmem:[%s3053_s5 + $0x70] sm:$0xf]  ;;  %v3283_v61 = vld [vmem:[%s3053_s5 + $0x14] sm:$0x1]  ;;  %v3286_v5 = vld [vmem:[%s3053_s5 + $0x20] sm:$0x1]  ;;  %v850_v57 = vor.u32 %v849_v29, %v846_v16  ;;  %v922_v20 = vor.u32 %v3121_v36, %v3119_v35 }
  0x26   : > { %2704 = vmatmul.mubr.msk.bf16.gmra.mxu1 %vm333_vm0, %v3206_v15  ;;  %v3289_v7 = vrot.slane %v853_v48, 5  ;;  %v859_v4 = vrot.slane %v857_v3, 4  ;;  %v3298_v23 = vrot.slane %v839_v63, 5  ;;  %v863_v16 = vshll.u32 %v3283_v61, 16  ;;  %v3304_v3 = vld [vmem:[%s3996_s1 + $0x28] sm:$0xff]   ;;  %v2939_v48 = vld [vmem:[%s3996_s1 + $0x80] sm:$0xff]  }
  0x27   : > { %2711 = vmatprep.mubr.msk.bf16.mxu1 %vm333_vm0, %v3110_v31  ;;  %v3277_v31 = vsel %vm3211_vm3, %v2539_v37, %v3999_v41  ;;  %4012 = vst [vmem:[#allocation7_spill] sm:$0xff] %v3304_v3  ;;  %v887_v63 = vshll.u32 %v3286_v5, 16  ;;  %v894_v29 = vrot.slane %v892_v24, 4  ;;  %v897_v41 = vrot.slane %v895_v25, 5  ;;  %v3324_v22 = vld [vmem:[%s3053_s5 + $0x2c] sm:$0x1] }
  0x28   : > { %4011 = vst [vmem:[#allocation6_spill] sm:$0xff] %v3277_v31  ;;  %v901_v37 = vshll.u32 %v3165_v54, 16  ;;  %v3327_v21 = vld [vmem:[%s3053_s5 + $0x38] sm:$0x1]  ;;  %v932_v24 = vor.u32 %v3144_v45, %v3129_v40  ;;  %v860_v25 = vor.u32 %v859_v4, %v3289_v7  ;;  %v907_v35 = vrot.slane %v905_v28, 4 }
  0x29   : > { %v832_v45 = vsel %vm3311_vm6, %v3127_v39, %v3083_v18  ;;  %v3356_v4 = vld [vmem:[%s3053_s5 + $0x44] sm:$0x1]  ;;  %v911_v28 = vshll.u32 %v3324_v22, 16  ;;  %v935_v8 = vshll.u32 %v3327_v21, 16  ;;  %v4017_v36 = vshrl.u32 %v3095_v26, 16 }
  0x2a   : > { %v3344_v10 = vrot.slane %v901_v37, 5  ;;  %4016 = vst [vmem:[#allocation9_spill] sm:$0xff] %v3356_v4  ;;  %v898_v37 = vor.u32 %v897_v41, %v894_v29  ;;  %v4018_v18 = vshll.u32 %v3095_v26, 16  ;;  %v880_v41 = vsel %vm3311_vm6, %v3227_v47, %v3182_v62 }
  0x2b   : > { %v942_v31 = vrot.slane %v4017_v36, 4  ;;  %v959_v29 = vshll.u32 %v3356_v4, 16  ;;  %v842_v36 = vsel %vm3311_vm6, %v3172_v56, %v3298_v23  ;;  %v913_v47 = vrot.slane %v911_v28, 5 }
  0x2c   : > { %2732 = vmatmul.mubr.msk.bf16.vlgmr.msra.gmra.mxu0 %vm333_vm0, %v3188_v0  ;;  %v945_v39 = vrot.slane %v4018_v18, 5  ;;  %v899_v62 = vrot.slane %v898_v37, 4  ;;  %v973_v18 = vshll.u32 %v3139_v43, 16  ;;  %v4020_v56 = vshrl.u32 %v3125_v38, 16 }
  0x2d   : > { %2768 = vmatpush3.bf16.msra.mxu0 %v3170_v55  ;;  %2735 = vmatprep.mubr.msk.bf16.mxu0 %vm333_vm0, %v3076_v13  ;;  %v3321_v55 = vcombine.low %v3234_v51, %v3249_v59  ;;  %v961_v37 = vrot.slane %v959_v29, 5  ;;  %v997_v29 = vshll.u32 %v3191_v1, 16 }
  0x2e   : > { %2712 = vmatmul.mubr.msk.bf16.vlgmr.msra.gmra.mxu1 %vm333_vm0, %v3148_v46  ;;  %2769 = vmatprep.subr.bf16.mxu0 %v2929_v14  ;;  %v3336_v46 = vrot.slane %v850_v57, 4  ;;  %v889_v57 = vrot.slane %v887_v63, 5  ;;  %v908_v63 = vor.u32 %v907_v35, %v3344_v10  ;;  %v933_v35 = vrot.slane %v932_v24, 4  ;;  %v3393_v24 = vld [vmem:[%s3053_s5 + $0x50] sm:$0x1] }
  0x2f   : > { %2748 = vmatpush3.bf16.msra.mxu1 %v3196_v2  ;;  %2715 = vmatprep.mubr.msk.bf16.mxu1 %vm333_vm0, %v3188_v0  ;;  %v3352_v0 = vrot.slane %v863_v16, 5  ;;  %v949_v16 = vshll.u32 %v3098_v27, 16  ;;  %v4019_v2 = vshrl.u32 %v3098_v27, 16  ;;  %v966_v23 = vrot.slane %v4020_v56, 4 }
  0x30   : > { %2749 = vmatprep.subr.bf16.mxu1 %v2928_v6  ;;  %v3395_v28 = vrot.slane %v973_v18, 5  ;;  %v4023_v56 = vshrl.u32 %v3179_v60, 16  ;;  %v3403_v27 = vcombine.low %v832_v45, %v842_v36  ;;  %v3421_v18 = vld [vmem:[%s3053_s5 + $0x5c] sm:$0x1] }
  0x31   : > { %2770 = vmatpush3.bf16.msra.mxu0 %v2929_v14  ;;  %v955_v11 = vrot.slane %v4019_v2, 4  ;;  %v861_v14 = vrot.slane %v860_v25, 4  ;;  %v946_v25 = vor.u32 %v945_v39, %v942_v31  ;;  %v951_v2 = vrot.slane %v949_v16, 5 }
  0x32   : > { %2807 = vmatprep.subr.bf16.mxu0 %v3304_v3  ;;  %v937_v3 = vrot.slane %v935_v8, 5  ;;  %v909_v39 = vrot.slane %v908_v63, 4  ;;  %v890_v63 = vsel %vm3311_vm6, %v3244_v58, %v889_v57 }
  0x33   : > { %2750 = vmatpush3.bf16.msra.mxu1 %v2928_v6  ;;  %v923_v6 = vrot.slane %v922_v20, 4  ;;  %v956_v4 = vor.u32 %v955_v11, %v951_v2  ;;  %v4021_v20 = vshll.u32 %v3125_v38, 16  ;;  %v947_v11 = vrot.slane %v946_v25, 4 }
  0x34   : > { %2736 = vmatmul.mubr.msk.bf16.gmra.mxu0 %vm333_vm0, %v3136_v42  ;;  %2787 = vmatprep.subr.bf16.mxu1 %v3342_v12  ;;  %v990_v12 = vrot.slane %v4023_v56, 4  ;;  %v983_v25 = vshll.u32 %v3393_v24, 16  ;;  %v914_v58 = vsel %vm3311_vm6, %v909_v39, %v913_v47  ;;  %v1621_v39 = vrot.slane %v3253_v9, 5 }
  0x35   : > { %2739 = vmatprep.mubr.msk.bf16.mxu0 %vm333_vm0, %v3162_v53  ;;  %v969_v31 = vrot.slane %v4021_v20, 5  ;;  %v957_v16 = vrot.slane %v956_v4, 4  ;;  %v4024_v20 = vshll.u32 %v3179_v60, 16  ;;  %v866_v4 = vsel %vm3311_vm6, %v861_v14, %v3352_v0 }
  0x36   : > { %2716 = vmatmul.mubr.msk.bf16.gmra.mxu1 %vm333_vm0, %v3076_v13  ;;  %v4022_v13 = vshrl.u32 %v3139_v43, 16  ;;  %v928_v45 = vsel %vm3311_vm6, %v923_v6, %v3129_v40  ;;  %v3433_v40 = vcombine.low %v880_v41, %v890_v63  ;;  %v952_v57 = vsel %vm3311_vm6, %v947_v11, %v951_v2 }
  0x37   : > { %2719 = vmatprep.mubr.msk.bf16.mxu1 %vm333_vm0, %v3136_v42  ;;  %v993_v38 = vrot.slane %v4024_v20, 5  ;;  %v856_v42 = vsel %vm3311_vm6, %v3336_v46, %v3289_v7  ;;  %v970_v36 = vor.u32 %v969_v31, %v966_v23  ;;  %v904_v7 = vsel %vm3311_vm6, %v899_v62, %v3344_v10 }
  0x38   : > { %v979_v8 = vrot.slane %v4022_v13, 4  ;;  %v938_v46 = vsel %vm3311_vm6, %v933_v35, %v937_v3  ;;  %v962_v14 = vsel %vm3311_vm6, %v957_v16, %v961_v37  ;;  %v3441_v6 = vcombine.low %v856_v42, %v866_v4 }
  0x39   : > { %v994_v10 = vor.u32 %v993_v38, %v990_v12  ;;  %v3443_v3 = vrot.slane %v997_v29, 5  ;;  %v4025_v62 = vshrl.u32 %v3191_v1, 16  ;;  %v1007_v41 = vshll.u32 %v3421_v18, 16 }
  0x3a   : > { %v980_v0 = vor.u32 %v979_v8, %v3395_v28  ;;  %v3450_v2 = vcombine.low %v904_v7, %v914_v58  ;;  %v3452_v35 = vcombine.low %v928_v45, %v938_v46  ;;  %v3454_v38 = vrot.slane %v970_v36, 4 }
  0x3b   : > { %v1003_v47 = vrot.slane %v4025_v62, 4  ;;  %v3456_v12 = vrot.slane %v983_v25, 5  ;;  %v3460_v23 = vcombine.low %v952_v57, %v962_v14  ;;  %v4026_v37 = vrot.slane %v3283_v61, 5  ;;  %v4030_v25 = vld [vmem:[#allocation3_spill] sm:$0xff] }
  0x3c   : > { %2740 = vmatmul.mubr.msk.bf16.gmra.mxu0 %vm333_vm0, %v3206_v15  ;;  %v3462_v31 = vrot.slane %v980_v0, 4  ;;  %v3470_v13 = vrot.slane %v994_v10, 4  ;;  %v4027_v8 = vshrl.u32 %v3234_v51, 16  ;;  %v2537_v16 = vrot.slane %v3113_v32, 9  ;;  %v4033_v10 = vld [vmem:[#allocation4_spill] sm:$0xff] }
  0x3d   : > { %2743 = vmatprep.mubr.msk.bf16.mxu0 %vm333_vm0, %v3321_v55  ;;  %v1004_v56 = vor.u32 %v1003_v47, %v3443_v3  ;;  %v3481_v9 = vrot.slane %v1007_v41, 5  ;;  %v3486_v61 = vsel %vm3211_vm3, %v3106_v30, %v1621_v39  ;;  %v4028_v20 = vshll.u32 %v3234_v51, 16  ;;  %v4034_v41 = vld [vmem:[#allocation6_spill] sm:$0xff] }
  0x3e   : > { %2720 = vmatmul.mubr.msk.bf16.gmra.mxu1 %vm333_vm0, %v3162_v53  ;;  %v1629_v53 = vsel %vm3211_vm3, %v3215_v19, %v4026_v37  ;;  %v3474_v11 = vrot.slane %v4027_v8, 4  ;;  %v1632_v19 = vrot.slane %v3116_v33, 5  ;;  %v1635_v32 = vrot.slane %v3286_v5, 5  ;;  %v4035_v37 = vld [vmem:[#allocation9_spill] sm:$0xff] }
  0x3f   : > { %2723 = vmatprep.mubr.msk.bf16.mxu1 %vm333_vm0, %v3206_v15  ;;  %v3477_v15 = vcombine.low %v3269_v34, %v1629_v53  ;;  %v3491_v42 = vrot.slane %v4028_v20, 5  ;;  %v2543_v34 = vcombine.low %v3242_v52, %v3486_v61  ;;  %v2538_v63 = vrot.slane %v3153_v49, 9  ;;  %v4036_v53 = vld [vmem:[#allocation5_spill] sm:$0xff] }
  0x40   : > { %v1231_v29 = vshll.u32 %v3249_v59, 16  ;;  %v1633_v4 = vsel %vm3211_vm3, %v2537_v16, %v1632_v19  ;;  %v1634_v30 = vrot.slane %v1632_v19, 4  ;;  %v1639_v45 = vrot.slane %v3165_v54, 5 }
  0x41   : > { %v4029_v33 = vcombine.low %v3263_v44, %v3280_v50  ;;  %v1642_v36 = vrot.slane %v3324_v22, 5  ;;  %v4031_v7 = vrot.slane %v4030_v25, 5  ;;  %v1649_v49 = vrot.slane %v3327_v21, 5 }
  0x42   : > { %v2540_v58 = vrot.slane %v3095_v26, 9  ;;  %v4032_v46 = vshrl.u32 %v3249_v59, 16  ;;  %v1636_v0 = vsel %vm3211_vm3, %v1634_v30, %v1635_v32  ;;  %v1640_v22 = vsel %vm3211_vm3, %v2538_v63, %v1639_v45  ;;  %v3544_v32 = vld [vmem:[%s3053_s5 + $0x74] sm:$0x1] }
  0x43   : > { %v1648_v5 = vrot.slane %v4031_v7, 4  ;;  %v1641_v57 = vrot.slane %v1639_v45, 4  ;;  %v3522_v21 = vrot.slane %v1004_v56, 4  ;;  %v3524_v26 = vcombine.low %v1633_v4, %v1636_v0 }
  0x44   : > { %2744 = vmatmul.mubr.msk.bf16.gmra.mxu0 %vm333_vm0, %v4029_v33  ;;  %v3514_v54 = vrot.slane %v4032_v46, 4  ;;  %v1653_v62 = vrot.slane %v4033_v10, 5  ;;  %v2541_v8 = vrot.slane %v4036_v53, 9  ;;  %v1660_v20 = vrot.slane %v3139_v43, 5 }
  0x45   : > { %2771 = vmatprep.mubr.msk.bf16.mxu0 %vm333_vm0, %v3441_v6  ;;  %v1650_v14 = vsel %vm3211_vm3, %v1648_v5, %v1649_v49  ;;  %v1643_v47 = vsel %vm3211_vm3, %v1641_v57, %v1642_v36  ;;  %v4037_v63 = vshrl.u32 %v3263_v44, 16  ;;  %v4038_v30 = vshll.u32 %v3263_v44, 16  ;;  %v2935_v36 = vld [vmem:[%s3996_s1 + $0x20] sm:$0xff]  }
  0x46   : > { %2724 = vmatmul.mubr.msk.bf16.gmra.mxu1 %vm333_vm0, %v3321_v55  ;;  %v3534_v39 = vcombine.low %v4034_v41, %v1650_v14  ;;  %v1656_v55 = vrot.slane %v4035_v37, 5  ;;  %v3538_v16 = vcombine.low %v1640_v22, %v1643_v47  ;;  %v1654_v56 = vsel %vm3211_vm3, %v2540_v58, %v1653_v62  ;;  %v2934_v22 = vld [vmem:[%s3996_s1 + $0x70] sm:$0xff]   ;;  %v4040_v47 = vld [vmem:[#allocation7_spill] sm:$0xff] }
  0x47   : > { %2751 = vmatprep.mubr.msk.bf16.mxu1 %vm333_vm0, %v3403_v27  ;;  %v1655_v19 = vrot.slane %v1653_v62, 4  ;;  %v1663_v27 = vrot.slane %v3393_v24, 5  ;;  %v1416_v4 = vrot.slane %v4037_v63, 4  ;;  %v1419_v45 = vrot.slane %v4038_v30, 5  ;;  %v2936_v30 = vld [vmem:[%s3996_s1 + $0x58] sm:$0xff]  }
  0x48   : > { %v1423_v33 = vshll.u32 %v3280_v50, 16  ;;  %v1661_v43 = vsel %vm3211_vm3, %v2541_v8, %v1660_v20  ;;  %v1662_v7 = vrot.slane %v1660_v20, 4  ;;  %v4039_v24 = vshrl.u32 %v3280_v50, 16  ;;  %v273_v8 = vld [vmem:[%s3053_s5 + $0x68] sm:$0x1] }
  0x49   : > { %v1657_v25 = vsel %vm3211_vm3, %v1655_v19, %v1656_v55  ;;  %v1420_v58 = vor.u32 %v1419_v45, %v1416_v4  ;;  %v1433_v0 = vshll.u32 %v3544_v32, 16  ;;  %v2542_v14 = vrot.slane %v3179_v60, 9  ;;  %v2937_v60 = vld [vmem:[%s3996_s1 + $0x88] sm:$0xff]  }
  0x4a   : > { %v1429_v5 = vrot.slane %v4039_v24, 4  ;;  %v3561_v49 = vcombine.low %v1654_v56, %v1657_v25  ;;  %v1425_v46 = vrot.slane %v1423_v33, 5  ;;  %v1664_v57 = vsel %vm3211_vm3, %v1662_v7, %v1663_v27  ;;  %v4041_v20 = vld [vmem:[#allocation8_spill] sm:$0xff] }
  0x4b   : > { %v1667_v10 = vrot.slane %v3191_v1, 5  ;;  %v1670_v62 = vrot.slane %v3421_v18, 5  ;;  %v3577_v41 = vcombine.low %v1661_v43, %v1664_v57  ;;  %v1421_v37 = vrot.slane %v1420_v58, 4 }
  0x4c   : > { %2772 = vmatmul.mubr.msk.bf16.vlgmr.msra.gmra.mxu0 %vm333_vm0, %v3433_v40  ;;  %v1430_v55 = vor.u32 %v1429_v5, %v1425_v46  ;;  %v1435_v53 = vrot.slane %v1433_v0, 5  ;;  %v2565_v56 = vrot.slane %v3234_v51, 9  ;;  %v1885_v19 = vrot.slane %v3249_v59, 5 }
  0x4d   : > { %2808 = vmatpush3.bf16.msra.mxu0 %v4040_v47  ;;  %2775 = vmatprep.mubr.msk.bf16.mxu0 %vm333_vm0, %v3450_v2  ;;  %v1668_v1 = vsel %vm3211_vm3, %v2542_v14, %v1667_v10  ;;  %v1669_v18 = vrot.slane %v1667_v10, 4  ;;  %v1888_v63 = vrot.slane %v273_v8, 5  ;;  %v2581_v4 = vrot.slane %v3263_v44, 9 }
  0x4e   : > { %2752 = vmatmul.mubr.msk.bf16.vlgmr.msra.gmra.mxu1 %vm333_vm0, %v3441_v6  ;;  %2809 = vmatprep.subr.bf16.mxu0 %v2935_v36  ;;  %v1426_v6 = vsel %vm3311_vm6, %v1421_v37, %v1425_v46  ;;  %v1431_v27 = vrot.slane %v1430_v55, 4  ;;  %v1886_v45 = vsel %vm3211_vm3, %v2565_v56, %v1885_v19  ;;  %v1887_v33 = vrot.slane %v1885_v19, 4 }
  0x4f   : > { %2788 = vmatpush3.bf16.msra.mxu1 %v4041_v20  ;;  %2755 = vmatprep.mubr.msk.bf16.mxu1 %vm333_vm0, %v3433_v40  ;;  %v1671_v51 = vsel %vm3211_vm3, %v1669_v18, %v1670_v62  ;;  %v2061_v25 = vrot.slane %v3280_v50, 5  ;;  %v1233_v43 = vrot.slane %v1231_v29, 5  ;;  %v2064_v24 = vrot.slane %v3544_v32, 5 }
  0x50   : > { %2789 = vmatprep.subr.bf16.mxu1 %v2934_v22  ;;  %v1436_v44 = vsel %vm3311_vm6, %v1431_v27, %v1435_v53  ;;  %v3607_v7 = vcombine.low %v1668_v1, %v1671_v51  ;;  %v1889_v58 = vsel %vm3211_vm3, %v1887_v33, %v1888_v63  ;;  %v976_v29 = vsel %vm3311_vm6, %v3454_v38, %v3395_v28 }
  0x51   : > { %2810 = vmatpush3.bf16.msra.mxu0 %v2935_v36  ;;  %v2520_v5 = vcombine.low %v1426_v6, %v1436_v44  ;;  %v3614_v46 = vsel %vm3211_vm3, %v2581_v4, %v2061_v25  ;;  %v2063_v50 = vrot.slane %v2061_v25, 4  ;;  %v3616_v59 = vcombine.low %v1886_v45, %v1889_v58 }
  0x52   : > { %2847 = vmatprep.subr.bf16.mxu0 %v2937_v60  ;;  %v986_v32 = vsel %vm3311_vm6, %v3462_v31, %v3456_v12  ;;  %v1228_v0 = vor.u32 %v3491_v42, %v3474_v11  ;;  %v1241_v57 = vshll.u32 %v273_v8, 16  ;;  %v1000_v17 = vsel %vm3311_vm6, %v3470_v13, %v3443_v3 }
  0x53   : > { %2790 = vmatpush3.bf16.msra.mxu1 %v2934_v22  ;;  %v3630_v36 = vsel %vm3211_vm3, %v2063_v50, %v2064_v24  ;;  %v1238_v22 = vor.u32 %v3514_v54, %v1233_v43  ;;  %v1010_v38 = vsel %vm3311_vm6, %v3522_v21, %v3481_v9  ;;  %v2489_v12 = vcombine.low %v976_v29, %v986_v32  ;;  %v2938_v21 = vld [vmem:[%s3996_s1 + $0x50] sm:$0xff]  }
  0x54   : > { %2776 = vmatmul.mubr.msk.bf16.gmra.mxu0 %vm333_vm0, %v3452_v35  ;;  %2827 = vmatprep.subr.bf16.mxu1 %v2936_v30  ;;  %v2582_v28 = vcombine.low %v3614_v46, %v3630_v36  ;;  %v2490_v31 = vcombine.low %v1000_v17, %v1010_v38  ;;  %v1229_v11 = vrot.slane %v1228_v0, 4  ;;  %v1243_v54 = vrot.slane %v1241_v57, 5 }
  0x55   : > { %2779 = vmatprep.mubr.msk.bf16.mxu0 %vm333_vm0, %v3460_v23  ;;  %v1239_v42 = vrot.slane %v1238_v22, 4 }
  0x56   : > { %2756 = vmatmul.mubr.msk.bf16.gmra.mxu1 %vm333_vm0, %v3450_v2  ;;  %v1234_v3 = vsel %vm3311_vm6, %v1229_v11, %v1233_v43 }
  0x57   : > { %2759 = vmatprep.mubr.msk.bf16.mxu1 %vm333_vm0, %v3452_v35  ;;  %v1244_v13 = vsel %vm3311_vm6, %v1239_v42, %v1243_v54 }
  0x58   : > { %v2505_v9 = vcombine.low %v1234_v3, %v1244_v13 }
  0x5c   : > { %2780 = vmatmul.mubr.msk.bf16.gmra.mxu0 %vm333_vm0, %v2489_v12 }
  0x5d   : > { %2783 = vmatprep.mubr.msk.bf16.mxu0 %vm333_vm0, %v2490_v31 }
  0x5e   : > { %2760 = vmatmul.mubr.msk.bf16.gmra.mxu1 %vm333_vm0, %v3460_v23 }
  0x5f   : > { %2763 = vmatprep.mubr.msk.bf16.mxu1 %vm333_vm0, %v2489_v12 }
  0x64   : > { %2784 = vmatmul.mubr.msk.bf16.gmra.mxu0 %vm333_vm0, %v2505_v9 }
  0x65   : > { %2811 = vmatprep.mubr.msk.bf16.mxu0 %vm333_vm0, %v2543_v34 }
  0x66   : > { %2764 = vmatmul.mubr.msk.bf16.gmra.mxu1 %vm333_vm0, %v2490_v31 }
  0x67   : > { %2791 = vmatprep.mubr.msk.bf16.mxu1 %vm333_vm0, %v3433_v40 }
  0x6c   : > { %2812 = vmatmul.mubr.msk.bf16.vlgmr.msra.gmra.mxu0 %vm333_vm0, %v3477_v15 }
  0x6d   : > { %2848 = vmatpush3.bf16.msra.mxu0 %v2937_v60  ;;  %2815 = vmatprep.mubr.msk.bf16.mxu0 %vm333_vm0, %v3524_v26 }
  0x6e   : > { %2792 = vmatmul.mubr.msk.bf16.vlgmr.msra.gmra.mxu1 %vm333_vm0, %v3450_v2  ;;  %2849 = vmatprep.subr.bf16.mxu0 %v2939_v48 }
  0x6f   : > { %2828 = vmatpush3.bf16.msra.mxu1 %v2936_v30  ;;  %2795 = vmatprep.mubr.msk.bf16.mxu1 %vm333_vm0, %v3452_v35 }
  0x70   : > { %2829 = vmatprep.subr.bf16.mxu1 %v2938_v21 }
  0x71   : > { %2850 = vmatpush3.bf16.msra.mxu0 %v2939_v48 }
  0x73   : > { %2830 = vmatpush3.bf16.msra.mxu1 %v2938_v21 }
  0x74   : > { %2816 = vmatmul.mubr.msk.bf16.gmra.mxu0 %vm333_vm0, %v3538_v16 }
  0x75   : > { %2819 = vmatprep.mubr.msk.bf16.mxu0 %vm333_vm0, %v3534_v39 }
  0x76   : > { %2796 = vmatmul.mubr.msk.bf16.gmra.mxu1 %vm333_vm0, %v3460_v23 }
  0x77   : > { %2799 = vmatprep.mubr.msk.bf16.mxu1 %vm333_vm0, %v2489_v12 }
  0x7c   : > { %2820 = vmatmul.mubr.msk.bf16.gmra.mxu0 %vm333_vm0, %v3561_v49 }
  0x7d   : > { %2823 = vmatprep.mubr.msk.bf16.mxu0 %vm333_vm0, %v3577_v41 }
  0x7e   : > { %2800 = vmatmul.mubr.msk.bf16.gmra.mxu1 %vm333_vm0, %v2490_v31 }
  0x7f   : > { %2803 = vmatprep.mubr.msk.bf16.mxu1 %vm333_vm0, %v2505_v9 }
  0x84   : > { %2824 = vmatmul.mubr.msk.bf16.gmra.mxu0 %vm333_vm0, %v3607_v7 }
  0x85   : > { %2851 = vmatprep.mubr.msk.bf16.mxu0 %vm333_vm0, %v3524_v26 }
  0x86   : > { %2804 = vmatmul.mubr.msk.bf16.gmra.mxu1 %vm333_vm0, %v2520_v5 }
  0x87   : > { %2831 = vmatprep.mubr.msk.bf16.mxu1 %vm333_vm0, %v3477_v15 }
  0x8c   : > { %2852 = vmatmul.mubr.msk.bf16.vlgmr.msra.gmra.mxu0 %vm333_vm0, %v3538_v16 }
  0x8d   : > { %2855 = vmatprep.mubr.msk.bf16.mxu0 %vm333_vm0, %v3534_v39 }
  0x8e   : > { %2832 = vmatmul.mubr.msk.bf16.vlgmr.msra.gmra.mxu1 %vm333_vm0, %v3524_v26 }
  0x8f   : > { %2835 = vmatprep.mubr.msk.bf16.mxu1 %vm333_vm0, %v3538_v16 }
  0x94   : > { %2856 = vmatmul.mubr.msk.bf16.gmra.mxu0 %vm333_vm0, %v3561_v49 }
  0x95   : > { %2859 = vmatprep.mubr.msk.bf16.mxu0 %vm333_vm0, %v3577_v41 }
  0x96   : > { %2836 = vmatmul.mubr.msk.bf16.gmra.mxu1 %vm333_vm0, %v3534_v39 }
  0x97   : > { %2839 = vmatprep.mubr.msk.bf16.mxu1 %vm333_vm0, %v3561_v49 }
  0x9c   : > { %2860 = vmatmul.mubr.msk.bf16.gmra.mxu0 %vm333_vm0, %v3607_v7 }
  0x9d   : > { %2863 = vmatprep.mubr.msk.bf16.mxu0 %vm333_vm0, %v3616_v59 }
  0x9e   : > { %2840 = vmatmul.mubr.msk.bf16.gmra.mxu1 %vm333_vm0, %v3577_v41 }
  0x9f   : > { %2843 = vmatprep.mubr.msk.bf16.mxu1 %vm333_vm0, %v3607_v7 }
  0xa4   : > { %2864 = vmatmul.mubr.msk.bf16.gmra.mxu0 %vm333_vm0, %v2582_v28 }
  0xa6   : > { %2844 = vmatmul.mubr.msk.bf16.gmra.mxu1 %vm333_vm0, %v3616_v59 }
  0xdc   : > { %v2693_v52 = vpop.f32.mrf.mxu0 }
  0xde   : > { %v2701_v40 = vpop.f32.mrf.mxu1  ;;  %v392_v2 = vpop.f32.mrf.mxu0 }
  0xe0   : > { %v424_v35 = vpop.f32.mrf.mxu1  ;;  %v2694_v23 = vpop.f32.mrf.mxu0 }
  0xe2   : > { %v2702_v15 = vpop.f32.mrf.mxu1  ;;  %v395_v61 = vpop.f32.mrf.mxu0 }
  0xe4   : > { %v427_v34 = vpop.f32.mrf.mxu1  ;;  %v2697_v26 = vpop.f32.mrf.mxu0 }
  0xe6   : > { %v2705_v39 = vpop.f32.mrf.mxu1  ;;  %v408_v16 = vpop.f32.mrf.mxu0 }
  0xe8   : > { %v440_v49 = vpop.f32.mrf.mxu1  ;;  %v2698_v14 = vpop.f32.mrf.mxu0 }
  0xea   : > { %v2706_v10 = vpop.f32.mrf.mxu1  ;;  %v411_v62 = vpop.f32.mrf.mxu0 }
  0xec   : > { %v3729_v47 = vpop.f32.mrf.mxu1  ;;  %v2733_v41 = vpop.f32.mrf.mxu0 }
  0xee   : > { %v2713_v37 = vpop.f32.mrf.mxu1  ;;  %v700_v55 = vpop.f32.mrf.mxu0 }
  0xef   : > { %v611_v53 = vadd.f32 %v2713_v37, %v2693_v52 }
  0xf0   : > { %v530_v8 = vpop.f32.mrf.mxu1  ;;  %v2734_v60 = vpop.f32.mrf.mxu0 }
  0xf1   : > { %v3731_v1 = vadd.f32 %v2733_v41, %v611_v53  ;;  %v609_v18 = vadd.f32 %v530_v8, %v392_v2 }
  0xf2   : > { %v2714_v56 = vpop.f32.mrf.mxu1  ;;  %v703_v19 = vpop.f32.mrf.mxu0 }
  0xf3   : > { %v3733_v20 = vadd.f32 %v700_v55, %v609_v18  ;;  %v612_v6 = vadd.f32 %v2714_v56, %v2694_v23 }
  0xf4   : > { %v533_v27 = vpop.f32.mrf.mxu1  ;;  %v2737_v63 = vpop.f32.mrf.mxu0 }
  0xf5   : > { %v3735_v4 = vadd.f32 %v2734_v60, %v612_v6  ;;  %v610_v30 = vadd.f32 %v533_v27, %v395_v61 }
  0xf6   : > { %v2717_v51 = vpop.f32.mrf.mxu1  ;;  %v716_v45 = vpop.f32.mrf.mxu0 }
  0xf7   : > { %v3737_v33 = vadd.f32 %v703_v19, %v610_v30  ;;  %v615_v25 = vadd.f32 %v2717_v51, %v2697_v26 }
  0xf8   : > { %v546_v43 = vpop.f32.mrf.mxu1  ;;  %v2738_v44 = vpop.f32.mrf.mxu0 }
  0xf9   : > { %v3739_v7 = vadd.f32 %v2737_v63, %v615_v25  ;;  %v613_v24 = vadd.f32 %v546_v43, %v408_v16 }
  0xfa   : > { %v2718_v5 = vpop.f32.mrf.mxu1  ;;  %v719_v58 = vpop.f32.mrf.mxu0 }
  0xfb   : > { %v3741_v46 = vadd.f32 %v716_v45, %v613_v24  ;;  %v616_v50 = vadd.f32 %v2718_v5, %v2698_v14 }
  0xfc   : > { %v549_v59 = vpop.f32.mrf.mxu1  ;;  %v2741_v29 = vpop.f32.mrf.mxu0 }
  0xfd   : > { %v3743_v32 = vadd.f32 %v2738_v44, %v616_v50  ;;  %v614_v36 = vadd.f32 %v549_v59, %v411_v62 }
  0xfe   : > { %v2721_v0 = vpop.f32.mrf.mxu1  ;;  %v732_v22 = vpop.f32.mrf.mxu0 }
  0xff   : > { %v3745_v57 = vadd.f32 %v719_v58, %v614_v36  ;;  %v619_v28 = vadd.f32 %v2721_v0, %v2701_v40 }
 0x100   : > { %v562_v17 = vpop.f32.mrf.mxu1  ;;  %v2742_v38 = vpop.f32.mrf.mxu0 }
 0x101   : > { %v3747_v12 = vadd.f32 %v2741_v29, %v619_v28  ;;  %v617_v31 = vadd.f32 %v562_v17, %v424_v35 }
 0x102   : > { %v2722_v11 = vpop.f32.mrf.mxu1  ;;  %v735_v42 = vpop.f32.mrf.mxu0 }
 0x103   : > { %v3749_v54 = vadd.f32 %v732_v22, %v617_v31  ;;  %v620_v3 = vadd.f32 %v2722_v11, %v2702_v15 }
 0x104   : > { %v565_v13 = vpop.f32.mrf.mxu1  ;;  %v2745_v9 = vpop.f32.mrf.mxu0 }
 0x105   : > { %v3751_v48 = vadd.f32 %v2742_v38, %v620_v3  ;;  %v618_v21 = vadd.f32 %v565_v13, %v427_v34 }
 0x106   : > { %v2725_v52 = vpop.f32.mrf.mxu1  ;;  %v748_v2 = vpop.f32.mrf.mxu0 }
 0x107   : > { %v3753_v23 = vadd.f32 %v735_v42, %v618_v21  ;;  %v623_v40 = vadd.f32 %v2725_v52, %v2705_v39 }
 0x108   : > { %v578_v61 = vpop.f32.mrf.mxu1  ;;  %v2746_v26 = vpop.f32.mrf.mxu0 }
 0x109   : > { %v3755_v16 = vadd.f32 %v2745_v9, %v623_v40  ;;  %v621_v35 = vadd.f32 %v578_v61, %v440_v49 }
 0x10a   : > { %v2726_v14 = vpop.f32.mrf.mxu1  ;;  %v751_v62 = vpop.f32.mrf.mxu0 }
 0x10b   : > { %v3757_v41 = vadd.f32 %v748_v2, %v621_v35  ;;  %v624_v15 = vadd.f32 %v2726_v14, %v2706_v10 }
 0x10c   : > { %v581_v37 = vpop.f32.mrf.mxu1  ;;  %v3759_v55 = vpop.f32.mrf.mxu0 }
 0x10d   : > { %4042 = vst [vmem:[#allocation3_spill] sm:$0xff] %v3757_v41  ;;  %v3761_v53 = vadd.f32 %v2746_v26, %v624_v15  ;;  %v622_v34 = vadd.f32 %v581_v37, %v3729_v47 }
 0x10e   : > { %v2753_v8 = vpop.f32.mrf.mxu1  ;;  %v3764_v60 = vpop.f32.mrf.mxu0 }
 0x10f   : > { %4043 = vst [vmem:[#allocation4_spill] sm:$0xff] %v3761_v53  ;;  %v3766_v39 = vadd.f32 %v751_v62, %v622_v34 }
 0x110   : > { %v1105_v18 = vpop.f32.mrf.mxu1  ;;  %v3768_v56 = vpop.f32.mrf.mxu0 }
 0x111   : > { %4044 = vst [vmem:[#allocation6_spill] sm:$0xff] %v3766_v39  ;;  %v1184_v41 = vadd.f32 %v1105_v18, %v3733_v20 }
 0x112   : > { %v2754_v49 = vpop.f32.mrf.mxu1  ;;  %v3770_v19 = vpop.f32.mrf.mxu0 }
 0x114   : > { %v1108_v6 = vpop.f32.mrf.mxu1  ;;  %v3772_v10 = vpop.f32.mrf.mxu0 }
 0x116   : > { %v3774_v27 = vpop.f32.mrf.mxu1  ;;  %v3776_v63 = vpop.f32.mrf.mxu0 }
 0x117   : > { %v1190_v20 = vadd.f32 %v3774_v27, %v3739_v7 }
 0x118   : > { %v3778_v30 = vpop.f32.mrf.mxu1  ;;  %v3780_v47 = vpop.f32.mrf.mxu0 }
 0x119   : > { %v1382_v7 = vadd.f32 %v3772_v10, %v1190_v20 }
 0x11a   : > { %v3782_v51 = vpop.f32.mrf.mxu1  ;;  %v3784_v45 = vpop.f32.mrf.mxu0 }
 0x11b   : > { %v1191_v27 = vadd.f32 %v3782_v51, %v3743_v32 }
 0x11c   : > { %v3786_v25 = vpop.f32.mrf.mxu1  ;;  %v3788_v43 = vpop.f32.mrf.mxu0 }
 0x11e   : > { %v3790_v44 = vpop.f32.mrf.mxu1  ;;  %v3792_v24 = vpop.f32.mrf.mxu0 }
 0x120   : > { %v3794_v5 = vpop.f32.mrf.mxu1  ;;  %v3796_v58 = vpop.f32.mrf.mxu0 }
 0x122   : > { %v3798_v50 = vpop.f32.mrf.mxu1  ;;  %v3800_v59 = vpop.f32.mrf.mxu0 }
 0x123   : > { %4045 = vst [vmem:[#allocation9_spill] sm:$0xff] %v3800_v59 }
 0x124   : > { %v3802_v29 = vpop.f32.mrf.mxu1  ;;  %v3804_v36 = vpop.f32.mrf.mxu0 }
 0x125   : > { %4046 = vst [vmem:[#allocation5_spill] sm:$0xff] %v3804_v36  ;;  %v1186_v36 = vadd.f32 %v2753_v8, %v3731_v1  ;;  %v1376_v1 = vadd.f32 %v3764_v60, %v1184_v41  ;;  %v1185_v8 = vadd.f32 %v1108_v6, %v3737_v33 }
 0x126   : > { %v3806_v0 = vpop.f32.mrf.mxu1  ;;  %v3808_v22 = vpop.f32.mrf.mxu0 }
 0x127   : > { %4047 = vst [vmem:[#allocation7_spill] sm:$0xff] %v3808_v22  ;;  %v1377_v41 = vadd.f32 %v3770_v19, %v1185_v8  ;;  %v3891_v19 = vld [vmem:[%s3997_s2] ss:$0 sm:$0xff] }
 0x128   : > { %v3810_v28 = vpop.f32.mrf.mxu1  ;;  %v3812_v17 = vpop.f32.mrf.mxu0 }
 0x129   : > { %4048 = vst [vmem:[#allocation8_spill] sm:$0xff] %v3810_v28  ;;  %4049 = vst [vmem:[#allocation10_spill] sm:$0xff] %v3812_v17 }
 0x12a   : > { %v3814_v38 = vpop.f32.mrf.mxu1  ;;  %v3816_v31 = vpop.f32.mrf.mxu0 }
 0x12b   : > { %4050 = vst [vmem:[#allocation11_spill] sm:$0xff] %v3814_v38  ;;  %4051 = vst [vmem:[#allocation12_spill] sm:$0xff] %v3816_v31 }
 0x12c   : > { %v3818_v11 = vpop.f32.mrf.mxu1  ;;  %v2813_v42 = vpop.f32.mrf.mxu0 }
 0x12d   : > { %4052 = vst [vmem:[#allocation13_spill] sm:$0xff] %v3818_v11 }
 0x12e   : > { %v2793_v3 = vpop.f32.mrf.mxu1  ;;  %v1766_v13 = vpop.f32.mrf.mxu0 }
 0x130   : > { %v1489_v9 = vpop.f32.mrf.mxu1  ;;  %v3820_v21 = vpop.f32.mrf.mxu0 }
 0x132   : > { %v2794_v52 = vpop.f32.mrf.mxu1  ;;  %v3822_v2 = vpop.f32.mrf.mxu0 }
 0x134   : > { %v1492_v40 = vpop.f32.mrf.mxu1  ;;  %v3824_v61 = vpop.f32.mrf.mxu0 }
 0x136   : > { %v2797_v26 = vpop.f32.mrf.mxu1  ;;  %v3826_v35 = vpop.f32.mrf.mxu0 }
 0x138   : > { %v1505_v14 = vpop.f32.mrf.mxu1  ;;  %v3828_v62 = vpop.f32.mrf.mxu0 }
 0x13a   : > { %v3830_v15 = vpop.f32.mrf.mxu1  ;;  %v3832_v37 = vpop.f32.mrf.mxu0 }
 0x13b   : > { %4053 = vst [vmem:[#allocation14_spill] sm:$0xff] %v3832_v37 }
 0x13c   : > { %v3834_v34 = vpop.f32.mrf.mxu1  ;;  %v3836_v31 = vpop.f32.mrf.mxu0 }
 0x13d   : > { %4054 = vst [vmem:[#allocation15_spill] sm:$0xff] %v3836_v31 }
 0x13e   : > { %v3838_v17 = vpop.f32.mrf.mxu1  ;;  %v3840_v11 = vpop.f32.mrf.mxu0 }
 0x13f   : > { %4055 = vst [vmem:[#allocation16_spill] sm:$0xff] %v3840_v11 }
 0x140   : > { %v3843_v39 = vpop.f32.mrf.mxu1  ;;  %v3845_v22 = vpop.f32.mrf.mxu0 }
 0x141   : > { %4056 = vst [vmem:[#allocation17_spill] sm:$0xff] %v3845_v22  ;;  %v1378_v22 = vadd.f32 %v3759_v55, %v1186_v36  ;;  %v1568_v55 = vadd.f32 %v1489_v9, %v1376_v1  ;;  %v1574_v1 = vadd.f32 %v2797_v26, %v1382_v7 }
 0x142   : > { %v3847_v38 = vpop.f32.mrf.mxu1  ;;  %v3849_v53 = vpop.f32.mrf.mxu0 }
 0x143   : > { %4057 = vst [vmem:[#allocation18_spill] sm:$0xff] %v3847_v38  ;;  %4058 = vst [vmem:[#allocation19_spill] sm:$0xff] %v3849_v53  ;;  %v1187_v38 = vadd.f32 %v2754_v49, %v3735_v4  ;;  %v1188_v49 = vadd.f32 %v3778_v30, %v3741_v46  ;;  %v1189_v30 = vadd.f32 %v3786_v25, %v3745_v57 }
 0x144   : > { %v3852_v28 = vpop.f32.mrf.mxu1  ;;  %v3854_v31 = vpop.f32.mrf.mxu0 }
 0x145   : > { %4059 = vst [vmem:[#allocation20_spill] sm:$0xff] %v3854_v31  ;;  %v1570_v31 = vadd.f32 %v2793_v3, %v1378_v22  ;;  %v1379_v4 = vadd.f32 %v3768_v56, %v1187_v38  ;;  %v1845_v56 = vadd.f32 %v1766_v13, %v1568_v55  ;;  %v1569_v38 = vadd.f32 %v1492_v40, %v1377_v41 }
 0x146   : > { %v3857_v11 = vpop.f32.mrf.mxu1  ;;  %v3859_v59 = vpop.f32.mrf.mxu0  ;;  %v1380_v46 = vadd.f32 %v3776_v63, %v1188_v49  ;;  %v1383_v13 = vadd.f32 %v3780_v47, %v1191_v27  ;;  %v1194_v63 = vadd.f32 %v3790_v44, %v3747_v12  ;;  %v1381_v47 = vadd.f32 %v3784_v45, %v1189_v30 }
 0x147   : > { %4060 = vst [vmem:[#allocation21_spill] sm:$0xff] %v3859_v59  ;;  %v1847_v60 = vadd.f32 %v2813_v42, %v1570_v31  ;;  %v1571_v6 = vadd.f32 %v2794_v52, %v1379_v4  ;;  %v1846_v40 = vadd.f32 %v3822_v2, %v1569_v38  ;;  %v1192_v12 = vadd.f32 %v3794_v5, %v3749_v54 }
 0x148   : > { %v3863_v37 = vpop.f32.mrf.mxu1  ;;  %v3865_v53 = vpop.f32.mrf.mxu0  ;;  %v1572_v52 = vadd.f32 %v1505_v14, %v1380_v46  ;;  %v1851_v44 = vadd.f32 %v3824_v61, %v1574_v1  ;;  %v1575_v4 = vadd.f32 %v3830_v15, %v1383_v13  ;;  %v1195_v45 = vadd.f32 %v3798_v50, %v3751_v48  ;;  %v4062_v1 = vld [vmem:[#allocation9_spill] sm:$0xff] }
 0x149   : > { %v1848_v32 = vadd.f32 %v3820_v21, %v1571_v6  ;;  %v1573_v61 = vadd.f32 %v3834_v34, %v1381_v47  ;;  %v1384_v7 = vadd.f32 %v3792_v24, %v1192_v12  ;;  %v1198_v24 = vadd.f32 %v3806_v0, %v3755_v16  ;;  %v4070_v47 = vld [vmem:[#allocation16_spill] sm:$0xff] }
 0x14a   : > { %v3872_v18 = vpop.f32.mrf.mxu1  ;;  %v3874_v59 = vpop.f32.mrf.mxu0  ;;  %v1849_v41 = vadd.f32 %v3826_v35, %v1572_v52  ;;  %v1852_v35 = vadd.f32 %v3828_v62, %v1575_v4 }
 0x14b   : > { %v1576_v38 = vadd.f32 %v3843_v39, %v1384_v7  ;;  %v4066_v39 = vld [vmem:[#allocation18_spill] sm:$0xff] }
 0x14c   : > { %v3879_v36 = vpop.f32.mrf.mxu1  ;;  %v2853_v33 = vpop.f32.mrf.mxu0 }
 0x14d   : > { %v1853_v12 = vadd.f32 %v4070_v47, %v1576_v38  ;;  %v4077_v38 = vld [vmem:[#allocation12_spill] sm:$0xff] }
 0x14e   : > { %v2833_v22 = vpop.f32.mrf.mxu1  ;;  %v2118_v3 = vpop.f32.mrf.mxu0 }
 0x14f   : > { %v2023_v9 = vadd.f32 %v2833_v22, %v1847_v60 }
 0x150   : > { %v1942_v10 = vpop.f32.mrf.mxu1  ;;  %v2854_v31 = vpop.f32.mrf.mxu0 }
 0x151   : > { %v2199_v51 = vadd.f32 %v2853_v33, %v2023_v9  ;;  %v2021_v42 = vadd.f32 %v1942_v10, %v1845_v56  ;;  %v1386_v33 = vadd.f32 %v3788_v43, %v1194_v63  ;;  %v1193_v43 = vadd.f32 %v3802_v29, %v3753_v23 }
 0x152   : > { %v2834_v57 = vpop.f32.mrf.mxu1  ;;  %v2121_v25 = vpop.f32.mrf.mxu0  ;;  %v1387_v56 = vadd.f32 %v3796_v58, %v1195_v45  ;;  %v4072_v45 = vld [vmem:[#allocation6_spill] sm:$0xff] }
 0x153   : > { %v2254_v21 = vadd.f32 %v3891_v19, %v2199_v51  ;;  %v2197_v26 = vadd.f32 %v2118_v3, %v2021_v42  ;;  %v2024_v8 = vadd.f32 %v2834_v57, %v1848_v32  ;;  %v1578_v27 = vadd.f32 %v3838_v17, %v1386_v33  ;;  %v4061_v17 = vld [vmem:[#allocation14_spill] sm:$0xff]  ;;  %v4064_v32 = vld [vmem:[#allocation8_spill] sm:$0xff]  ;;  %v4065_v51 = vld [vmem:[#allocation15_spill] sm:$0xff] }
 0x154   : > { %v1945_v14 = vpop.f32.mrf.mxu1  ;;  %v2857_v20 = vpop.f32.mrf.mxu0  ;;  %v1850_v9 = vadd.f32 %v4061_v17, %v1573_v61  ;;  %v1385_v10 = vadd.f32 %v4062_v1, %v1193_v43  ;;  %v1579_v13 = vadd.f32 %v4066_v39, %v1387_v56 }
 0x155   : > { %2270 = vst [vmem:[%s3900_s28 + $0x10] sm:$0xff] %v2254_v21  ;;  %v2252_v55 = vadd.f32 %v3891_v19, %v2197_v26  ;;  %v2200_v2 = vadd.f32 %v2854_v31, %v2024_v8  ;;  %v2022_v49 = vadd.f32 %v1945_v14, %v1846_v40  ;;  %v4063_v31 = vld [vmem:[#allocation3_spill] sm:$0xff]  ;;  %v1855_v42 = vadd.f32 %v4065_v51, %v1578_v27  ;;  %v4068_v21 = vld [vmem:[#allocation4_spill] sm:$0xff]  ;;  %v4075_v27 = vld [vmem:[#allocation10_spill] sm:$0xff] }
 0x156   : > { %v2837_v54 = vpop.f32.mrf.mxu1  ;;  %v2134_v5 = vpop.f32.mrf.mxu0  ;;  %v1196_v58 = vadd.f32 %v4064_v32, %v4063_v31  ;;  %v4069_v26 = vld [vmem:[#allocation11_spill] sm:$0xff] }
 0x157   : > { %2268 = vst [vmem:[%s3900_s28] sm:$0xff] %v2252_v55  ;;  %v2255_v15 = vadd.f32 %v3891_v19, %v2200_v2  ;;  %v2198_v60 = vadd.f32 %v2121_v25, %v2022_v49  ;;  %v2027_v6 = vadd.f32 %v2837_v54, %v1851_v44  ;;  %v4067_v25 = vld [vmem:[#allocation5_spill] sm:$0xff]  ;;  %v1199_v8 = vadd.f32 %v4069_v26, %v4068_v21  ;;  %v4071_v49 = vld [vmem:[#allocation7_spill] sm:$0xff] }
 0x158   : > { %v1958_v48 = vpop.f32.mrf.mxu1  ;;  %v2858_v50 = vpop.f32.mrf.mxu0  ;;  %v1390_v40 = vadd.f32 %v4067_v25, %v1198_v24  ;;  %v1388_v33 = vadd.f32 %v4071_v49, %v1196_v58 }
 0x159   : > { %2271 = vst [vmem:[%s3900_s28 + $0x18] sm:$0xff] %v2255_v15  ;;  %v2253_v34 = vadd.f32 %v3891_v19, %v2198_v60  ;;  %v2203_v22 = vadd.f32 %v2857_v20, %v2027_v6  ;;  %v2025_v3 = vadd.f32 %v1958_v48, %v1849_v41  ;;  %v1577_v20 = vadd.f32 %v3852_v28, %v1385_v10  ;;  %v4073_v41 = vld [vmem:[#allocation13_spill] sm:$0xff] }
 0x15a   : > { %v2838_v23 = vpop.f32.mrf.mxu1  ;;  %v2137_v29 = vpop.f32.mrf.mxu0  ;;  %v1197_v54 = vadd.f32 %v4073_v41, %v4072_v45  ;;  %v4074_v60 = vld [vmem:[#allocation17_spill] sm:$0xff]  ;;  %v1391_v48 = vadd.f32 %v4075_v27, %v1199_v8 }
 0x15b   : > { %2269 = vst [vmem:[%s3900_s28 + $0x8] sm:$0xff] %v2253_v34  ;;  %v2258_v62 = vadd.f32 %v3891_v19, %v2203_v22  ;;  %v2201_v46 = vadd.f32 %v2134_v5, %v2025_v3  ;;  %v2028_v30 = vadd.f32 %v2838_v23, %v1852_v35  ;;  %v1582_v5 = vadd.f32 %v3857_v11, %v1390_v40  ;;  %v4076_v22 = vld [vmem:[#allocation19_spill] sm:$0xff]  ;;  %v4079_v10 = vld [vmem:[#allocation21_spill] sm:$0xff] }
 0x15c   : > { %v1961_v16 = vpop.f32.mrf.mxu1  ;;  %v2861_v0 = vpop.f32.mrf.mxu0  ;;  %v1856_v6 = vadd.f32 %v4074_v60, %v1579_v13  ;;  %v1854_v3 = vadd.f32 %v4076_v22, %v1577_v20  ;;  %v1389_v23 = vadd.f32 %v4077_v38, %v1197_v54 }
 0x15d   : > { %2274 = vst [vmem:[%s3900_s28 + $0x30] sm:$0xff] %v2258_v62  ;;  %v2256_v63 = vadd.f32 %v3891_v19, %v2201_v46  ;;  %v2204_v52 = vadd.f32 %v2858_v50, %v2028_v30  ;;  %v2026_v57 = vadd.f32 %v1961_v16, %v1850_v9  ;;  %v1580_v50 = vadd.f32 %v3863_v37, %v1388_v33 }
 0x15e   : > { %v2841_v44 = vpop.f32.mrf.mxu1  ;;  %v2150_v14 = vpop.f32.mrf.mxu0  ;;  %v1583_v46 = vadd.f32 %v3872_v18, %v1391_v48  ;;  %v1581_v51 = vadd.f32 %v3879_v36, %v1389_v23 }
 0x15f   : > { %2272 = vst [vmem:[%s3900_s28 + $0x20] sm:$0xff] %v2256_v63  ;;  %v2259_v4 = vadd.f32 %v3891_v19, %v2204_v52  ;;  %v2202_v55 = vadd.f32 %v2137_v29, %v2026_v57  ;;  %v2031_v2 = vadd.f32 %v2841_v44, %v1855_v42  ;;  %v4078_v29 = vld [vmem:[#allocation20_spill] sm:$0xff]  ;;  %v1857_v31 = vadd.f32 %v4079_v10, %v1580_v50 }
 0x160   : > { %v1974_v61 = vpop.f32.mrf.mxu1  ;;  %v2862_v15 = vpop.f32.mrf.mxu0  ;;  %v1859_v17 = vadd.f32 %v4078_v29, %v1582_v5  ;;  %v1860_v18 = vadd.f32 %v3865_v53, %v1583_v46  ;;  %v1858_v36 = vadd.f32 %v3874_v59, %v1581_v51 }
 0x161   : > { %2275 = vst [vmem:[%s3900_s28 + $0x38] sm:$0xff] %v2259_v4  ;;  %v2257_v28 = vadd.f32 %v3891_v19, %v2202_v55  ;;  %v2207_v7 = vadd.f32 %v2861_v0, %v2031_v2  ;;  %v2029_v43 = vadd.f32 %v1974_v61, %v1853_v12 }
 0x162   : > { %v2842_v35 = vpop.f32.mrf.mxu1  ;;  %v2153_v34 = vpop.f32.mrf.mxu0 }
 0x163   : > { %2273 = vst [vmem:[%s3900_s28 + $0x28] sm:$0xff] %v2257_v28  ;;  %v2262_v11 = vadd.f32 %v3891_v19, %v2207_v7  ;;  %v2205_v56 = vadd.f32 %v2150_v14, %v2029_v43  ;;  %v2032_v24 = vadd.f32 %v2842_v35, %v1856_v6 }
 0x164   : > { %v1977_v9 = vpop.f32.mrf.mxu1  ;;  %v2865_v62 = vpop.f32.mrf.mxu0 }
 0x165   : > { %2278 = vst [vmem:[%s3900_s28 + $0x50] sm:$0xff] %v2262_v11  ;;  %v2260_v37 = vadd.f32 %v3891_v19, %v2205_v56  ;;  %v2208_v30 = vadd.f32 %v2862_v15, %v2032_v24  ;;  %v2030_v1 = vadd.f32 %v1977_v9, %v1854_v3 }
 0x166   : > { %v2845_v32 = vpop.f32.mrf.mxu1  ;;  %v2166_v58 = vpop.f32.mrf.mxu0 }
 0x167   : > { %2276 = vst [vmem:[%s3900_s28 + $0x40] sm:$0xff] %v2260_v37  ;;  %v2263_v42 = vadd.f32 %v3891_v19, %v2208_v30  ;;  %v2206_v16 = vadd.f32 %v2153_v34, %v2030_v1  ;;  %v2035_v0 = vadd.f32 %v2845_v32, %v1859_v17 }
 0x168   : > { %v1990_v39 = vpop.f32.mrf.mxu1  ;;  %v2866_v25 = vpop.f32.mrf.mxu0 }
 0x169   : > { %2279 = vst [vmem:[%s3900_s28 + $0x58] sm:$0xff] %v2263_v42  ;;  %v2261_v13 = vadd.f32 %v3891_v19, %v2206_v16  ;;  %v2211_v63 = vadd.f32 %v2865_v62, %v2035_v0  ;;  %v2033_v52 = vadd.f32 %v1990_v39, %v1857_v31 }
 0x16a   : > { %v2846_v57 = vpop.f32.mrf.mxu1  ;;  %v2169_v44 = vpop.f32.mrf.mxu0 }
 0x16b   : > { %2277 = vst [vmem:[%s3900_s28 + $0x48] sm:$0xff] %v2261_v13  ;;  %v2266_v40 = vadd.f32 %v3891_v19, %v2211_v63  ;;  %v2209_v21 = vadd.f32 %v2166_v58, %v2033_v52  ;;  %v2036_v26 = vadd.f32 %v2846_v57, %v1860_v18 }
 0x16c   : > { %v1993_v8 = vpop.f32.mrf.mxu1 }
 0x16d   : > { %2282 = vst [vmem:[%s3900_s28 + $0x70] sm:$0xff] %v2266_v40  ;;  %v2264_v53 = vadd.f32 %v3891_v19, %v2209_v21  ;;  %v2212_v47 = vadd.f32 %v2866_v25, %v2036_v26  ;;  %v2034_v12 = vadd.f32 %v1993_v8, %v1858_v36 }
 0x16f   : > { %2280 = vst [vmem:[%s3900_s28 + $0x60] sm:$0xff] %v2264_v53  ;;  %v2267_v14 = vadd.f32 %v3891_v19, %v2212_v47  ;;  %v2210_v20 = vadd.f32 %v2169_v44, %v2034_v12 }
 0x171   : > { %2283 = vst [vmem:[%s3900_s28 + $0x78] sm:$0xff] %v2267_v14  ;;  %v2265_v59 = vadd.f32 %v3891_v19, %v2210_v20 }
 0x173   : > { %2281 = vst [vmem:[%s3900_s28 + $0x68] sm:$0xff] %v2265_v59 }
 0x174 PF: > { %s13_s16 = sadd.s32 1, %s2978_s16   ;;  %s4080_s12 = smov %s2970_s14 }
 0x175   : > { %p10_p7 = scmp.ge.s32.totalorder %s13_s16, 6   ;;  %s4081_s13 = smov %s2974_s15 }
 0x176   : > { %s4082_s14 = smov %s4085_s17  ;;  %s4083_s15 = smov %s4089_s18 }
 0x177   :  { %12 = sbr.rel (!%p10_p7) target bundleno = 3 (0x3), region = 77 }

</bundles_post_ra>
